<compile_context>
chip_gen: v5e
topology: v5e:2x2
jax: 0.10.0
libtpu: 0.0.40
codegen_flags: <defaults>
</compile_context>

<pallas_src>
import jax
import jax.numpy as jnp
from jax import lax
from jax.experimental import pallas as pl
from jax.experimental.pallas import tpu as pltpu


# ----------------------------------------------------------------------------
# Kernel 1: fused conv trunk (conv1..conv4 + BN + ReLU + pool + attention gate)
# ----------------------------------------------------------------------------
def features_kernel(p_ref, w1_ref, s1_ref, b1_ref,
                    w2_ref, s2_ref, b2_ref,
                    w3_ref, s3_ref, b3_ref,
                    w4_ref, s4_ref, b4_ref,
                    wa_ref, ba_ref, o_ref,
                    pad2_ref, pad3_ref, pad4_ref):
    f32 = jnp.float32
    bf16 = jnp.bfloat16

    def bn_relu_pool(acc, h, w, s_ref, b_ref):
        # acc: (h*w, c) f32 conv output -> folded BN + ReLU + 2x2 max-pool.
        c = acc.shape[-1]
        y = jnp.maximum(acc * s_ref[...] + b_ref[...], 0.0)
        y = y.reshape(h, w, c)
        # Pool rows first (major dim -> layout preserving, pure VPU max) ...
        y = y.reshape(h // 2, 2, w, c).max(axis=1)
        # ... then columns (sublane dim) on the already-halved data.
        y = y.reshape(h // 2, w // 2, 2, c).max(axis=2)
        return y                                            # (h//2, w//2, c)

    def store_padded(pad_ref, y):
        # Zero the whole buffer (keeps the halo correct for every grid step,
        # including megacore-sharded ones), then write the interior.
        h, w, _ = y.shape
        pad_ref[...] = jnp.zeros_like(pad_ref)
        pad_ref[1:h + 1, 1:w + 1, :] = y

    def conv3x3(pad_ref, w_ref):
        # 3x3 SAME conv as 9 shifted (h*w, cin) @ (cin, cout) MXU matmuls.
        hp, wp, cin = pad_ref.shape
        h, w = hp - 2, wp - 2
        cout = w_ref.shape[-1]
        acc = jnp.zeros((h * w, cout), f32)
        for t in range(9):
            dy, dx = t // 3, t % 3
            xs = pad_ref[dy:dy + h, dx:dx + w, :].reshape(h * w, cin)
            acc = acc + jnp.dot(xs.astype(bf16), w_ref[t],
                                preferred_element_type=f32)
        return acc, h, w

    # ---- layer 1: im2col'd input -> one bf16 MXU matmul (K = 9*Cin)
    h2p, w2p, _ = pad2_ref.shape
    h1, w1 = 2 * (h2p - 2), 2 * (w2p - 2)
    acc1 = jnp.dot(p_ref[0], w1_ref[...], preferred_element_type=f32)
    y1 = bn_relu_pool(acc1, h1, w1, s1_ref, b1_ref)
    store_padded(pad2_ref, y1)

    # ---- layer 2
    acc2, h2, w2 = conv3x3(pad2_ref, w2_ref)
    y2 = bn_relu_pool(acc2, h2, w2, s2_ref, b2_ref)
    store_padded(pad3_ref, y2)

    # ---- layer 3
    acc3, h3, w3 = conv3x3(pad3_ref, w3_ref)
    y3 = bn_relu_pool(acc3, h3, w3, s3_ref, b3_ref)
    store_padded(pad4_ref, y3)

    # ---- layer 4
    acc4, h4, w4 = conv3x3(pad4_ref, w4_ref)
    y4 = bn_relu_pool(acc4, h4, w4, s4_ref, b4_ref)          # (Hp, Wp, 256)

    # ---- 1x1 attention conv as VPU multiply + lane reduction, then gate.
    hp, wp, c4 = y4.shape
    z = y4.reshape(hp * wp, c4)
    att = jax.nn.sigmoid(
        jnp.sum(z * wa_ref[...], axis=-1, keepdims=True) + ba_ref[...])
    o_ref[0] = (z * att).astype(o_ref.dtype)                 # (HWp, 256)


def conv_features(patches, p, H, W):
    N, HW, K1 = patches.shape
    H2, W2 = H // 2, W // 2
    H3, W3 = H // 4, W // 4
    H4, W4 = H // 8, W // 8
    Hp, Wp = H // 16, W // 16

    def const(shape):
        return pl.BlockSpec(shape, lambda n, _s=len(shape): (0,) * _s)

    return pl.pallas_call(
        features_kernel,
        out_shape=jax.ShapeDtypeStruct((N, Hp * Wp, 256), jnp.bfloat16),
        grid_spec=pltpu.PrefetchScalarGridSpec(
            num_scalar_prefetch=0,
            grid=(N,),
            in_specs=[
                pl.BlockSpec((1, HW, K1), lambda n: (n, 0, 0)),
                const((K1, 32)), const((1, 32)), const((1, 32)),
                const((9, 32, 64)), const((1, 64)), const((1, 64)),
                const((9, 64, 128)), const((1, 128)), const((1, 128)),
                const((9, 128, 256)), const((1, 256)), const((1, 256)),
                const((1, 256)), const((1, 1)),
            ],
            out_specs=pl.BlockSpec((1, Hp * Wp, 256), lambda n: (n, 0, 0)),
            scratch_shapes=[
                pltpu.VMEM((H2 + 2, W2 + 2, 32), jnp.float32),
                pltpu.VMEM((H3 + 2, W3 + 2, 64), jnp.float32),
                pltpu.VMEM((H4 + 2, W4 + 2, 128), jnp.float32),
            ],
        ),
        compiler_params=pltpu.CompilerParams(
            dimension_semantics=("parallel",),         # v7x: 2 TCs share batch
            vmem_limit_bytes=48 * 1024 * 1024,
        ),
    )(patches, p["w1"], p["s1"], p["b1"],
      p["w2"], p["s2"], p["b2"],
      p["w3"], p["s3"], p["b3"],
      p["w4"], p["s4"], p["b4"],
      p["wa"], p["ba"])


# ----------------------------------------------------------------------------
# Kernel 2: head — fc1 (K-tiled) + BN1d + ReLU + fc2 + L2 normalize
# ----------------------------------------------------------------------------
def head_kernel(x_ref, w1_ref, s5_ref, b5_ref, w2_ref, b2_ref, o_ref, acc_ref):
    k = pl.program_id(0)

    @pl.when(k == 0)
    def _():
        acc_ref[...] = jnp.zeros_like(acc_ref)

    acc_ref[...] += jnp.dot(x_ref[...], w1_ref[...],
                            preferred_element_type=jnp.float32)

    @pl.when(k == pl.num_programs(0) - 1)
    def _():
        h = jnp.maximum(acc_ref[...] * s5_ref[...] + b5_ref[...], 0.0)
        e = jnp.dot(h.astype(w2_ref.dtype), w2_ref[...],
                    preferred_element_type=jnp.float32) + b2_ref[...]
        # F.normalize(p=2, dim=1, eps=1e-12) via rsqrt (EUP slot is idle here).
        inv = lax.rsqrt(jnp.maximum(jnp.sum(e * e, axis=-1, keepdims=True),
                                    1e-24))
        o_ref[...] = e * inv


def head(xf, p):
    N, F = xf.shape
    D = p["w_fc1"].shape[1]
    E = p["w_fc2"].shape[1]
    # K-tile the fc1 contraction so only one (tk, D) weight slice is resident.
    tk = 2048 if (F % 2048 == 0 and F > 2048) else F
    kt = F // tk
    return pl.pallas_call(
        head_kernel,
        out_shape=jax.ShapeDtypeStruct((N, E), jnp.float32),
        grid_spec=pltpu.PrefetchScalarGridSpec(
            num_scalar_prefetch=0,
            grid=(kt,),
            in_specs=[
                pl.BlockSpec((N, tk), lambda k: (0, k)),
                pl.BlockSpec((tk, D), lambda k: (k, 0)),
                pl.BlockSpec((1, D), lambda k: (0, 0)),
                pl.BlockSpec((1, D), lambda k: (0, 0)),
                pl.BlockSpec((D, E), lambda k: (0, 0)),
                pl.BlockSpec((1, E), lambda k: (0, 0)),
            ],
            out_specs=pl.BlockSpec((N, E), lambda k: (0, 0)),
            scratch_shapes=[pltpu.VMEM((N, D), jnp.float32)],
        ),
        compiler_params=pltpu.CompilerParams(
            dimension_semantics=("arbitrary",)),
    )(xf, p["w_fc1"], p["s5"], p["b5"], p["w_fc2"], p["b_fc2"])


# ----------------------------------------------------------------------------
# Full forward
# ----------------------------------------------------------------------------
def audio_fingerprinter_forward(x_nchw, p):
    N, Cin, H, W = x_nchw.shape
    # NCHW -> NHWC, then wrapper-side im2col for the Cin=1 first conv
    # (layout plumbing only, zero FLOPs); K = 9*Cin, tap-major / cin-minor.
    x = jnp.transpose(x_nchw, (0, 2, 3, 1))
    xp = jnp.pad(x, ((0, 0), (1, 1), (1, 1), (0, 0)))
    taps = [xp[:, dy:dy + H, dx:dx + W, :] for dy in range(3) for dx in range(3)]
    patches = jnp.stack(taps, axis=3).reshape(N, H * W, 9 * Cin)
    patches = patches.astype(jnp.bfloat16)

    feats = conv_features(patches, p, H, W)       # (N, Hp*Wp, 256), gated
    xf = feats.reshape(N, -1)                     # (s, c) order matches w_fc1
    return head(xf, p)


# ----------------------------------------------------------------------------
# Deterministic parameters (eval-mode BN stats folded into scale/bias)
# ----------------------------------------------------------------------------
def init_params(key, emb_dim, cin, H, W):
    eps = 1e-5
    bf16 = jnp.bfloat16
    chans = [cin, 32, 64, 128, 256]
    keys = jax.random.split(key, 24)
    ki = iter(range(24))
    p = {"ref_convs": []}

    for i in range(4):
        ci, co = chans[i], chans[i + 1]
        w = jax.random.normal(keys[next(ki)], (co, ci, 3, 3), jnp.float32) * (ci * 9) ** -0.5
        b = 0.01 * jax.random.normal(keys[next(ki)], (co,), jnp.float32)
        gamma = 1.0 + 0.1 * jax.random.normal(keys[next(ki)], (co,), jnp.float32)
        beta = 0.1 * jax.random.normal(keys[next(ki)], (co,), jnp.float32)
        scale = gamma / jnp.sqrt(1.0 + eps)        # BN2d eval: mean=0, var=1
        bias = beta + scale * b
        p["ref_convs"].append((w, scale, bias))
        wk = jnp.transpose(w, (2, 3, 1, 0))        # (3, 3, ci, co), tap-major
        if i == 0:
            p["w1"] = wk.reshape(9 * ci, co).astype(bf16)   # im2col weight
        else:
            p[f"w{i + 1}"] = wk.reshape(9, ci, co).astype(bf16)
        p[f"s{i + 1}"] = scale.reshape(1, co)
        p[f"b{i + 1}"] = bias.reshape(1, co)

    Hp, Wp = H // 16, W // 16
    HW, C, D = Hp * Wp, 256, 512
    F = C * HW                                     # flattened_size

    wa = jax.random.normal(keys[next(ki)], (C,), jnp.float32) * C ** -0.5
    ba = 0.01 * jax.random.normal(keys[next(ki)], (1,), jnp.float32)
    p["wa"] = wa.reshape(1, C)
    p["ba"] = ba.reshape(1, 1)
    p["ref_wa"] = wa
    p["ref_ba"] = ba[0]

    W1 = jax.random.normal(keys[next(ki)], (D, F), jnp.float32) * F ** -0.5
    b1 = 0.01 * jax.random.normal(keys[next(ki)], (D,), jnp.float32)
    gamma5 = 1.0 + 0.1 * jax.random.normal(keys[next(ki)], (D,), jnp.float32)
    beta5 = 0.1 * jax.random.normal(keys[next(ki)], (D,), jnp.float32)
    s5 = gamma5 / jnp.sqrt(1.0 + eps)              # BN1d eval
    b5 = beta5 + s5 * b1
    W2 = jax.random.normal(keys[next(ki)], (emb_dim, D), jnp.float32) * D ** -0.5
    b2 = 0.01 * jax.random.normal(keys[next(ki)], (emb_dim,), jnp.float32)

    # fc1 weight permuted so kernel row index s*C + c matches the PyTorch
    # NCHW flatten index c*HW + s.
    w_fc1 = jnp.transpose(W1.reshape(D, C, HW), (2, 1, 0)).reshape(HW * C, D)
    p["w_fc1"] = w_fc1.astype(bf16)
    p["s5"] = s5.reshape(1, D)
    p["b5"] = b5.reshape(1, D)
    p["w_fc2"] = W2.T.astype(bf16)
    p["b_fc2"] = b2.reshape(1, emb_dim)
    p["ref_W1"] = W1
    p["ref_W2"] = W2
    return p


# ----------------------------------------------------------------------------
# Pure-JAX f32 reference (validation only)
# ----------------------------------------------------------------------------
def reference_forward(x_nchw, p):
    y = x_nchw
    for (w, scale, bias) in p["ref_convs"]:
        y = lax.conv_general_dilated(
            y, w, (1, 1), "SAME",
            dimension_numbers=("NCHW", "OIHW", "NCHW"))
        y = y * scale[None, :, None, None] + bias[None, :, None, None]
        y = jnp.maximum(y, 0.0)
        y = lax.reduce_window(y, -jnp.inf, lax.max,
                              (1, 1, 2, 2), (1, 1, 2, 2), "VALID")
    att = jax.nn.sigmoid(jnp.einsum("nchw,c->nhw", y, p["ref_wa"]) + p["ref_ba"])
    y = y * att[:, None, :, :]
    flat = y.reshape(y.shape[0], -1)
    h = jnp.maximum(flat @ p["ref_W1"].T * p["s5"] + p["b5"], 0.0)
    e = h @ p["ref_W2"].T + p["b_fc2"]
    nrm = jnp.sqrt(jnp.sum(e * e, axis=1, keepdims=True))
    return e / jnp.maximum(nrm, 1e-12)


# ----------------------------------------------------------------------------
if __name__ == "__main__":
    # Small shapes consistent with the module (H, W multiples of 16).
    N, Cin, H, W, E = 2, 1, 16, 32, 128
    key = jax.random.PRNGKey(0)
    kx, kp = jax.random.split(key)
    x = jax.random.normal(kx, (N, Cin, H, W), jnp.float32)
    params = init_params(kp, E, Cin, H, W)

    fwd = jax.jit(audio_fingerprinter_forward)
    out = jax.block_until_ready(fwd(x, params))

    assert out.shape == (N, E)
    assert bool(jnp.all(jnp.isfinite(out)))

    ref = reference_forward(x, params)
    err = float(jnp.max(jnp.abs(out - ref)))
    # bf16 MXU operands (with f32 accumulation) introduce ~1e-3..1e-2 drift
    # vs the f32 reference; embeddings are L2-normalized (|values| ~ 0.1).
    assert err < 5e-2, f"max abs error vs reference: {err}"

    print("KERNEL_OK")
</pallas_src>

<mosaic_0001>
module attributes {stable_mosaic.version = 11 : i64} {
  func.func @features_kernel(%arg0: i32, %arg1: memref<1x512x9xbf16, #tpu.memory_space<vmem>>, %arg2: memref<9x32xbf16, #tpu.memory_space<vmem>>, %arg3: memref<1x32xf32, #tpu.memory_space<vmem>>, %arg4: memref<1x32xf32, #tpu.memory_space<vmem>>, %arg5: memref<9x32x64xbf16, #tpu.memory_space<vmem>>, %arg6: memref<1x64xf32, #tpu.memory_space<vmem>>, %arg7: memref<1x64xf32, #tpu.memory_space<vmem>>, %arg8: memref<9x64x128xbf16, #tpu.memory_space<vmem>>, %arg9: memref<1x128xf32, #tpu.memory_space<vmem>>, %arg10: memref<1x128xf32, #tpu.memory_space<vmem>>, %arg11: memref<9x128x256xbf16, #tpu.memory_space<vmem>>, %arg12: memref<1x256xf32, #tpu.memory_space<vmem>>, %arg13: memref<1x256xf32, #tpu.memory_space<vmem>>, %arg14: memref<1x256xf32, #tpu.memory_space<vmem>>, %arg15: memref<1x1xf32, #tpu.memory_space<vmem>>, %arg16: memref<1x2x256xbf16, #tpu.memory_space<vmem>>, %arg17: memref<10x18x32xf32, #tpu.memory_space<vmem>>, %arg18: memref<6x10x64xf32, #tpu.memory_space<vmem>>, %arg19: memref<4x6x128xf32, #tpu.memory_space<vmem>>) attributes {dimension_semantics = [#tpu.dimension_semantics<parallel>], iteration_bounds = array<i64: 2>, scalar_prefetch = 0 : i64, scratch_operands = 3 : i64, tpu.core_type = #tpu.core_type<tc>, window_params = [{transform_indices = @transform_0, window_bounds = array<i64: 1, 512, 9>}, {pipeline_mode = #tpu.pipeline_mode<synchronous>, transform_indices = @transform_1, window_bounds = array<i64: 9, 32>}, {pipeline_mode = #tpu.pipeline_mode<synchronous>, transform_indices = @transform_2, window_bounds = array<i64: 1, 32>}, {pipeline_mode = #tpu.pipeline_mode<synchronous>, transform_indices = @transform_3, window_bounds = array<i64: 1, 32>}, {pipeline_mode = #tpu.pipeline_mode<synchronous>, transform_indices = @transform_4, window_bounds = array<i64: 9, 32, 64>}, {pipeline_mode = #tpu.pipeline_mode<synchronous>, transform_indices = @transform_5, window_bounds = array<i64: 1, 64>}, {pipeline_mode = #tpu.pipeline_mode<synchronous>, transform_indices = @transform_6, window_bounds = array<i64: 1, 64>}, {pipeline_mode = #tpu.pipeline_mode<synchronous>, transform_indices = @transform_7, window_bounds = array<i64: 9, 64, 128>}, {pipeline_mode = #tpu.pipeline_mode<synchronous>, transform_indices = @transform_8, window_bounds = array<i64: 1, 128>}, {pipeline_mode = #tpu.pipeline_mode<synchronous>, transform_indices = @transform_9, window_bounds = array<i64: 1, 128>}, {pipeline_mode = #tpu.pipeline_mode<synchronous>, transform_indices = @transform_10, window_bounds = array<i64: 9, 128, 256>}, {pipeline_mode = #tpu.pipeline_mode<synchronous>, transform_indices = @transform_11, window_bounds = array<i64: 1, 256>}, {pipeline_mode = #tpu.pipeline_mode<synchronous>, transform_indices = @transform_12, window_bounds = array<i64: 1, 256>}, {pipeline_mode = #tpu.pipeline_mode<synchronous>, transform_indices = @transform_13, window_bounds = array<i64: 1, 256>}, {pipeline_mode = #tpu.pipeline_mode<synchronous>, transform_indices = @transform_14, window_bounds = array<i64: 1, 1>}, {transform_indices = @transform_15, window_bounds = array<i64: 1, 2, 256>}]} {
    %c0 = arith.constant 0 : index
    %c0_0 = arith.constant 0 : index
    %c0_1 = arith.constant 0 : index
    %0 = vector.load %arg1[%c0, %c0_0, %c0_1] : memref<1x512x9xbf16, #tpu.memory_space<vmem>>, vector<1x512x9xbf16>
    %1 = vector.shape_cast %0 : vector<1x512x9xbf16> to vector<512x9xbf16>
    %c0_2 = arith.constant 0 : index
    %c0_3 = arith.constant 0 : index
    %2 = vector.load %arg2[%c0_2, %c0_3] : memref<9x32xbf16, #tpu.memory_space<vmem>>, vector<9x32xbf16>
    %cst = arith.constant dense<0.000000e+00> : vector<512x32xf32>
    %3 = tpu.matmul %1, %2, %cst {dimension_numbers = #tpu.dot_dimension_numbers<[1], [0], [0], [1], [0, 0, 1, 1], [], []>} : vector<512x9xbf16>, vector<9x32xbf16>, vector<512x32xf32> -> vector<512x32xf32>
    %c0_4 = arith.constant 0 : index
    %c0_5 = arith.constant 0 : index
    %4 = vector.load %arg3[%c0_4, %c0_5] : memref<1x32xf32, #tpu.memory_space<vmem>>, vector<1x32xf32>
    %5 = vector.broadcast %4 : vector<1x32xf32> to vector<512x32xf32>
    %6 = arith.mulf %3, %5 : vector<512x32xf32>
    %c0_6 = arith.constant 0 : index
    %c0_7 = arith.constant 0 : index
    %7 = vector.load %arg4[%c0_6, %c0_7] : memref<1x32xf32, #tpu.memory_space<vmem>>, vector<1x32xf32>
    %8 = vector.broadcast %7 : vector<1x32xf32> to vector<512x32xf32>
    %9 = arith.addf %6, %8 : vector<512x32xf32>
    %cst_8 = arith.constant 0.000000e+00 : f32
    %10 = vector.broadcast %cst_8 : f32 to vector<512x32xf32>
    %11 = arith.maximumf %9, %10 : vector<512x32xf32>
    %12 = vector.shape_cast %11 : vector<512x32xf32> to vector<16x32x32xf32>
    %13 = vector.shape_cast %12 : vector<16x32x32xf32> to vector<8x2x32x32xf32>
    %cst_9 = arith.constant dense<0xFF800000> : vector<8x32x32xf32>
    %14 = vector.multi_reduction <maximumf>, %13, %cst_9 [1] : vector<8x2x32x32xf32> to vector<8x32x32xf32>
    %15 = vector.shape_cast %14 : vector<8x32x32xf32> to vector<8x16x2x32xf32>
    %cst_10 = arith.constant dense<0xFF800000> : vector<8x16x32xf32>
    %16 = vector.multi_reduction <maximumf>, %15, %cst_10 [2] : vector<8x16x2x32xf32> to vector<8x16x32xf32>
    %cst_11 = arith.constant 0.000000e+00 : f32
    %17 = vector.broadcast %cst_11 : f32 to vector<10x18x32xf32>
    %c0_12 = arith.constant 0 : index
    %c0_13 = arith.constant 0 : index
    %c0_14 = arith.constant 0 : index
    %18 = vector.load %arg17[%c0_12, %c0_13, %c0_14] : memref<10x18x32xf32, #tpu.memory_space<vmem>>, vector<10x18x32xf32>
    tpu.vector_store %arg17[%c0_12, %c0_13, %c0_14], %17 {strides = array<i32>} : memref<10x18x32xf32, #tpu.memory_space<vmem>>, vector<10x18x32xf32>,
    %c1 = arith.constant 1 : index
    %c1_15 = arith.constant 1 : index
    %c0_16 = arith.constant 0 : index
    %19 = vector.load %arg17[%c1, %c1_15, %c0_16] : memref<10x18x32xf32, #tpu.memory_space<vmem>>, vector<8x16x32xf32>
    tpu.vector_store %arg17[%c1, %c1_15, %c0_16], %16 {strides = array<i32>} : memref<10x18x32xf32, #tpu.memory_space<vmem>>, vector<8x16x32xf32>,
    %cst_17 = arith.constant 0.000000e+00 : f32
    %20 = vector.broadcast %cst_17 : f32 to vector<128x64xf32>
    %c0_18 = arith.constant 0 : index
    %c0_19 = arith.constant 0 : index
    %c0_20 = arith.constant 0 : index
    %21 = vector.load %arg17[%c0_18, %c0_19, %c0_20] : memref<10x18x32xf32, #tpu.memory_space<vmem>>, vector<8x16x32xf32>
    %22 = vector.shape_cast %21 : vector<8x16x32xf32> to vector<128x32xf32>
    %23 = arith.truncf %22 : vector<128x32xf32> to vector<128x32xbf16>
    %c0_21 = arith.constant 0 : index
    %c0_22 = arith.constant 0 : index
    %c0_23 = arith.constant 0 : index
    %24 = vector.load %arg5[%c0_21, %c0_22, %c0_23] : memref<9x32x64xbf16, #tpu.memory_space<vmem>>, vector<1x32x64xbf16>
    %25 = vector.shape_cast %24 : vector<1x32x64xbf16> to vector<32x64xbf16>
    %cst_24 = arith.constant dense<0.000000e+00> : vector<128x64xf32>
    %26 = tpu.matmul %23, %25, %cst_24 {dimension_numbers = #tpu.dot_dimension_numbers<[1], [0], [0], [1], [0, 0, 1, 1], [], []>} : vector<128x32xbf16>, vector<32x64xbf16>, vector<128x64xf32> -> vector<128x64xf32>
    %27 = arith.addf %20, %26 : vector<128x64xf32>
    %c0_25 = arith.constant 0 : index
    %c1_26 = arith.constant 1 : index
    %c0_27 = arith.constant 0 : index
    %28 = vector.load %arg17[%c0_25, %c1_26, %c0_27] : memref<10x18x32xf32, #tpu.memory_space<vmem>>, vector<8x16x32xf32>
    %29 = vector.shape_cast %28 : vector<8x16x32xf32> to vector<128x32xf32>
    %30 = arith.truncf %29 : vector<128x32xf32> to vector<128x32xbf16>
    %c1_28 = arith.constant 1 : index
    %c0_29 = arith.constant 0 : index
    %c0_30 = arith.constant 0 : index
    %31 = vector.load %arg5[%c1_28, %c0_29, %c0_30] : memref<9x32x64xbf16, #tpu.memory_space<vmem>>, vector<1x32x64xbf16>
    %32 = vector.shape_cast %31 : vector<1x32x64xbf16> to vector<32x64xbf16>
    %cst_31 = arith.constant dense<0.000000e+00> : vector<128x64xf32>
    %33 = tpu.matmul %30, %32, %cst_31 {dimension_numbers = #tpu.dot_dimension_numbers<[1], [0], [0], [1], [0, 0, 1, 1], [], []>} : vector<128x32xbf16>, vector<32x64xbf16>, vector<128x64xf32> -> vector<128x64xf32>
    %34 = arith.addf %27, %33 : vector<128x64xf32>
    %c0_32 = arith.constant 0 : index
    %c2 = arith.constant 2 : index
    %c0_33 = arith.constant 0 : index
    %35 = vector.load %arg17[%c0_32, %c2, %c0_33] : memref<10x18x32xf32, #tpu.memory_space<vmem>>, vector<8x16x32xf32>
    %36 = vector.shape_cast %35 : vector<8x16x32xf32> to vector<128x32xf32>
    %37 = arith.truncf %36 : vector<128x32xf32> to vector<128x32xbf16>
    %c2_34 = arith.constant 2 : index
    %c0_35 = arith.constant 0 : index
    %c0_36 = arith.constant 0 : index
    %38 = vector.load %arg5[%c2_34, %c0_35, %c0_36] : memref<9x32x64xbf16, #tpu.memory_space<vmem>>, vector<1x32x64xbf16>
    %39 = vector.shape_cast %38 : vector<1x32x64xbf16> to vector<32x64xbf16>
    %cst_37 = arith.constant dense<0.000000e+00> : vector<128x64xf32>
    %40 = tpu.matmul %37, %39, %cst_37 {dimension_numbers = #tpu.dot_dimension_numbers<[1], [0], [0], [1], [0, 0, 1, 1], [], []>} : vector<128x32xbf16>, vector<32x64xbf16>, vector<128x64xf32> -> vector<128x64xf32>
    %41 = arith.addf %34, %40 : vector<128x64xf32>
    %c1_38 = arith.constant 1 : index
    %c0_39 = arith.constant 0 : index
    %c0_40 = arith.constant 0 : index
    %42 = vector.load %arg17[%c1_38, %c0_39, %c0_40] : memref<10x18x32xf32, #tpu.memory_space<vmem>>, vector<8x16x32xf32>
    %43 = vector.shape_cast %42 : vector<8x16x32xf32> to vector<128x32xf32>
    %44 = arith.truncf %43 : vector<128x32xf32> to vector<128x32xbf16>
    %c3 = arith.constant 3 : index
    %c0_41 = arith.constant 0 : index
    %c0_42 = arith.constant 0 : index
    %45 = vector.load %arg5[%c3, %c0_41, %c0_42] : memref<9x32x64xbf16, #tpu.memory_space<vmem>>, vector<1x32x64xbf16>
    %46 = vector.shape_cast %45 : vector<1x32x64xbf16> to vector<32x64xbf16>
    %cst_43 = arith.constant dense<0.000000e+00> : vector<128x64xf32>
    %47 = tpu.matmul %44, %46, %cst_43 {dimension_numbers = #tpu.dot_dimension_numbers<[1], [0], [0], [1], [0, 0, 1, 1], [], []>} : vector<128x32xbf16>, vector<32x64xbf16>, vector<128x64xf32> -> vector<128x64xf32>
    %48 = arith.addf %41, %47 : vector<128x64xf32>
    %c1_44 = arith.constant 1 : index
    %c1_45 = arith.constant 1 : index
    %c0_46 = arith.constant 0 : index
    %49 = vector.load %arg17[%c1_44, %c1_45, %c0_46] : memref<10x18x32xf32, #tpu.memory_space<vmem>>, vector<8x16x32xf32>
    %50 = vector.shape_cast %49 : vector<8x16x32xf32> to vector<128x32xf32>
    %51 = arith.truncf %50 : vector<128x32xf32> to vector<128x32xbf16>
    %c4 = arith.constant 4 : index
    %c0_47 = arith.constant 0 : index
    %c0_48 = arith.constant 0 : index
    %52 = vector.load %arg5[%c4, %c0_47, %c0_48] : memref<9x32x64xbf16, #tpu.memory_space<vmem>>, vector<1x32x64xbf16>
    %53 = vector.shape_cast %52 : vector<1x32x64xbf16> to vector<32x64xbf16>
    %cst_49 = arith.constant dense<0.000000e+00> : vector<128x64xf32>
    %54 = tpu.matmul %51, %53, %cst_49 {dimension_numbers = #tpu.dot_dimension_numbers<[1], [0], [0], [1], [0, 0, 1, 1], [], []>} : vector<128x32xbf16>, vector<32x64xbf16>, vector<128x64xf32> -> vector<128x64xf32>
    %55 = arith.addf %48, %54 : vector<128x64xf32>
    %c1_50 = arith.constant 1 : index
    %c2_51 = arith.constant 2 : index
    %c0_52 = arith.constant 0 : index
    %56 = vector.load %arg17[%c1_50, %c2_51, %c0_52] : memref<10x18x32xf32, #tpu.memory_space<vmem>>, vector<8x16x32xf32>
    %57 = vector.shape_cast %56 : vector<8x16x32xf32> to vector<128x32xf32>
    %58 = arith.truncf %57 : vector<128x32xf32> to vector<128x32xbf16>
    %c5 = arith.constant 5 : index
    %c0_53 = arith.constant 0 : index
    %c0_54 = arith.constant 0 : index
    %59 = vector.load %arg5[%c5, %c0_53, %c0_54] : memref<9x32x64xbf16, #tpu.memory_space<vmem>>, vector<1x32x64xbf16>
    %60 = vector.shape_cast %59 : vector<1x32x64xbf16> to vector<32x64xbf16>
    %cst_55 = arith.constant dense<0.000000e+00> : vector<128x64xf32>
    %61 = tpu.matmul %58, %60, %cst_55 {dimension_numbers = #tpu.dot_dimension_numbers<[1], [0], [0], [1], [0, 0, 1, 1], [], []>} : vector<128x32xbf16>, vector<32x64xbf16>, vector<128x64xf32> -> vector<128x64xf32>
    %62 = arith.addf %55, %61 : vector<128x64xf32>
    %c2_56 = arith.constant 2 : index
    %c0_57 = arith.constant 0 : index
    %c0_58 = arith.constant 0 : index
    %63 = vector.load %arg17[%c2_56, %c0_57, %c0_58] : memref<10x18x32xf32, #tpu.memory_space<vmem>>, vector<8x16x32xf32>
    %64 = vector.shape_cast %63 : vector<8x16x32xf32> to vector<128x32xf32>
    %65 = arith.truncf %64 : vector<128x32xf32> to vector<128x32xbf16>
    %c6 = arith.constant 6 : index
    %c0_59 = arith.constant 0 : index
    %c0_60 = arith.constant 0 : index
    %66 = vector.load %arg5[%c6, %c0_59, %c0_60] : memref<9x32x64xbf16, #tpu.memory_space<vmem>>, vector<1x32x64xbf16>
    %67 = vector.shape_cast %66 : vector<1x32x64xbf16> to vector<32x64xbf16>
    %cst_61 = arith.constant dense<0.000000e+00> : vector<128x64xf32>
    %68 = tpu.matmul %65, %67, %cst_61 {dimension_numbers = #tpu.dot_dimension_numbers<[1], [0], [0], [1], [0, 0, 1, 1], [], []>} : vector<128x32xbf16>, vector<32x64xbf16>, vector<128x64xf32> -> vector<128x64xf32>
    %69 = arith.addf %62, %68 : vector<128x64xf32>
    %c2_62 = arith.constant 2 : index
    %c1_63 = arith.constant 1 : index
    %c0_64 = arith.constant 0 : index
    %70 = vector.load %arg17[%c2_62, %c1_63, %c0_64] : memref<10x18x32xf32, #tpu.memory_space<vmem>>, vector<8x16x32xf32>
    %71 = vector.shape_cast %70 : vector<8x16x32xf32> to vector<128x32xf32>
    %72 = arith.truncf %71 : vector<128x32xf32> to vector<128x32xbf16>
    %c7 = arith.constant 7 : index
    %c0_65 = arith.constant 0 : index
    %c0_66 = arith.constant 0 : index
    %73 = vector.load %arg5[%c7, %c0_65, %c0_66] : memref<9x32x64xbf16, #tpu.memory_space<vmem>>, vector<1x32x64xbf16>
    %74 = vector.shape_cast %73 : vector<1x32x64xbf16> to vector<32x64xbf16>
    %cst_67 = arith.constant dense<0.000000e+00> : vector<128x64xf32>
    %75 = tpu.matmul %72, %74, %cst_67 {dimension_numbers = #tpu.dot_dimension_numbers<[1], [0], [0], [1], [0, 0, 1, 1], [], []>} : vector<128x32xbf16>, vector<32x64xbf16>, vector<128x64xf32> -> vector<128x64xf32>
    %76 = arith.addf %69, %75 : vector<128x64xf32>
    %c2_68 = arith.constant 2 : index
    %c2_69 = arith.constant 2 : index
    %c0_70 = arith.constant 0 : index
    %77 = vector.load %arg17[%c2_68, %c2_69, %c0_70] : memref<10x18x32xf32, #tpu.memory_space<vmem>>, vector<8x16x32xf32>
    %78 = vector.shape_cast %77 : vector<8x16x32xf32> to vector<128x32xf32>
    %79 = arith.truncf %78 : vector<128x32xf32> to vector<128x32xbf16>
    %c8 = arith.constant 8 : index
    %c0_71 = arith.constant 0 : index
    %c0_72 = arith.constant 0 : index
    %80 = vector.load %arg5[%c8, %c0_71, %c0_72] : memref<9x32x64xbf16, #tpu.memory_space<vmem>>, vector<1x32x64xbf16>
    %81 = vector.shape_cast %80 : vector<1x32x64xbf16> to vector<32x64xbf16>
    %cst_73 = arith.constant dense<0.000000e+00> : vector<128x64xf32>
    %82 = tpu.matmul %79, %81, %cst_73 {dimension_numbers = #tpu.dot_dimension_numbers<[1], [0], [0], [1], [0, 0, 1, 1], [], []>} : vector<128x32xbf16>, vector<32x64xbf16>, vector<128x64xf32> -> vector<128x64xf32>
    %83 = arith.addf %76, %82 : vector<128x64xf32>
    %c0_74 = arith.constant 0 : index
    %c0_75 = arith.constant 0 : index
    %84 = vector.load %arg6[%c0_74, %c0_75] : memref<1x64xf32, #tpu.memory_space<vmem>>, vector<1x64xf32>
    %85 = vector.broadcast %84 : vector<1x64xf32> to vector<128x64xf32>
    %86 = arith.mulf %83, %85 : vector<128x64xf32>
    %c0_76 = arith.constant 0 : index
    %c0_77 = arith.constant 0 : index
    %87 = vector.load %arg7[%c0_76, %c0_77] : memref<1x64xf32, #tpu.memory_space<vmem>>, vector<1x64xf32>
    %88 = vector.broadcast %87 : vector<1x64xf32> to vector<128x64xf32>
    %89 = arith.addf %86, %88 : vector<128x64xf32>
    %cst_78 = arith.constant 0.000000e+00 : f32
    %90 = vector.broadcast %cst_78 : f32 to vector<128x64xf32>
    %91 = arith.maximumf %89, %90 : vector<128x64xf32>
    %92 = vector.shape_cast %91 : vector<128x64xf32> to vector<8x16x64xf32>
    %93 = vector.shape_cast %92 : vector<8x16x64xf32> to vector<4x2x16x64xf32>
    %cst_79 = arith.constant dense<0xFF800000> : vector<4x16x64xf32>
    %94 = vector.multi_reduction <maximumf>, %93, %cst_79 [1] : vector<4x2x16x64xf32> to vector<4x16x64xf32>
    %95 = vector.shape_cast %94 : vector<4x16x64xf32> to vector<4x8x2x64xf32>
    %cst_80 = arith.constant dense<0xFF800000> : vector<4x8x64xf32>
    %96 = vector.multi_reduction <maximumf>, %95, %cst_80 [2] : vector<4x8x2x64xf32> to vector<4x8x64xf32>
    %cst_81 = arith.constant 0.000000e+00 : f32
    %97 = vector.broadcast %cst_81 : f32 to vector<6x10x64xf32>
    %c0_82 = arith.constant 0 : index
    %c0_83 = arith.constant 0 : index
    %c0_84 = arith.constant 0 : index
    %98 = vector.load %arg18[%c0_82, %c0_83, %c0_84] : memref<6x10x64xf32, #tpu.memory_space<vmem>>, vector<6x10x64xf32>
    tpu.vector_store %arg18[%c0_82, %c0_83, %c0_84], %97 {strides = array<i32>} : memref<6x10x64xf32, #tpu.memory_space<vmem>>, vector<6x10x64xf32>,
    %c1_85 = arith.constant 1 : index
    %c1_86 = arith.constant 1 : index
    %c0_87 = arith.constant 0 : index
    %99 = vector.load %arg18[%c1_85, %c1_86, %c0_87] : memref<6x10x64xf32, #tpu.memory_space<vmem>>, vector<4x8x64xf32>
    tpu.vector_store %arg18[%c1_85, %c1_86, %c0_87], %96 {strides = array<i32>} : memref<6x10x64xf32, #tpu.memory_space<vmem>>, vector<4x8x64xf32>,
    %cst_88 = arith.constant 0.000000e+00 : f32
    %100 = vector.broadcast %cst_88 : f32 to vector<32x128xf32>
    %c0_89 = arith.constant 0 : index
    %c0_90 = arith.constant 0 : index
    %c0_91 = arith.constant 0 : index
    %101 = vector.load %arg18[%c0_89, %c0_90, %c0_91] : memref<6x10x64xf32, #tpu.memory_space<vmem>>, vector<4x8x64xf32>
    %102 = vector.shape_cast %101 : vector<4x8x64xf32> to vector<32x64xf32>
    %103 = arith.truncf %102 : vector<32x64xf32> to vector<32x64xbf16>
    %c0_92 = arith.constant 0 : index
    %c0_93 = arith.constant 0 : index
    %c0_94 = arith.constant 0 : index
    %104 = vector.load %arg8[%c0_92, %c0_93, %c0_94] : memref<9x64x128xbf16, #tpu.memory_space<vmem>>, vector<1x64x128xbf16>
    %105 = vector.shape_cast %104 : vector<1x64x128xbf16> to vector<64x128xbf16>
    %cst_95 = arith.constant dense<0.000000e+00> : vector<32x128xf32>
    %106 = tpu.matmul %103, %105, %cst_95 {dimension_numbers = #tpu.dot_dimension_numbers<[1], [0], [0], [1], [0, 0, 1, 1], [], []>} : vector<32x64xbf16>, vector<64x128xbf16>, vector<32x128xf32> -> vector<32x128xf32>
    %107 = arith.addf %100, %106 : vector<32x128xf32>
    %c0_96 = arith.constant 0 : index
    %c1_97 = arith.constant 1 : index
    %c0_98 = arith.constant 0 : index
    %108 = vector.load %arg18[%c0_96, %c1_97, %c0_98] : memref<6x10x64xf32, #tpu.memory_space<vmem>>, vector<4x8x64xf32>
    %109 = vector.shape_cast %108 : vector<4x8x64xf32> to vector<32x64xf32>
    %110 = arith.truncf %109 : vector<32x64xf32> to vector<32x64xbf16>
    %c1_99 = arith.constant 1 : index
    %c0_100 = arith.constant 0 : index
    %c0_101 = arith.constant 0 : index
    %111 = vector.load %arg8[%c1_99, %c0_100, %c0_101] : memref<9x64x128xbf16, #tpu.memory_space<vmem>>, vector<1x64x128xbf16>
    %112 = vector.shape_cast %111 : vector<1x64x128xbf16> to vector<64x128xbf16>
    %cst_102 = arith.constant dense<0.000000e+00> : vector<32x128xf32>
    %113 = tpu.matmul %110, %112, %cst_102 {dimension_numbers = #tpu.dot_dimension_numbers<[1], [0], [0], [1], [0, 0, 1, 1], [], []>} : vector<32x64xbf16>, vector<64x128xbf16>, vector<32x128xf32> -> vector<32x128xf32>
    %114 = arith.addf %107, %113 : vector<32x128xf32>
    %c0_103 = arith.constant 0 : index
    %c2_104 = arith.constant 2 : index
    %c0_105 = arith.constant 0 : index
    %115 = vector.load %arg18[%c0_103, %c2_104, %c0_105] : memref<6x10x64xf32, #tpu.memory_space<vmem>>, vector<4x8x64xf32>
    %116 = vector.shape_cast %115 : vector<4x8x64xf32> to vector<32x64xf32>
    %117 = arith.truncf %116 : vector<32x64xf32> to vector<32x64xbf16>
    %c2_106 = arith.constant 2 : index
    %c0_107 = arith.constant 0 : index
    %c0_108 = arith.constant 0 : index
    %118 = vector.load %arg8[%c2_106, %c0_107, %c0_108] : memref<9x64x128xbf16, #tpu.memory_space<vmem>>, vector<1x64x128xbf16>
    %119 = vector.shape_cast %118 : vector<1x64x128xbf16> to vector<64x128xbf16>
    %cst_109 = arith.constant dense<0.000000e+00> : vector<32x128xf32>
    %120 = tpu.matmul %117, %119, %cst_109 {dimension_numbers = #tpu.dot_dimension_numbers<[1], [0], [0], [1], [0, 0, 1, 1], [], []>} : vector<32x64xbf16>, vector<64x128xbf16>, vector<32x128xf32> -> vector<32x128xf32>
    %121 = arith.addf %114, %120 : vector<32x128xf32>
    %c1_110 = arith.constant 1 : index
    %c0_111 = arith.constant 0 : index
    %c0_112 = arith.constant 0 : index
    %122 = vector.load %arg18[%c1_110, %c0_111, %c0_112] : memref<6x10x64xf32, #tpu.memory_space<vmem>>, vector<4x8x64xf32>
    %123 = vector.shape_cast %122 : vector<4x8x64xf32> to vector<32x64xf32>
    %124 = arith.truncf %123 : vector<32x64xf32> to vector<32x64xbf16>
    %c3_113 = arith.constant 3 : index
    %c0_114 = arith.constant 0 : index
    %c0_115 = arith.constant 0 : index
    %125 = vector.load %arg8[%c3_113, %c0_114, %c0_115] : memref<9x64x128xbf16, #tpu.memory_space<vmem>>, vector<1x64x128xbf16>
    %126 = vector.shape_cast %125 : vector<1x64x128xbf16> to vector<64x128xbf16>
    %cst_116 = arith.constant dense<0.000000e+00> : vector<32x128xf32>
    %127 = tpu.matmul %124, %126, %cst_116 {dimension_numbers = #tpu.dot_dimension_numbers<[1], [0], [0], [1], [0, 0, 1, 1], [], []>} : vector<32x64xbf16>, vector<64x128xbf16>, vector<32x128xf32> -> vector<32x128xf32>
    %128 = arith.addf %121, %127 : vector<32x128xf32>
    %c1_117 = arith.constant 1 : index
    %c1_118 = arith.constant 1 : index
    %c0_119 = arith.constant 0 : index
    %129 = vector.load %arg18[%c1_117, %c1_118, %c0_119] : memref<6x10x64xf32, #tpu.memory_space<vmem>>, vector<4x8x64xf32>
    %130 = vector.shape_cast %129 : vector<4x8x64xf32> to vector<32x64xf32>
    %131 = arith.truncf %130 : vector<32x64xf32> to vector<32x64xbf16>
    %c4_120 = arith.constant 4 : index
    %c0_121 = arith.constant 0 : index
    %c0_122 = arith.constant 0 : index
    %132 = vector.load %arg8[%c4_120, %c0_121, %c0_122] : memref<9x64x128xbf16, #tpu.memory_space<vmem>>, vector<1x64x128xbf16>
    %133 = vector.shape_cast %132 : vector<1x64x128xbf16> to vector<64x128xbf16>
    %cst_123 = arith.constant dense<0.000000e+00> : vector<32x128xf32>
    %134 = tpu.matmul %131, %133, %cst_123 {dimension_numbers = #tpu.dot_dimension_numbers<[1], [0], [0], [1], [0, 0, 1, 1], [], []>} : vector<32x64xbf16>, vector<64x128xbf16>, vector<32x128xf32> -> vector<32x128xf32>
    %135 = arith.addf %128, %134 : vector<32x128xf32>
    %c1_124 = arith.constant 1 : index
    %c2_125 = arith.constant 2 : index
    %c0_126 = arith.constant 0 : index
    %136 = vector.load %arg18[%c1_124, %c2_125, %c0_126] : memref<6x10x64xf32, #tpu.memory_space<vmem>>, vector<4x8x64xf32>
    %137 = vector.shape_cast %136 : vector<4x8x64xf32> to vector<32x64xf32>
    %138 = arith.truncf %137 : vector<32x64xf32> to vector<32x64xbf16>
    %c5_127 = arith.constant 5 : index
    %c0_128 = arith.constant 0 : index
    %c0_129 = arith.constant 0 : index
    %139 = vector.load %arg8[%c5_127, %c0_128, %c0_129] : memref<9x64x128xbf16, #tpu.memory_space<vmem>>, vector<1x64x128xbf16>
    %140 = vector.shape_cast %139 : vector<1x64x128xbf16> to vector<64x128xbf16>
    %cst_130 = arith.constant dense<0.000000e+00> : vector<32x128xf32>
    %141 = tpu.matmul %138, %140, %cst_130 {dimension_numbers = #tpu.dot_dimension_numbers<[1], [0], [0], [1], [0, 0, 1, 1], [], []>} : vector<32x64xbf16>, vector<64x128xbf16>, vector<32x128xf32> -> vector<32x128xf32>
    %142 = arith.addf %135, %141 : vector<32x128xf32>
    %c2_131 = arith.constant 2 : index
    %c0_132 = arith.constant 0 : index
    %c0_133 = arith.constant 0 : index
    %143 = vector.load %arg18[%c2_131, %c0_132, %c0_133] : memref<6x10x64xf32, #tpu.memory_space<vmem>>, vector<4x8x64xf32>
    %144 = vector.shape_cast %143 : vector<4x8x64xf32> to vector<32x64xf32>
    %145 = arith.truncf %144 : vector<32x64xf32> to vector<32x64xbf16>
    %c6_134 = arith.constant 6 : index
    %c0_135 = arith.constant 0 : index
    %c0_136 = arith.constant 0 : index
    %146 = vector.load %arg8[%c6_134, %c0_135, %c0_136] : memref<9x64x128xbf16, #tpu.memory_space<vmem>>, vector<1x64x128xbf16>
    %147 = vector.shape_cast %146 : vector<1x64x128xbf16> to vector<64x128xbf16>
    %cst_137 = arith.constant dense<0.000000e+00> : vector<32x128xf32>
    %148 = tpu.matmul %145, %147, %cst_137 {dimension_numbers = #tpu.dot_dimension_numbers<[1], [0], [0], [1], [0, 0, 1, 1], [], []>} : vector<32x64xbf16>, vector<64x128xbf16>, vector<32x128xf32> -> vector<32x128xf32>
    %149 = arith.addf %142, %148 : vector<32x128xf32>
    %c2_138 = arith.constant 2 : index
    %c1_139 = arith.constant 1 : index
    %c0_140 = arith.constant 0 : index
    %150 = vector.load %arg18[%c2_138, %c1_139, %c0_140] : memref<6x10x64xf32, #tpu.memory_space<vmem>>, vector<4x8x64xf32>
    %151 = vector.shape_cast %150 : vector<4x8x64xf32> to vector<32x64xf32>
    %152 = arith.truncf %151 : vector<32x64xf32> to vector<32x64xbf16>
    %c7_141 = arith.constant 7 : index
    %c0_142 = arith.constant 0 : index
    %c0_143 = arith.constant 0 : index
    %153 = vector.load %arg8[%c7_141, %c0_142, %c0_143] : memref<9x64x128xbf16, #tpu.memory_space<vmem>>, vector<1x64x128xbf16>
    %154 = vector.shape_cast %153 : vector<1x64x128xbf16> to vector<64x128xbf16>
    %cst_144 = arith.constant dense<0.000000e+00> : vector<32x128xf32>
    %155 = tpu.matmul %152, %154, %cst_144 {dimension_numbers = #tpu.dot_dimension_numbers<[1], [0], [0], [1], [0, 0, 1, 1], [], []>} : vector<32x64xbf16>, vector<64x128xbf16>, vector<32x128xf32> -> vector<32x128xf32>
    %156 = arith.addf %149, %155 : vector<32x128xf32>
    %c2_145 = arith.constant 2 : index
    %c2_146 = arith.constant 2 : index
    %c0_147 = arith.constant 0 : index
    %157 = vector.load %arg18[%c2_145, %c2_146, %c0_147] : memref<6x10x64xf32, #tpu.memory_space<vmem>>, vector<4x8x64xf32>
    %158 = vector.shape_cast %157 : vector<4x8x64xf32> to vector<32x64xf32>
    %159 = arith.truncf %158 : vector<32x64xf32> to vector<32x64xbf16>
    %c8_148 = arith.constant 8 : index
    %c0_149 = arith.constant 0 : index
    %c0_150 = arith.constant 0 : index
    %160 = vector.load %arg8[%c8_148, %c0_149, %c0_150] : memref<9x64x128xbf16, #tpu.memory_space<vmem>>, vector<1x64x128xbf16>
    %161 = vector.shape_cast %160 : vector<1x64x128xbf16> to vector<64x128xbf16>
    %cst_151 = arith.constant dense<0.000000e+00> : vector<32x128xf32>
    %162 = tpu.matmul %159, %161, %cst_151 {dimension_numbers = #tpu.dot_dimension_numbers<[1], [0], [0], [1], [0, 0, 1, 1], [], []>} : vector<32x64xbf16>, vector<64x128xbf16>, vector<32x128xf32> -> vector<32x128xf32>
    %163 = arith.addf %156, %162 : vector<32x128xf32>
    %c0_152 = arith.constant 0 : index
    %c0_153 = arith.constant 0 : index
    %164 = vector.load %arg9[%c0_152, %c0_153] : memref<1x128xf32, #tpu.memory_space<vmem>>, vector<1x128xf32>
    %165 = vector.broadcast %164 : vector<1x128xf32> to vector<32x128xf32>
    %166 = arith.mulf %163, %165 : vector<32x128xf32>
    %c0_154 = arith.constant 0 : index
    %c0_155 = arith.constant 0 : index
    %167 = vector.load %arg10[%c0_154, %c0_155] : memref<1x128xf32, #tpu.memory_space<vmem>>, vector<1x128xf32>
    %168 = vector.broadcast %167 : vector<1x128xf32> to vector<32x128xf32>
    %169 = arith.addf %166, %168 : vector<32x128xf32>
    %cst_156 = arith.constant 0.000000e+00 : f32
    %170 = vector.broadcast %cst_156 : f32 to vector<32x128xf32>
    %171 = arith.maximumf %169, %170 : vector<32x128xf32>
    %172 = vector.shape_cast %171 : vector<32x128xf32> to vector<4x8x128xf32>
    %173 = vector.shape_cast %172 : vector<4x8x128xf32> to vector<2x2x8x128xf32>
    %cst_157 = arith.constant dense<0xFF800000> : vector<2x8x128xf32>
    %174 = vector.multi_reduction <maximumf>, %173, %cst_157 [1] : vector<2x2x8x128xf32> to vector<2x8x128xf32>
    %175 = vector.shape_cast %174 : vector<2x8x128xf32> to vector<2x4x2x128xf32>
    %cst_158 = arith.constant dense<0xFF800000> : vector<2x4x128xf32>
    %176 = vector.multi_reduction <maximumf>, %175, %cst_158 [2] : vector<2x4x2x128xf32> to vector<2x4x128xf32>
    %cst_159 = arith.constant 0.000000e+00 : f32
    %177 = vector.broadcast %cst_159 : f32 to vector<4x6x128xf32>
    %c0_160 = arith.constant 0 : index
    %c0_161 = arith.constant 0 : index
    %c0_162 = arith.constant 0 : index
    %178 = vector.load %arg19[%c0_160, %c0_161, %c0_162] : memref<4x6x128xf32, #tpu.memory_space<vmem>>, vector<4x6x128xf32>
    tpu.vector_store %arg19[%c0_160, %c0_161, %c0_162], %177 {strides = array<i32>} : memref<4x6x128xf32, #tpu.memory_space<vmem>>, vector<4x6x128xf32>,
    %c1_163 = arith.constant 1 : index
    %c1_164 = arith.constant 1 : index
    %c0_165 = arith.constant 0 : index
    %179 = vector.load %arg19[%c1_163, %c1_164, %c0_165] : memref<4x6x128xf32, #tpu.memory_space<vmem>>, vector<2x4x128xf32>
    tpu.vector_store %arg19[%c1_163, %c1_164, %c0_165], %176 {strides = array<i32>} : memref<4x6x128xf32, #tpu.memory_space<vmem>>, vector<2x4x128xf32>,
    %cst_166 = arith.constant 0.000000e+00 : f32
    %180 = vector.broadcast %cst_166 : f32 to vector<8x256xf32>
    %c0_167 = arith.constant 0 : index
    %c0_168 = arith.constant 0 : index
    %c0_169 = arith.constant 0 : index
    %181 = vector.load %arg19[%c0_167, %c0_168, %c0_169] : memref<4x6x128xf32, #tpu.memory_space<vmem>>, vector<2x4x128xf32>
    %182 = vector.shape_cast %181 : vector<2x4x128xf32> to vector<8x128xf32>
    %183 = arith.truncf %182 : vector<8x128xf32> to vector<8x128xbf16>
    %c0_170 = arith.constant 0 : index
    %c0_171 = arith.constant 0 : index
    %c0_172 = arith.constant 0 : index
    %184 = vector.load %arg11[%c0_170, %c0_171, %c0_172] : memref<9x128x256xbf16, #tpu.memory_space<vmem>>, vector<1x128x256xbf16>
    %185 = vector.shape_cast %184 : vector<1x128x256xbf16> to vector<128x256xbf16>
    %cst_173 = arith.constant dense<0.000000e+00> : vector<8x256xf32>
    %186 = tpu.matmul %183, %185, %cst_173 {dimension_numbers = #tpu.dot_dimension_numbers<[1], [0], [0], [1], [0, 0, 1, 1], [], []>} : vector<8x128xbf16>, vector<128x256xbf16>, vector<8x256xf32> -> vector<8x256xf32>
    %187 = arith.addf %180, %186 : vector<8x256xf32>
    %c0_174 = arith.constant 0 : index
    %c1_175 = arith.constant 1 : index
    %c0_176 = arith.constant 0 : index
    %188 = vector.load %arg19[%c0_174, %c1_175, %c0_176] : memref<4x6x128xf32, #tpu.memory_space<vmem>>, vector<2x4x128xf32>
    %189 = vector.shape_cast %188 : vector<2x4x128xf32> to vector<8x128xf32>
    %190 = arith.truncf %189 : vector<8x128xf32> to vector<8x128xbf16>
    %c1_177 = arith.constant 1 : index
    %c0_178 = arith.constant 0 : index
    %c0_179 = arith.constant 0 : index
    %191 = vector.load %arg11[%c1_177, %c0_178, %c0_179] : memref<9x128x256xbf16, #tpu.memory_space<vmem>>, vector<1x128x256xbf16>
    %192 = vector.shape_cast %191 : vector<1x128x256xbf16> to vector<128x256xbf16>
    %cst_180 = arith.constant dense<0.000000e+00> : vector<8x256xf32>
    %193 = tpu.matmul %190, %192, %cst_180 {dimension_numbers = #tpu.dot_dimension_numbers<[1], [0], [0], [1], [0, 0, 1, 1], [], []>} : vector<8x128xbf16>, vector<128x256xbf16>, vector<8x256xf32> -> vector<8x256xf32>
    %194 = arith.addf %187, %193 : vector<8x256xf32>
    %c0_181 = arith.constant 0 : index
    %c2_182 = arith.constant 2 : index
    %c0_183 = arith.constant 0 : index
    %195 = vector.load %arg19[%c0_181, %c2_182, %c0_183] : memref<4x6x128xf32, #tpu.memory_space<vmem>>, vector<2x4x128xf32>
    %196 = vector.shape_cast %195 : vector<2x4x128xf32> to vector<8x128xf32>
    %197 = arith.truncf %196 : vector<8x128xf32> to vector<8x128xbf16>
    %c2_184 = arith.constant 2 : index
    %c0_185 = arith.constant 0 : index
    %c0_186 = arith.constant 0 : index
    %198 = vector.load %arg11[%c2_184, %c0_185, %c0_186] : memref<9x128x256xbf16, #tpu.memory_space<vmem>>, vector<1x128x256xbf16>
    %199 = vector.shape_cast %198 : vector<1x128x256xbf16> to vector<128x256xbf16>
    %cst_187 = arith.constant dense<0.000000e+00> : vector<8x256xf32>
    %200 = tpu.matmul %197, %199, %cst_187 {dimension_numbers = #tpu.dot_dimension_numbers<[1], [0], [0], [1], [0, 0, 1, 1], [], []>} : vector<8x128xbf16>, vector<128x256xbf16>, vector<8x256xf32> -> vector<8x256xf32>
    %201 = arith.addf %194, %200 : vector<8x256xf32>
    %c1_188 = arith.constant 1 : index
    %c0_189 = arith.constant 0 : index
    %c0_190 = arith.constant 0 : index
    %202 = vector.load %arg19[%c1_188, %c0_189, %c0_190] : memref<4x6x128xf32, #tpu.memory_space<vmem>>, vector<2x4x128xf32>
    %203 = vector.shape_cast %202 : vector<2x4x128xf32> to vector<8x128xf32>
    %204 = arith.truncf %203 : vector<8x128xf32> to vector<8x128xbf16>
    %c3_191 = arith.constant 3 : index
    %c0_192 = arith.constant 0 : index
    %c0_193 = arith.constant 0 : index
    %205 = vector.load %arg11[%c3_191, %c0_192, %c0_193] : memref<9x128x256xbf16, #tpu.memory_space<vmem>>, vector<1x128x256xbf16>
    %206 = vector.shape_cast %205 : vector<1x128x256xbf16> to vector<128x256xbf16>
    %cst_194 = arith.constant dense<0.000000e+00> : vector<8x256xf32>
    %207 = tpu.matmul %204, %206, %cst_194 {dimension_numbers = #tpu.dot_dimension_numbers<[1], [0], [0], [1], [0, 0, 1, 1], [], []>} : vector<8x128xbf16>, vector<128x256xbf16>, vector<8x256xf32> -> vector<8x256xf32>
    %208 = arith.addf %201, %207 : vector<8x256xf32>
    %c1_195 = arith.constant 1 : index
    %c1_196 = arith.constant 1 : index
    %c0_197 = arith.constant 0 : index
    %209 = vector.load %arg19[%c1_195, %c1_196, %c0_197] : memref<4x6x128xf32, #tpu.memory_space<vmem>>, vector<2x4x128xf32>
    %210 = vector.shape_cast %209 : vector<2x4x128xf32> to vector<8x128xf32>
    %211 = arith.truncf %210 : vector<8x128xf32> to vector<8x128xbf16>
    %c4_198 = arith.constant 4 : index
    %c0_199 = arith.constant 0 : index
    %c0_200 = arith.constant 0 : index
    %212 = vector.load %arg11[%c4_198, %c0_199, %c0_200] : memref<9x128x256xbf16, #tpu.memory_space<vmem>>, vector<1x128x256xbf16>
    %213 = vector.shape_cast %212 : vector<1x128x256xbf16> to vector<128x256xbf16>
    %cst_201 = arith.constant dense<0.000000e+00> : vector<8x256xf32>
    %214 = tpu.matmul %211, %213, %cst_201 {dimension_numbers = #tpu.dot_dimension_numbers<[1], [0], [0], [1], [0, 0, 1, 1], [], []>} : vector<8x128xbf16>, vector<128x256xbf16>, vector<8x256xf32> -> vector<8x256xf32>
    %215 = arith.addf %208, %214 : vector<8x256xf32>
    %c1_202 = arith.constant 1 : index
    %c2_203 = arith.constant 2 : index
    %c0_204 = arith.constant 0 : index
    %216 = vector.load %arg19[%c1_202, %c2_203, %c0_204] : memref<4x6x128xf32, #tpu.memory_space<vmem>>, vector<2x4x128xf32>
    %217 = vector.shape_cast %216 : vector<2x4x128xf32> to vector<8x128xf32>
    %218 = arith.truncf %217 : vector<8x128xf32> to vector<8x128xbf16>
    %c5_205 = arith.constant 5 : index
    %c0_206 = arith.constant 0 : index
    %c0_207 = arith.constant 0 : index
    %219 = vector.load %arg11[%c5_205, %c0_206, %c0_207] : memref<9x128x256xbf16, #tpu.memory_space<vmem>>, vector<1x128x256xbf16>
    %220 = vector.shape_cast %219 : vector<1x128x256xbf16> to vector<128x256xbf16>
    %cst_208 = arith.constant dense<0.000000e+00> : vector<8x256xf32>
    %221 = tpu.matmul %218, %220, %cst_208 {dimension_numbers = #tpu.dot_dimension_numbers<[1], [0], [0], [1], [0, 0, 1, 1], [], []>} : vector<8x128xbf16>, vector<128x256xbf16>, vector<8x256xf32> -> vector<8x256xf32>
    %222 = arith.addf %215, %221 : vector<8x256xf32>
    %c2_209 = arith.constant 2 : index
    %c0_210 = arith.constant 0 : index
    %c0_211 = arith.constant 0 : index
    %223 = vector.load %arg19[%c2_209, %c0_210, %c0_211] : memref<4x6x128xf32, #tpu.memory_space<vmem>>, vector<2x4x128xf32>
    %224 = vector.shape_cast %223 : vector<2x4x128xf32> to vector<8x128xf32>
    %225 = arith.truncf %224 : vector<8x128xf32> to vector<8x128xbf16>
    %c6_212 = arith.constant 6 : index
    %c0_213 = arith.constant 0 : index
    %c0_214 = arith.constant 0 : index
    %226 = vector.load %arg11[%c6_212, %c0_213, %c0_214] : memref<9x128x256xbf16, #tpu.memory_space<vmem>>, vector<1x128x256xbf16>
    %227 = vector.shape_cast %226 : vector<1x128x256xbf16> to vector<128x256xbf16>
    %cst_215 = arith.constant dense<0.000000e+00> : vector<8x256xf32>
    %228 = tpu.matmul %225, %227, %cst_215 {dimension_numbers = #tpu.dot_dimension_numbers<[1], [0], [0], [1], [0, 0, 1, 1], [], []>} : vector<8x128xbf16>, vector<128x256xbf16>, vector<8x256xf32> -> vector<8x256xf32>
    %229 = arith.addf %222, %228 : vector<8x256xf32>
    %c2_216 = arith.constant 2 : index
    %c1_217 = arith.constant 1 : index
    %c0_218 = arith.constant 0 : index
    %230 = vector.load %arg19[%c2_216, %c1_217, %c0_218] : memref<4x6x128xf32, #tpu.memory_space<vmem>>, vector<2x4x128xf32>
    %231 = vector.shape_cast %230 : vector<2x4x128xf32> to vector<8x128xf32>
    %232 = arith.truncf %231 : vector<8x128xf32> to vector<8x128xbf16>
    %c7_219 = arith.constant 7 : index
    %c0_220 = arith.constant 0 : index
    %c0_221 = arith.constant 0 : index
    %233 = vector.load %arg11[%c7_219, %c0_220, %c0_221] : memref<9x128x256xbf16, #tpu.memory_space<vmem>>, vector<1x128x256xbf16>
    %234 = vector.shape_cast %233 : vector<1x128x256xbf16> to vector<128x256xbf16>
    %cst_222 = arith.constant dense<0.000000e+00> : vector<8x256xf32>
    %235 = tpu.matmul %232, %234, %cst_222 {dimension_numbers = #tpu.dot_dimension_numbers<[1], [0], [0], [1], [0, 0, 1, 1], [], []>} : vector<8x128xbf16>, vector<128x256xbf16>, vector<8x256xf32> -> vector<8x256xf32>
    %236 = arith.addf %229, %235 : vector<8x256xf32>
    %c2_223 = arith.constant 2 : index
    %c2_224 = arith.constant 2 : index
    %c0_225 = arith.constant 0 : index
    %237 = vector.load %arg19[%c2_223, %c2_224, %c0_225] : memref<4x6x128xf32, #tpu.memory_space<vmem>>, vector<2x4x128xf32>
    %238 = vector.shape_cast %237 : vector<2x4x128xf32> to vector<8x128xf32>
    %239 = arith.truncf %238 : vector<8x128xf32> to vector<8x128xbf16>
    %c8_226 = arith.constant 8 : index
    %c0_227 = arith.constant 0 : index
    %c0_228 = arith.constant 0 : index
    %240 = vector.load %arg11[%c8_226, %c0_227, %c0_228] : memref<9x128x256xbf16, #tpu.memory_space<vmem>>, vector<1x128x256xbf16>
    %241 = vector.shape_cast %240 : vector<1x128x256xbf16> to vector<128x256xbf16>
    %cst_229 = arith.constant dense<0.000000e+00> : vector<8x256xf32>
    %242 = tpu.matmul %239, %241, %cst_229 {dimension_numbers = #tpu.dot_dimension_numbers<[1], [0], [0], [1], [0, 0, 1, 1], [], []>} : vector<8x128xbf16>, vector<128x256xbf16>, vector<8x256xf32> -> vector<8x256xf32>
    %243 = arith.addf %236, %242 : vector<8x256xf32>
    %c0_230 = arith.constant 0 : index
    %c0_231 = arith.constant 0 : index
    %244 = vector.load %arg12[%c0_230, %c0_231] : memref<1x256xf32, #tpu.memory_space<vmem>>, vector<1x256xf32>
    %245 = vector.broadcast %244 : vector<1x256xf32> to vector<8x256xf32>
    %246 = arith.mulf %243, %245 : vector<8x256xf32>
    %c0_232 = arith.constant 0 : index
    %c0_233 = arith.constant 0 : index
    %247 = vector.load %arg13[%c0_232, %c0_233] : memref<1x256xf32, #tpu.memory_space<vmem>>, vector<1x256xf32>
    %248 = vector.broadcast %247 : vector<1x256xf32> to vector<8x256xf32>
    %249 = arith.addf %246, %248 : vector<8x256xf32>
    %cst_234 = arith.constant 0.000000e+00 : f32
    %250 = vector.broadcast %cst_234 : f32 to vector<8x256xf32>
    %251 = arith.maximumf %249, %250 : vector<8x256xf32>
    %252 = vector.shape_cast %251 : vector<8x256xf32> to vector<2x4x256xf32>
    %253 = vector.shape_cast %252 : vector<2x4x256xf32> to vector<1x2x4x256xf32>
    %cst_235 = arith.constant dense<0xFF800000> : vector<1x4x256xf32>
    %254 = vector.multi_reduction <maximumf>, %253, %cst_235 [1] : vector<1x2x4x256xf32> to vector<1x4x256xf32>
    %255 = vector.shape_cast %254 : vector<1x4x256xf32> to vector<1x2x2x256xf32>
    %cst_236 = arith.constant dense<0xFF800000> : vector<1x2x256xf32>
    %256 = vector.multi_reduction <maximumf>, %255, %cst_236 [2] : vector<1x2x2x256xf32> to vector<1x2x256xf32>
    %257 = vector.shape_cast %256 : vector<1x2x256xf32> to vector<2x256xf32>
    %c0_237 = arith.constant 0 : index
    %c0_238 = arith.constant 0 : index
    %258 = vector.load %arg14[%c0_237, %c0_238] : memref<1x256xf32, #tpu.memory_space<vmem>>, vector<1x256xf32>
    %259 = vector.broadcast %258 : vector<1x256xf32> to vector<2x256xf32>
    %260 = arith.mulf %257, %259 : vector<2x256xf32>
    %cst_239 = arith.constant dense<0.000000e+00> : vector<2xf32>
    %261 = vector.multi_reduction <add>, %260, %cst_239 [1] : vector<2x256xf32> to vector<2xf32>
    %262 = vector.shape_cast %261 : vector<2xf32> to vector<2x1xf32>
    %c0_240 = arith.constant 0 : index
    %c0_241 = arith.constant 0 : index
    %263 = vector.load %arg15[%c0_240, %c0_241] : memref<1x1xf32, #tpu.memory_space<vmem>>, vector<1x1xf32>
    %264 = vector.broadcast %263 : vector<1x1xf32> to vector<2x1xf32>
    %265 = arith.addf %262, %264 : vector<2x1xf32>
    %266 = arith.negf %265 : vector<2x1xf32>
    %267 = math.exp %266 : vector<2x1xf32>
    %cst_242 = arith.constant 1.000000e+00 : f32
    %268 = vector.broadcast %cst_242 : f32 to vector<2x1xf32>
    %269 = arith.addf %268, %267 : vector<2x1xf32>
    %270 = arith.divf %268, %269 : vector<2x1xf32>
    %271 = vector.broadcast %270 : vector<2x1xf32> to vector<2x256xf32>
    %272 = arith.mulf %257, %271 : vector<2x256xf32>
    %273 = arith.truncf %272 : vector<2x256xf32> to vector<2x256xbf16>
    %c0_243 = arith.constant 0 : index
    %c0_244 = arith.constant 0 : index
    %c0_245 = arith.constant 0 : index
    %274 = vector.load %arg16[%c0_243, %c0_244, %c0_245] : memref<1x2x256xbf16, #tpu.memory_space<vmem>>, vector<1x2x256xbf16>
    %275 = vector.shape_cast %274 : vector<1x2x256xbf16> to vector<2x256xbf16>
    %276 = vector.shape_cast %273 : vector<2x256xbf16> to vector<1x2x256xbf16>
    tpu.vector_store %arg16[%c0_243, %c0_244, %c0_245], %276 {strides = array<i32>} : memref<1x2x256xbf16, #tpu.memory_space<vmem>>, vector<1x2x256xbf16>,
    return
  }
  func.func @transform_0(%arg0: i32) -> (i32, i32, i32) {
    %c0_i32 = arith.constant 0 : i32
    %c0_i32_0 = arith.constant 0 : i32
    %c0_i32_1 = arith.constant 0 : i32
    return %arg0, %c0_i32, %c0_i32_0 : i32, i32, i32
  }
  func.func @transform_1(%arg0: i32) -> (i32, i32) {
    %c0_i32 = arith.constant 0 : i32
    %c0_i32_0 = arith.constant 0 : i32
    %c0_i32_1 = arith.constant 0 : i32
    return %c0_i32, %c0_i32_0 : i32, i32
  }
  func.func @transform_2(%arg0: i32) -> (i32, i32) {
    %c0_i32 = arith.constant 0 : i32
    %c0_i32_0 = arith.constant 0 : i32
    %c0_i32_1 = arith.constant 0 : i32
    return %c0_i32, %c0_i32_0 : i32, i32
  }
  func.func @transform_3(%arg0: i32) -> (i32, i32) {
    %c0_i32 = arith.constant 0 : i32
    %c0_i32_0 = arith.constant 0 : i32
    %c0_i32_1 = arith.constant 0 : i32
    return %c0_i32, %c0_i32_0 : i32, i32
  }
  func.func @transform_4(%arg0: i32) -> (i32, i32, i32) {
    %c0_i32 = arith.constant 0 : i32
    %c0_i32_0 = arith.constant 0 : i32
    %c0_i32_1 = arith.constant 0 : i32
    %c0_i32_2 = arith.constant 0 : i32
    return %c0_i32, %c0_i32_0, %c0_i32_1 : i32, i32, i32
  }
  func.func @transform_5(%arg0: i32) -> (i32, i32) {
    %c0_i32 = arith.constant 0 : i32
    %c0_i32_0 = arith.constant 0 : i32
    %c0_i32_1 = arith.constant 0 : i32
    return %c0_i32, %c0_i32_0 : i32, i32
  }
  func.func @transform_6(%arg0: i32) -> (i32, i32) {
    %c0_i32 = arith.constant 0 : i32
    %c0_i32_0 = arith.constant 0 : i32
    %c0_i32_1 = arith.constant 0 : i32
    return %c0_i32, %c0_i32_0 : i32, i32
  }
  func.func @transform_7(%arg0: i32) -> (i32, i32, i32) {
    %c0_i32 = arith.constant 0 : i32
    %c0_i32_0 = arith.constant 0 : i32
    %c0_i32_1 = arith.constant 0 : i32
    %c0_i32_2 = arith.constant 0 : i32
    return %c0_i32, %c0_i32_0, %c0_i32_1 : i32, i32, i32
  }
  func.func @transform_8(%arg0: i32) -> (i32, i32) {
    %c0_i32 = arith.constant 0 : i32
    %c0_i32_0 = arith.constant 0 : i32
    %c0_i32_1 = arith.constant 0 : i32
    return %c0_i32, %c0_i32_0 : i32, i32
  }
  func.func @transform_9(%arg0: i32) -> (i32, i32) {
    %c0_i32 = arith.constant 0 : i32
    %c0_i32_0 = arith.constant 0 : i32
    %c0_i32_1 = arith.constant 0 : i32
    return %c0_i32, %c0_i32_0 : i32, i32
  }
  func.func @transform_10(%arg0: i32) -> (i32, i32, i32) {
    %c0_i32 = arith.constant 0 : i32
    %c0_i32_0 = arith.constant 0 : i32
    %c0_i32_1 = arith.constant 0 : i32
    %c0_i32_2 = arith.constant 0 : i32
    return %c0_i32, %c0_i32_0, %c0_i32_1 : i32, i32, i32
  }
  func.func @transform_11(%arg0: i32) -> (i32, i32) {
    %c0_i32 = arith.constant 0 : i32
    %c0_i32_0 = arith.constant 0 : i32
    %c0_i32_1 = arith.constant 0 : i32
    return %c0_i32, %c0_i32_0 : i32, i32
  }
  func.func @transform_12(%arg0: i32) -> (i32, i32) {
    %c0_i32 = arith.constant 0 : i32
    %c0_i32_0 = arith.constant 0 : i32
    %c0_i32_1 = arith.constant 0 : i32
    return %c0_i32, %c0_i32_0 : i32, i32
  }
  func.func @transform_13(%arg0: i32) -> (i32, i32) {
    %c0_i32 = arith.constant 0 : i32
    %c0_i32_0 = arith.constant 0 : i32
    %c0_i32_1 = arith.constant 0 : i32
    return %c0_i32, %c0_i32_0 : i32, i32
  }
  func.func @transform_14(%arg0: i32) -> (i32, i32) {
    %c0_i32 = arith.constant 0 : i32
    %c0_i32_0 = arith.constant 0 : i32
    %c0_i32_1 = arith.constant 0 : i32
    return %c0_i32, %c0_i32_0 : i32, i32
  }
  func.func @transform_15(%arg0: i32) -> (i32, i32, i32) {
    %c0_i32 = arith.constant 0 : i32
    %c0_i32_0 = arith.constant 0 : i32
    %c0_i32_1 = arith.constant 0 : i32
    return %arg0, %c0_i32, %c0_i32_0 : i32, i32, i32
  }
}

module attributes {stable_mosaic.version = 11 : i64} {
  func.func @head_kernel(%arg0: i32, %arg1: memref<2x512xbf16, #tpu.memory_space<vmem>>, %arg2: memref<512x512xbf16, #tpu.memory_space<vmem>>, %arg3: memref<1x512xf32, #tpu.memory_space<vmem>>, %arg4: memref<1x512xf32, #tpu.memory_space<vmem>>, %arg5: memref<512x128xbf16, #tpu.memory_space<vmem>>, %arg6: memref<1x128xf32, #tpu.memory_space<vmem>>, %arg7: memref<2x128xf32, #tpu.memory_space<vmem>>, %arg8: memref<2x512xf32, #tpu.memory_space<vmem>>) attributes {dimension_semantics = [#tpu.dimension_semantics<arbitrary>], iteration_bounds = array<i64: 1>, scalar_prefetch = 0 : i64, scratch_operands = 1 : i64, tpu.core_type = #tpu.core_type<tc>, window_params = [{transform_indices = @transform_0, window_bounds = array<i64: 2, 512>}, {transform_indices = @transform_1, window_bounds = array<i64: 512, 512>}, {pipeline_mode = #tpu.pipeline_mode<synchronous>, transform_indices = @transform_2, window_bounds = array<i64: 1, 512>}, {pipeline_mode = #tpu.pipeline_mode<synchronous>, transform_indices = @transform_3, window_bounds = array<i64: 1, 512>}, {pipeline_mode = #tpu.pipeline_mode<synchronous>, transform_indices = @transform_4, window_bounds = array<i64: 512, 128>}, {pipeline_mode = #tpu.pipeline_mode<synchronous>, transform_indices = @transform_5, window_bounds = array<i64: 1, 128>}, {pipeline_mode = #tpu.pipeline_mode<synchronous>, transform_indices = @transform_6, window_bounds = array<i64: 2, 128>}]} {
    %c0_i32 = arith.constant 0 : i32
    %0 = arith.cmpi eq, %arg0, %c0_i32 : i32
    %1 = arith.extui %0 : i1 to i32
    %c0_i32_0 = arith.constant 0 : i32
    %2 = arith.cmpi ne, %1, %c0_i32_0 : i32
    scf.if %2 {
      %cst_10 = arith.constant 0.000000e+00 : f32
      %12 = vector.broadcast %cst_10 : f32 to vector<2x512xf32>
      %c0_11 = arith.constant 0 : index
      %c0_12 = arith.constant 0 : index
      %13 = vector.load %arg8[%c0_11, %c0_12] : memref<2x512xf32, #tpu.memory_space<vmem>>, vector<2x512xf32>
      tpu.vector_store %arg8[%c0_11, %c0_12], %12 {strides = array<i32>} : memref<2x512xf32, #tpu.memory_space<vmem>>, vector<2x512xf32>,
    } else {
    }
    %c0 = arith.constant 0 : index
    %c0_1 = arith.constant 0 : index
    %3 = vector.load %arg8[%c0, %c0_1] : memref<2x512xf32, #tpu.memory_space<vmem>>, vector<2x512xf32>
    %c0_2 = arith.constant 0 : index
    %c0_3 = arith.constant 0 : index
    %4 = vector.load %arg1[%c0_2, %c0_3] : memref<2x512xbf16, #tpu.memory_space<vmem>>, vector<2x512xbf16>
    %c0_4 = arith.constant 0 : index
    %c0_5 = arith.constant 0 : index
    %5 = vector.load %arg2[%c0_4, %c0_5] : memref<512x512xbf16, #tpu.memory_space<vmem>>, vector<512x512xbf16>
    %cst = arith.constant dense<0.000000e+00> : vector<2x512xf32>
    %6 = tpu.matmul %4, %5, %cst {dimension_numbers = #tpu.dot_dimension_numbers<[1], [0], [0], [1], [0, 0, 1, 1], [], []>} : vector<2x512xbf16>, vector<512x512xbf16>, vector<2x512xf32> -> vector<2x512xf32>
    %7 = arith.addf %3, %6 : vector<2x512xf32>
    %c0_6 = arith.constant 0 : index
    %c0_7 = arith.constant 0 : index
    %8 = vector.load %arg8[%c0_6, %c0_7] : memref<2x512xf32, #tpu.memory_space<vmem>>, vector<2x512xf32>
    tpu.vector_store %arg8[%c0_6, %c0_7], %7 {strides = array<i32>} : memref<2x512xf32, #tpu.memory_space<vmem>>, vector<2x512xf32>,
    %c0_i32_8 = arith.constant 0 : i32
    %9 = arith.cmpi eq, %arg0, %c0_i32_8 : i32
    %10 = arith.extui %9 : i1 to i32
    %c0_i32_9 = arith.constant 0 : i32
    %11 = arith.cmpi ne, %10, %c0_i32_9 : i32
    scf.if %11 {
      %c0_10 = arith.constant 0 : index
      %c0_11 = arith.constant 0 : index
      %12 = vector.load %arg8[%c0_10, %c0_11] : memref<2x512xf32, #tpu.memory_space<vmem>>, vector<2x512xf32>
      %c0_12 = arith.constant 0 : index
      %c0_13 = arith.constant 0 : index
      %13 = vector.load %arg3[%c0_12, %c0_13] : memref<1x512xf32, #tpu.memory_space<vmem>>, vector<1x512xf32>
      %14 = vector.broadcast %13 : vector<1x512xf32> to vector<2x512xf32>
      %15 = arith.mulf %12, %14 : vector<2x512xf32>
      %c0_14 = arith.constant 0 : index
      %c0_15 = arith.constant 0 : index
      %16 = vector.load %arg4[%c0_14, %c0_15] : memref<1x512xf32, #tpu.memory_space<vmem>>, vector<1x512xf32>
      %17 = vector.broadcast %16 : vector<1x512xf32> to vector<2x512xf32>
      %18 = arith.addf %15, %17 : vector<2x512xf32>
      %cst_16 = arith.constant 0.000000e+00 : f32
      %19 = vector.broadcast %cst_16 : f32 to vector<2x512xf32>
      %20 = arith.maximumf %18, %19 : vector<2x512xf32>
      %21 = arith.truncf %20 : vector<2x512xf32> to vector<2x512xbf16>
      %c0_17 = arith.constant 0 : index
      %c0_18 = arith.constant 0 : index
      %22 = vector.load %arg5[%c0_17, %c0_18] : memref<512x128xbf16, #tpu.memory_space<vmem>>, vector<512x128xbf16>
      %cst_19 = arith.constant dense<0.000000e+00> : vector<2x128xf32>
      %23 = tpu.matmul %21, %22, %cst_19 {dimension_numbers = #tpu.dot_dimension_numbers<[1], [0], [0], [1], [0, 0, 1, 1], [], []>} : vector<2x512xbf16>, vector<512x128xbf16>, vector<2x128xf32> -> vector<2x128xf32>
      %c0_20 = arith.constant 0 : index
      %c0_21 = arith.constant 0 : index
      %24 = vector.load %arg6[%c0_20, %c0_21] : memref<1x128xf32, #tpu.memory_space<vmem>>, vector<1x128xf32>
      %25 = vector.broadcast %24 : vector<1x128xf32> to vector<2x128xf32>
      %26 = arith.addf %23, %25 : vector<2x128xf32>
      %27 = arith.mulf %26, %26 : vector<2x128xf32>
      %cst_22 = arith.constant dense<0.000000e+00> : vector<2xf32>
      %28 = vector.multi_reduction <add>, %27, %cst_22 [1] : vector<2x128xf32> to vector<2xf32>
      %29 = vector.shape_cast %28 : vector<2xf32> to vector<2x1xf32>
      %cst_23 = arith.constant 1.000000e-24 : f32
      %30 = vector.broadcast %cst_23 : f32 to vector<2x1xf32>
      %31 = arith.maximumf %29, %30 : vector<2x1xf32>
      %32 = math.rsqrt %31 : vector<2x1xf32>
      %33 = vector.broadcast %32 : vector<2x1xf32> to vector<2x128xf32>
      %34 = arith.mulf %26, %33 : vector<2x128xf32>
      %c0_24 = arith.constant 0 : index
      %c0_25 = arith.constant 0 : index
      %35 = vector.load %arg7[%c0_24, %c0_25] : memref<2x128xf32, #tpu.memory_space<vmem>>, vector<2x128xf32>
      tpu.vector_store %arg7[%c0_24, %c0_25], %34 {strides = array<i32>} : memref<2x128xf32, #tpu.memory_space<vmem>>, vector<2x128xf32>,
    } else {
    }
    return
  }
  func.func @transform_0(%arg0: i32) -> (i32, i32) {
    %c0_i32 = arith.constant 0 : i32
    %c0_i32_0 = arith.constant 0 : i32
    return %c0_i32, %arg0 : i32, i32
  }
  func.func @transform_1(%arg0: i32) -> (i32, i32) {
    %c0_i32 = arith.constant 0 : i32
    %c0_i32_0 = arith.constant 0 : i32
    return %arg0, %c0_i32 : i32, i32
  }
  func.func @transform_2(%arg0: i32) -> (i32, i32) {
    %c0_i32 = arith.constant 0 : i32
    %c0_i32_0 = arith.constant 0 : i32
    %c0_i32_1 = arith.constant 0 : i32
    return %c0_i32, %c0_i32_0 : i32, i32
  }
  func.func @transform_3(%arg0: i32) -> (i32, i32) {
    %c0_i32 = arith.constant 0 : i32
    %c0_i32_0 = arith.constant 0 : i32
    %c0_i32_1 = arith.constant 0 : i32
    return %c0_i32, %c0_i32_0 : i32, i32
  }
  func.func @transform_4(%arg0: i32) -> (i32, i32) {
    %c0_i32 = arith.constant 0 : i32
    %c0_i32_0 = arith.constant 0 : i32
    %c0_i32_1 = arith.constant 0 : i32
    return %c0_i32, %c0_i32_0 : i32, i32
  }
  func.func @transform_5(%arg0: i32) -> (i32, i32) {
    %c0_i32 = arith.constant 0 : i32
    %c0_i32_0 = arith.constant 0 : i32
    %c0_i32_1 = arith.constant 0 : i32
    return %c0_i32, %c0_i32_0 : i32, i32
  }
  func.func @transform_6(%arg0: i32) -> (i32, i32) {
    %c0_i32 = arith.constant 0 : i32
    %c0_i32_0 = arith.constant 0 : i32
    %c0_i32_1 = arith.constant 0 : i32
    return %c0_i32, %c0_i32_0 : i32, i32
  }
}

</mosaic_0001>

<bundles_post_ra>
// kernel: audio_fingerprinter_forward.3
= control target key start
LH: loop header
LB: loop body
LE: loop exit
PB: predicated region body
PF: predicated region fallthrough
CT: control target
= control target key end

     0   :  { %11 = vsyncpa [#allocation4], 0  ;;  %s2506_s0 = inlined_call_operand.vmem [shape: bf16[2,512], index: 0, kind: input, shape index: {}]   ;;  %s2507_s1 = inlined_call_operand.hbm [shape: bf16[512,512], index: 1, kind: input, shape index: {}]   ;;  %s2508_s2 = inlined_call_operand.vmem [shape: f32[1,512], index: 2, kind: input, shape index: {}]   ;;  %s2509_s3 = inlined_call_operand.vmem [shape: f32[1,512], index: 3, kind: input, shape index: {}]   ;;  %s2510_s4 = inlined_call_operand.vmem [shape: bf16[512,128], index: 4, kind: input, shape index: {}]   ;;  %s2511_s5 = inlined_call_operand.vmem [shape: f32[1,128], index: 5, kind: input, shape index: {}]   ;;  %s2512_s6 = inlined_call_operand.hbm [shape: f32[2,128], index: 6, kind: output, shape index: {}]  }
   0x1   :  { %12 = vsyncpa [#allocation5], 0  ;;  %s19_s23 = sshll.u32 %s2507_s1, 4  ;;  %s2301_s24 = smov [#allocation3]   ;;  %s20_s23 = int_to_ptr.hbm [resolvable:$true] %s19_s23 }
   0x2   :  { %s21_s25 = sshll.u32 %s2301_s24, 4  ;;  %s2302_s26 = smov 256   ;;  %s22_s25 = int_to_ptr.vmem [resolvable:$true] %s21_s25 }
   0x3   :  { %s2303_s27 = smov 16  }
   0x4   :  { %27 = dma.hbm_to_vmem [thread:$0]  %s20_s23, 16384, %s22_s25, [#allocation4], %s2302_s26, %s2302_s26, %s2303_s27  }
   0x5   :  { %2297 = dma.done.wait [#allocation4], 16384  }
   0x6   :  { %2298 = vsyncadd [#allocation4], 4294950912  ;;  %v1556_v0 = vld [vmem:[#allocation3 + $0xe0] sm:$0xf]  ;;  %v2112_v1 = vld [vmem:[#allocation3 + $0xec] sm:$0xf0] }
   0x7   :  { %v1684_v2 = vld [vmem:[#allocation3 + $0x1e0] sm:$0xf]  ;;  %v1557_v3 = vor.u32 %v2112_v1, %v1556_v0  ;;  %v2144_v4 = vld [vmem:[#allocation3 + $0x1ec] sm:$0xf0]  ;;  %vm1042_vm0 = vcmask 1045508   ;;  %vm1040_vm1 = vcmask 1041408  }
   0x8   :  { %v1812_v5 = vld [vmem:[#allocation3 + $0x2e0] sm:$0xf]  ;;  %v2176_v6 = vld [vmem:[#allocation3 + $0x2ec] sm:$0xf0]  ;;  %v1685_v7 = vor.u32 %v2144_v4, %v1684_v2  ;;  %vm1044_vm2 = vcmask 1043456   ;;  %s1432_s22 = sshll.u32 %s2512_s6, 4  ;;  %s1433_s22 = int_to_ptr.hbm [resolvable:$true] %s1432_s22 }
   0x9   :  { %v1813_v8 = vor.u32 %v2176_v6, %v1812_v5  ;;  %v1940_v9 = vld [vmem:[#allocation3 + $0x3e0] sm:$0xf]  ;;  %v2208_v10 = vld [vmem:[#allocation3 + $0x3ec] sm:$0xf0]  ;;  %825 = vmatpush.bf16.msra.mxu0 %v1557_v3 }
   0xa   :  { %v1540_v11 = vld [vmem:[#allocation3 + $0xc0] sm:$0xf]  ;;  %v1941_v12 = vor.u32 %v2208_v10, %v1940_v9  ;;  %v2108_v13 = vld [vmem:[#allocation3 + $0xcc] sm:$0xf0]  ;;  %838 = vmatpush.bf16.msra.mxu1 %v1685_v7 }
   0xb   :  { %v1668_v14 = vld [vmem:[#allocation3 + $0x1c0] sm:$0xf]  ;;  %v2140_v15 = vld [vmem:[#allocation3 + $0x1cc] sm:$0xf0]  ;;  %851 = vmatpush.bf16.msra.mxu2 %v1813_v8  ;;  %v1541_v16 = vor.u32 %v2108_v13, %v1540_v11 }
   0xc   :  { %v1669_v17 = vor.u32 %v2140_v15, %v1668_v14  ;;  %v1796_v18 = vld [vmem:[#allocation3 + $0x2c0] sm:$0xf]  ;;  %v2172_v19 = vld [vmem:[#allocation3 + $0x2cc] sm:$0xf0]  ;;  %864 = vmatpush.bf16.msra.mxu3 %v1941_v12 }
   0xd   :  { %v1924_v20 = vld [vmem:[#allocation3 + $0x3c0] sm:$0xf]  ;;  %v1797_v21 = vor.u32 %v2172_v19, %v1796_v18  ;;  %v2204_v22 = vld [vmem:[#allocation3 + $0x3cc] sm:$0xf0]  ;;  %826 = vmatpush.bf16.msra.mxu0 %v1541_v16 }
   0xe   :  { %v1524_v23 = vld [vmem:[#allocation3 + $0xa0] sm:$0xf]  ;;  %v2104_v24 = vld [vmem:[#allocation3 + $0xac] sm:$0xf0]  ;;  %v1925_v25 = vor.u32 %v2204_v22, %v1924_v20  ;;  %839 = vmatpush.bf16.msra.mxu1 %v1669_v17 }
   0xf   :  { %v1652_v26 = vld [vmem:[#allocation3 + $0x1a0] sm:$0xf]  ;;  %v2136_v27 = vld [vmem:[#allocation3 + $0x1ac] sm:$0xf0]  ;;  %v1525_v29 = vor.u32 %v2104_v24, %v1524_v23  ;;  %852 = vmatpush.bf16.msra.mxu2 %v1797_v21 }
  0x10   :  { %v1780_v28 = vld [vmem:[#allocation3 + $0x2a0] sm:$0xf]  ;;  %v2168_v30 = vld [vmem:[#allocation3 + $0x2ac] sm:$0xf0]  ;;  %v1653_v33 = vor.u32 %v2136_v27, %v1652_v26  ;;  %865 = vmatpush.bf16.msra.mxu3 %v1925_v25 }
  0x11   :  { %v1908_v31 = vld [vmem:[#allocation3 + $0x3a0] sm:$0xf]  ;;  %v2200_v32 = vld [vmem:[#allocation3 + $0x3ac] sm:$0xf0]  ;;  %v1781_v34 = vor.u32 %v2168_v30, %v1780_v28  ;;  %827 = vmatpush.bf16.msra.mxu0 %v1525_v29  ;;  %v2110_v28 = vld [vmem:[#allocation3 + $0xe4] sm:$0xf] }
  0x12   :  { %v1508_v35 = vld [vmem:[#allocation3 + $0x80] sm:$0xf]  ;;  %v2100_v36 = vld [vmem:[#allocation3 + $0x8c] sm:$0xf0]  ;;  %v1909_v38 = vor.u32 %v2200_v32, %v1908_v31  ;;  %840 = vmatpush.bf16.msra.mxu1 %v1653_v33  ;;  %v1558_v29 = vld [vmem:[#allocation3 + $0xf0] sm:$0xf0] }
  0x13   :  { %v1636_v37 = vld [vmem:[#allocation3 + $0x180] sm:$0xf]  ;;  %v2132_v39 = vld [vmem:[#allocation3 + $0x18c] sm:$0xf0]  ;;  %v1509_v44 = vor.u32 %v2100_v36, %v1508_v35  ;;  %853 = vmatpush.bf16.msra.mxu2 %v1781_v34  ;;  %v2142_v30 = vld [vmem:[#allocation3 + $0x1e4] sm:$0xf] }
  0x14   :  { %v1764_v40 = vld [vmem:[#allocation3 + $0x280] sm:$0xf]  ;;  %v2164_v41 = vld [vmem:[#allocation3 + $0x28c] sm:$0xf0]  ;;  %v1637_v45 = vor.u32 %v2132_v39, %v1636_v37  ;;  %866 = vmatpush.bf16.msra.mxu3 %v1909_v38  ;;  %v1686_v32 = vld [vmem:[#allocation3 + $0x1f0] sm:$0xf0] }
  0x15   :  { %v1892_v42 = vld [vmem:[#allocation3 + $0x380] sm:$0xf]  ;;  %v2196_v43 = vld [vmem:[#allocation3 + $0x38c] sm:$0xf0]  ;;  %v1765_v46 = vor.u32 %v2164_v41, %v1764_v40  ;;  %828 = vmatpush.bf16.msra.mxu0 %v1509_v44  ;;  %v2174_v33 = vld [vmem:[#allocation3 + $0x2e4] sm:$0xf]  ;;  %v1561_v40 = vor.u32 %v2110_v28, %v1558_v29  ;;  %v1689_v41 = vor.u32 %v2142_v30, %v1686_v32 }
  0x16   :  { %v1492_v47 = vld [vmem:[#allocation3 + $0x60] sm:$0xf]  ;;  %v2096_v48 = vld [vmem:[#allocation3 + $0x6c] sm:$0xf0]  ;;  %v1893_v50 = vor.u32 %v2196_v43, %v1892_v42  ;;  %841 = vmatpush.bf16.msra.mxu1 %v1637_v45  ;;  %v1814_v34 = vld [vmem:[#allocation3 + $0x2f0] sm:$0xf0] }
  0x17   :  { %v1620_v49 = vld [vmem:[#allocation3 + $0x160] sm:$0xf]  ;;  %v2128_v51 = vld [vmem:[#allocation3 + $0x16c] sm:$0xf0]  ;;  %v1493_v56 = vor.u32 %v2096_v48, %v1492_v47  ;;  %854 = vmatpush.bf16.msra.mxu2 %v1765_v46  ;;  %v2206_v37 = vld [vmem:[#allocation3 + $0x3e4] sm:$0xf]  ;;  %v1817_v42 = vor.u32 %v2174_v33, %v1814_v34 }
  0x18   :  { %v1748_v52 = vld [vmem:[#allocation3 + $0x260] sm:$0xf]  ;;  %v2160_v53 = vld [vmem:[#allocation3 + $0x26c] sm:$0xf0]  ;;  %v1621_v57 = vor.u32 %v2128_v51, %v1620_v49  ;;  %867 = vmatpush.bf16.msra.mxu3 %v1893_v50  ;;  %v1942_v38 = vld [vmem:[#allocation3 + $0x3f0] sm:$0xf0] }
  0x19   :  { %v1876_v54 = vld [vmem:[#allocation3 + $0x360] sm:$0xf]  ;;  %v2192_v55 = vld [vmem:[#allocation3 + $0x36c] sm:$0xf0]  ;;  %v1749_v58 = vor.u32 %v2160_v53, %v1748_v52  ;;  %829 = vmatpush.bf16.msra.mxu0 %v1493_v56  ;;  %v2106_v43 = vld [vmem:[#allocation3 + $0xc4] sm:$0xf]  ;;  %v1945_v46 = vor.u32 %v2206_v37, %v1942_v38 }
  0x1a   :  { %v1476_v59 = vld [vmem:[#allocation3 + $0x40] sm:$0xf]  ;;  %v2092_v60 = vld [vmem:[#allocation3 + $0x4c] sm:$0xf0]  ;;  %v1877_v62 = vor.u32 %v2192_v55, %v1876_v54  ;;  %842 = vmatpush.bf16.msra.mxu1 %v1621_v57  ;;  %v1542_v44 = vld [vmem:[#allocation3 + $0xd0] sm:$0xf0] }
  0x1b   :  { %v1604_v61 = vld [vmem:[#allocation3 + $0x140] sm:$0xf]  ;;  %v2124_v63 = vld [vmem:[#allocation3 + $0x14c] sm:$0xf0]  ;;  %v1477_v4 = vor.u32 %v2092_v60, %v1476_v59  ;;  %855 = vmatpush.bf16.msra.mxu2 %v1749_v58  ;;  %v2138_v45 = vld [vmem:[#allocation3 + $0x1c4] sm:$0xf]  ;;  %v1545_v53 = vor.u32 %v2106_v43, %v1542_v44 }
  0x1c   :  { %v1732_v0 = vld [vmem:[#allocation3 + $0x240] sm:$0xf]  ;;  %v2156_v1 = vld [vmem:[#allocation3 + $0x24c] sm:$0xf0]  ;;  %v1605_v5 = vor.u32 %v2124_v63, %v1604_v61  ;;  %868 = vmatpush.bf16.msra.mxu3 %v1877_v62  ;;  %v1670_v47 = vld [vmem:[#allocation3 + $0x1d0] sm:$0xf0] }
  0x1d   :  { %v1860_v2 = vld [vmem:[#allocation3 + $0x340] sm:$0xf]  ;;  %v2188_v3 = vld [vmem:[#allocation3 + $0x34c] sm:$0xf0]  ;;  %v1733_v6 = vor.u32 %v2156_v1, %v1732_v0  ;;  %830 = vmatpush.bf16.msra.mxu0 %v1477_v4  ;;  %v2170_v48 = vld [vmem:[#allocation3 + $0x2c4] sm:$0xf]  ;;  %v1673_v54 = vor.u32 %v2138_v45, %v1670_v47 }
  0x1e   :  { %v1460_v7 = vld [vmem:[#allocation3 + $0x20] sm:$0xf]  ;;  %v2088_v8 = vld [vmem:[#allocation3 + $0x2c] sm:$0xf0]  ;;  %v1861_v10 = vor.u32 %v2188_v3, %v1860_v2  ;;  %843 = vmatpush.bf16.msra.mxu1 %v1605_v5  ;;  %v1798_v49 = vld [vmem:[#allocation3 + $0x2d0] sm:$0xf0] }
  0x1f   :  { %v1588_v9 = vld [vmem:[#allocation3 + $0x120] sm:$0xf]  ;;  %v2120_v11 = vld [vmem:[#allocation3 + $0x12c] sm:$0xf0]  ;;  %v1461_v16 = vor.u32 %v2088_v8, %v1460_v7  ;;  %856 = vmatpush.bf16.msra.mxu2 %v1733_v6  ;;  %v2202_v50 = vld [vmem:[#allocation3 + $0x3c4] sm:$0xf]  ;;  %v1801_v55 = vor.u32 %v2170_v48, %v1798_v49 }
  0x20   :  { %v1716_v12 = vld [vmem:[#allocation3 + $0x220] sm:$0xf]  ;;  %v2152_v13 = vld [vmem:[#allocation3 + $0x22c] sm:$0xf0]  ;;  %v1589_v19 = vor.u32 %v2120_v11, %v1588_v9  ;;  %869 = vmatpush.bf16.msra.mxu3 %v1861_v10  ;;  %v1926_v51 = vld [vmem:[#allocation3 + $0x3d0] sm:$0xf0] }
  0x21   :  { %v1844_v14 = vld [vmem:[#allocation3 + $0x320] sm:$0xf]  ;;  %v2184_v15 = vld [vmem:[#allocation3 + $0x32c] sm:$0xf0]  ;;  %v1717_v20 = vor.u32 %v2152_v13, %v1716_v12  ;;  %831 = vmatpush.bf16.msra.mxu0 %v1461_v16  ;;  %v46_v52 = vld [vmem:[%s2506_s0] sm:$0xf]  ;;  %v1929_v59 = vor.u32 %v2202_v50, %v1926_v51 }
  0x22   :  { %v1444_v17 = vld [vmem:[#allocation3] sm:$0xf]  ;;  %v2084_v18 = vld [vmem:[#allocation3 + $0xc] sm:$0xf0]  ;;  %v1845_v24 = vor.u32 %v2184_v15, %v1844_v14  ;;  %844 = vmatpush.bf16.msra.mxu1 %v1589_v19  ;;  %176 = vst [vmem:[#allocation1] ss:$9 sm:$0xff] %v46_v52 }
  0x23   :  { %v1572_v21 = vld [vmem:[#allocation3 + $0x100] sm:$0xf]  ;;  %v2116_v22 = vld [vmem:[#allocation3 + $0x10c] sm:$0xf0]  ;;  %v1445_v31 = vor.u32 %v2084_v18, %v1444_v17  ;;  %857 = vmatpush.bf16.msra.mxu2 %v1717_v20  ;;  %v2102_v56 = vld [vmem:[#allocation3 + $0xa4] sm:$0xf] }
  0x24   :  { %v1700_v23 = vld [vmem:[#allocation3 + $0x200] sm:$0xf]  ;;  %v2148_v25 = vld [vmem:[#allocation3 + $0x20c] sm:$0xf0]  ;;  %v1573_v35 = vor.u32 %v2116_v22, %v1572_v21  ;;  %870 = vmatpush.bf16.msra.mxu3 %v1845_v24  ;;  %v1526_v57 = vld [vmem:[#allocation3 + $0xb0] sm:$0xf0] }
  0x25   :  { %v1828_v26 = vld [vmem:[#allocation3 + $0x300] sm:$0xf]  ;;  %v2180_v27 = vld [vmem:[#allocation3 + $0x30c] sm:$0xf0]  ;;  %v1701_v36 = vor.u32 %v2148_v25, %v1700_v23  ;;  %832 = vmatpush.bf16.msra.mxu0 %v1445_v31  ;;  %v2134_v58 = vld [vmem:[#allocation3 + $0x1a4] sm:$0xf]  ;;  %v1529_v1 = vor.u32 %v2102_v56, %v1526_v57 }
  0x26   :  { %v1829_v39 = vor.u32 %v2180_v27, %v1828_v26  ;;  %845 = vmatpush.bf16.msra.mxu1 %v1573_v35  ;;  %v1654_v60 = vld [vmem:[#allocation3 + $0x1b0] sm:$0xf0]  ;;  %v2166_v61 = vld [vmem:[#allocation3 + $0x2a4] sm:$0xf] }
  0x27   :  { %858 = vmatpush.bf16.msra.mxu2 %v1701_v36  ;;  %v1782_v62 = vld [vmem:[#allocation3 + $0x2b0] sm:$0xf0]  ;;  %v2198_v63 = vld [vmem:[#allocation3 + $0x3a4] sm:$0xf]  ;;  %v1657_v3 = vor.u32 %v2134_v58, %v1654_v60 }
  0x28   :  { %871 = vmatpush.bf16.msra.mxu3 %v1829_v39  ;;  %v1910_v0 = vld [vmem:[#allocation3 + $0x3b0] sm:$0xf0]  ;;  %v2098_v2 = vld [vmem:[#allocation3 + $0x84] sm:$0xf]  ;;  %v1785_v4 = vor.u32 %v2166_v61, %v1782_v62 }
  0x29   :  { %877 = vmatpush.bf16.msrb.mxu0 %v1561_v40  ;;  %v1510_v5 = vld [vmem:[#allocation3 + $0x90] sm:$0xf0]  ;;  %v2130_v6 = vld [vmem:[#allocation3 + $0x184] sm:$0xf]  ;;  %v1913_v8 = vor.u32 %v2198_v63, %v1910_v0  ;;  %v2346_v13 = vld [vmem:[#allocation1 + $0x12] sm:$0xff] }
  0x2a   :  { %890 = vmatpush.bf16.msrb.mxu1 %v1689_v41  ;;  %v1638_v7 = vld [vmem:[#allocation3 + $0x190] sm:$0xf0]  ;;  %v2162_v9 = vld [vmem:[#allocation3 + $0x284] sm:$0xf]  ;;  %v2348_v14 = vld [vmem:[#allocation1] sm:$0xff]  ;;  %v1513_v15 = vor.u32 %v2098_v2, %v1510_v5  ;;  %859 = vmatmul.bf16.vlgmr.msra.gmra.mxu2 %v2346_v13 }
  0x2b   :  { %903 = vmatpush.bf16.msrb.mxu2 %v1817_v42  ;;  %v1766_v10 = vld [vmem:[#allocation3 + $0x290] sm:$0xf0]  ;;  %v2194_v11 = vld [vmem:[#allocation3 + $0x384] sm:$0xf]  ;;  %v1641_v18 = vor.u32 %v2130_v6, %v1638_v7  ;;  %833 = vmatmul.bf16.vlgmr.msra.gmra.mxu0 %v2348_v14  ;;  %v2113_v2 = vld [vmem:[#allocation3 + $0xf4] sm:$0xf0] }
  0x2c   :  { %916 = vmatpush.bf16.msrb.mxu3 %v1945_v46  ;;  %v1894_v12 = vld [vmem:[#allocation3 + $0x390] sm:$0xf0]  ;;  %v2353_v17 = vld [vmem:[#allocation1 + $0x9] sm:$0xff]  ;;  %v1769_v19 = vor.u32 %v2162_v9, %v1766_v10  ;;  %v2145_v5 = vld [vmem:[#allocation3 + $0x1f4] sm:$0xf0] }
  0x2d   :  { %878 = vmatpush.bf16.msrb.mxu0 %v1545_v53  ;;  %v2351_v16 = vld [vmem:[#allocation1 + $0x1b] sm:$0xff]  ;;  %v2094_v20 = vld [vmem:[#allocation3 + $0x64] sm:$0xf]  ;;  %v1897_v23 = vor.u32 %v2194_v11, %v1894_v12  ;;  %846 = vmatmul.bf16.vlgmr.msra.gmra.mxu1 %v2353_v17  ;;  %v1820_v6 = vld [vmem:[#allocation3 + $0x2e8] sm:$0xf] }
  0x2e   :  { %891 = vmatpush.bf16.msrb.mxu1 %v1673_v54  ;;  %v1494_v21 = vld [vmem:[#allocation3 + $0x70] sm:$0xf0]  ;;  %v2126_v22 = vld [vmem:[#allocation3 + $0x164] sm:$0xf]  ;;  %872 = vmatmul.bf16.vlgmr.msra.gmra.mxu3 %v2351_v16  ;;  %v2177_v7 = vld [vmem:[#allocation3 + $0x2f4] sm:$0xf0] }
  0x2f   :  { %904 = vmatpush.bf16.msrb.mxu2 %v1801_v55  ;;  %v1622_v24 = vld [vmem:[#allocation3 + $0x170] sm:$0xf0]  ;;  %v2158_v25 = vld [vmem:[#allocation3 + $0x264] sm:$0xf]  ;;  %v1497_v29 = vor.u32 %v2094_v20, %v1494_v21  ;;  %v1948_v10 = vld [vmem:[#allocation3 + $0x3e8] sm:$0xf] }
  0x30   :  { %917 = vmatpush.bf16.msrb.mxu3 %v1929_v59  ;;  %v1750_v26 = vld [vmem:[#allocation3 + $0x270] sm:$0xf0]  ;;  %v2190_v27 = vld [vmem:[#allocation3 + $0x364] sm:$0xf]  ;;  %v1625_v30 = vor.u32 %v2126_v22, %v1622_v24  ;;  %v2209_v11 = vld [vmem:[#allocation3 + $0x3f4] sm:$0xf0] }
  0x31   :  { %879 = vmatpush.bf16.msrb.mxu0 %v1529_v1  ;;  %v1878_v28 = vld [vmem:[#allocation3 + $0x370] sm:$0xf0]  ;;  %v1753_v31 = vor.u32 %v2158_v25, %v1750_v26  ;;  %v2090_v32 = vld [vmem:[#allocation3 + $0x44] sm:$0xf]  ;;  %v1564_v1 = vld [vmem:[#allocation3 + $0xe8] sm:$0xf] }
  0x32   :  { %892 = vmatpush.bf16.msrb.mxu1 %v1657_v3  ;;  %v1478_v33 = vld [vmem:[#allocation3 + $0x50] sm:$0xf0]  ;;  %v2122_v34 = vld [vmem:[#allocation3 + $0x144] sm:$0xf]  ;;  %v1881_v35 = vor.u32 %v2190_v27, %v1878_v28  ;;  %v1692_v3 = vld [vmem:[#allocation3 + $0x1e8] sm:$0xf] }
  0x33   :  { %905 = vmatpush.bf16.msrb.mxu2 %v1785_v4  ;;  %v1606_v36 = vld [vmem:[#allocation3 + $0x150] sm:$0xf0]  ;;  %v2154_v37 = vld [vmem:[#allocation3 + $0x244] sm:$0xf]  ;;  %v1481_v41 = vor.u32 %v2090_v32, %v1478_v33  ;;  %v1548_v20 = vld [vmem:[#allocation3 + $0xc8] sm:$0xf] }
  0x34   :  { %918 = vmatpush.bf16.msrb.mxu3 %v1913_v8  ;;  %v1734_v38 = vld [vmem:[#allocation3 + $0x250] sm:$0xf0]  ;;  %v2186_v39 = vld [vmem:[#allocation3 + $0x344] sm:$0xf]  ;;  %v1609_v42 = vor.u32 %v2122_v34, %v1606_v36  ;;  %v2109_v21 = vld [vmem:[#allocation3 + $0xd4] sm:$0xf0] }
  0x35   :  { %880 = vmatpush.bf16.msrb.mxu0 %v1513_v15  ;;  %v1862_v40 = vld [vmem:[#allocation3 + $0x350] sm:$0xf0]  ;;  %v1737_v43 = vor.u32 %v2154_v37, %v1734_v38  ;;  %v2086_v44 = vld [vmem:[#allocation3 + $0x24] sm:$0xf]  ;;  %v1565_v15 = vor.u32 %v2113_v2, %v1564_v1  ;;  %v1676_v22 = vld [vmem:[#allocation3 + $0x1c8] sm:$0xf] }
  0x36   :  { %893 = vmatpush.bf16.msrb.mxu1 %v1641_v18  ;;  %v1462_v45 = vld [vmem:[#allocation3 + $0x30] sm:$0xf0]  ;;  %v2118_v46 = vld [vmem:[#allocation3 + $0x124] sm:$0xf]  ;;  %v1865_v47 = vor.u32 %v2186_v39, %v1862_v40  ;;  %v1693_v18 = vor.u32 %v2145_v5, %v1692_v3  ;;  %v2141_v24 = vld [vmem:[#allocation3 + $0x1d4] sm:$0xf0] }
  0x37   :  { %906 = vmatpush.bf16.msrb.mxu2 %v1769_v19  ;;  %v1590_v48 = vld [vmem:[#allocation3 + $0x130] sm:$0xf0]  ;;  %v2150_v49 = vld [vmem:[#allocation3 + $0x224] sm:$0xf]  ;;  %v1465_v53 = vor.u32 %v2086_v44, %v1462_v45  ;;  %v1821_v19 = vor.u32 %v2177_v7, %v1820_v6  ;;  %v1804_v25 = vld [vmem:[#allocation3 + $0x2c8] sm:$0xf] }
  0x38   :  { %919 = vmatpush.bf16.msrb.mxu3 %v1897_v23  ;;  %v1718_v50 = vld [vmem:[#allocation3 + $0x230] sm:$0xf0]  ;;  %v2182_v51 = vld [vmem:[#allocation3 + $0x324] sm:$0xf]  ;;  %v1593_v56 = vor.u32 %v2118_v46, %v1590_v48  ;;  %v1949_v23 = vor.u32 %v2209_v11, %v1948_v10  ;;  %v2173_v26 = vld [vmem:[#allocation3 + $0x2d4] sm:$0xf0] }
  0x39   :  { %881 = vmatpush.bf16.msrb.mxu0 %v1497_v29  ;;  %v1846_v52 = vld [vmem:[#allocation3 + $0x330] sm:$0xf0]  ;;  %v2082_v54 = vld [vmem:[#allocation3 + $0x4] sm:$0xf]  ;;  %v1721_v57 = vor.u32 %v2150_v49, %v1718_v50  ;;  %v1932_v27 = vld [vmem:[#allocation3 + $0x3c8] sm:$0xf]  ;;  %v1549_v29 = vor.u32 %v2109_v21, %v1548_v20 }
  0x3a   :  { %894 = vmatpush.bf16.msrb.mxu1 %v1625_v30  ;;  %v1446_v55 = vld [vmem:[#allocation3 + $0x10] sm:$0xf0]  ;;  %v2114_v58 = vld [vmem:[#allocation3 + $0x104] sm:$0xf]  ;;  %v1849_v61 = vor.u32 %v2182_v51, %v1846_v52  ;;  %v2205_v28 = vld [vmem:[#allocation3 + $0x3d4] sm:$0xf0]  ;;  %v1677_v30 = vor.u32 %v2141_v24, %v1676_v22 }
  0x3b   :  { %907 = vmatpush.bf16.msrb.mxu2 %v1753_v31  ;;  %v1574_v59 = vld [vmem:[#allocation3 + $0x110] sm:$0xf0]  ;;  %v2146_v60 = vld [vmem:[#allocation3 + $0x204] sm:$0xf]  ;;  %v1449_v4 = vor.u32 %v2082_v54, %v1446_v55  ;;  %v1805_v31 = vor.u32 %v2173_v26, %v1804_v25  ;;  %v1532_v32 = vld [vmem:[#allocation3 + $0xa8] sm:$0xf] }
  0x3c   :  { %920 = vmatpush.bf16.msrb.mxu3 %v1881_v35  ;;  %v1702_v62 = vld [vmem:[#allocation3 + $0x210] sm:$0xf0]  ;;  %v2178_v63 = vld [vmem:[#allocation3 + $0x304] sm:$0xf]  ;;  %v1577_v8 = vor.u32 %v2114_v58, %v1574_v59  ;;  %v2105_v33 = vld [vmem:[#allocation3 + $0xb4] sm:$0xf0]  ;;  %v1933_v35 = vor.u32 %v2205_v28, %v1932_v27 }
  0x3d   :  { %882 = vmatpush.bf16.msrb.mxu0 %v1481_v41  ;;  %v1830_v0 = vld [vmem:[#allocation3 + $0x310] sm:$0xf0]  ;;  %v1705_v9 = vor.u32 %v2146_v60, %v1702_v62  ;;  %v1660_v34 = vld [vmem:[#allocation3 + $0x1a8] sm:$0xf]  ;;  %v2137_v36 = vld [vmem:[#allocation3 + $0x1b4] sm:$0xf0]  ;;  %v1533_v41 = vor.u32 %v2105_v33, %v1532_v32 }
  0x3e   :  { %895 = vmatpush.bf16.msrb.mxu1 %v1609_v42  ;;  %v1833_v12 = vor.u32 %v2178_v63, %v1830_v0  ;;  %v1788_v37 = vld [vmem:[#allocation3 + $0x2a8] sm:$0xf]  ;;  %v2169_v38 = vld [vmem:[#allocation3 + $0x2b4] sm:$0xf0]  ;;  %v1661_v42 = vor.u32 %v2137_v36, %v1660_v34 }
  0x3f   :  { %908 = vmatpush.bf16.msrb.mxu2 %v1737_v43  ;;  %v1916_v39 = vld [vmem:[#allocation3 + $0x3a8] sm:$0xf]  ;;  %v2201_v40 = vld [vmem:[#allocation3 + $0x3b4] sm:$0xf0]  ;;  %v1789_v43 = vor.u32 %v2169_v38, %v1788_v37 }
  0x40   :  { %921 = vmatpush.bf16.msrb.mxu3 %v1865_v47  ;;  %v1516_v44 = vld [vmem:[#allocation3 + $0x88] sm:$0xf]  ;;  %v2101_v45 = vld [vmem:[#allocation3 + $0x94] sm:$0xf0]  ;;  %v1917_v47 = vor.u32 %v2201_v40, %v1916_v39 }
  0x41   :  { %883 = vmatpush.bf16.msrb.mxu0 %v1465_v53  ;;  %v1644_v46 = vld [vmem:[#allocation3 + $0x188] sm:$0xf]  ;;  %v2133_v48 = vld [vmem:[#allocation3 + $0x194] sm:$0xf0]  ;;  %v1517_v53 = vor.u32 %v2101_v45, %v1516_v44  ;;  %v1694_v45 = vld [vmem:[#allocation3 + $0x1f8] sm:$0xf0] }
  0x42   :  { %896 = vmatpush.bf16.msrb.mxu1 %v1593_v56  ;;  %v1772_v49 = vld [vmem:[#allocation3 + $0x288] sm:$0xf]  ;;  %v2165_v50 = vld [vmem:[#allocation3 + $0x294] sm:$0xf0]  ;;  %v1645_v54 = vor.u32 %v2133_v48, %v1644_v46  ;;  %v2175_v46 = vld [vmem:[#allocation3 + $0x2ec] sm:$0xf] }
  0x43   :  { %909 = vmatpush.bf16.msrb.mxu2 %v1721_v57  ;;  %v1900_v51 = vld [vmem:[#allocation3 + $0x388] sm:$0xf]  ;;  %v2197_v52 = vld [vmem:[#allocation3 + $0x394] sm:$0xf0]  ;;  %v1773_v55 = vor.u32 %v2165_v50, %v1772_v49  ;;  %v2207_v50 = vld [vmem:[#allocation3 + $0x3ec] sm:$0xf] }
  0x44   :  { %922 = vmatpush.bf16.msrb.mxu3 %v1849_v61  ;;  %v1500_v56 = vld [vmem:[#allocation3 + $0x68] sm:$0xf]  ;;  %v2097_v57 = vld [vmem:[#allocation3 + $0x74] sm:$0xf0]  ;;  %v1901_v59 = vor.u32 %v2197_v52, %v1900_v51  ;;  %v1950_v51 = vld [vmem:[#allocation3 + $0x3f8] sm:$0xf0] }
  0x45   :  { %884 = vmatpush.bf16.msrb.mxu0 %v1449_v4  ;;  %v1628_v58 = vld [vmem:[#allocation3 + $0x168] sm:$0xf]  ;;  %v2129_v60 = vld [vmem:[#allocation3 + $0x174] sm:$0xf0]  ;;  %v1501_v1 = vor.u32 %v2097_v57, %v1500_v56  ;;  %v2107_v56 = vld [vmem:[#allocation3 + $0xcc] sm:$0xf] }
  0x46   :  { %897 = vmatpush.bf16.msrb.mxu1 %v1577_v8  ;;  %v1756_v61 = vld [vmem:[#allocation3 + $0x268] sm:$0xf]  ;;  %v2161_v62 = vld [vmem:[#allocation3 + $0x274] sm:$0xf0]  ;;  %v1629_v2 = vor.u32 %v2129_v60, %v1628_v58  ;;  %v1550_v57 = vld [vmem:[#allocation3 + $0xd8] sm:$0xf0] }
  0x47   :  { %910 = vmatpush.bf16.msrb.mxu2 %v1705_v9  ;;  %v1884_v63 = vld [vmem:[#allocation3 + $0x368] sm:$0xf]  ;;  %v2193_v0 = vld [vmem:[#allocation3 + $0x374] sm:$0xf0]  ;;  %v1757_v3 = vor.u32 %v2161_v62, %v1756_v61  ;;  %v2139_v58 = vld [vmem:[#allocation3 + $0x1cc] sm:$0xf] }
  0x48   :  { %923 = vmatpush.bf16.msrb.mxu3 %v1833_v12  ;;  %885 = vmatmul.bf16.vlgmr.msrb.gmra.mxu0 %v2348_v14  ;;  %v1484_v4 = vld [vmem:[#allocation3 + $0x48] sm:$0xf]  ;;  %v2093_v5 = vld [vmem:[#allocation3 + $0x54] sm:$0xf0]  ;;  %v1885_v7 = vor.u32 %v2193_v0, %v1884_v63  ;;  %v1678_v60 = vld [vmem:[#allocation3 + $0x1d8] sm:$0xf0] }
  0x49   :  { %929 = vmatpush.bf16.msra.mxu0 %v1565_v15  ;;  %898 = vmatmul.bf16.vlgmr.msrb.gmra.mxu1 %v2353_v17  ;;  %v1612_v6 = vld [vmem:[#allocation3 + $0x148] sm:$0xf]  ;;  %v2125_v8 = vld [vmem:[#allocation3 + $0x154] sm:$0xf0]  ;;  %v1485_v15 = vor.u32 %v2093_v5, %v1484_v4  ;;  %v2171_v61 = vld [vmem:[#allocation3 + $0x2cc] sm:$0xf] }
  0x4a   :  { %942 = vmatpush.bf16.msra.mxu1 %v1693_v18  ;;  %911 = vmatmul.bf16.vlgmr.msrb.gmra.mxu2 %v2346_v13  ;;  %v1740_v9 = vld [vmem:[#allocation3 + $0x248] sm:$0xf]  ;;  %v2157_v10 = vld [vmem:[#allocation3 + $0x254] sm:$0xf0]  ;;  %v1613_v18 = vor.u32 %v2125_v8, %v1612_v6  ;;  %v1806_v62 = vld [vmem:[#allocation3 + $0x2d8] sm:$0xf0] }
  0x4b   :  { %955 = vmatpush.bf16.msra.mxu2 %v1821_v19  ;;  %924 = vmatmul.bf16.vlgmr.msrb.gmra.mxu3 %v2351_v16  ;;  %v1868_v11 = vld [vmem:[#allocation3 + $0x348] sm:$0xf]  ;;  %v2189_v12 = vld [vmem:[#allocation3 + $0x354] sm:$0xf0]  ;;  %v1741_v19 = vor.u32 %v2157_v10, %v1740_v9  ;;  %v2203_v63 = vld [vmem:[#allocation3 + $0x3cc] sm:$0xf] }
  0x4c   :  { %968 = vmatpush.bf16.msra.mxu3 %v1949_v23  ;;  %v1468_v20 = vld [vmem:[#allocation3 + $0x28] sm:$0xf]  ;;  %v2089_v21 = vld [vmem:[#allocation3 + $0x34] sm:$0xf0]  ;;  %v1869_v23 = vor.u32 %v2189_v12, %v1868_v11  ;;  %v1934_v0 = vld [vmem:[#allocation3 + $0x3d8] sm:$0xf0] }
  0x4d   :  { %930 = vmatpush.bf16.msra.mxu0 %v1549_v29  ;;  %v1596_v22 = vld [vmem:[#allocation3 + $0x128] sm:$0xf]  ;;  %v2121_v24 = vld [vmem:[#allocation3 + $0x134] sm:$0xf0]  ;;  %v1469_v29 = vor.u32 %v2089_v21, %v1468_v20  ;;  %v2103_v4 = vld [vmem:[#allocation3 + $0xac] sm:$0xf] }
  0x4e   :  { %943 = vmatpush.bf16.msra.mxu1 %v1677_v30  ;;  %v1724_v25 = vld [vmem:[#allocation3 + $0x228] sm:$0xf]  ;;  %v2153_v26 = vld [vmem:[#allocation3 + $0x234] sm:$0xf0]  ;;  %v1597_v32 = vor.u32 %v2121_v24, %v1596_v22  ;;  %v1534_v5 = vld [vmem:[#allocation3 + $0xb8] sm:$0xf0] }
  0x4f   :  { %956 = vmatpush.bf16.msra.mxu2 %v1805_v31  ;;  %v1852_v27 = vld [vmem:[#allocation3 + $0x328] sm:$0xf]  ;;  %v2185_v28 = vld [vmem:[#allocation3 + $0x334] sm:$0xf0]  ;;  %v1725_v33 = vor.u32 %v2153_v26, %v1724_v25  ;;  %v2135_v6 = vld [vmem:[#allocation3 + $0x1ac] sm:$0xf] }
  0x50   :  { %969 = vmatpush.bf16.msra.mxu3 %v1933_v35  ;;  %v1452_v30 = vld [vmem:[#allocation3 + $0x8] sm:$0xf]  ;;  %v2085_v31 = vld [vmem:[#allocation3 + $0x14] sm:$0xf0]  ;;  %v1853_v37 = vor.u32 %v2185_v28, %v1852_v27  ;;  %v1662_v8 = vld [vmem:[#allocation3 + $0x1b8] sm:$0xf0] }
  0x51   :  { %931 = vmatpush.bf16.msra.mxu0 %v1533_v41  ;;  %v1580_v34 = vld [vmem:[#allocation3 + $0x108] sm:$0xf]  ;;  %v2117_v35 = vld [vmem:[#allocation3 + $0x114] sm:$0xf0]  ;;  %v2111_v41 = vld [vmem:[#allocation3 + $0xec] sm:$0xf]  ;;  %v1453_v44 = vor.u32 %v2085_v31, %v1452_v30 }
  0x52   :  { %944 = vmatpush.bf16.msra.mxu1 %v1661_v42  ;;  %v1708_v36 = vld [vmem:[#allocation3 + $0x208] sm:$0xf]  ;;  %v2149_v38 = vld [vmem:[#allocation3 + $0x214] sm:$0xf0]  ;;  %v1566_v42 = vld [vmem:[#allocation3 + $0xf8] sm:$0xf0]  ;;  %v1581_v48 = vor.u32 %v2117_v35, %v1580_v34 }
  0x53   :  { %957 = vmatpush.bf16.msra.mxu2 %v1789_v43  ;;  %v1836_v39 = vld [vmem:[#allocation3 + $0x308] sm:$0xf]  ;;  %v2181_v40 = vld [vmem:[#allocation3 + $0x314] sm:$0xf0]  ;;  %v2143_v43 = vld [vmem:[#allocation3 + $0x1ec] sm:$0xf]  ;;  %v1709_v49 = vor.u32 %v2149_v38, %v1708_v36 }
  0x54   :  { %970 = vmatpush.bf16.msra.mxu3 %v1917_v47  ;;  %v1822_v47 = vld [vmem:[#allocation3 + $0x2f8] sm:$0xf0]  ;;  %v1837_v52 = vor.u32 %v2181_v40, %v1836_v39  ;;  %v2167_v9 = vld [vmem:[#allocation3 + $0x2ac] sm:$0xf] }
  0x55   :  { %932 = vmatpush.bf16.msra.mxu0 %v1517_v53  ;;  %v1569_v53 = vor.u32 %v2111_v41, %v1566_v42  ;;  %v1790_v10 = vld [vmem:[#allocation3 + $0x2b8] sm:$0xf0]  ;;  %v2199_v11 = vld [vmem:[#allocation3 + $0x3ac] sm:$0xf] }
  0x56   :  { %945 = vmatpush.bf16.msra.mxu1 %v1645_v54  ;;  %v1697_v54 = vor.u32 %v2143_v43, %v1694_v45  ;;  %v1918_v12 = vld [vmem:[#allocation3 + $0x3b8] sm:$0xf0]  ;;  %v2099_v20 = vld [vmem:[#allocation3 + $0x8c] sm:$0xf] }
  0x57   :  { %958 = vmatpush.bf16.msra.mxu2 %v1773_v55  ;;  %v1825_v55 = vor.u32 %v2175_v46, %v1822_v47  ;;  %v1518_v21 = vld [vmem:[#allocation3 + $0x98] sm:$0xf0]  ;;  %v2131_v22 = vld [vmem:[#allocation3 + $0x18c] sm:$0xf] }
  0x58   :  { %971 = vmatpush.bf16.msra.mxu3 %v1901_v59  ;;  %v1953_v59 = vor.u32 %v2207_v50, %v1950_v51  ;;  %v1646_v24 = vld [vmem:[#allocation3 + $0x198] sm:$0xf0]  ;;  %v2163_v25 = vld [vmem:[#allocation3 + $0x28c] sm:$0xf] }
  0x59   :  { %933 = vmatpush.bf16.msra.mxu0 %v1501_v1  ;;  %v1553_v1 = vor.u32 %v2107_v56, %v1550_v57  ;;  %v1774_v26 = vld [vmem:[#allocation3 + $0x298] sm:$0xf0]  ;;  %v2195_v27 = vld [vmem:[#allocation3 + $0x38c] sm:$0xf]  ;;  %v1649_v30 = vor.u32 %v2131_v22, %v1646_v24 }
  0x5a   :  { %946 = vmatpush.bf16.msra.mxu1 %v1629_v2  ;;  %v1681_v2 = vor.u32 %v2139_v58, %v1678_v60  ;;  %v1902_v28 = vld [vmem:[#allocation3 + $0x398] sm:$0xf0]  ;;  %v1777_v31 = vor.u32 %v2163_v25, %v1774_v26  ;;  %v2127_v34 = vld [vmem:[#allocation3 + $0x16c] sm:$0xf] }
  0x5b   :  { %959 = vmatpush.bf16.msra.mxu2 %v1757_v3  ;;  %v1809_v3 = vor.u32 %v2171_v61, %v1806_v62  ;;  %v1905_v35 = vor.u32 %v2195_v27, %v1902_v28  ;;  %v1630_v36 = vld [vmem:[#allocation3 + $0x178] sm:$0xf0]  ;;  %v2191_v39 = vld [vmem:[#allocation3 + $0x36c] sm:$0xf] }
  0x5c   :  { %972 = vmatpush.bf16.msra.mxu3 %v1885_v7  ;;  %v1937_v7 = vor.u32 %v2203_v63, %v1934_v0  ;;  %v1758_v38 = vld [vmem:[#allocation3 + $0x278] sm:$0xf0]  ;;  %v1633_v42 = vor.u32 %v2127_v34, %v1630_v36  ;;  %v2123_v46 = vld [vmem:[#allocation3 + $0x14c] sm:$0xf]  ;;  %v2217_v36 = vld [vmem:[%s2510_s4 + $0x38] sm:$0xff] }
  0x5d   :  { %934 = vmatpush.bf16.msra.mxu0 %v1485_v15  ;;  %v1537_v15 = vor.u32 %v2103_v4, %v1534_v5  ;;  %v1886_v40 = vld [vmem:[#allocation3 + $0x378] sm:$0xf0]  ;;  %v2187_v51 = vld [vmem:[#allocation3 + $0x34c] sm:$0xf] }
  0x5e   :  { %947 = vmatpush.bf16.msra.mxu1 %v1613_v18  ;;  %v1665_v18 = vor.u32 %v2135_v6, %v1662_v8  ;;  %v1486_v45 = vld [vmem:[#allocation3 + $0x58] sm:$0xf0]  ;;  %v1889_v47 = vor.u32 %v2191_v39, %v1886_v40  ;;  %v2087_v56 = vld [vmem:[#allocation3 + $0x2c] sm:$0xf]  ;;  %v2241_v39 = vld [vmem:[%s2510_s4 + $0xf8] sm:$0xff] }
  0x5f   :  { %960 = vmatpush.bf16.msra.mxu2 %v1741_v19  ;;  %v1793_v19 = vor.u32 %v2167_v9, %v1790_v10  ;;  %v1742_v50 = vld [vmem:[#allocation3 + $0x258] sm:$0xf0]  ;;  %v2119_v58 = vld [vmem:[#allocation3 + $0x12c] sm:$0xf] }
  0x60   :  { %973 = vmatpush.bf16.msra.mxu3 %v1869_v23  ;;  %v1921_v23 = vor.u32 %v2199_v11, %v1918_v12  ;;  %v1470_v57 = vld [vmem:[#allocation3 + $0x38] sm:$0xf0]  ;;  %v2151_v61 = vld [vmem:[#allocation3 + $0x22c] sm:$0xf] }
  0x61   :  { %935 = vmatpush.bf16.msra.mxu0 %v1469_v29  ;;  %v1521_v29 = vor.u32 %v2099_v20, %v1518_v21  ;;  %v1598_v60 = vld [vmem:[#allocation3 + $0x138] sm:$0xf0]  ;;  %v2183_v63 = vld [vmem:[#allocation3 + $0x32c] sm:$0xf] }
  0x62   :  { %948 = vmatpush.bf16.msra.mxu1 %v1597_v32  ;;  %v2095_v32 = vld [vmem:[#allocation3 + $0x6c] sm:$0xf]  ;;  %v1726_v62 = vld [vmem:[#allocation3 + $0x238] sm:$0xf0] }
  0x63   :  { %961 = vmatpush.bf16.msra.mxu2 %v1725_v33  ;;  %v1502_v33 = vld [vmem:[#allocation3 + $0x78] sm:$0xf0]  ;;  %v2083_v4 = vld [vmem:[#allocation3 + $0xc] sm:$0xf] }
  0x64   :  { %974 = vmatpush.bf16.msra.mxu3 %v1853_v37  ;;  %v2159_v37 = vld [vmem:[#allocation3 + $0x26c] sm:$0xf]  ;;  %v1505_v41 = vor.u32 %v2095_v32, %v1502_v33  ;;  %v1854_v0 = vld [vmem:[#allocation3 + $0x338] sm:$0xf0] }
  0x65   :  { %936 = vmatpush.bf16.msra.mxu0 %v1453_v44  ;;  %v1761_v43 = vor.u32 %v2159_v37, %v1758_v38  ;;  %v2091_v44 = vld [vmem:[#allocation3 + $0x4c] sm:$0xf]  ;;  %v1454_v5 = vld [vmem:[#allocation3 + $0x18] sm:$0xf0]  ;;  %v2225_v37 = vld [vmem:[%s2510_s4 + $0x78] sm:$0xff] }
  0x66   :  { %949 = vmatpush.bf16.msra.mxu1 %v1581_v48  ;;  %v1614_v48 = vld [vmem:[#allocation3 + $0x158] sm:$0xf0]  ;;  %v2115_v6 = vld [vmem:[#allocation3 + $0x10c] sm:$0xf]  ;;  %v2233_v38 = vld [vmem:[%s2510_s4 + $0xb8] sm:$0xff] }
  0x67   :  { %962 = vmatpush.bf16.msra.mxu2 %v1709_v49  ;;  %v2155_v49 = vld [vmem:[#allocation3 + $0x24c] sm:$0xf]  ;;  %v1582_v8 = vld [vmem:[#allocation3 + $0x118] sm:$0xf0] }
  0x68   :  { %975 = vmatpush.bf16.msra.mxu3 %v1837_v52  ;;  %937 = vmatmul.bf16.vlgmr.msra.gmra.mxu0 %v2348_v14  ;;  %v1870_v52 = vld [vmem:[#allocation3 + $0x358] sm:$0xf0]  ;;  %v2147_v9 = vld [vmem:[#allocation3 + $0x20c] sm:$0xf] }
  0x69   :  { %981 = vmatpush.bf16.msrb.mxu0 %v1569_v53  ;;  %950 = vmatmul.bf16.vlgmr.msra.gmra.mxu1 %v2353_v17  ;;  %v1489_v53 = vor.u32 %v2091_v44, %v1486_v45  ;;  %v1710_v10 = vld [vmem:[#allocation3 + $0x218] sm:$0xf0]  ;;  %v2179_v11 = vld [vmem:[#allocation3 + $0x30c] sm:$0xf] }
  0x6a   :  { %994 = vmatpush.bf16.msrb.mxu1 %v1697_v54  ;;  %963 = vmatmul.bf16.vlgmr.msra.gmra.mxu2 %v2346_v13  ;;  %v1617_v54 = vor.u32 %v2123_v46, %v1614_v48  ;;  %v1838_v12 = vld [vmem:[#allocation3 + $0x318] sm:$0xf0]  ;;  %v2216_v40 = vld [vmem:[%s2510_s4 + $0x30] sm:$0xff]  ;;  %v2215_v46 = vld [vmem:[%s2510_s4 + $0x28] sm:$0xff] }
  0x6b   :  { %1007 = vmatpush.bf16.msrb.mxu2 %v1825_v55  ;;  %976 = vmatmul.bf16.vlgmr.msra.gmra.mxu3 %v2351_v16  ;;  %v1745_v55 = vor.u32 %v2155_v49, %v1742_v50  ;;  %v1841_v20 = vor.u32 %v2179_v11, %v1838_v12  ;;  %v2231_v48 = vld [vmem:[%s2510_s4 + $0xa8] sm:$0xff]  ;;  %v2234_v11 = vld [vmem:[%s2510_s4 + $0xc0] sm:$0xff] }
  0x6c   :  { %1020 = vmatpush.bf16.msrb.mxu3 %v1953_v59  ;;  %v1873_v59 = vor.u32 %v2187_v51, %v1870_v52  ;;  %v2239_v50 = vld [vmem:[%s2510_s4 + $0xe8] sm:$0xff] }
  0x6d   :  { %982 = vmatpush.bf16.msrb.mxu0 %v1553_v1  ;;  %v1473_v1 = vor.u32 %v2087_v56, %v1470_v57  ;;  %v2238_v57 = vld [vmem:[%s2510_s4 + $0xe0] sm:$0xff] }
  0x6e   :  { %995 = vmatpush.bf16.msrb.mxu1 %v1681_v2  ;;  %v1601_v2 = vor.u32 %v2119_v58, %v1598_v60  ;;  %v2213_v58 = vld [vmem:[%s2510_s4 + $0x18] sm:$0xff] }
  0x6f   :  { %1008 = vmatpush.bf16.msrb.mxu2 %v1809_v3  ;;  %v1729_v3 = vor.u32 %v2151_v61, %v1726_v62  ;;  %v2229_v60 = vld [vmem:[%s2510_s4 + $0x98] sm:$0xff] }
  0x70   :  { %1021 = vmatpush.bf16.msrb.mxu3 %v1937_v7  ;;  %v1857_v7 = vor.u32 %v2183_v63, %v1854_v0  ;;  %v2237_v62 = vld [vmem:[%s2510_s4 + $0xd8] sm:$0xff]  ;;  %v2212_v0 = vld [vmem:[%s2510_s4 + $0x10] sm:$0xff] }
  0x71   :  { %983 = vmatpush.bf16.msrb.mxu0 %v1537_v15  ;;  %v1457_v15 = vor.u32 %v2083_v4, %v1454_v5  ;;  %v2211_v4 = vld [vmem:[%s2510_s4 + $0x8] sm:$0xff] }
  0x72   :  { %996 = vmatpush.bf16.msrb.mxu1 %v1665_v18  ;;  %v1585_v18 = vor.u32 %v2115_v6, %v1582_v8  ;;  %v2219_v5 = vld [vmem:[%s2510_s4 + $0x48] sm:$0xff]  ;;  %v2210_v8 = vld [vmem:[%s2510_s4] sm:$0xff] }
  0x73   :  { %1009 = vmatpush.bf16.msrb.mxu2 %v1793_v19  ;;  %v1713_v19 = vor.u32 %v2147_v9, %v1710_v10  ;;  %v2227_v6 = vld [vmem:[%s2510_s4 + $0x88] sm:$0xff]  ;;  %v2218_v9 = vld [vmem:[%s2510_s4 + $0x40] sm:$0xff] }
  0x74   :  { %1022 = vmatpush.bf16.msrb.mxu3 %v1921_v23  ;;  %v2226_v10 = vld [vmem:[%s2510_s4 + $0x80] sm:$0xff] }
  0x75   :  { %984 = vmatpush.bf16.msrb.mxu0 %v1521_v29 }
  0x76   :  { %997 = vmatpush.bf16.msrb.mxu1 %v1649_v30 }
  0x77   :  { %1010 = vmatpush.bf16.msrb.mxu2 %v1777_v31 }
  0x78   :  { %1023 = vmatpush.bf16.msrb.mxu3 %v1905_v35 }
  0x79   :  { %985 = vmatpush.bf16.msrb.mxu0 %v1505_v41  ;;  %v2224_v41 = vld [vmem:[%s2510_s4 + $0x70] sm:$0xff] }
  0x7a   :  { %998 = vmatpush.bf16.msrb.mxu1 %v1633_v42  ;;  %v2232_v42 = vld [vmem:[%s2510_s4 + $0xb0] sm:$0xff] }
  0x7b   :  { %1011 = vmatpush.bf16.msrb.mxu2 %v1761_v43  ;;  %v2240_v43 = vld [vmem:[%s2510_s4 + $0xf0] sm:$0xff] }
  0x7c   :  { %1024 = vmatpush.bf16.msrb.mxu3 %v1889_v47  ;;  %v2223_v47 = vld [vmem:[%s2510_s4 + $0x68] sm:$0xff] }
  0x7d   :  { %986 = vmatpush.bf16.msrb.mxu0 %v1489_v53  ;;  %v2214_v53 = vld [vmem:[%s2510_s4 + $0x20] sm:$0xff] }
  0x7e   :  { %999 = vmatpush.bf16.msrb.mxu1 %v1617_v54  ;;  %v2222_v54 = vld [vmem:[%s2510_s4 + $0x60] sm:$0xff] }
  0x7f   :  { %1012 = vmatpush.bf16.msrb.mxu2 %v1745_v55  ;;  %v2230_v55 = vld [vmem:[%s2510_s4 + $0xa0] sm:$0xff] }
  0x80   :  { %1025 = vmatpush.bf16.msrb.mxu3 %v1873_v59  ;;  %v2221_v59 = vld [vmem:[%s2510_s4 + $0x58] sm:$0xff] }
  0x81   :  { %987 = vmatpush.bf16.msrb.mxu0 %v1473_v1  ;;  %v2220_v1 = vld [vmem:[%s2510_s4 + $0x50] sm:$0xff] }
  0x82   :  { %1000 = vmatpush.bf16.msrb.mxu1 %v1601_v2  ;;  %v2228_v2 = vld [vmem:[%s2510_s4 + $0x90] sm:$0xff] }
  0x83   :  { %1013 = vmatpush.bf16.msrb.mxu2 %v1729_v3  ;;  %v2236_v3 = vld [vmem:[%s2510_s4 + $0xd0] sm:$0xff] }
  0x84   :  { %1026 = vmatpush.bf16.msrb.mxu3 %v1857_v7  ;;  %v2235_v7 = vld [vmem:[%s2510_s4 + $0xc8] sm:$0xff]  ;;  %s2304_s4 = smov [#allocation6]  }
  0x85   :  { %988 = vmatpush.bf16.msrb.mxu0 %v1457_v15  ;;  %v1053_v15 = vld [vmem:[%s2508_s2] sm:$0xf] }
  0x86   :  { %1001 = vmatpush.bf16.msrb.mxu1 %v1585_v18  ;;  %v1067_v18 = vld [vmem:[%s2509_s3] sm:$0xf] }
  0x87   :  { %1014 = vmatpush.bf16.msrb.mxu2 %v1713_v19 }
  0x88   :  { %1027 = vmatpush.bf16.msrb.mxu3 %v1841_v20  ;;  %989 = vmatmul.bf16.vlgmr.msrb.gmra.mxu0 %v2348_v14 }
  0x89   :  { %1002 = vmatmul.bf16.vlgmr.msrb.gmra.mxu1 %v2353_v17  ;;  %1356 = vmatpush.bf16.msra.mxu0 %v2217_v36 }
  0x8a   :  { %1015 = vmatmul.bf16.vlgmr.msrb.gmra.mxu2 %v2346_v13  ;;  %1369 = vmatpush.bf16.msra.mxu1 %v2225_v37 }
  0x8b   :  { %1028 = vmatmul.bf16.vlgmr.msrb.gmra.mxu3 %v2351_v16  ;;  %1382 = vmatpush.bf16.msra.mxu2 %v2233_v38 }
  0x8c   :  { %1395 = vmatpush.bf16.msra.mxu3 %v2241_v39 }
  0x8d   :  { %1357 = vmatpush.bf16.msra.mxu0 %v2216_v40 }
  0x8e   :  { %1370 = vmatpush.bf16.msra.mxu1 %v2224_v41 }
  0x8f   :  { %1383 = vmatpush.bf16.msra.mxu2 %v2232_v42 }
  0x90   :  { %1396 = vmatpush.bf16.msra.mxu3 %v2240_v43 }
  0x91   :  { %1358 = vmatpush.bf16.msra.mxu0 %v2215_v46 }
  0x92   :  { %1371 = vmatpush.bf16.msra.mxu1 %v2223_v47 }
  0x93   :  { %1384 = vmatpush.bf16.msra.mxu2 %v2231_v48 }
  0x94   :  { %1397 = vmatpush.bf16.msra.mxu3 %v2239_v50 }
  0x95   :  { %1359 = vmatpush.bf16.msra.mxu0 %v2214_v53 }
  0x96   :  { %1372 = vmatpush.bf16.msra.mxu1 %v2222_v54 }
  0x97   :  { %1385 = vmatpush.bf16.msra.mxu2 %v2230_v55 }
  0x98   :  { %1398 = vmatpush.bf16.msra.mxu3 %v2238_v57 }
  0x99   :  { %1360 = vmatpush.bf16.msra.mxu0 %v2213_v58 }
  0x9a   :  { %1373 = vmatpush.bf16.msra.mxu1 %v2221_v59 }
  0x9b   :  { %1386 = vmatpush.bf16.msra.mxu2 %v2229_v60 }
  0x9c   :  { %1399 = vmatpush.bf16.msra.mxu3 %v2237_v62 }
  0x9d   :  { %1361 = vmatpush.bf16.msra.mxu0 %v2212_v0 }
  0x9e   :  { %1374 = vmatpush.bf16.msra.mxu1 %v2220_v1 }
  0x9f   :  { %1387 = vmatpush.bf16.msra.mxu2 %v2228_v2 }
  0xa0   :  { %1400 = vmatpush.bf16.msra.mxu3 %v2236_v3 }
  0xa1   :  { %1362 = vmatpush.bf16.msra.mxu0 %v2211_v4 }
  0xa2   :  { %1375 = vmatpush.bf16.msra.mxu1 %v2219_v5 }
  0xa3   :  { %1388 = vmatpush.bf16.msra.mxu2 %v2227_v6 }
  0xa4   :  { %1401 = vmatpush.bf16.msra.mxu3 %v2235_v7 }
  0xa5   :  { %1363 = vmatpush.bf16.msra.mxu0 %v2210_v8 }
  0xa6   :  { %1376 = vmatpush.bf16.msra.mxu1 %v2218_v9 }
  0xa7   :  { %1389 = vmatpush.bf16.msra.mxu2 %v2226_v10 }
  0xa8   :  { %v834_v21 = vpop.f32.mrf.mxu0  ;;  %1402 = vmatpush.bf16.msra.mxu3 %v2234_v11 }
  0xaa   :  { %v847_v22 = vpop.f32.mrf.mxu1 }
  0xab   :  { %v848_v23 = vadd.f32 %v847_v22, %v834_v21 }
  0xad   :  { %v860_v24 = vpop.f32.mrf.mxu2 }
  0xae   :  { %v861_v25 = vadd.f32 %v860_v24, %v848_v23  ;;  %v1056_v23 = vperm.slane %v1053_v15, 1  ;;  %v1057_v24 = vperm.slane %v1053_v15, 2 }
  0xb0   :  { %v836_v28 = vpop.f32.mrf.mxu0 }
  0xb1   :  { %v873_v26 = vpop.f32.mrf.mxu3 }
  0xb2   :  { %v2370_v27 = vadd.f32 %v873_v26, %v861_v25  ;;  %v849_v29 = vpop.f32.mrf.mxu1  ;;  %v1058_v25 = vperm.slane %v1053_v15, 3  ;;  %v1070_v26 = vperm.slane %v1067_v18, 1 }
  0xb4   :  { %v1073_v36 = vrot.slane %v1070_v26, 6 }
  0xb5   :  { %v862_v30 = vpop.f32.mrf.mxu2 }
  0xb6   :  { %v1071_v30 = vperm.slane %v1067_v18, 2 }
  0xb8   :  { %v1074_v40 = vrot.slane %v1071_v30, 4 }
  0xb9   :  { %v875_v31 = vpop.f32.mrf.mxu3 }
  0xba   :  { %v1072_v31 = vperm.slane %v1067_v18, 3 }
  0xbc   :  { %v1075_v41 = vrot.slane %v1072_v31, 2 }
  0xbe   :  { %v1077_v50 = vsel %vm1042_vm0, %v1074_v40, %v1075_v41 }
  0xc5   :  { %v2372_v32 = vpop.f32.mrf.mxu0 }
  0xc6   :  { %v2374_v14 = vpop.f32.mrf.mxu1 }
  0xc7   :  { %v900_v12 = vadd.f32 %v2374_v14, %v2372_v32  ;;  %v1055_v14 = vperm.slane %v1053_v15, 0 }
  0xcd   :  { %v2376_v17 = vpop.f32.mrf.mxu2  ;;  %v888_v16 = vpop.f32.mrf.mxu0 }
  0xce   :  { %v2378_v13 = vpop.f32.mrf.mxu3  ;;  %v901_v33 = vpop.f32.mrf.mxu1  ;;  %v913_v21 = vadd.f32 %v2376_v17, %v900_v12  ;;  %v1059_v16 = vrot.slane %v1056_v23, 6 }
  0xcf   :  { %v1060_v33 = vrot.slane %v1057_v24, 4 }
  0xd0   :  { %v926_v32 = vadd.f32 %v2378_v13, %v913_v21  ;;  %v1062_v13 = vsel %vm1040_vm1, %v1055_v14, %v1059_v16 }
  0xd2   :  { %v1037_v43 = vrot.slane %v926_v32, 6 }
  0xd5   :  { %v914_v34 = vpop.f32.mrf.mxu2 }
  0xd6   :  { %v927_v35 = vpop.f32.mrf.mxu3  ;;  %v1061_v34 = vrot.slane %v1058_v25, 2 }
  0xd7   :  { %v1069_v35 = vperm.slane %v1067_v18, 0 }
  0xd8   :  { %v1063_v46 = vsel %vm1042_vm0, %v1060_v33, %v1061_v34 }
  0xd9   :  { %v1076_v47 = vsel %vm1040_vm1, %v1069_v35, %v1073_v36 }
  0xda   :  { %v1078_v55 = vsel %vm1044_vm2, %v1076_v47, %v1077_v50 }
  0xe5   :  { %v2404_v44 = vpop.f32.mrf.mxu0 }
  0xe6   :  { %v951_v45 = vpop.f32.mrf.mxu1 }
  0xe7   :  { %v952_v19 = vadd.f32 %v951_v45, %v2404_v44 }
  0xed   :  { %v964_v49 = vpop.f32.mrf.mxu2  ;;  %v940_v52 = vpop.f32.mrf.mxu0 }
  0xee   :  { %v2418_v51 = vpop.f32.mrf.mxu3  ;;  %v953_v56 = vpop.f32.mrf.mxu1  ;;  %v965_v28 = vadd.f32 %v964_v49, %v952_v19  ;;  %v1041_v52 = vsel %vm1040_vm1, %v2370_v27, %v1037_v43  ;;  %v2246_v27 = vld [vmem:[%s2511_s5] ss:$0 sm:$0xff]  ;;  %s1430_s5 = sshll.u32 %s2304_s4, 4  ;;  %s1431_s5 = int_to_ptr.vmem [resolvable:$true] %s1430_s5 }
  0xf0   :  { %v978_v17 = vadd.f32 %v2418_v51, %v965_v28  ;;  %v1064_v51 = vsel %vm1044_vm2, %v1062_v13, %v1063_v46 }
  0xf2   :  { %v1038_v48 = vrot.slane %v978_v17, 4 }
  0xf5   :  { %v966_v61 = vpop.f32.mrf.mxu2 }
  0xf6   :  { %v979_v63 = vpop.f32.mrf.mxu3 }
 0x105   :  { %v990_v20 = vpop.f32.mrf.mxu0 }
 0x106   :  { %v1003_v22 = vpop.f32.mrf.mxu1 }
 0x107   :  { %v1004_v29 = vadd.f32 %v1003_v22, %v990_v20 }
 0x10d   :  { %v1016_v37 = vpop.f32.mrf.mxu2  ;;  %v992_v42 = vpop.f32.mrf.mxu0 }
 0x10e   :  { %v1017_v38 = vadd.f32 %v1016_v37, %v1004_v29  ;;  %v1029_v39 = vpop.f32.mrf.mxu3  ;;  %v1005_v44 = vpop.f32.mrf.mxu1 }
 0x110   :  { %v1030_v45 = vadd.f32 %v1029_v39, %v1017_v38 }
 0x112   :  { %v1039_v49 = vrot.slane %v1030_v45, 2 }
 0x114   :  { %v1043_v53 = vsel %vm1042_vm0, %v1038_v48, %v1039_v49 }
 0x115   :  { %v1045_v54 = vsel %vm1044_vm2, %v1041_v52, %v1043_v53  ;;  %v1018_v56 = vpop.f32.mrf.mxu2 }
 0x116   :  { %v1066_v57 = vmul.f32 %v1064_v51, %v1045_v54  ;;  %v1031_v58 = vpop.f32.mrf.mxu3 }
 0x118   :  { %v1080_v59 = vadd.f32 %v1078_v55, %v1066_v57 }
 0x11a   :  { %v1081_v60 = vmax.f32 %v1080_v59, 0.0 }
 0x11c   :  { %1083 = vst [vmem:[#allocation1] ss:$4 sm:$0xff] %v1081_v60 }
 0x123   :  { %v1084_v61 = vld.sshfl [vmem:[#allocation1] sm:$0xff pattern:$0x73625140]  ;;  %v1085_v62 = vld.sshfl [vmem:[#allocation1 + $0x8] sm:$0xff pattern:$0x73625140] }
 0x124   :  { %v1092_v63 = vpack.c.bf16 %v1084_v61, %v1084_v61  ;;  %v1093_v0 = vpack.c.bf16 %v1085_v62, %v1085_v62  ;;  %v1086_v1 = vld.sshfl [vmem:[#allocation1 + $0x10] sm:$0xff pattern:$0x73625140]  ;;  %v1087_v2 = vld.sshfl [vmem:[#allocation1 + $0x18] sm:$0xff pattern:$0x73625140] }
 0x125   :  { %v1094_v3 = vpack.c.bf16 %v1086_v1, %v1086_v1  ;;  %v1095_v4 = vpack.c.bf16 %v1087_v2, %v1087_v2 }
 0x126   :  { %1364 = vmatmul.bf16.vlgmr.msra.gmra.mxu0 %v1092_v63  ;;  %1377 = vmatmul.bf16.vlgmr.msra.gmra.mxu1 %v1093_v0 }
 0x127   :  { %1390 = vmatmul.bf16.vlgmr.msra.gmra.mxu2 %v1094_v3  ;;  %1403 = vmatmul.bf16.vlgmr.msra.gmra.mxu3 %v1095_v4 }
 0x1a3   :  { %v1365_v5 = vpop.f32.mrf.mxu0  ;;  %v1378_v6 = vpop.f32.mrf.mxu1 }
 0x1a4   :  { %v1366_v7 = vadd.f32 %v2246_v27, %v1365_v5 }
 0x1a6   :  { %v1379_v8 = vadd.f32 %v1378_v6, %v1366_v7 }
 0x1aa   :  { %v1391_v9 = vpop.f32.mrf.mxu2  ;;  %v1404_v10 = vpop.f32.mrf.mxu3 }
 0x1ab   :  { %v1392_v11 = vadd.f32 %v1391_v9, %v1379_v8  ;;  %v1367_v12 = vpop.f32.mrf.mxu0  ;;  %v1380_v15 = vpop.f32.mrf.mxu1 }
 0x1ad   :  { %v1405_v18 = vadd.f32 %v1404_v10, %v1392_v11 }
 0x1af   :  { %v1408_v19 = vmul.f32 %v1405_v18, %v1405_v18 }
 0x1b1   :  { %v1409_v20 = vsel %vm1040_vm1, %v1408_v19, 0.0 }
 0x1b2   :  { %v1393_v21 = vpop.f32.mrf.mxu2  ;;  %v1406_v22 = vpop.f32.mrf.mxu3  ;;  %1410 = vadd.xlane.f32.xlu0 %v1409_v20 }
 0x225   :  { %v1411_v23 = vpop.xlane.xlu0 %1410 }
 0x226   :  { %v1412_v24 = vmax.f32 %v1411_v23, 1e-24 }
 0x228   :  { %2247 = vrsqrt.f32 %v1412_v24  ;;  %vm1419_vm4 = vweird.f32 %v1412_v24 }
 0x22e   :  { %v2248_v25 = vpop.eup %2247 }
 0x22f   :  { %v1414_v26 = vmul.f32 %v2248_v25, %v1412_v24  ;;  %vm1420_vm3 = vweird.f32 %v2248_v25 }
 0x230   :  { %vm1421_vm5 = vmor %vm1419_vm4, %vm1420_vm3 }
 0x231   :  { %v1415_v28 = vmul.f32 %v2248_v25, %v1414_v26 }
 0x233   :  { %v1416_v29 = vmul.f32 0.5, %v1415_v28 }
 0x235   :  { %v1417_v30 = vsub.f32 1.5, %v1416_v29 }
 0x237   :  { %v1418_v31 = vmul.f32 %v2248_v25, %v1417_v30 }
 0x239   :  { %v1422_v32 = vsel %vm1421_vm5, %v2248_v25, %v1418_v31 }
 0x23a   :  { %v1423_v14 = vmul.f32 %v1422_v32, %v1405_v18 }
 0x23c   :  { %1424 = vst [vmem:[#allocation6] sm:$0x3] %v1423_v14 }
 0x23d   :  { %1435 = dma.vmem_to_hbm [thread:$0]  %s1431_s5, 32, %s1433_s22, [#allocation5]  }
 0x23e   :  { %2299 = dma.done.wait [#allocation5], 32  }
 0x23f   :  { %2300 = vsyncadd [#allocation5], 4294967264 }
 0x240   :  { %1440 = vsyncpa [#allocation4], 1 }
 0x241   :  { %1441 = vsyncpa [#allocation5], 1 }

// kernel: audio_fingerprinter_forward.2
= control target key start
LH: loop header
LB: loop body
LE: loop exit
PB: predicated region body
PF: predicated region fallthrough
CT: control target
= control target key end

     0   :  { %s9548_s0 = inlined_call_operand.vmem [shape: bf16[2,512,9], index: 0, kind: input, shape index: {}]   ;;  %s9549_s1 = inlined_call_operand.vmem [shape: bf16[9,32], index: 1, kind: input, shape index: {}]   ;;  %s9550_s2 = inlined_call_operand.vmem [shape: f32[1,32], index: 2, kind: input, shape index: {}]   ;;  %s9551_s3 = inlined_call_operand.vmem [shape: f32[1,32], index: 3, kind: input, shape index: {}]   ;;  %s9552_s4 = inlined_call_operand.vmem [shape: bf16[9,32,64], index: 4, kind: input, shape index: {}]   ;;  %s9553_s5 = inlined_call_operand.vmem [shape: f32[1,64], index: 5, kind: input, shape index: {}]   ;;  %s9554_s6 = inlined_call_operand.vmem [shape: f32[1,64], index: 6, kind: input, shape index: {}]   ;;  %s9555_s7 = inlined_call_operand.vmem [shape: bf16[9,64,128], index: 7, kind: input, shape index: {}]   ;;  %s9556_s8 = inlined_call_operand.vmem [shape: f32[1,128], index: 8, kind: input, shape index: {}]   ;;  %s9557_s9 = inlined_call_operand.vmem [shape: f32[1,128], index: 9, kind: input, shape index: {}]   ;;  %s9558_s10 = inlined_call_operand.hbm [shape: bf16[9,128,256], index: 10, kind: input, shape index: {}]   ;;  %s9559_s11 = inlined_call_operand.vmem [shape: f32[1,256], index: 11, kind: input, shape index: {}]   ;;  %s9560_s12 = inlined_call_operand.vmem [shape: f32[1,256], index: 12, kind: input, shape index: {}]   ;;  %s9561_s13 = inlined_call_operand.vmem [shape: f32[1,256], index: 13, kind: input, shape index: {}]   ;;  %s9562_s14 = inlined_call_operand.<no memory space> [shape: f32[1,1], index: 14, kind: input, shape index: {}]   ;;  %s9563_s15 = inlined_call_operand.vmem [shape: bf16[2,2,256], index: 15, kind: output, shape index: {}]  }
   0x1   :  { %v20_v0 = vstv %s9562_s14 }
   0x2   :  { %21 = vst [vmem:[#allocation5] sm:$0x1] %v20_v0 }
   0x3   :  { %22 = vsyncpa [#allocation7], 0  ;;  %s8053_s20 = smov 0  }
   0x4 LB: > { %s417_s23 = sshll.u32 %s9558_s10, 4  ;;  %s6489_s24 = sadd.s32 4294967295, %s7962_s20   ;;  %s7962_s20 = sphi %s8053_s20, %s28_s20   ;;  %s418_s23 = int_to_ptr.hbm [resolvable:$true] %s417_s23 }
   0x5   : > { %p6491_p0 = scmp.ge.s32.totalorder %s7962_s20, 1  ;;  %p379_p1 = scmp.lt.s32.totalorder %s7962_s20, 3 }
   0x6   : > { %p7888_p2 = scmp.eq.s32.totalorder %s6489_s24, 0  ;;  %s7964_s14 = smov [#allocation6]  }
   0x7   : > { %p380_p3 = pnand %p6491_p0, %p379_p1  ;;  %s419_s25 = sshll.u32 %s7964_s14, 4  ;;  %s420_s25 = int_to_ptr.vmem [resolvable:$true] %s419_s25 }
   0x8   : > { %s7965_s26 = smov 128   ;;  %s7966_s27 = smov 8  }
   0x9   : > { %p7884_p4 = pneg %p380_p3  ;;  %455 = sbr.rel (%p380_p3) target bundleno = 1881 (0x759), region = 80 }
   0xb   : > { %p7885_p5 = pnand %p7888_p2, %p7884_p4 }
   0xd   : > { %7887 = dma.hbm_to_vmem [thread:$0]  (!%p7885_p5), %s418_s23, 18432, %s420_s25, [#allocation7], %s7965_s26, %s7965_s26, %s7966_s27  }
   0xe   : > { %7957 = dma.done.wait (%p7888_p2), [#allocation7], 18432  }
   0xf   : > { %7959 = vsyncadd (%p7888_p2), [#allocation7], 4294948864  ;;  %p503_p6 = scmp.lt.s32.totalorder %s6489_s24, 1  ;;  %vm841_vm0 = vcmask 1043456   ;;  %vm842_vm1 = vcmask 1044480   ;;  %v7967_v1 = vmov 65535  }
  0x10   : > { %v843_v2 = vsel %vm841_vm0, 4294967295, %v7967_v1  ;;  %v6629_v3 = vld [vmem:[%s9549_s1] sm:$0xf]  ;;  %v7677_v4 = vld [vmem:[%s9549_s1] sm:$0x10]  ;;  %vm744_vm2 = vcmask 72704  }
  0x11   : > { %s9569_s24 = smov (!%p503_p6, %s6489_s24), 1  ;;  %v844_v5 = vsel %vm842_vm1, %v843_v2, 0  ;;  %v6630_v6 = vor.u32 %v7677_v4, %v6629_v3  ;;  %v8102_v21 = vld [vmem:[%s9550_s2] ss:$0 sm:$0xff]  ;;  %vm1217_vm3 = vcmask 261120   ;;  %v7968_v33 = vmov 0.0  }
  0x12   : > { %s7644_s28 = sshll.u32 %s9569_s24, 8  ;;  %v8108_v24 = vld [vmem:[%s9551_s3] ss:$0 sm:$0xff]  ;;  %2438 = vst.msk [vmem:[#allocation2 + $0x18] sm:$0xff] %vm1217_vm3, %v7968_v33  ;;  %vm1538_vm4 = vcmask 254976   ;;  %vm2593_vm5 = vcmask 1041409  }
  0x13   : > { %s8077_s21 = scalar_lea.vmem %s9548_s0, %s7644_s28  ;;  %v846_v7 = vand.u32 %v6630_v6, %v844_v5  ;;  %2439 = vst.msk [vmem:[#allocation2 + $0x20] sm:$0xff] %vm1217_vm3, %v7968_v33  ;;  %v7681_v6 = vld [vmem:[%s9552_s4 + $0x18] sm:$0xff]  ;;  %vm2595_vm6 = vcmask 1042434   ;;  %vm2597_vm7 = vcmask 1043459   ;;  %vm2599_vm8 = vcmask 1044484   ;;  %s6498_s19 = sshll.u32 %s9569_s24, 1 }
  0x14   : > { %v7645_v8 = vld [vmem:[%s8077_s21] sm:$0xff]  ;;  %v7646_v9 = vld [vmem:[%s8077_s21 + $0x8] sm:$0xff]  ;;  %v7647_v10 = vld [vmem:[%s8077_s21 + $0x10] sm:$0xff]  ;;  %2435 = vst.msk [vmem:[#allocation2] sm:$0xff] %vm1217_vm3, %v7968_v33  ;;  %2844 = vmatpush.bf16.msra.mxu1 %v7681_v6  ;;  %vm2601_vm9 = vcmask 1045509   ;;  %vm2603_vm10 = vcmask 1046534   ;;  %s511_s14 = scalar_lea.vmem %s9563_s15, %s6498_s19 }
  0x15   : > { %855 = vmatpush.bf16.msra.mxu0 %v846_v7  ;;  %v7648_v11 = vld [vmem:[%s8077_s21 + $0x18] sm:$0xff]  ;;  %v7649_v12 = vld [vmem:[%s8077_s21 + $0x20] sm:$0xff]  ;;  %v7650_v13 = vld [vmem:[%s8077_s21 + $0x28] sm:$0xff]  ;;  %2436 = vst.msk [vmem:[#allocation2 + $0x8] sm:$0xff] %vm1217_vm3, %v7968_v33  ;;  %vm2605_vm11 = vcmask 1047559   ;;  %vm3939_vm12 = vcmask 523264  }
  0x16   : > { %v7651_v14 = vld [vmem:[%s8077_s21 + $0x30] sm:$0xff]  ;;  %v7652_v15 = vld [vmem:[%s8077_s21 + $0x38] sm:$0xff]  ;;  %v7653_v16 = vld [vmem:[%s8077_s21 + $0x40] sm:$0xff]  ;;  %2437 = vst.msk [vmem:[#allocation2 + $0x10] sm:$0x3] %vm1538_vm4, %v7968_v33  ;;  %vm4020_vm13 = vcmask 517120  }
  0x17   : > { %v7654_v19 = vld [vmem:[%s8077_s21 + $0x48] sm:$0xff]  ;;  %v7655_v26 = vld [vmem:[%s8077_s21 + $0x50] sm:$0xff]  ;;  %2440 = vst.msk [vmem:[#allocation2 + $0x28] sm:$0x3] %vm1538_vm4, %v7968_v33  ;;  %v7656_v3 = vld [vmem:[%s8077_s21 + $0x58] sm:$0xff]  ;;  %vm4966_vm14 = vcmask 1041408  }
  0x18   : > { %6631 = vmatmul.msk.bf16.vlgmr.msra.gmra.mxu0 %vm744_vm2, %v7645_v8  ;;  %2441 = vst.msk [vmem:[#allocation2 + $0x30] sm:$0xff] %vm1217_vm3, %v7968_v33  ;;  %v7679_v7 = vld [vmem:[%s9552_s4 + $0x8] sm:$0xff]  ;;  %vm6287_vm15 = vcmask 1043458  }
  0x19   : > { %2442 = vst.msk [vmem:[#allocation2 + $0x38] sm:$0xff] %vm1217_vm3, %v7968_v33  ;;  %v7683_v8 = vld [vmem:[%s9552_s4 + $0x28] sm:$0xff]  ;;  %2929 = vmatpush.bf16.msra.mxu2 %v7679_v7 }
  0x1a   : > { %2443 = vst.msk [vmem:[#allocation2 + $0x40] sm:$0x3] %vm1538_vm4, %v7968_v33  ;;  %3043 = vmatpush.bf16.msra.mxu3 %v7683_v8 }
  0x1b   : > { %2444 = vst.msk [vmem:[#allocation2 + $0x48] sm:$0xff] %vm1217_vm3, %v7968_v33 }
  0x1c   : > { %2445 = vst.msk [vmem:[#allocation2 + $0x50] sm:$0xff] %vm1217_vm3, %v7968_v33 }
  0x1d   : > { %2446 = vst.msk [vmem:[#allocation2 + $0x58] sm:$0x3] %vm1538_vm4, %v7968_v33 }
  0x1e   : > { %2447 = vst.msk [vmem:[#allocation2 + $0x60] sm:$0xff] %vm1217_vm3, %v7968_v33 }
  0x1f   : > { %2448 = vst.msk [vmem:[#allocation2 + $0x68] sm:$0xff] %vm1217_vm3, %v7968_v33 }
  0x20   : > { %2449 = vst.msk [vmem:[#allocation2 + $0x70] sm:$0x3] %vm1538_vm4, %v7968_v33 }
  0x21   : > { %2450 = vst.msk [vmem:[#allocation2 + $0x78] sm:$0xff] %vm1217_vm3, %v7968_v33 }
  0x22   : > { %2451 = vst.msk [vmem:[#allocation2 + $0x80] sm:$0xff] %vm1217_vm3, %v7968_v33 }
  0x23   : > { %2452 = vst.msk [vmem:[#allocation2 + $0x88] sm:$0x3] %vm1538_vm4, %v7968_v33 }
  0x24   : > { %2453 = vst.msk [vmem:[#allocation2 + $0x90] sm:$0xff] %vm1217_vm3, %v7968_v33 }
  0x25   : > { %2454 = vst.msk [vmem:[#allocation2 + $0x98] sm:$0xff] %vm1217_vm3, %v7968_v33 }
  0x26   : > { %2455 = vst.msk [vmem:[#allocation2 + $0xa0] sm:$0x3] %vm1538_vm4, %v7968_v33 }
  0x27   : > { %2456 = vst.msk [vmem:[#allocation2 + $0xa8] sm:$0xff] %vm1217_vm3, %v7968_v33 }
  0x28   : > { %6632 = vmatmul.msk.bf16.gmra.mxu0 %vm744_vm2, %v7646_v9  ;;  %2457 = vst.msk [vmem:[#allocation2 + $0xb0] sm:$0xff] %vm1217_vm3, %v7968_v33 }
  0x29   : > { %2458 = vst.msk [vmem:[#allocation2 + $0xb8] sm:$0x3] %vm1538_vm4, %v7968_v33 }
  0x2a   : > { %2459 = vst.msk [vmem:[#allocation2 + $0xc0] sm:$0xff] %vm1217_vm3, %v7968_v33 }
  0x2b   : > { %2460 = vst.msk [vmem:[#allocation2 + $0xc8] sm:$0xff] %vm1217_vm3, %v7968_v33 }
  0x2c   : > { %2461 = vst.msk [vmem:[#allocation2 + $0xd0] sm:$0x3] %vm1538_vm4, %v7968_v33 }
  0x2d   : > { %2462 = vst.msk [vmem:[#allocation2 + $0xd8] sm:$0xff] %vm1217_vm3, %v7968_v33 }
  0x2e   : > { %2463 = vst.msk [vmem:[#allocation2 + $0xe0] sm:$0xff] %vm1217_vm3, %v7968_v33 }
  0x2f   : > { %2464 = vst.msk [vmem:[#allocation2 + $0xe8] sm:$0x3] %vm1538_vm4, %v7968_v33 }
  0x30   : > { %5023 = vst [vmem:[#allocation4] sm:$0x3f] %v7968_v33 }
  0x31   : > { %5024 = vst [vmem:[#allocation4 + $0x8] sm:$0x3f] %v7968_v33 }
  0x32   : > { %5025 = vst [vmem:[#allocation4 + $0x10] sm:$0x3f] %v7968_v33 }
  0x33   : > { %5026 = vst [vmem:[#allocation4 + $0x18] sm:$0x3f] %v7968_v33 }
  0x34   : > { %4245 = vst.msk [vmem:[#allocation3] sm:$0xff] %vm3939_vm12, %v7968_v33 }
  0x35   : > { %4247 = vst.msk [vmem:[#allocation3 + $0x10] sm:$0xff] %vm3939_vm12, %v7968_v33 }
  0x36   : > { %4249 = vst.msk [vmem:[#allocation3 + $0x20] sm:$0xff] %vm3939_vm12, %v7968_v33 }
  0x37   : > { %4251 = vst.msk [vmem:[#allocation3 + $0x30] sm:$0xff] %vm3939_vm12, %v7968_v33 }
  0x38   : > { %6633 = vmatmul.msk.bf16.gmra.mxu0 %vm744_vm2, %v7647_v10  ;;  %4253 = vst.msk [vmem:[#allocation3 + $0x40] sm:$0xff] %vm3939_vm12, %v7968_v33 }
  0x39   : > { %4255 = vst.msk [vmem:[#allocation3 + $0x50] sm:$0xff] %vm3939_vm12, %v7968_v33 }
  0x3a   : > { %4246 = vst.msk [vmem:[#allocation3 + $0x8] sm:$0x3] %vm4020_vm13, %v7968_v33 }
  0x3b   : > { %4248 = vst.msk [vmem:[#allocation3 + $0x18] sm:$0x3] %vm4020_vm13, %v7968_v33 }
  0x3c   : > { %4250 = vst.msk [vmem:[#allocation3 + $0x28] sm:$0x3] %vm4020_vm13, %v7968_v33 }
  0x3d   : > { %4252 = vst.msk [vmem:[#allocation3 + $0x38] sm:$0x3] %vm4020_vm13, %v7968_v33 }
  0x3e   : > { %4254 = vst.msk [vmem:[#allocation3 + $0x48] sm:$0x3] %vm4020_vm13, %v7968_v33 }
  0x3f   : > { %4256 = vst.msk [vmem:[#allocation3 + $0x58] sm:$0x3] %vm4020_vm13, %v7968_v33  ;;  %v9114_v33 = vld [vmem:[%s9554_s6] ss:$0 sm:$0xff] }
  0x48   : > { %6634 = vmatmul.msk.bf16.gmra.mxu0 %vm744_vm2, %v7648_v11 }
  0x58   : > { %6635 = vmatmul.msk.bf16.gmra.mxu0 %vm744_vm2, %v7649_v12 }
  0x68   : > { %6636 = vmatmul.msk.bf16.gmra.mxu0 %vm744_vm2, %v7650_v13 }
  0x78   : > { %6637 = vmatmul.msk.bf16.gmra.mxu0 %vm744_vm2, %v7651_v14 }
  0x88   : > { %6638 = vmatmul.msk.bf16.gmra.mxu0 %vm744_vm2, %v7652_v15 }
  0x95   : > { %v857_v17 = vpop.f32.mrf.mxu0 }
  0x96   : > { %v1021_v23 = vmul.f32 %v8102_v21, %v857_v17 }
  0x98   : > { %6639 = vmatmul.msk.bf16.gmra.mxu0 %vm744_vm2, %v7653_v16  ;;  %v1089_v25 = vadd.f32 %v8108_v24, %v1021_v23 }
  0x9a   : > { %v1153_v31 = vmax.f32 %v1089_v25, 0.0 }
  0x9c   : > { %v1218_v38 = vsel %vm1217_vm3, %v1153_v31, -inf }
  0x9d   : > { %v859_v18 = vpop.f32.mrf.mxu0 }
  0x9e   : > { %v1022_v28 = vmul.f32 %v8102_v21, %v859_v18 }
  0xa0   : > { %v1090_v34 = vadd.f32 %v8108_v24, %v1022_v28 }
  0xa2   : > { %v1154_v42 = vmax.f32 %v1090_v34, 0.0 }
  0xa4   : > { %v1221_v59 = vsel %vm1217_vm3, %v1154_v42, -inf  ;;  %v2774_v42 = vld [vmem:[#allocation2 + $0x9] sm:$0xff] }
  0xa5   : > { %v862_v20 = vpop.f32.mrf.mxu0 }
  0xa6   : > { %v1023_v29 = vmul.f32 %v8102_v21, %v862_v20 }
  0xa8   : > { %6640 = vmatmul.msk.bf16.gmra.mxu0 %vm744_vm2, %v7654_v19  ;;  %v1091_v35 = vadd.f32 %v8108_v24, %v1023_v29  ;;  %v7680_v29 = vld [vmem:[%s9552_s4 + $0x10] sm:$0xff] }
  0xa9   : > { %2845 = vmatpush.bf16.msra.mxu1 %v7680_v29 }
  0xaa   : > { %v1155_v43 = vmax.f32 %v1091_v35, 0.0 }
  0xac   : > { %v8153_v60 = vsel %vm1217_vm3, %v1155_v43, -inf }
  0xad   : > { %v864_v22 = vpop.f32.mrf.mxu0 }
  0xae   : > { %v1024_v36 = vmul.f32 %v8102_v21, %v864_v22 }
  0xb0   : > { %v1092_v44 = vadd.f32 %v8108_v24, %v1024_v36  ;;  %v7682_v36 = vld [vmem:[%s9552_s4 + $0x20] sm:$0xff] }
  0xb1   : > { %3044 = vmatpush.bf16.msra.mxu3 %v7682_v36 }
  0xb2   : > { %v1156_v61 = vmax.f32 %v1092_v44, 0.0 }
  0xb4   : > { %v8175_v13 = vsel %vm1217_vm3, %v1156_v61, -inf }
  0xb5   : > { %v867_v27 = vpop.f32.mrf.mxu0 }
  0xb6   : > { %v1025_v30 = vmul.f32 %v8102_v21, %v867_v27 }
  0xb8   : > { %v1093_v32 = vadd.f32 %v8108_v24, %v1025_v30  ;;  %6641 = vmatmul.msk.bf16.gmra.mxu0 %vm744_vm2, %v7655_v26  ;;  %v7678_v30 = vld [vmem:[%s9552_s4] sm:$0xff] }
  0xb9   : > { %2930 = vmatpush.bf16.msra.mxu2 %v7678_v30 }
  0xba   : > { %v1157_v37 = vmax.f32 %v1093_v32, 0.0 }
  0xbc   : > { %v1219_v39 = vsel %vm1217_vm3, %v1157_v37, -inf }
  0xbd   : > { %v1220_v40 = vmax.f32 %v1218_v38, %v1219_v39  ;;  %v869_v41 = vpop.f32.mrf.mxu0 }
  0xbe   : > { %v1026_v45 = vmul.f32 %v8102_v21, %v869_v41  ;;  %v2773_v41 = vld [vmem:[#allocation2 + $0x1] sm:$0xff] }
  0xbf   : > { %v1346_v46 = vrot.slane %v1220_v40, 2  ;;  %v1347_v47 = vrot.slane %v1220_v40, 4  ;;  %v1348_v48 = vrot.slane %v1220_v40, 6  ;;  %v1539_v49 = vsel %vm1538_vm4, %v1220_v40, -inf }
  0xc0   : > { %v1540_v50 = vrot.slane %v1539_v49, 4  ;;  %v1094_v51 = vadd.f32 %v8108_v24, %v1026_v45 }
  0xc1   : > { %v1546_v52 = vsel %vm1538_vm4, %v1346_v46, -inf  ;;  %v1553_v53 = vsel %vm1538_vm4, %v1347_v47, -inf  ;;  %v1560_v54 = vsel %vm1538_vm4, %v1348_v48, -inf }
  0xc2   : > { %v1541_v55 = vmax.f32 %v1539_v49, %v1540_v50  ;;  %v1547_v56 = vrot.slane %v1546_v52, 4  ;;  %v1554_v57 = vrot.slane %v1553_v53, 4  ;;  %v1561_v58 = vrot.slane %v1560_v54, 4 }
  0xc3   : > { %v1158_v62 = vmax.f32 %v1094_v51, 0.0  ;;  %v2789_v51 = vpack.c.bf16 %v2774_v42, %v2773_v41 }
  0xc4   : > { %v1542_v63 = vrot.slane %v1541_v55, 2  ;;  %v1548_v0 = vmax.f32 %v1546_v52, %v1547_v56  ;;  %v1555_v1 = vmax.f32 %v1553_v53, %v1554_v57  ;;  %v1562_v2 = vmax.f32 %v1560_v54, %v1561_v58  ;;  %v2745_v52 = vld [vmem:[#allocation2] sm:$0xff]  ;;  %v2746_v53 = vld [vmem:[#allocation2 + $0x8] sm:$0xff] }
  0xc5   : > { %v1222_v4 = vsel %vm1217_vm3, %v1158_v62, -inf  ;;  %v872_v5 = vpop.f32.mrf.mxu0  ;;  %v2972_v58 = vld [vmem:[#allocation2 + $0x2] sm:$0xff]  ;;  %6675 = vmatmul.msk.bf16.vlgmr.msra.gmra.mxu1 %vm1217_vm3, %v2789_v51 }
  0xc6   : > { %v1543_v9 = vmax.f32 %v1541_v55, %v1542_v63  ;;  %v1549_v10 = vrot.slane %v1548_v0, 2  ;;  %v1556_v11 = vrot.slane %v1555_v1, 2  ;;  %v1563_v12 = vrot.slane %v1562_v2, 2 }
  0xc7   : > { %v1223_v14 = vmax.f32 %v1221_v59, %v1222_v4  ;;  %v1027_v15 = vmul.f32 %v8102_v21, %v872_v5  ;;  %v2973_v59 = vld [vmem:[#allocation2 + $0xa] sm:$0xff]  ;;  %v2761_v4 = vpack.c.bf16 %v2746_v53, %v2745_v52 }
  0xc8   : > { %v1544_v16 = vrot.slane %v1543_v9, 1  ;;  %v1550_v17 = vmax.f32 %v1548_v0, %v1549_v10  ;;  %v1557_v18 = vmax.f32 %v1555_v1, %v1556_v11  ;;  %v1564_v19 = vmax.f32 %v1562_v2, %v1563_v12  ;;  %6642 = vmatmul.msk.bf16.gmra.mxu0 %vm744_vm2, %v7656_v3 }
  0xc9   : > { %v1349_v20 = vrot.slane %v1223_v14, 2  ;;  %v1350_v22 = vrot.slane %v1223_v14, 4  ;;  %v1351_v23 = vrot.slane %v1223_v14, 6  ;;  %v1567_v25 = vsel %vm1538_vm4, %v1223_v14, -inf  ;;  %6691 = vmatmul.msk.bf16.vlgmr.msra.gmra.mxu2 %vm1217_vm3, %v2761_v4 }
  0xca   : > { %v1551_v26 = vrot.slane %v1550_v17, 1  ;;  %v1558_v27 = vrot.slane %v1557_v18, 1  ;;  %v1565_v28 = vrot.slane %v1564_v19, 1  ;;  %v1568_v31 = vrot.slane %v1567_v25, 4 }
  0xcb   : > { %v1574_v32 = vsel %vm1538_vm4, %v1349_v20, -inf  ;;  %v1581_v34 = vsel %vm1538_vm4, %v1350_v22, -inf  ;;  %v1588_v35 = vsel %vm1538_vm4, %v1351_v23, -inf  ;;  %v1545_v37 = vmax.f32 %v1543_v9, %v1544_v16 }
  0xcc   : > { %v1552_v38 = vmax.f32 %v1550_v17, %v1551_v26  ;;  %v1559_v39 = vmax.f32 %v1557_v18, %v1558_v27  ;;  %v1575_v40 = vrot.slane %v1574_v32, 4  ;;  %v1569_v43 = vmax.f32 %v1567_v25, %v1568_v31  ;;  %v7657_v17 = vld [vmem:[%s8077_s21 + $0x60] sm:$0xff] }
  0xcd   : > { %v1582_v44 = vrot.slane %v1581_v34, 4  ;;  %v1589_v45 = vrot.slane %v1588_v35, 4  ;;  %v1095_v46 = vadd.f32 %v8108_v24, %v1027_v15  ;;  %v874_v47 = vpop.f32.mrf.mxu0  ;;  %v1566_v54 = vmax.f32 %v1564_v19, %v1565_v28 }
  0xce   : > { %v2594_v48 = vsel %vm2593_vm5, %v1552_v38, %v1545_v37  ;;  %v1576_v49 = vmax.f32 %v1574_v32, %v1575_v40  ;;  %v1028_v50 = vmul.f32 %v8102_v21, %v874_v47  ;;  %v1570_v55 = vrot.slane %v1569_v43, 2 }
  0xcf   : > { %v1583_v56 = vmax.f32 %v1581_v34, %v1582_v44  ;;  %v1590_v57 = vmax.f32 %v1588_v35, %v1589_v45  ;;  %v2596_v61 = vsel %vm2595_vm6, %v1559_v39, %v2594_v48  ;;  %v1159_v63 = vmax.f32 %v1095_v46, 0.0 }
  0xd0   : > { %v1577_v62 = vrot.slane %v1576_v49, 2  ;;  %v1096_v0 = vadd.f32 %v8108_v24, %v1028_v50  ;;  %v1571_v1 = vmax.f32 %v1569_v43, %v1570_v55  ;;  %v2988_v8 = vpack.c.bf16 %v2973_v59, %v2972_v58 }
  0xd1   : > { %v1584_v2 = vrot.slane %v1583_v56, 2  ;;  %v1591_v3 = vrot.slane %v1590_v57, 2  ;;  %v1225_v6 = vsel %vm1217_vm3, %v1159_v63, -inf  ;;  %v2598_v14 = vsel %vm2597_vm7, %v1566_v54, %v2596_v61 }
  0xd2   : > { %v1578_v5 = vmax.f32 %v1576_v49, %v1577_v62  ;;  %v1160_v7 = vmax.f32 %v1096_v0, 0.0  ;;  %v1572_v9 = vrot.slane %v1571_v1, 1  ;;  %v1226_v12 = vmax.f32 %v8153_v60, %v1225_v6  ;;  %6711 = vmatmul.msk.bf16.vlgmr.msra.gmra.mxu3 %vm1217_vm3, %v2988_v8 }
  0xd3   : > { %v1585_v10 = vmax.f32 %v1583_v56, %v1584_v2  ;;  %v1592_v11 = vmax.f32 %v1590_v57, %v1591_v3 }
  0xd4   : > { %v1579_v15 = vrot.slane %v1578_v5, 1  ;;  %v1228_v16 = vsel %vm1217_vm3, %v1160_v7, -inf  ;;  %v1573_v18 = vmax.f32 %v1571_v1, %v1572_v9  ;;  %v1352_v60 = vrot.slane %v1226_v12, 2 }
  0xd5   : > { %v1586_v19 = vrot.slane %v1585_v10, 1  ;;  %v1593_v20 = vrot.slane %v1592_v11, 1  ;;  %v8235_v22 = vpop.f32.mrf.mxu0  ;;  %v1353_v25 = vrot.slane %v1226_v12, 4  ;;  %v1354_v26 = vrot.slane %v1226_v12, 6 }
  0xd6   : > { %v1580_v23 = vmax.f32 %v1578_v5, %v1579_v15  ;;  %v1595_v27 = vsel %vm1538_vm4, %v1226_v12, -inf  ;;  %v2600_v30 = vsel %vm2599_vm8, %v1573_v18, %v2598_v14  ;;  %v1602_v34 = vsel %vm1538_vm4, %v1352_v60, -inf }
  0xd7   : > { %v1587_v28 = vmax.f32 %v1585_v10, %v1586_v19  ;;  %v1594_v29 = vmax.f32 %v1592_v11, %v1593_v20  ;;  %v1596_v31 = vrot.slane %v1595_v27, 4  ;;  %v1609_v35 = vsel %vm1538_vm4, %v1353_v25, -inf  ;;  %v7658_v19 = vld [vmem:[%s8077_s21 + $0x68] sm:$0xff] }
  0xd8   : > { %v2602_v32 = vsel %vm2601_vm9, %v1580_v23, %v2600_v30  ;;  %v1616_v36 = vsel %vm1538_vm4, %v1354_v26, -inf  ;;  %6643 = vmatmul.msk.bf16.gmra.mxu0 %vm744_vm2, %v7657_v17  ;;  %v1603_v39 = vrot.slane %v1602_v34, 4  ;;  %v1610_v40 = vrot.slane %v1609_v35, 4 }
  0xd9   : > { %v2604_v37 = vsel %vm2603_vm10, %v1587_v28, %v2602_v32  ;;  %v1597_v38 = vmax.f32 %v1595_v27, %v1596_v31  ;;  %v1617_v42 = vrot.slane %v1616_v36, 4  ;;  %v1229_v43 = vmax.f32 %v8175_v13, %v1228_v16 }
  0xda   : > { %v2606_v41 = vsel %vm2605_vm11, %v1594_v29, %v2604_v37  ;;  %v1604_v45 = vmax.f32 %v1602_v34, %v1603_v39  ;;  %v1611_v46 = vmax.f32 %v1609_v35, %v1610_v40 }
  0xdb   : > { %2729 = vst.msk [vmem:[#allocation2 + $0x19] sm:$0xff] %vm1217_vm3, %v2606_v41  ;;  %v1598_v44 = vrot.slane %v1597_v38, 2  ;;  %v1618_v47 = vmax.f32 %v1616_v36, %v1617_v42  ;;  %v1355_v48 = vrot.slane %v1229_v43, 2  ;;  %v1356_v49 = vrot.slane %v1229_v43, 4 }
  0xdc   : > { %v1357_v50 = vrot.slane %v1229_v43, 6  ;;  %v1605_v52 = vrot.slane %v1604_v45, 2  ;;  %v1612_v53 = vrot.slane %v1611_v46, 2  ;;  %v1623_v54 = vsel %vm1538_vm4, %v1229_v43, -inf }
  0xdd   : > { %v1599_v51 = vmax.f32 %v1597_v38, %v1598_v44  ;;  %v8253_v55 = vpop.f32.mrf.mxu0  ;;  %v1619_v56 = vrot.slane %v1618_v47, 2  ;;  %v1624_v57 = vrot.slane %v1623_v54, 4  ;;  %v1630_v13 = vsel %vm1538_vm4, %v1355_v48, -inf }
  0xde   : > { %v1637_v58 = vsel %vm1538_vm4, %v1356_v49, -inf  ;;  %v1606_v61 = vmax.f32 %v1604_v45, %v1605_v52  ;;  %v1613_v62 = vmax.f32 %v1611_v46, %v1612_v53  ;;  %v1631_v63 = vrot.slane %v1630_v13, 4 }
  0xdf   : > { %v1600_v59 = vrot.slane %v1599_v51, 1  ;;  %v1620_v0 = vmax.f32 %v1618_v47, %v1619_v56  ;;  %v1625_v1 = vmax.f32 %v1623_v54, %v1624_v57  ;;  %v1638_v2 = vrot.slane %v1637_v58, 4  ;;  %v7659_v47 = vld [vmem:[%s8077_s21 + $0x70] sm:$0xff] }
  0xe0   : > { %v1644_v3 = vsel %vm1538_vm4, %v1357_v50, -inf  ;;  %v1607_v4 = vrot.slane %v1606_v61, 1  ;;  %v1614_v5 = vrot.slane %v1613_v62, 1  ;;  %v1632_v6 = vmax.f32 %v1630_v13, %v1631_v63 }
  0xe1   : > { %v1601_v7 = vmax.f32 %v1599_v51, %v1600_v59  ;;  %v1626_v8 = vrot.slane %v1625_v1, 2  ;;  %v1639_v9 = vmax.f32 %v1637_v58, %v1638_v2  ;;  %v1645_v10 = vrot.slane %v1644_v3, 4 }
  0xe2   : > { %v1608_v11 = vmax.f32 %v1606_v61, %v1607_v4  ;;  %v1615_v12 = vmax.f32 %v1613_v62, %v1614_v5  ;;  %v1621_v14 = vrot.slane %v1620_v0, 1  ;;  %v1633_v15 = vrot.slane %v1632_v6, 2  ;;  %v2775_v48 = vld [vmem:[#allocation2 + $0x19] sm:$0xff] }
  0xe3   : > { %v1627_v16 = vmax.f32 %v1625_v1, %v1626_v8  ;;  %v1640_v17 = vrot.slane %v1639_v9, 2  ;;  %v1646_v18 = vmax.f32 %v1644_v3, %v1645_v10  ;;  %v1029_v45 = vmul.f32 %v8102_v21, %v8235_v22  ;;  %v2747_v49 = vld [vmem:[#allocation2 + $0x18] sm:$0xff] }
  0xe4   : > { %v2607_v20 = vsel %vm2593_vm5, %v1608_v11, %v1601_v7  ;;  %v1634_v60 = vmax.f32 %v1632_v6, %v1633_v15  ;;  %v1622_v29 = vmax.f32 %v1620_v0, %v1621_v14  ;;  %v1030_v22 = vmul.f32 %v8102_v21, %v8253_v55 }
  0xe5   : > { %v882_v23 = vpop.f32.mrf.mxu0  ;;  %v2608_v25 = vsel %vm2595_vm6, %v1615_v12, %v2607_v20  ;;  %v1628_v26 = vrot.slane %v1627_v16, 1  ;;  %v1641_v27 = vmax.f32 %v1639_v9, %v1640_v17  ;;  %v1647_v28 = vrot.slane %v1646_v18, 2 }
  0xe6   : > { %v1635_v30 = vrot.slane %v1634_v60, 1  ;;  %v2609_v35 = vsel %vm2597_vm7, %v1622_v29, %v2608_v25  ;;  %v1097_v46 = vadd.f32 %v8108_v24, %v1029_v45  ;;  %v1098_v1 = vadd.f32 %v8108_v24, %v1030_v22 }
  0xe7   : > { %v1629_v31 = vmax.f32 %v1627_v16, %v1628_v26  ;;  %v1642_v32 = vrot.slane %v1641_v27, 1  ;;  %v1648_v34 = vmax.f32 %v1646_v18, %v1647_v28  ;;  %v1031_v4 = vmul.f32 %v8102_v21, %v882_v23  ;;  %v7660_v28 = vld [vmem:[%s8077_s21 + $0x78] sm:$0xff] }
  0xe8   : > { %6644 = vmatmul.msk.bf16.gmra.mxu0 %vm744_vm2, %v7658_v19  ;;  %v1636_v36 = vmax.f32 %v1634_v60, %v1635_v30  ;;  %v1161_v58 = vmax.f32 %v1097_v46, 0.0  ;;  %v1162_v11 = vmax.f32 %v1098_v1, 0.0 }
  0xe9   : > { %v1643_v37 = vmax.f32 %v1641_v27, %v1642_v32  ;;  %v1649_v38 = vrot.slane %v1648_v34, 1  ;;  %v2610_v39 = vsel %vm2599_vm8, %v1629_v31, %v2609_v35  ;;  %v1099_v20 = vadd.f32 %v8108_v24, %v1031_v4 }
  0xea   : > { %v2611_v40 = vsel %vm2601_vm9, %v1636_v36, %v2610_v39  ;;  %v1230_v63 = vsel %vm1217_vm3, %v1161_v58, -inf  ;;  %v1233_v29 = vsel %vm1217_vm3, %v1162_v11, -inf }
  0xeb   : > { %v1650_v41 = vmax.f32 %v1648_v34, %v1649_v38  ;;  %v2612_v42 = vsel %vm2603_vm10, %v1643_v37, %v2611_v40  ;;  %v1163_v38 = vmax.f32 %v1099_v20, 0.0 }
  0xed   : > { %v884_v43 = vpop.f32.mrf.mxu0  ;;  %v2613_v44 = vsel %vm2605_vm11, %v1650_v41, %v2612_v42 }
  0xee   : > { %2730 = vst.msk [vmem:[#allocation2 + $0x21] sm:$0xff] %vm1217_vm3, %v2613_v44  ;;  %v1032_v30 = vmul.f32 %v8102_v21, %v884_v43 }
  0xf5   : > { %v887_v50 = vpop.f32.mrf.mxu0  ;;  %v2776_v51 = vld [vmem:[#allocation2 + $0x21] sm:$0xff] }
  0xf6   : > { %v2748_v52 = vld [vmem:[#allocation2 + $0x20] sm:$0xff]  ;;  %v1033_v54 = vmul.f32 %v8102_v21, %v887_v50  ;;  %v2790_v56 = vpack.c.bf16 %v2776_v51, %v2775_v48  ;;  %v1100_v48 = vadd.f32 %v8108_v24, %v1032_v30 }
  0xf7   : > { %v2974_v53 = vld [vmem:[#allocation2 + $0x1a] sm:$0xff]  ;;  %v2762_v57 = vpack.c.bf16 %v2748_v52, %v2747_v49  ;;  %v2975_v13 = vld [vmem:[#allocation2 + $0x22] sm:$0xff] }
  0xf8   : > { %v2989_v59 = vpack.c.bf16 %v2975_v13, %v2974_v53  ;;  %v1101_v61 = vadd.f32 %v8108_v24, %v1033_v54  ;;  %6645 = vmatmul.msk.bf16.gmra.mxu0 %vm744_vm2, %v7659_v47  ;;  %6676 = vmatmul.msk.bf16.gmra.mxu1 %vm1217_vm3, %v2790_v56 }
  0xf9   : > { %6692 = vmatmul.msk.bf16.gmra.mxu2 %vm1217_vm3, %v2762_v57 }
  0xfa   : > { %6712 = vmatmul.msk.bf16.gmra.mxu3 %vm1217_vm3, %v2989_v59  ;;  %v1165_v62 = vmax.f32 %v1101_v61, 0.0 }
  0xfc   : > { %v1231_v0 = vsel %vm1217_vm3, %v1165_v62, -inf }
  0xfd   : > { %v1232_v2 = vmax.f32 %v1230_v63, %v1231_v0  ;;  %v889_v3 = vpop.f32.mrf.mxu0 }
  0xfe   : > { %v1034_v5 = vmul.f32 %v8102_v21, %v889_v3 }
  0xff   : > { %v1358_v55 = vrot.slane %v1232_v2, 2  ;;  %v1359_v6 = vrot.slane %v1232_v2, 4  ;;  %v1360_v7 = vrot.slane %v1232_v2, 6  ;;  %v1651_v8 = vsel %vm1538_vm4, %v1232_v2, -inf }
 0x100   : > { %v1652_v9 = vrot.slane %v1651_v8, 4  ;;  %v1102_v10 = vadd.f32 %v8108_v24, %v1034_v5  ;;  %v1236_v5 = vsel %vm1217_vm3, %v1163_v38, -inf }
 0x101   : > { %v1658_v12 = vsel %vm1538_vm4, %v1358_v55, -inf  ;;  %v1665_v14 = vsel %vm1538_vm4, %v1359_v6, -inf  ;;  %v1672_v15 = vsel %vm1538_vm4, %v1360_v7, -inf }
 0x102   : > { %v1653_v16 = vmax.f32 %v1651_v8, %v1652_v9  ;;  %v1659_v17 = vrot.slane %v1658_v12, 4  ;;  %v1666_v18 = vrot.slane %v1665_v14, 4  ;;  %v1673_v19 = vrot.slane %v1672_v15, 4 }
 0x103   : > { %v1166_v60 = vmax.f32 %v1102_v10, 0.0  ;;  %v1164_v8 = vmax.f32 %v1100_v48, 0.0 }
 0x104   : > { %v1654_v23 = vrot.slane %v1653_v16, 2  ;;  %v1660_v25 = vmax.f32 %v1658_v12, %v1659_v17  ;;  %v1667_v26 = vmax.f32 %v1665_v14, %v1666_v18  ;;  %v1674_v27 = vmax.f32 %v1672_v15, %v1673_v19 }
 0x105   : > { %v1234_v31 = vsel %vm1217_vm3, %v1166_v60, -inf  ;;  %v892_v32 = vpop.f32.mrf.mxu0 }
 0x106   : > { %v1655_v34 = vmax.f32 %v1653_v16, %v1654_v23  ;;  %v1661_v35 = vrot.slane %v1660_v25, 2  ;;  %v1668_v36 = vrot.slane %v1667_v26, 2  ;;  %v1675_v37 = vrot.slane %v1674_v27, 2 }
 0x107   : > { %v1235_v39 = vmax.f32 %v1233_v29, %v1234_v31  ;;  %v1035_v44 = vmul.f32 %v8102_v21, %v892_v32  ;;  %v7661_v31 = vld [vmem:[%s8077_s21 + $0x80] sm:$0xff] }
 0x108   : > { %v1656_v40 = vrot.slane %v1655_v34, 1  ;;  %v1662_v41 = vmax.f32 %v1660_v25, %v1661_v35  ;;  %v1669_v42 = vmax.f32 %v1667_v26, %v1668_v36  ;;  %6646 = vmatmul.msk.bf16.gmra.mxu0 %vm744_vm2, %v7660_v28  ;;  %v1676_v51 = vmax.f32 %v1674_v27, %v1675_v37 }
 0x109   : > { %v1361_v45 = vrot.slane %v1235_v39, 2  ;;  %v1362_v46 = vrot.slane %v1235_v39, 4  ;;  %v1363_v47 = vrot.slane %v1235_v39, 6  ;;  %v1679_v43 = vsel %vm1538_vm4, %v1235_v39, -inf }
 0x10a   : > { %v1663_v49 = vrot.slane %v1662_v41, 1  ;;  %v1670_v50 = vrot.slane %v1669_v42, 1  ;;  %v1680_v52 = vrot.slane %v1679_v43, 4  ;;  %v1657_v57 = vmax.f32 %v1655_v34, %v1656_v40 }
 0x10b   : > { %v1686_v53 = vsel %vm1538_vm4, %v1361_v45, -inf  ;;  %v1693_v54 = vsel %vm1538_vm4, %v1362_v46, -inf  ;;  %v1700_v56 = vsel %vm1538_vm4, %v1363_v47, -inf  ;;  %v1103_v63 = vadd.f32 %v8108_v24, %v1035_v44 }
 0x10c   : > { %v1664_v13 = vmax.f32 %v1662_v41, %v1663_v49  ;;  %v1671_v58 = vmax.f32 %v1669_v42, %v1670_v50  ;;  %v1687_v59 = vrot.slane %v1686_v53, 4  ;;  %v1681_v61 = vmax.f32 %v1679_v43, %v1680_v52 }
 0x10d   : > { %v1694_v22 = vrot.slane %v1693_v54, 4  ;;  %v1701_v62 = vrot.slane %v1700_v56, 4  ;;  %v894_v0 = vpop.f32.mrf.mxu0  ;;  %v1677_v1 = vrot.slane %v1676_v51, 1  ;;  %v1167_v10 = vmax.f32 %v1103_v63, 0.0 }
 0x10e   : > { %v2614_v2 = vsel %vm2593_vm5, %v1664_v13, %v1657_v57  ;;  %v1688_v3 = vmax.f32 %v1686_v53, %v1687_v59  ;;  %v1036_v4 = vmul.f32 %v8102_v21, %v894_v0  ;;  %v1682_v55 = vrot.slane %v1681_v61, 2 }
 0x10f   : > { %v1695_v6 = vmax.f32 %v1693_v54, %v1694_v22  ;;  %v1702_v7 = vmax.f32 %v1700_v56, %v1701_v62  ;;  %v2615_v12 = vsel %vm2595_vm6, %v1671_v58, %v2614_v2  ;;  %v1678_v17 = vmax.f32 %v1676_v51, %v1677_v1 }
 0x110   : > { %v1689_v9 = vrot.slane %v1688_v3, 2  ;;  %v1104_v11 = vadd.f32 %v8108_v24, %v1036_v4  ;;  %v1683_v14 = vmax.f32 %v1681_v61, %v1682_v55  ;;  %v1237_v19 = vsel %vm1217_vm3, %v1167_v10, -inf }
 0x111   : > { %v1696_v15 = vrot.slane %v1695_v6, 2  ;;  %v1703_v16 = vrot.slane %v1702_v7, 2  ;;  %v1238_v26 = vmax.f32 %v1236_v5, %v1237_v19  ;;  %v1239_v27 = vsel %vm1217_vm3, %v1164_v8, -inf }
 0x112   : > { %v1690_v18 = vmax.f32 %v1688_v3, %v1689_v9  ;;  %v1168_v20 = vmax.f32 %v1104_v11, 0.0  ;;  %v1684_v60 = vrot.slane %v1683_v14, 1  ;;  %v2616_v28 = vsel %vm2597_vm7, %v1678_v17, %v2615_v12 }
 0x113   : > { %v1697_v23 = vmax.f32 %v1695_v6, %v1696_v15  ;;  %v1704_v25 = vmax.f32 %v1702_v7, %v1703_v16  ;;  %v1364_v36 = vrot.slane %v1238_v26, 2  ;;  %v1365_v39 = vrot.slane %v1238_v26, 4 }
 0x114   : > { %v1691_v29 = vrot.slane %v1690_v18, 1  ;;  %v1240_v30 = vsel %vm1217_vm3, %v1168_v20, -inf  ;;  %v1685_v32 = vmax.f32 %v1683_v14, %v1684_v60  ;;  %v1366_v40 = vrot.slane %v1238_v26, 6 }
 0x115   : > { %v1698_v34 = vrot.slane %v1697_v23, 1  ;;  %v1705_v35 = vrot.slane %v1704_v25, 1  ;;  %v8313_v37 = vpop.f32.mrf.mxu0  ;;  %v1707_v41 = vsel %vm1538_vm4, %v1238_v26, -inf  ;;  %v1714_v43 = vsel %vm1538_vm4, %v1364_v36, -inf }
 0x116   : > { %v1692_v38 = vmax.f32 %v1690_v18, %v1691_v29  ;;  %v2617_v45 = vsel %vm2599_vm8, %v1685_v32, %v2616_v28  ;;  %v1708_v46 = vrot.slane %v1707_v41, 4  ;;  %v1721_v48 = vsel %vm1538_vm4, %v1365_v39, -inf }
 0x117   : > { %v1699_v42 = vmax.f32 %v1697_v23, %v1698_v34  ;;  %v1706_v44 = vmax.f32 %v1704_v25, %v1705_v35  ;;  %v1728_v49 = vsel %vm1538_vm4, %v1366_v40, -inf  ;;  %v1715_v52 = vrot.slane %v1714_v43, 4  ;;  %v7662_v34 = vld [vmem:[%s8077_s21 + $0x88] sm:$0xff] }
 0x118   : > { %v2618_v47 = vsel %vm2601_vm9, %v1692_v38, %v2617_v45  ;;  %6647 = vmatmul.msk.bf16.gmra.mxu0 %vm744_vm2, %v7661_v31  ;;  %v1709_v51 = vmax.f32 %v1707_v41, %v1708_v46  ;;  %v1722_v53 = vrot.slane %v1721_v48, 4  ;;  %v1729_v56 = vrot.slane %v1728_v49, 4 }
 0x119   : > { %v2619_v50 = vsel %vm2603_vm10, %v1699_v42, %v2618_v47  ;;  %v1241_v57 = vmax.f32 %v1239_v27, %v1240_v30  ;;  %v1716_v58 = vmax.f32 %v1714_v43, %v1715_v52 }
 0x11a   : > { %v2620_v54 = vsel %vm2605_vm11, %v1706_v44, %v2619_v50  ;;  %v1710_v13 = vrot.slane %v1709_v51, 2  ;;  %v1723_v59 = vmax.f32 %v1721_v48, %v1722_v53  ;;  %v1730_v61 = vmax.f32 %v1728_v49, %v1729_v56 }
 0x11b   : > { %2731 = vst.msk [vmem:[#allocation2 + $0x31] sm:$0xff] %vm1217_vm3, %v2620_v54  ;;  %v1367_v22 = vrot.slane %v1241_v57, 2  ;;  %v1368_v62 = vrot.slane %v1241_v57, 4  ;;  %v1369_v63 = vrot.slane %v1241_v57, 6  ;;  %v1717_v1 = vrot.slane %v1716_v58, 2 }
 0x11c   : > { %v1711_v0 = vmax.f32 %v1709_v51, %v1710_v13  ;;  %v1724_v2 = vrot.slane %v1723_v59, 2  ;;  %v1735_v3 = vsel %vm1538_vm4, %v1241_v57, -inf  ;;  %v1731_v5 = vrot.slane %v1730_v61, 2 }
 0x11d   : > { %v8326_v4 = vpop.f32.mrf.mxu0  ;;  %v1736_v55 = vrot.slane %v1735_v3, 4  ;;  %v1742_v6 = vsel %vm1538_vm4, %v1367_v22, -inf  ;;  %v1749_v7 = vsel %vm1538_vm4, %v1368_v62, -inf  ;;  %v1718_v9 = vmax.f32 %v1716_v58, %v1717_v1 }
 0x11e   : > { %v1712_v8 = vrot.slane %v1711_v0, 1  ;;  %v1725_v10 = vmax.f32 %v1723_v59, %v1724_v2  ;;  %v1743_v11 = vrot.slane %v1742_v6, 4  ;;  %v1732_v12 = vmax.f32 %v1730_v61, %v1731_v5  ;;  %v7663_v61 = vld [vmem:[%s8077_s21 + $0x90] sm:$0xff] }
 0x11f   : > { %v1737_v14 = vmax.f32 %v1735_v3, %v1736_v55  ;;  %v1750_v15 = vrot.slane %v1749_v7, 4  ;;  %v1756_v16 = vsel %vm1538_vm4, %v1369_v63, -inf  ;;  %v1719_v17 = vrot.slane %v1718_v9, 1 }
 0x120   : > { %v1726_v18 = vrot.slane %v1725_v10, 1  ;;  %v1744_v19 = vmax.f32 %v1742_v6, %v1743_v11  ;;  %v1713_v20 = vmax.f32 %v1711_v0, %v1712_v8  ;;  %v1757_v25 = vrot.slane %v1756_v16, 4 }
 0x121   : > { %v1738_v60 = vrot.slane %v1737_v14, 2  ;;  %v1751_v23 = vmax.f32 %v1749_v7, %v1750_v15  ;;  %v1720_v26 = vmax.f32 %v1718_v9, %v1719_v17  ;;  %v1733_v28 = vrot.slane %v1732_v12, 1 }
 0x122   : > { %v1727_v27 = vmax.f32 %v1725_v10, %v1726_v18  ;;  %v1745_v29 = vrot.slane %v1744_v19, 2  ;;  %v1758_v32 = vmax.f32 %v1756_v16, %v1757_v25  ;;  %v1037_v58 = vmul.f32 %v8102_v21, %v8313_v37  ;;  %v2777_v22 = vld [vmem:[#allocation2 + $0x31] sm:$0xff] }
 0x123   : > { %v1739_v30 = vmax.f32 %v1737_v14, %v1738_v60  ;;  %v1752_v31 = vrot.slane %v1751_v23, 2  ;;  %v2621_v35 = vsel %vm2593_vm5, %v1720_v26, %v1713_v20  ;;  %v1734_v44 = vmax.f32 %v1732_v12, %v1733_v28  ;;  %v2749_v62 = vld [vmem:[#allocation2 + $0x30] sm:$0xff] }
 0x124   : > { %v1746_v36 = vmax.f32 %v1744_v19, %v1745_v29  ;;  %v2622_v39 = vsel %vm2595_vm6, %v1727_v27, %v2621_v35  ;;  %v1759_v42 = vrot.slane %v1758_v32, 2  ;;  %v1105_v59 = vadd.f32 %v8108_v24, %v1037_v58 }
 0x125   : > { %v902_v38 = vpop.f32.mrf.mxu0  ;;  %v1740_v40 = vrot.slane %v1739_v30, 1  ;;  %v1753_v41 = vmax.f32 %v1751_v23, %v1752_v31  ;;  %v2623_v48 = vsel %vm2597_vm7, %v1734_v44, %v2622_v39  ;;  %v1038_v37 = vmul.f32 %v8102_v21, %v8326_v4  ;;  %v8369_v44 = vld [vmem:[%s9550_s2] ss:$0 sm:$0xff] }
 0x126   : > { %v1747_v45 = vrot.slane %v1746_v36, 1  ;;  %v1760_v43 = vmax.f32 %v1758_v32, %v1759_v42  ;;  %v1169_v7 = vmax.f32 %v1105_v59, 0.0  ;;  %v1039_v17 = vmul.f32 %v8102_v21, %v902_v38 }
 0x127   : > { %v1741_v46 = vmax.f32 %v1739_v30, %v1740_v40  ;;  %v1754_v47 = vrot.slane %v1753_v41, 1  ;;  %v1106_v14 = vadd.f32 %v8108_v24, %v1038_v37 }
 0x128   : > { %6648 = vmatmul.msk.bf16.gmra.mxu0 %vm744_vm2, %v7662_v34  ;;  %v1748_v49 = vmax.f32 %v1746_v36, %v1747_v45  ;;  %v1761_v51 = vrot.slane %v1760_v43, 1  ;;  %v1242_v11 = vsel %vm1217_vm3, %v1169_v7, -inf  ;;  %v1107_v34 = vadd.f32 %v8108_v24, %v1039_v17 }
 0x129   : > { %v1755_v50 = vmax.f32 %v1753_v41, %v1754_v47  ;;  %v2624_v52 = vsel %vm2599_vm8, %v1741_v46, %v2623_v48  ;;  %v1170_v26 = vmax.f32 %v1106_v14, 0.0  ;;  %v7664_v41 = vld [vmem:[%s8077_s21 + $0x98] sm:$0xff] }
 0x12a   : > { %v2625_v53 = vsel %vm2601_vm9, %v1748_v49, %v2624_v52  ;;  %v1762_v54 = vmax.f32 %v1760_v43, %v1761_v51 }
 0x12b   : > { %v2626_v56 = vsel %vm2603_vm10, %v1755_v50, %v2625_v53  ;;  %v1245_v42 = vsel %vm1217_vm3, %v1170_v26, -inf  ;;  %v1171_v50 = vmax.f32 %v1107_v34, 0.0 }
 0x12c   : > { %v2627_v13 = vsel %vm2605_vm11, %v1762_v54, %v2626_v56 }
 0x12d   : > { %v904_v57 = vpop.f32.mrf.mxu0  ;;  %2732 = vst.msk [vmem:[#allocation2 + $0x39] sm:$0xff] %vm1217_vm3, %v2627_v13 }
 0x12e   : > { %v1040_v45 = vmul.f32 %v8369_v44, %v904_v57 }
 0x134   : > { %v2778_v0 = vld [vmem:[#allocation2 + $0x39] sm:$0xff] }
 0x135   : > { %v907_v63 = vpop.f32.mrf.mxu0  ;;  %v2750_v1 = vld [vmem:[#allocation2 + $0x38] sm:$0xff]  ;;  %v2791_v5 = vpack.c.bf16 %v2778_v0, %v2777_v22 }
 0x136   : > { %v2976_v2 = vld [vmem:[#allocation2 + $0x32] sm:$0xff]  ;;  %v1041_v3 = vmul.f32 %v8102_v21, %v907_v63  ;;  %v2763_v55 = vpack.c.bf16 %v2750_v1, %v2749_v62  ;;  %v2977_v6 = vld [vmem:[#allocation2 + $0x3a] sm:$0xff] }
 0x137   : > { %v2990_v8 = vpack.c.bf16 %v2977_v6, %v2976_v2  ;;  %6677 = vmatmul.msk.bf16.gmra.mxu1 %vm1217_vm3, %v2791_v5 }
 0x138   : > { %v1109_v9 = vadd.f32 %v8108_v24, %v1041_v3  ;;  %6649 = vmatmul.msk.bf16.gmra.mxu0 %vm744_vm2, %v7663_v61  ;;  %6693 = vmatmul.msk.bf16.gmra.mxu2 %vm1217_vm3, %v2763_v55  ;;  %v8379_v61 = vld [vmem:[%s9551_s3] ss:$0 sm:$0xff] }
 0x139   : > { %6713 = vmatmul.msk.bf16.gmra.mxu3 %vm1217_vm3, %v2990_v8  ;;  %v1108_v22 = vadd.f32 %v8379_v61, %v1040_v45 }
 0x13a   : > { %v1173_v10 = vmax.f32 %v1109_v9, 0.0 }
 0x13c   : > { %v1243_v12 = vsel %vm1217_vm3, %v1173_v10, -inf }
 0x13d   : > { %v1244_v15 = vmax.f32 %v1242_v11, %v1243_v12  ;;  %v909_v16 = vpop.f32.mrf.mxu0 }
 0x13e   : > { %v1042_v18 = vmul.f32 %v8102_v21, %v909_v16 }
 0x13f   : > { %v1370_v4 = vrot.slane %v1244_v15, 2  ;;  %v1371_v19 = vrot.slane %v1244_v15, 4  ;;  %v1372_v20 = vrot.slane %v1244_v15, 6  ;;  %v1763_v60 = vsel %vm1538_vm4, %v1244_v15, -inf }
 0x140   : > { %v1764_v23 = vrot.slane %v1763_v60, 4  ;;  %v1110_v25 = vadd.f32 %v8108_v24, %v1042_v18  ;;  %v1248_v18 = vsel %vm1217_vm3, %v1171_v50, -inf }
 0x141   : > { %v1770_v27 = vsel %vm1538_vm4, %v1370_v4, -inf  ;;  %v1777_v28 = vsel %vm1538_vm4, %v1371_v19, -inf  ;;  %v1784_v29 = vsel %vm1538_vm4, %v1372_v20, -inf }
 0x142   : > { %v1765_v30 = vmax.f32 %v1763_v60, %v1764_v23  ;;  %v1771_v31 = vrot.slane %v1770_v27, 4  ;;  %v1778_v32 = vrot.slane %v1777_v28, 4  ;;  %v1785_v21 = vrot.slane %v1784_v29, 4 }
 0x143   : > { %v1174_v35 = vmax.f32 %v1110_v25, 0.0  ;;  %v1172_v60 = vmax.f32 %v1108_v22, 0.0 }
 0x144   : > { %v1766_v36 = vrot.slane %v1765_v30, 2  ;;  %v1772_v38 = vmax.f32 %v1770_v27, %v1771_v31  ;;  %v1779_v39 = vmax.f32 %v1777_v28, %v1778_v32  ;;  %v1786_v40 = vmax.f32 %v1784_v29, %v1785_v21 }
 0x145   : > { %v1246_v46 = vsel %vm1217_vm3, %v1174_v35, -inf  ;;  %v912_v47 = vpop.f32.mrf.mxu0 }
 0x146   : > { %v1767_v43 = vmax.f32 %v1765_v30, %v1766_v36  ;;  %v1773_v24 = vrot.slane %v1772_v38, 2  ;;  %v1780_v48 = vrot.slane %v1779_v39, 2  ;;  %v1787_v49 = vrot.slane %v1786_v40, 2 }
 0x147   : > { %v1247_v51 = vmax.f32 %v1245_v42, %v1246_v46  ;;  %v1043_v56 = vmul.f32 %v8369_v44, %v912_v47  ;;  %v7665_v46 = vld [vmem:[%s8077_s21 + $0xa0] sm:$0xff] }
 0x148   : > { %v1768_v52 = vrot.slane %v1767_v43, 1  ;;  %v1774_v53 = vmax.f32 %v1772_v38, %v1773_v24  ;;  %v1781_v54 = vmax.f32 %v1779_v39, %v1780_v48  ;;  %6650 = vmatmul.msk.bf16.gmra.mxu0 %vm744_vm2, %v7664_v41  ;;  %v1788_v0 = vmax.f32 %v1786_v40, %v1787_v49 }
 0x149   : > { %v1373_v13 = vrot.slane %v1247_v51, 2  ;;  %v1374_v58 = vrot.slane %v1247_v51, 4  ;;  %v1375_v59 = vrot.slane %v1247_v51, 6  ;;  %v1791_v57 = vsel %vm1538_vm4, %v1247_v51, -inf }
 0x14a   : > { %v1775_v62 = vrot.slane %v1774_v53, 1  ;;  %v1782_v63 = vrot.slane %v1781_v54, 1  ;;  %v1792_v1 = vrot.slane %v1791_v57, 4  ;;  %v1769_v55 = vmax.f32 %v1767_v43, %v1768_v52 }
 0x14b   : > { %v1798_v2 = vsel %vm1538_vm4, %v1373_v13, -inf  ;;  %v1805_v3 = vsel %vm1538_vm4, %v1374_v58, -inf  ;;  %v1812_v5 = vsel %vm1538_vm4, %v1375_v59, -inf  ;;  %v1111_v11 = vadd.f32 %v8379_v61, %v1043_v56 }
 0x14c   : > { %v1776_v6 = vmax.f32 %v1774_v53, %v1775_v62  ;;  %v1783_v7 = vmax.f32 %v1781_v54, %v1782_v63  ;;  %v1799_v8 = vrot.slane %v1798_v2, 4  ;;  %v1793_v9 = vmax.f32 %v1791_v57, %v1792_v1 }
 0x14d   : > { %v1806_v37 = vrot.slane %v1805_v3, 4  ;;  %v1813_v10 = vrot.slane %v1812_v5, 4  ;;  %v914_v12 = vpop.f32.mrf.mxu0  ;;  %v1789_v14 = vrot.slane %v1788_v0, 1  ;;  %v1175_v25 = vmax.f32 %v1111_v11, 0.0 }
 0x14e   : > { %v2628_v15 = vsel %vm2593_vm5, %v1776_v6, %v1769_v55  ;;  %v1800_v16 = vmax.f32 %v1798_v2, %v1799_v8  ;;  %v1044_v17 = vmul.f32 %v8369_v44, %v914_v12  ;;  %v1794_v4 = vrot.slane %v1793_v9, 2  ;;  %v2847_v6 = vpop.f32.mrf.mxu1 }
 0x14f   : > { %v1807_v19 = vmax.f32 %v1805_v3, %v1806_v37  ;;  %v1814_v20 = vmax.f32 %v1812_v5, %v1813_v10  ;;  %v2629_v27 = vsel %vm2595_vm6, %v1783_v7, %v2628_v15  ;;  %v1790_v31 = vmax.f32 %v1788_v0, %v1789_v14  ;;  %v2932_v7 = vpop.f32.mrf.mxu2 }
 0x150   : > { %v1801_v23 = vrot.slane %v1800_v16, 2  ;;  %v1112_v26 = vadd.f32 %v8379_v61, %v1044_v17  ;;  %v1795_v28 = vmax.f32 %v1793_v9, %v1794_v4  ;;  %v1249_v21 = vsel %vm1217_vm3, %v1175_v25, -inf }
 0x151   : > { %v1808_v29 = vrot.slane %v1807_v19, 2  ;;  %v1815_v30 = vrot.slane %v1814_v20, 2  ;;  %v1250_v39 = vmax.f32 %v1248_v18, %v1249_v21  ;;  %v1251_v40 = vsel %vm1217_vm3, %v1172_v60, -inf }
 0x152   : > { %v1802_v32 = vmax.f32 %v1800_v16, %v1801_v23  ;;  %v1176_v34 = vmax.f32 %v1112_v26, 0.0  ;;  %v1796_v35 = vrot.slane %v1795_v28, 1  ;;  %v2630_v41 = vsel %vm2597_vm7, %v1790_v31, %v2629_v27 }
 0x153   : > { %v1809_v36 = vmax.f32 %v1807_v19, %v1808_v29  ;;  %v1816_v38 = vmax.f32 %v1814_v20, %v1815_v30  ;;  %v1376_v48 = vrot.slane %v1250_v39, 2  ;;  %v1377_v51 = vrot.slane %v1250_v39, 4 }
 0x154   : > { %v1803_v42 = vrot.slane %v1802_v32, 1  ;;  %v1252_v45 = vsel %vm1217_vm3, %v1176_v34, -inf  ;;  %v1797_v47 = vmax.f32 %v1795_v28, %v1796_v35  ;;  %v1378_v52 = vrot.slane %v1250_v39, 6 }
 0x155   : > { %v1810_v43 = vrot.slane %v1809_v36, 1  ;;  %v1817_v24 = vrot.slane %v1816_v38, 1  ;;  %v8396_v49 = vpop.f32.mrf.mxu0  ;;  %v1819_v53 = vsel %vm1538_vm4, %v1250_v39, -inf  ;;  %v1826_v57 = vsel %vm1538_vm4, %v1376_v48, -inf }
 0x156   : > { %v1804_v50 = vmax.f32 %v1802_v32, %v1803_v42  ;;  %v2631_v13 = vsel %vm2599_vm8, %v1797_v47, %v2630_v41  ;;  %v1820_v58 = vrot.slane %v1819_v53, 4  ;;  %v1833_v22 = vsel %vm1538_vm4, %v1377_v51, -inf }
 0x157   : > { %v1811_v54 = vmax.f32 %v1809_v36, %v1810_v43  ;;  %v1818_v56 = vmax.f32 %v1816_v38, %v1817_v24  ;;  %v1840_v62 = vsel %vm1538_vm4, %v1378_v52, -inf  ;;  %v1827_v1 = vrot.slane %v1826_v57, 4 }
 0x158   : > { %v2632_v59 = vsel %vm2601_vm9, %v1804_v50, %v2631_v13  ;;  %6651 = vmatmul.msk.bf16.gmra.mxu0 %vm744_vm2, %v7665_v46  ;;  %v1821_v0 = vmax.f32 %v1819_v53, %v1820_v58  ;;  %v1834_v2 = vrot.slane %v1833_v22, 4  ;;  %v1841_v5 = vrot.slane %v1840_v62, 4  ;;  %v7666_v50 = vld [vmem:[%s8077_s21 + $0xa8] sm:$0xff] }
 0x159   : > { %v2633_v63 = vsel %vm2603_vm10, %v1811_v54, %v2632_v59  ;;  %v1253_v55 = vmax.f32 %v1251_v40, %v1252_v45  ;;  %v1828_v9 = vmax.f32 %v1826_v57, %v1827_v1  ;;  %v2933_v10 = vadd.f32 %v2932_v7, %v2847_v6 }
 0x15a   : > { %v2634_v3 = vsel %vm2605_vm11, %v1818_v56, %v2633_v63  ;;  %v1822_v8 = vrot.slane %v1821_v0, 2  ;;  %v1835_v37 = vmax.f32 %v1833_v22, %v1834_v2  ;;  %v1842_v11 = vmax.f32 %v1840_v62, %v1841_v5 }
 0x15b   : > { %2733 = vst.msk [vmem:[#allocation2 + $0x49] sm:$0xff] %vm1217_vm3, %v2634_v3  ;;  %v1379_v12 = vrot.slane %v1253_v55, 2  ;;  %v1380_v14 = vrot.slane %v1253_v55, 4  ;;  %v1381_v15 = vrot.slane %v1253_v55, 6  ;;  %v1829_v17 = vrot.slane %v1828_v9, 2 }
 0x15c   : > { %v1823_v16 = vmax.f32 %v1821_v0, %v1822_v8  ;;  %v1836_v18 = vrot.slane %v1835_v37, 2  ;;  %v1847_v4 = vsel %vm1538_vm4, %v1253_v55, -inf  ;;  %v1843_v20 = vrot.slane %v1842_v11, 2  ;;  %v3046_v0 = vpop.f32.mrf.mxu3 }
 0x15d   : > { %v8409_v19 = vpop.f32.mrf.mxu0  ;;  %v1848_v60 = vrot.slane %v1847_v4, 4  ;;  %v1854_v23 = vsel %vm1538_vm4, %v1379_v12, -inf  ;;  %v1861_v25 = vsel %vm1538_vm4, %v1380_v14, -inf  ;;  %v1830_v27 = vmax.f32 %v1828_v9, %v1829_v17  ;;  %v8428_v14 = vpop.f32.mrf.mxu1 }
 0x15e   : > { %v1824_v26 = vrot.slane %v1823_v16, 1  ;;  %v1837_v28 = vmax.f32 %v1835_v37, %v1836_v18  ;;  %v1855_v29 = vrot.slane %v1854_v23, 4  ;;  %v1844_v30 = vmax.f32 %v1842_v11, %v1843_v20 }
 0x15f   : > { %v1849_v31 = vmax.f32 %v1847_v4, %v1848_v60  ;;  %v1862_v32 = vrot.slane %v1861_v25, 4  ;;  %v1868_v21 = vsel %vm1538_vm4, %v1381_v15, -inf  ;;  %v1831_v34 = vrot.slane %v1830_v27, 1 }
 0x160   : > { %v1838_v35 = vrot.slane %v1837_v28, 1  ;;  %v1856_v36 = vmax.f32 %v1854_v23, %v1855_v29  ;;  %v1825_v38 = vmax.f32 %v1823_v16, %v1824_v26  ;;  %v1869_v41 = vrot.slane %v1868_v21, 4  ;;  %v7667_v16 = vld [vmem:[%s8077_s21 + $0xb0] sm:$0xff] }
 0x161   : > { %v1850_v39 = vrot.slane %v1849_v31, 2  ;;  %v1863_v40 = vmax.f32 %v1861_v25, %v1862_v32  ;;  %v1832_v42 = vmax.f32 %v1830_v27, %v1831_v34  ;;  %v1845_v46 = vrot.slane %v1844_v30, 1 }
 0x162   : > { %v1839_v45 = vmax.f32 %v1837_v28, %v1838_v35  ;;  %v1857_v47 = vrot.slane %v1856_v36, 2  ;;  %v1870_v48 = vmax.f32 %v1868_v21, %v1869_v41  ;;  %v8419_v3 = vadd.f32 %v3046_v0, %v2933_v10  ;;  %v8430_v10 = vpop.f32.mrf.mxu2  ;;  %v2779_v18 = vld [vmem:[#allocation2 + $0x49] sm:$0xff] }
 0x163   : > { %v1851_v43 = vmax.f32 %v1849_v31, %v1850_v39  ;;  %v1864_v24 = vrot.slane %v1863_v40, 2  ;;  %v2635_v51 = vsel %vm2593_vm5, %v1832_v42, %v1825_v38  ;;  %v1846_v59 = vmax.f32 %v1844_v30, %v1845_v46  ;;  %v2751_v4 = vld [vmem:[#allocation2 + $0x48] sm:$0xff] }
 0x164   : > { %v1858_v52 = vmax.f32 %v1856_v36, %v1857_v47  ;;  %v2636_v54 = vsel %vm2595_vm6, %v1839_v45, %v2635_v51  ;;  %v1871_v58 = vrot.slane %v1870_v48, 2  ;;  %v1045_v12 = vmul.f32 %v8369_v44, %v8396_v49  ;;  %v8434_v17 = vpop.f32.mrf.mxu3 }
 0x165   : > { %v922_v53 = vpop.f32.mrf.mxu0  ;;  %v1852_v56 = vrot.slane %v1851_v43, 1  ;;  %v1865_v13 = vmax.f32 %v1863_v40, %v1864_v24  ;;  %v2637_v1 = vsel %vm2597_vm7, %v1846_v59, %v2636_v54  ;;  %v1046_v32 = vmul.f32 %v8369_v44, %v8409_v19 }
 0x166   : > { %v1859_v57 = vrot.slane %v1858_v52, 1  ;;  %v1872_v63 = vmax.f32 %v1870_v48, %v1871_v58  ;;  %v1113_v15 = vadd.f32 %v8379_v61, %v1045_v12  ;;  %v1047_v19 = vmul.f32 %v8369_v44, %v922_v53 }
 0x167   : > { %v1853_v22 = vmax.f32 %v1851_v43, %v1852_v56  ;;  %v1866_v62 = vrot.slane %v1865_v13, 1  ;;  %v1114_v39 = vadd.f32 %v8379_v61, %v1046_v32 }
 0x168   : > { %6652 = vmatmul.msk.bf16.gmra.mxu0 %vm744_vm2, %v7666_v50  ;;  %v1860_v2 = vmax.f32 %v1858_v52, %v1859_v57  ;;  %v1873_v55 = vrot.slane %v1872_v63, 1  ;;  %v1177_v29 = vmax.f32 %v1113_v15, 0.0 }
 0x169   : > { %v1867_v5 = vmax.f32 %v1865_v13, %v1866_v62  ;;  %v2638_v6 = vsel %vm2599_vm8, %v1853_v22, %v2637_v1  ;;  %v1178_v54 = vmax.f32 %v1114_v39, 0.0  ;;  %v1115_v62 = vadd.f32 %v8379_v61, %v1047_v19 }
 0x16a   : > { %v2639_v7 = vsel %vm2601_vm9, %v1860_v2, %v2638_v6  ;;  %v1874_v8 = vmax.f32 %v1872_v63, %v1873_v55  ;;  %v1254_v34 = vsel %vm1217_vm3, %v1177_v29, -inf  ;;  %v7668_v55 = vld [vmem:[%s8077_s21 + $0xb8] sm:$0xff] }
 0x16b   : > { %v2640_v9 = vsel %vm2603_vm10, %v1867_v5, %v2639_v7  ;;  %v1257_v6 = vsel %vm1217_vm3, %v1178_v54, -inf }
 0x16c   : > { %v2641_v11 = vsel %vm2605_vm11, %v1874_v8, %v2640_v9 }
 0x16d   : > { %v924_v37 = vpop.f32.mrf.mxu0  ;;  %2734 = vst.msk [vmem:[#allocation2 + $0x51] sm:$0xff] %vm1217_vm3, %v2641_v11 }
 0x16e   : > { %v1048_v7 = vmul.f32 %v8369_v44, %v924_v37 }
 0x174   : > { %v2780_v60 = vld [vmem:[#allocation2 + $0x51] sm:$0xff] }
 0x175   : > { %v927_v20 = vpop.f32.mrf.mxu0  ;;  %v2752_v23 = vld [vmem:[#allocation2 + $0x50] sm:$0xff]  ;;  %v2792_v27 = vpack.c.bf16 %v2780_v60, %v2779_v18  ;;  %v2852_v35 = vpop.f32.mrf.mxu1  ;;  %v1179_v18 = vmax.f32 %v1115_v62, 0.0 }
 0x176   : > { %v2978_v25 = vld [vmem:[#allocation2 + $0x4a] sm:$0xff]  ;;  %v1049_v26 = vmul.f32 %v8369_v44, %v927_v20  ;;  %v2764_v28 = vpack.c.bf16 %v2752_v23, %v2751_v4  ;;  %v2979_v49 = vld [vmem:[#allocation2 + $0x52] sm:$0xff] }
 0x177   : > { %v2991_v30 = vpack.c.bf16 %v2979_v49, %v2978_v25  ;;  %6678 = vmatmul.msk.bf16.gmra.mxu1 %vm1217_vm3, %v2792_v27  ;;  %v1116_v49 = vadd.f32 %v8379_v61, %v1048_v7 }
 0x178   : > { %v1117_v31 = vadd.f32 %v8379_v61, %v1049_v26  ;;  %6653 = vmatmul.msk.bf16.gmra.mxu0 %vm744_vm2, %v7667_v16  ;;  %6694 = vmatmul.msk.bf16.gmra.mxu2 %vm1217_vm3, %v2764_v28 }
 0x179   : > { %6714 = vmatmul.msk.bf16.gmra.mxu3 %vm1217_vm3, %v2991_v30 }
 0x17a   : > { %v1181_v21 = vmax.f32 %v1117_v31, 0.0 }
 0x17c   : > { %v1255_v36 = vsel %vm1217_vm3, %v1181_v21, -inf  ;;  %v2937_v38 = vpop.f32.mrf.mxu2 }
 0x17d   : > { %v1256_v40 = vmax.f32 %v1254_v34, %v1255_v36  ;;  %v2938_v41 = vadd.f32 %v2937_v38, %v2852_v35  ;;  %v929_v42 = vpop.f32.mrf.mxu0  ;;  %v3051_v48 = vpop.f32.mrf.mxu3 }
 0x17e   : > { %v1050_v45 = vmul.f32 %v8369_v44, %v929_v42 }
 0x17f   : > { %v1382_v46 = vrot.slane %v1256_v40, 2  ;;  %v1383_v47 = vrot.slane %v1256_v40, 4  ;;  %v1384_v43 = vrot.slane %v1256_v40, 6  ;;  %v1875_v24 = vsel %vm1538_vm4, %v1256_v40, -inf }
 0x180   : > { %v1876_v50 = vrot.slane %v1875_v24, 4  ;;  %v8450_v51 = vadd.f32 %v3051_v48, %v2938_v41  ;;  %v1118_v52 = vadd.f32 %v8379_v61, %v1050_v45 }
 0x181   : > { %v1882_v56 = vsel %vm1538_vm4, %v1382_v46, -inf  ;;  %v1889_v13 = vsel %vm1538_vm4, %v1383_v47, -inf  ;;  %v1896_v53 = vsel %vm1538_vm4, %v1384_v43, -inf }
 0x182   : > { %v1877_v58 = vmax.f32 %v1875_v24, %v1876_v50  ;;  %v1883_v59 = vrot.slane %v1882_v56, 4  ;;  %v1890_v57 = vrot.slane %v1889_v13, 4  ;;  %v1897_v22 = vrot.slane %v1896_v53, 4 }
 0x183   : > { %v1182_v63 = vmax.f32 %v1118_v52, 0.0  ;;  %v1260_v50 = vsel %vm1217_vm3, %v1179_v18, -inf }
 0x184   : > { %v1878_v0 = vrot.slane %v1877_v58, 2  ;;  %v1884_v1 = vmax.f32 %v1882_v56, %v1883_v59  ;;  %v1891_v2 = vmax.f32 %v1889_v13, %v1890_v57  ;;  %v1898_v5 = vmax.f32 %v1896_v53, %v1897_v22 }
 0x185   : > { %v1258_v8 = vsel %vm1217_vm3, %v1182_v63, -inf  ;;  %v932_v9 = vpop.f32.mrf.mxu0  ;;  %v1180_v13 = vmax.f32 %v1116_v49, 0.0 }
 0x186   : > { %v1879_v11 = vmax.f32 %v1877_v58, %v1878_v0  ;;  %v1885_v12 = vrot.slane %v1884_v1, 2  ;;  %v1892_v15 = vrot.slane %v1891_v2, 2  ;;  %v1899_v16 = vrot.slane %v1898_v5, 2 }
 0x187   : > { %v1259_v4 = vmax.f32 %v1257_v6, %v1258_v8  ;;  %v1051_v25 = vmul.f32 %v8369_v44, %v932_v9  ;;  %v1263_v9 = vsel %vm1217_vm3, %v1180_v13, -inf }
 0x188   : > { %v1880_v20 = vrot.slane %v1879_v11, 1  ;;  %v1886_v60 = vmax.f32 %v1884_v1, %v1885_v12  ;;  %v1893_v23 = vmax.f32 %v1891_v2, %v1892_v15  ;;  %6654 = vmatmul.msk.bf16.gmra.mxu0 %vm744_vm2, %v7668_v55  ;;  %v1900_v31 = vmax.f32 %v1898_v5, %v1899_v16  ;;  %v7669_v16 = vld [vmem:[%s8077_s21 + $0xc0] sm:$0xff] }
 0x189   : > { %v1385_v26 = vrot.slane %v1259_v4, 2  ;;  %v1386_v27 = vrot.slane %v1259_v4, 4  ;;  %v1387_v28 = vrot.slane %v1259_v4, 6  ;;  %v1903_v37 = vsel %vm1538_vm4, %v1259_v4, -inf }
 0x18a   : > { %v1887_v29 = vrot.slane %v1886_v60, 1  ;;  %v1894_v30 = vrot.slane %v1893_v23, 1  ;;  %v1904_v32 = vrot.slane %v1903_v37, 4  ;;  %v1881_v36 = vmax.f32 %v1879_v11, %v1880_v20 }
 0x18b   : > { %v1910_v21 = vsel %vm1538_vm4, %v1385_v26, -inf  ;;  %v1917_v34 = vsel %vm1538_vm4, %v1386_v27, -inf  ;;  %v1924_v35 = vsel %vm1538_vm4, %v1387_v28, -inf  ;;  %v1119_v45 = vadd.f32 %v8379_v61, %v1051_v25 }
 0x18c   : > { %v1888_v38 = vmax.f32 %v1886_v60, %v1887_v29  ;;  %v1895_v39 = vmax.f32 %v1893_v23, %v1894_v30  ;;  %v1911_v40 = vrot.slane %v1910_v21, 4  ;;  %v1905_v41 = vmax.f32 %v1903_v37, %v1904_v32 }
 0x18d   : > { %v1918_v42 = vrot.slane %v1917_v34, 4  ;;  %v1925_v19 = vrot.slane %v1924_v35, 4  ;;  %v934_v46 = vpop.f32.mrf.mxu0  ;;  %v1901_v47 = vrot.slane %v1900_v31, 1  ;;  %v1183_v58 = vmax.f32 %v1119_v45, 0.0 }
 0x18e   : > { %v2642_v43 = vsel %vm2593_vm5, %v1888_v38, %v1881_v36  ;;  %v1912_v24 = vmax.f32 %v1910_v21, %v1911_v40  ;;  %v1052_v48 = vmul.f32 %v8369_v44, %v934_v46  ;;  %v1906_v52 = vrot.slane %v1905_v41, 2 }
 0x18f   : > { %v1919_v54 = vmax.f32 %v1917_v34, %v1918_v42  ;;  %v1926_v56 = vmax.f32 %v1924_v35, %v1925_v19  ;;  %v2643_v57 = vsel %vm2595_vm6, %v1895_v39, %v2642_v43  ;;  %v1902_v0 = vmax.f32 %v1900_v31, %v1901_v47 }
 0x190   : > { %v1913_v53 = vrot.slane %v1912_v24, 2  ;;  %v1120_v59 = vadd.f32 %v8379_v61, %v1052_v48  ;;  %v1907_v22 = vmax.f32 %v1905_v41, %v1906_v52  ;;  %v1261_v2 = vsel %vm1217_vm3, %v1183_v58, -inf }
 0x191   : > { %v1920_v62 = vrot.slane %v1919_v54, 2  ;;  %v1927_v63 = vrot.slane %v1926_v56, 2  ;;  %v1262_v8 = vmax.f32 %v1260_v50, %v1261_v2  ;;  %v2644_v11 = vsel %vm2597_vm7, %v1902_v0, %v2643_v57 }
 0x192   : > { %v1914_v1 = vmax.f32 %v1912_v24, %v1913_v53  ;;  %v1184_v5 = vmax.f32 %v1120_v59, 0.0  ;;  %v1908_v55 = vrot.slane %v1907_v22, 1 }
 0x193   : > { %v1921_v6 = vmax.f32 %v1919_v54, %v1920_v62  ;;  %v1928_v7 = vmax.f32 %v1926_v56, %v1927_v63  ;;  %v1388_v60 = vrot.slane %v1262_v8, 2  ;;  %v1389_v26 = vrot.slane %v1262_v8, 4 }
 0x194   : > { %v1915_v12 = vrot.slane %v1914_v1, 1  ;;  %v1264_v15 = vsel %vm1217_vm3, %v1184_v5, -inf  ;;  %v1909_v18 = vmax.f32 %v1907_v22, %v1908_v55  ;;  %v1390_v27 = vrot.slane %v1262_v8, 6 }
 0x195   : > { %v1922_v4 = vrot.slane %v1921_v6, 1  ;;  %v1929_v20 = vrot.slane %v1928_v7, 1  ;;  %v8479_v23 = vpop.f32.mrf.mxu0  ;;  %v1931_v28 = vsel %vm1538_vm4, %v1262_v8, -inf  ;;  %v1938_v32 = vsel %vm1538_vm4, %v1388_v60, -inf }
 0x196   : > { %v1916_v25 = vmax.f32 %v1914_v1, %v1915_v12  ;;  %v2645_v29 = vsel %vm2599_vm8, %v1909_v18, %v2644_v11  ;;  %v1932_v30 = vrot.slane %v1931_v28, 4  ;;  %v1945_v21 = vsel %vm1538_vm4, %v1389_v26, -inf }
 0x197   : > { %v1923_v37 = vmax.f32 %v1921_v6, %v1922_v4  ;;  %v1930_v49 = vmax.f32 %v1928_v7, %v1929_v20  ;;  %v1952_v34 = vsel %vm1538_vm4, %v1390_v27, -inf  ;;  %v1939_v38 = vrot.slane %v1938_v32, 4  ;;  %v7670_v27 = vld [vmem:[%s8077_s21 + $0xc8] sm:$0xff] }
 0x198   : > { %v2646_v31 = vsel %vm2601_vm9, %v1916_v25, %v2645_v29  ;;  %6655 = vmatmul.msk.bf16.gmra.mxu0 %vm744_vm2, %v7669_v16  ;;  %v1933_v36 = vmax.f32 %v1931_v28, %v1932_v30  ;;  %v1946_v39 = vrot.slane %v1945_v21, 4  ;;  %v1953_v41 = vrot.slane %v1952_v34, 4 }
 0x199   : > { %v2647_v35 = vsel %vm2603_vm10, %v1923_v37, %v2646_v31  ;;  %v1265_v42 = vmax.f32 %v1263_v9, %v1264_v15  ;;  %v1940_v45 = vmax.f32 %v1938_v32, %v1939_v38 }
 0x19a   : > { %v2648_v40 = vsel %vm2605_vm11, %v1930_v49, %v2647_v35  ;;  %v1934_v19 = vrot.slane %v1933_v36, 2  ;;  %v1947_v46 = vmax.f32 %v1945_v21, %v1946_v39  ;;  %v1954_v47 = vmax.f32 %v1952_v34, %v1953_v41 }
 0x19b   : > { %2735 = vst.msk [vmem:[#allocation2 + $0x61] sm:$0xff] %vm1217_vm3, %v2648_v40  ;;  %v1391_v43 = vrot.slane %v1265_v42, 2  ;;  %v1392_v24 = vrot.slane %v1265_v42, 4  ;;  %v1393_v48 = vrot.slane %v1265_v42, 6  ;;  %v1941_v52 = vrot.slane %v1940_v45, 2 }
 0x19c   : > { %v1935_v50 = vmax.f32 %v1933_v36, %v1934_v19  ;;  %v1948_v54 = vrot.slane %v1947_v46, 2  ;;  %v1959_v56 = vsel %vm1538_vm4, %v1265_v42, -inf  ;;  %v1955_v53 = vrot.slane %v1954_v47, 2 }
 0x19d   : > { %v8492_v13 = vpop.f32.mrf.mxu0  ;;  %v1960_v58 = vrot.slane %v1959_v56, 4  ;;  %v1966_v59 = vsel %vm1538_vm4, %v1391_v43, -inf  ;;  %v1973_v57 = vsel %vm1538_vm4, %v1392_v24, -inf  ;;  %v1942_v62 = vmax.f32 %v1940_v45, %v1941_v52  ;;  %v8511_v52 = vpop.f32.mrf.mxu2 }
 0x19e   : > { %v1936_v22 = vrot.slane %v1935_v50, 1  ;;  %v1949_v63 = vmax.f32 %v1947_v46, %v1948_v54  ;;  %v1967_v0 = vrot.slane %v1966_v59, 4  ;;  %v1956_v1 = vmax.f32 %v1954_v47, %v1955_v53 }
 0x19f   : > { %v1961_v2 = vmax.f32 %v1959_v56, %v1960_v58  ;;  %v1974_v5 = vrot.slane %v1973_v57, 4  ;;  %v1980_v55 = vsel %vm1538_vm4, %v1393_v48, -inf  ;;  %v1943_v6 = vrot.slane %v1942_v62, 1  ;;  %v7671_v56 = vld [vmem:[%s8077_s21 + $0xd0] sm:$0xff] }
 0x1a0   : > { %v1950_v7 = vrot.slane %v1949_v63, 1  ;;  %v1968_v8 = vmax.f32 %v1966_v59, %v1967_v0  ;;  %v1937_v9 = vmax.f32 %v1935_v50, %v1936_v22  ;;  %v1981_v15 = vrot.slane %v1980_v55, 4  ;;  %v8509_v50 = vpop.f32.mrf.mxu1  ;;  %v8516_v0 = vpop.f32.mrf.mxu3 }
 0x1a1   : > { %v1962_v11 = vrot.slane %v1961_v2, 2  ;;  %v1975_v12 = vmax.f32 %v1973_v57, %v1974_v5  ;;  %v1944_v16 = vmax.f32 %v1942_v62, %v1943_v6  ;;  %v1957_v4 = vrot.slane %v1956_v1, 1 }
 0x1a2   : > { %v1951_v18 = vmax.f32 %v1949_v63, %v1950_v7  ;;  %v1969_v20 = vrot.slane %v1968_v8, 2  ;;  %v1982_v26 = vmax.f32 %v1980_v55, %v1981_v15  ;;  %v1053_v48 = vmul.f32 %v8369_v44, %v8479_v23  ;;  %v2781_v53 = vld [vmem:[#allocation2 + $0x61] sm:$0xff] }
 0x1a3   : > { %v1963_v60 = vmax.f32 %v1961_v2, %v1962_v11  ;;  %v1976_v25 = vrot.slane %v1975_v12, 2  ;;  %v2649_v28 = vsel %vm2593_vm5, %v1944_v16, %v1937_v9  ;;  %v1958_v21 = vmax.f32 %v1956_v1, %v1957_v4  ;;  %v2753_v58 = vld [vmem:[#allocation2 + $0x60] sm:$0xff] }
 0x1a4   : > { %v1970_v37 = vmax.f32 %v1968_v8, %v1969_v20  ;;  %v2650_v29 = vsel %vm2595_vm6, %v1951_v18, %v2649_v28  ;;  %v1983_v32 = vrot.slane %v1982_v26, 2  ;;  %v1121_v54 = vadd.f32 %v8379_v61, %v1053_v48 }
 0x1a5   : > { %v942_v49 = vpop.f32.mrf.mxu0  ;;  %v1964_v30 = vrot.slane %v1963_v60, 1  ;;  %v1977_v31 = vmax.f32 %v1975_v12, %v1976_v25  ;;  %v2651_v39 = vsel %vm2597_vm7, %v1958_v21, %v2650_v29  ;;  %v1054_v7 = vmul.f32 %v8369_v44, %v8492_v13 }
 0x1a6   : > { %v1971_v34 = vrot.slane %v1970_v37, 1  ;;  %v1984_v38 = vmax.f32 %v1982_v26, %v1983_v32  ;;  %v1185_v5 = vmax.f32 %v1121_v54, 0.0  ;;  %v1055_v13 = vmul.f32 %v8369_v44, %v942_v49 }
 0x1a7   : > { %v1965_v35 = vmax.f32 %v1963_v60, %v1964_v30  ;;  %v1978_v36 = vrot.slane %v1977_v31, 1  ;;  %v1122_v16 = vadd.f32 %v8379_v61, %v1054_v7 }
 0x1a8   : > { %6656 = vmatmul.msk.bf16.gmra.mxu0 %vm744_vm2, %v7670_v27  ;;  %v1972_v40 = vmax.f32 %v1970_v37, %v1971_v34  ;;  %v1985_v42 = vrot.slane %v1984_v38, 1  ;;  %v1266_v9 = vsel %vm1217_vm3, %v1185_v5, -inf }
 0x1a9   : > { %v1979_v41 = vmax.f32 %v1977_v31, %v1978_v36  ;;  %v2652_v19 = vsel %vm2599_vm8, %v1965_v35, %v2651_v39  ;;  %v1186_v32 = vmax.f32 %v1122_v16, 0.0 }
 0x1aa   : > { %v2653_v45 = vsel %vm2601_vm9, %v1972_v40, %v2652_v19  ;;  %v1986_v46 = vmax.f32 %v1984_v38, %v1985_v42  ;;  %v1123_v40 = vadd.f32 %v8379_v61, %v1055_v13 }
 0x1ab   : > { %v2654_v47 = vsel %vm2603_vm10, %v1979_v41, %v2653_v45 }
 0x1ac   : > { %v2655_v24 = vsel %vm2605_vm11, %v1986_v46, %v2654_v47  ;;  %v7672_v47 = vld [vmem:[%s8077_s21 + $0xd8] sm:$0xff] }
 0x1ad   : > { %v944_v43 = vpop.f32.mrf.mxu0  ;;  %2736 = vst.msk [vmem:[#allocation2 + $0x69] sm:$0xff] %vm1217_vm3, %v2655_v24  ;;  %v1269_v24 = vsel %vm1217_vm3, %v1186_v32, -inf }
 0x1ae   : > { %v1056_v48 = vmul.f32 %v8369_v44, %v944_v43 }
 0x1b0   : > { %v1124_v7 = vadd.f32 %v8379_v61, %v1056_v48 }
 0x1b4   : > { %v2782_v57 = vld [vmem:[#allocation2 + $0x69] sm:$0xff]  ;;  %v2857_v11 = vpop.f32.mrf.mxu1 }
 0x1b5   : > { %v947_v59 = vpop.f32.mrf.mxu0  ;;  %v2754_v22 = vld [vmem:[#allocation2 + $0x68] sm:$0xff]  ;;  %v2793_v1 = vpack.c.bf16 %v2782_v57, %v2781_v53 }
 0x1b6   : > { %v2980_v62 = vld [vmem:[#allocation2 + $0x62] sm:$0xff]  ;;  %v1057_v63 = vmul.f32 %v8369_v44, %v947_v59  ;;  %v2765_v2 = vpack.c.bf16 %v2754_v22, %v2753_v58  ;;  %v2981_v23 = vld [vmem:[#allocation2 + $0x6a] sm:$0xff]  ;;  %v1187_v22 = vmax.f32 %v1123_v40, 0.0 }
 0x1b7   : > { %v2992_v55 = vpack.c.bf16 %v2981_v23, %v2980_v62  ;;  %6679 = vmatmul.msk.bf16.gmra.mxu1 %vm1217_vm3, %v2793_v1 }
 0x1b8   : > { %v1125_v6 = vadd.f32 %v8379_v61, %v1057_v63  ;;  %6657 = vmatmul.msk.bf16.gmra.mxu0 %vm744_vm2, %v7671_v56  ;;  %6695 = vmatmul.msk.bf16.gmra.mxu2 %vm1217_vm3, %v2765_v2 }
 0x1b9   : > { %6715 = vmatmul.msk.bf16.gmra.mxu3 %vm1217_vm3, %v2992_v55 }
 0x1ba   : > { %v1189_v8 = vmax.f32 %v1125_v6, 0.0 }
 0x1bb   : > { %v2942_v15 = vpop.f32.mrf.mxu2 }
 0x1bc   : > { %v1267_v12 = vsel %vm1217_vm3, %v1189_v8, -inf  ;;  %v2943_v4 = vadd.f32 %v2942_v15, %v2857_v11  ;;  %v3056_v37 = vpop.f32.mrf.mxu3 }
 0x1bd   : > { %v1268_v18 = vmax.f32 %v1266_v9, %v1267_v12  ;;  %v949_v20 = vpop.f32.mrf.mxu0 }
 0x1be   : > { %v1058_v60 = vmul.f32 %v8369_v44, %v949_v20  ;;  %v8531_v30 = vadd.f32 %v3056_v37, %v2943_v4 }
 0x1bf   : > { %v1394_v25 = vrot.slane %v1268_v18, 2  ;;  %v1395_v26 = vrot.slane %v1268_v18, 4  ;;  %v1396_v27 = vrot.slane %v1268_v18, 6  ;;  %v1987_v28 = vsel %vm1538_vm4, %v1268_v18, -inf }
 0x1c0   : > { %v1988_v29 = vrot.slane %v1987_v28, 4  ;;  %v1126_v31 = vadd.f32 %v8379_v61, %v1058_v60 }
 0x1c1   : > { %v1994_v21 = vsel %vm1538_vm4, %v1394_v25, -inf  ;;  %v2001_v34 = vsel %vm1538_vm4, %v1395_v26, -inf  ;;  %v2008_v49 = vsel %vm1538_vm4, %v1396_v27, -inf }
 0x1c2   : > { %v1989_v35 = vmax.f32 %v1987_v28, %v1988_v29  ;;  %v1995_v36 = vrot.slane %v1994_v21, 4  ;;  %v2002_v38 = vrot.slane %v2001_v34, 4  ;;  %v2009_v39 = vrot.slane %v2008_v49, 4 }
 0x1c3   : > { %v1190_v41 = vmax.f32 %v1126_v31, 0.0 }
 0x1c4   : > { %v1990_v42 = vrot.slane %v1989_v35, 2  ;;  %v1996_v19 = vmax.f32 %v1994_v21, %v1995_v36  ;;  %v2003_v45 = vmax.f32 %v2001_v34, %v2002_v38  ;;  %v2010_v46 = vmax.f32 %v2008_v49, %v2009_v39 }
 0x1c5   : > { %v1270_v54 = vsel %vm1217_vm3, %v1190_v41, -inf  ;;  %v952_v56 = vpop.f32.mrf.mxu0  ;;  %v1272_v34 = vsel %vm1217_vm3, %v1187_v22, -inf  ;;  %v1188_v38 = vmax.f32 %v1124_v7, 0.0 }
 0x1c6   : > { %v1991_v53 = vmax.f32 %v1989_v35, %v1990_v42  ;;  %v1997_v58 = vrot.slane %v1996_v19, 2  ;;  %v2004_v59 = vrot.slane %v2003_v45, 2  ;;  %v2011_v57 = vrot.slane %v2010_v46, 2 }
 0x1c7   : > { %v1271_v62 = vmax.f32 %v1269_v24, %v1270_v54  ;;  %v1059_v23 = vmul.f32 %v8369_v44, %v952_v56 }
 0x1c8   : > { %v1992_v63 = vrot.slane %v1991_v53, 1  ;;  %v1998_v1 = vmax.f32 %v1996_v19, %v1997_v58  ;;  %v2005_v2 = vmax.f32 %v2003_v45, %v2004_v59  ;;  %6658 = vmatmul.msk.bf16.gmra.mxu0 %vm744_vm2, %v7672_v47  ;;  %v2012_v11 = vmax.f32 %v2010_v46, %v2011_v57 }
 0x1c9   : > { %v1397_v5 = vrot.slane %v1271_v62, 2  ;;  %v1398_v55 = vrot.slane %v1271_v62, 4  ;;  %v1399_v6 = vrot.slane %v1271_v62, 6  ;;  %v2015_v43 = vsel %vm1538_vm4, %v1271_v62, -inf  ;;  %v7673_v62 = vld [vmem:[%s8077_s21 + $0xe0] sm:$0xff] }
 0x1ca   : > { %v1999_v8 = vrot.slane %v1998_v1, 1  ;;  %v2006_v9 = vrot.slane %v2005_v2, 1  ;;  %v2016_v12 = vrot.slane %v2015_v43, 4  ;;  %v1993_v4 = vmax.f32 %v1991_v53, %v1992_v63 }
 0x1cb   : > { %v2022_v15 = vsel %vm1538_vm4, %v1397_v5, -inf  ;;  %v2029_v16 = vsel %vm1538_vm4, %v1398_v55, -inf  ;;  %v2036_v18 = vsel %vm1538_vm4, %v1399_v6, -inf  ;;  %v1127_v28 = vadd.f32 %v8379_v61, %v1059_v23 }
 0x1cc   : > { %v2000_v20 = vmax.f32 %v1998_v1, %v1999_v8  ;;  %v2007_v13 = vmax.f32 %v2005_v2, %v2006_v9  ;;  %v2023_v60 = vrot.slane %v2022_v15, 4  ;;  %v2017_v25 = vmax.f32 %v2015_v43, %v2016_v12 }
 0x1cd   : > { %v2030_v26 = vrot.slane %v2029_v16, 4  ;;  %v2037_v27 = vrot.slane %v2036_v18, 4  ;;  %v954_v37 = vpop.f32.mrf.mxu0  ;;  %v2013_v29 = vrot.slane %v2012_v11, 1  ;;  %v1191_v40 = vmax.f32 %v1127_v28, 0.0 }
 0x1ce   : > { %v2656_v31 = vsel %vm2593_vm5, %v2000_v20, %v1993_v4  ;;  %v2024_v32 = vmax.f32 %v2022_v15, %v2023_v60  ;;  %v1060_v21 = vmul.f32 %v8369_v44, %v954_v37  ;;  %v2018_v49 = vrot.slane %v2017_v25, 2 }
 0x1cf   : > { %v2031_v35 = vmax.f32 %v2029_v16, %v2030_v26  ;;  %v2038_v36 = vmax.f32 %v2036_v18, %v2037_v27  ;;  %v2657_v42 = vsel %vm2595_vm6, %v2007_v13, %v2656_v31  ;;  %v2014_v47 = vmax.f32 %v2012_v11, %v2013_v29 }
 0x1d0   : > { %v2025_v39 = vrot.slane %v2024_v32, 2  ;;  %v1128_v41 = vadd.f32 %v8379_v61, %v1060_v21  ;;  %v2019_v19 = vmax.f32 %v2017_v25, %v2018_v49  ;;  %v1273_v44 = vsel %vm1217_vm3, %v1191_v40, -inf }
 0x1d1   : > { %v2032_v45 = vrot.slane %v2031_v35, 2  ;;  %v2039_v46 = vrot.slane %v2038_v36, 2  ;;  %v1274_v58 = vmax.f32 %v1272_v34, %v1273_v44  ;;  %v1275_v59 = vsel %vm1217_vm3, %v1188_v38, -inf }
 0x1d2   : > { %v2026_v24 = vmax.f32 %v2024_v32, %v2025_v39  ;;  %v1192_v48 = vmax.f32 %v1128_v41, 0.0  ;;  %v2020_v54 = vrot.slane %v2019_v19, 1  ;;  %v2658_v57 = vsel %vm2597_vm7, %v2014_v47, %v2657_v42 }
 0x1d3   : > { %v2033_v56 = vmax.f32 %v2031_v35, %v2032_v45  ;;  %v2040_v53 = vmax.f32 %v2038_v36, %v2039_v46  ;;  %v1400_v23 = vrot.slane %v1274_v58, 2  ;;  %v1401_v6 = vrot.slane %v1274_v58, 4 }
 0x1d4   : > { %v2027_v61 = vrot.slane %v2026_v24, 1  ;;  %v1276_v22 = vsel %vm1217_vm3, %v1192_v48, -inf  ;;  %v2021_v63 = vmax.f32 %v2019_v19, %v2020_v54  ;;  %v1402_v43 = vrot.slane %v1274_v58, 6 }
 0x1d5   : > { %v2034_v1 = vrot.slane %v2033_v56, 1  ;;  %v2041_v2 = vrot.slane %v2040_v53, 1  ;;  %v8560_v5 = vpop.f32.mrf.mxu0  ;;  %v2043_v7 = vsel %vm1538_vm4, %v1274_v58, -inf  ;;  %v2050_v16 = vsel %vm1538_vm4, %v1400_v23, -inf }
 0x1d6   : > { %v2028_v55 = vmax.f32 %v2026_v24, %v2027_v61  ;;  %v2659_v11 = vsel %vm2599_vm8, %v2021_v63, %v2658_v57  ;;  %v2044_v12 = vrot.slane %v2043_v7, 4  ;;  %v2057_v18 = vsel %vm1538_vm4, %v1401_v6, -inf }
 0x1d7   : > { %v2035_v8 = vmax.f32 %v2033_v56, %v2034_v1  ;;  %v2042_v9 = vmax.f32 %v2040_v53, %v2041_v2  ;;  %v2064_v4 = vsel %vm1538_vm4, %v1402_v43, -inf  ;;  %v2051_v60 = vrot.slane %v2050_v16, 4 }
 0x1d8   : > { %v2660_v15 = vsel %vm2601_vm9, %v2028_v55, %v2659_v11  ;;  %6659 = vmatmul.msk.bf16.gmra.mxu0 %vm744_vm2, %v7673_v62  ;;  %v2045_v13 = vmax.f32 %v2043_v7, %v2044_v12  ;;  %v2058_v25 = vrot.slane %v2057_v18, 4  ;;  %v2065_v27 = vrot.slane %v2064_v4, 4 }
 0x1d9   : > { %v2661_v20 = vsel %vm2603_vm10, %v2035_v8, %v2660_v15  ;;  %v1277_v28 = vmax.f32 %v1275_v59, %v1276_v22  ;;  %v2052_v29 = vmax.f32 %v2050_v16, %v2051_v60  ;;  %v7674_v8 = vld [vmem:[%s8077_s21 + $0xe8] sm:$0xff] }
 0x1da   : > { %v2662_v26 = vsel %vm2605_vm11, %v2042_v9, %v2661_v20  ;;  %v2046_v37 = vrot.slane %v2045_v13, 2  ;;  %v2059_v31 = vmax.f32 %v2057_v18, %v2058_v25  ;;  %v2066_v32 = vmax.f32 %v2064_v4, %v2065_v27 }
 0x1db   : > { %2737 = vst.msk [vmem:[#allocation2 + $0x79] sm:$0xff] %vm1217_vm3, %v2662_v26  ;;  %v1403_v21 = vrot.slane %v1277_v28, 2  ;;  %v1404_v34 = vrot.slane %v1277_v28, 4  ;;  %v1405_v49 = vrot.slane %v1277_v28, 6  ;;  %v2053_v36 = vrot.slane %v2052_v29, 2 }
 0x1dc   : > { %v2047_v35 = vmax.f32 %v2045_v13, %v2046_v37  ;;  %v2060_v38 = vrot.slane %v2059_v31, 2  ;;  %v2071_v39 = vsel %vm1538_vm4, %v1277_v28, -inf  ;;  %v2067_v41 = vrot.slane %v2066_v32, 2 }
 0x1dd   : > { %v8573_v40 = vpop.f32.mrf.mxu0  ;;  %v2072_v42 = vrot.slane %v2071_v39, 4  ;;  %v2078_v19 = vsel %vm1538_vm4, %v1403_v21, -inf  ;;  %v2085_v45 = vsel %vm1538_vm4, %v1404_v34, -inf  ;;  %v2054_v47 = vmax.f32 %v2052_v29, %v2053_v36  ;;  %v8593_v36 = vld [vmem:[%s9550_s2] ss:$0 sm:$0xff] }
 0x1de   : > { %v2048_v46 = vrot.slane %v2047_v35, 1  ;;  %v2061_v24 = vmax.f32 %v2059_v31, %v2060_v38  ;;  %v2079_v44 = vrot.slane %v2078_v19, 4  ;;  %v2068_v48 = vmax.f32 %v2066_v32, %v2067_v41  ;;  %v8599_v41 = vpop.f32.mrf.mxu2 }
 0x1df   : > { %v2073_v54 = vmax.f32 %v2071_v39, %v2072_v42  ;;  %v2086_v56 = vrot.slane %v2085_v45, 4  ;;  %v2092_v53 = vsel %vm1538_vm4, %v1405_v49, -inf  ;;  %v2055_v58 = vrot.slane %v2054_v47, 1  ;;  %v8597_v39 = vpop.f32.mrf.mxu1  ;;  %v8604_v42 = vld [vmem:[%s9551_s3] ss:$0 sm:$0xff] }
 0x1e0   : > { %v2062_v59 = vrot.slane %v2061_v24, 1  ;;  %v2080_v57 = vmax.f32 %v2078_v19, %v2079_v44  ;;  %v2049_v61 = vmax.f32 %v2047_v35, %v2048_v46  ;;  %v2093_v63 = vrot.slane %v2092_v53, 4 }
 0x1e1   : > { %v2074_v22 = vrot.slane %v2073_v54, 2  ;;  %v2087_v62 = vmax.f32 %v2085_v45, %v2086_v56  ;;  %v2056_v1 = vmax.f32 %v2054_v47, %v2055_v58  ;;  %v2069_v23 = vrot.slane %v2068_v48, 1  ;;  %v7675_v45 = vld [vmem:[%s8077_s21 + $0xf0] sm:$0xff]  ;;  %v8609_v56 = vpop.f32.mrf.mxu3 }
 0x1e2   : > { %v2063_v2 = vmax.f32 %v2061_v24, %v2062_v59  ;;  %v2081_v55 = vrot.slane %v2080_v57, 2  ;;  %v2094_v7 = vmax.f32 %v2092_v53, %v2093_v63  ;;  %v1061_v38 = vmul.f32 %v8593_v36, %v8560_v5  ;;  %v2783_v46 = vld [vmem:[#allocation2 + $0x79] sm:$0xff] }
 0x1e3   : > { %v2075_v6 = vmax.f32 %v2073_v54, %v2074_v22  ;;  %v2088_v43 = vrot.slane %v2087_v62, 2  ;;  %v2663_v9 = vsel %vm2593_vm5, %v2056_v1, %v2049_v61  ;;  %v2070_v20 = vmax.f32 %v2068_v48, %v2069_v23  ;;  %v2755_v47 = vld [vmem:[#allocation2 + $0x78] sm:$0xff] }
 0x1e4   : > { %v2082_v11 = vmax.f32 %v2080_v57, %v2081_v55  ;;  %v2664_v15 = vsel %vm2595_vm6, %v2063_v2, %v2663_v9  ;;  %v2095_v4 = vrot.slane %v2094_v7, 2  ;;  %v1129_v19 = vadd.f32 %v8604_v42, %v1061_v38 }
 0x1e5   : > { %v962_v12 = vpop.f32.mrf.mxu0  ;;  %v2076_v16 = vrot.slane %v2075_v6, 1  ;;  %v2089_v18 = vmax.f32 %v2087_v62, %v2088_v43  ;;  %v2665_v27 = vsel %vm2597_vm7, %v2070_v20, %v2664_v15  ;;  %v1062_v62 = vmul.f32 %v8593_v36, %v8573_v40 }
 0x1e6   : > { %v2083_v13 = vrot.slane %v2082_v11, 1  ;;  %v2096_v26 = vmax.f32 %v2094_v7, %v2095_v4  ;;  %v1193_v57 = vmax.f32 %v1129_v19, 0.0  ;;  %v1063_v40 = vmul.f32 %v8593_v36, %v962_v12 }
 0x1e7   : > { %v2077_v60 = vmax.f32 %v2075_v6, %v2076_v16  ;;  %v2090_v25 = vrot.slane %v2089_v18, 1  ;;  %v1130_v6 = vadd.f32 %v8604_v42, %v1062_v62 }
 0x1e8   : > { %6660 = vmatmul.msk.bf16.gmra.mxu0 %vm744_vm2, %v7674_v8  ;;  %v2084_v28 = vmax.f32 %v2082_v11, %v2083_v13  ;;  %v2097_v29 = vrot.slane %v2096_v26, 1  ;;  %v1278_v1 = vsel %vm1217_vm3, %v1193_v57, -inf }
 0x1e9   : > { %v2091_v37 = vmax.f32 %v2089_v18, %v2090_v25  ;;  %v2666_v31 = vsel %vm2599_vm8, %v2077_v60, %v2665_v27  ;;  %v1194_v25 = vmax.f32 %v1130_v6, 0.0 }
 0x1ea   : > { %v2667_v32 = vsel %vm2601_vm9, %v2084_v28, %v2666_v31  ;;  %v2098_v21 = vmax.f32 %v2096_v26, %v2097_v29 }
 0x1eb   : > { %v2668_v34 = vsel %vm2603_vm10, %v2091_v37, %v2667_v32  ;;  %v1131_v32 = vadd.f32 %v8604_v42, %v1063_v40 }
 0x1ec   : > { %v2669_v35 = vsel %vm2605_vm11, %v2098_v21, %v2668_v34 }
 0x1ed   : > { %v8586_v49 = vpop.f32.mrf.mxu0  ;;  %2738 = vst.msk [vmem:[#allocation2 + $0x81] sm:$0xff] %vm1217_vm3, %v2669_v35 }
 0x1f4   : > { %v2784_v44 = vld [vmem:[#allocation2 + $0x81] sm:$0xff]  ;;  %v2862_v2 = vpop.f32.mrf.mxu1 }
 0x1f5   : > { %v967_v24 = vpop.f32.mrf.mxu0  ;;  %v2756_v48 = vld [vmem:[#allocation2 + $0x80] sm:$0xff]  ;;  %v2794_v53 = vpack.c.bf16 %v2784_v44, %v2783_v46  ;;  %v1281_v46 = vsel %vm1217_vm3, %v1194_v25, -inf }
 0x1f6   : > { %v2982_v54 = vld [vmem:[#allocation2 + $0x7a] sm:$0xff]  ;;  %v1065_v5 = vmul.f32 %v8593_v36, %v967_v24  ;;  %v2766_v58 = vpack.c.bf16 %v2756_v48, %v2755_v47  ;;  %v2983_v59 = vld [vmem:[#allocation2 + $0x82] sm:$0xff]  ;;  %v1064_v47 = vmul.f32 %v8593_v36, %v8586_v49 }
 0x1f7   : > { %v2993_v61 = vpack.c.bf16 %v2983_v59, %v2982_v54  ;;  %6680 = vmatmul.msk.bf16.gmra.mxu1 %vm1217_vm3, %v2794_v53 }
 0x1f8   : > { %v1133_v22 = vadd.f32 %v8604_v42, %v1065_v5  ;;  %6661 = vmatmul.msk.bf16.gmra.mxu0 %vm744_vm2, %v7675_v45  ;;  %6696 = vmatmul.msk.bf16.gmra.mxu2 %vm1217_vm3, %v2766_v58  ;;  %v7676_v45 = vld [vmem:[%s8077_s21 + $0xf8] sm:$0xff]  ;;  %v1195_v58 = vmax.f32 %v1131_v32, 0.0 }
 0x1f9   : > { %6716 = vmatmul.msk.bf16.gmra.mxu3 %vm1217_vm3, %v2993_v61 }
 0x1fa   : > { %v1197_v63 = vmax.f32 %v1133_v22, 0.0 }
 0x1fb   : > { %v2947_v55 = vpop.f32.mrf.mxu2 }
 0x1fc   : > { %v1279_v23 = vsel %vm1217_vm3, %v1197_v63, -inf  ;;  %v2948_v7 = vadd.f32 %v2947_v55, %v2862_v2  ;;  %v3061_v4 = vpop.f32.mrf.mxu3 }
 0x1fd   : > { %v1280_v43 = vmax.f32 %v1278_v1, %v1279_v23  ;;  %v969_v8 = vpop.f32.mrf.mxu0  ;;  %v1132_v23 = vadd.f32 %v8604_v42, %v1064_v47 }
 0x1fe   : > { %v1066_v9 = vmul.f32 %v8593_v36, %v969_v8  ;;  %v8624_v13 = vadd.f32 %v3061_v4, %v2948_v7 }
 0x1ff   : > { %v1406_v11 = vrot.slane %v1280_v43, 2  ;;  %v1407_v15 = vrot.slane %v1280_v43, 4  ;;  %v1408_v16 = vrot.slane %v1280_v43, 6  ;;  %v2099_v18 = vsel %vm1538_vm4, %v1280_v43, -inf }
 0x200   : > { %v2100_v20 = vrot.slane %v2099_v18, 4  ;;  %v1134_v60 = vadd.f32 %v8604_v42, %v1066_v9 }
 0x201   : > { %v2106_v26 = vsel %vm1538_vm4, %v1406_v11, -inf  ;;  %v2113_v27 = vsel %vm1538_vm4, %v1407_v15, -inf  ;;  %v2120_v12 = vsel %vm1538_vm4, %v1408_v16, -inf }
 0x202   : > { %v2101_v28 = vmax.f32 %v2099_v18, %v2100_v20  ;;  %v2107_v37 = vrot.slane %v2106_v26, 4  ;;  %v2114_v29 = vrot.slane %v2113_v27, 4  ;;  %v2121_v31 = vrot.slane %v2120_v12, 4 }
 0x203   : > { %v1198_v21 = vmax.f32 %v1134_v60, 0.0 }
 0x204   : > { %v2102_v34 = vrot.slane %v2101_v28, 2  ;;  %v2108_v35 = vmax.f32 %v2106_v26, %v2107_v37  ;;  %v2115_v38 = vmax.f32 %v2113_v27, %v2114_v29  ;;  %v2122_v19 = vmax.f32 %v2120_v12, %v2121_v31 }
 0x205   : > { %v1282_v24 = vsel %vm1217_vm3, %v1198_v21, -inf  ;;  %v972_v44 = vpop.f32.mrf.mxu0  ;;  %v1284_v29 = vsel %vm1217_vm3, %v1195_v58, -inf }
 0x206   : > { %v2103_v48 = vmax.f32 %v2101_v28, %v2102_v34  ;;  %v2109_v54 = vrot.slane %v2108_v35, 2  ;;  %v2116_v5 = vrot.slane %v2115_v38, 2  ;;  %v2123_v53 = vrot.slane %v2122_v19, 2  ;;  %v7687_v34 = vld [vmem:[%s9552_s4 + $0x48] sm:$0xff] }
 0x207   : > { %v1283_v59 = vmax.f32 %v1281_v46, %v1282_v24  ;;  %v1067_v62 = vmul.f32 %v8593_v36, %v972_v44  ;;  %3303 = vmatpush.bf16.msrb.mxu2 %v7687_v34 }
 0x208   : > { %v2104_v57 = vrot.slane %v2103_v48, 1  ;;  %v2110_v61 = vmax.f32 %v2108_v35, %v2109_v54  ;;  %v2117_v22 = vmax.f32 %v2115_v38, %v2116_v5  ;;  %6662 = vmatmul.msk.bf16.gmra.mxu0 %vm744_vm2, %v7676_v45  ;;  %v2124_v43 = vmax.f32 %v2122_v19, %v2123_v53  ;;  %v7689_v35 = vld [vmem:[%s9552_s4 + $0x58] sm:$0xff] }
 0x209   : > { %v1409_v63 = vrot.slane %v1283_v59, 2  ;;  %v1410_v1 = vrot.slane %v1283_v59, 4  ;;  %v1411_v2 = vrot.slane %v1283_v59, 6  ;;  %v2127_v49 = vsel %vm1538_vm4, %v1283_v59, -inf  ;;  %v7685_v38 = vld [vmem:[%s9552_s4 + $0x38] sm:$0xff]  ;;  %3433 = vmatpush.bf16.msrb.mxu3 %v7689_v35 }
 0x20a   : > { %v2111_v55 = vrot.slane %v2110_v61, 1  ;;  %v2118_v6 = vrot.slane %v2117_v22, 1  ;;  %v2128_v7 = vrot.slane %v2127_v49, 4  ;;  %v2105_v11 = vmax.f32 %v2103_v48, %v2104_v57  ;;  %3173 = vmatpush.bf16.msrb.mxu1 %v7685_v38 }
 0x20b   : > { %v2134_v8 = vsel %vm1538_vm4, %v1409_v63, -inf  ;;  %v2141_v40 = vsel %vm1538_vm4, %v1410_v1, -inf  ;;  %v2148_v9 = vsel %vm1538_vm4, %v1411_v2, -inf  ;;  %v1135_v25 = vadd.f32 %v8604_v42, %v1067_v62 }
 0x20c   : > { %v2112_v15 = vmax.f32 %v2110_v61, %v2111_v55  ;;  %v2119_v16 = vmax.f32 %v2117_v22, %v2118_v6  ;;  %v2135_v18 = vrot.slane %v2134_v8, 4  ;;  %v2129_v4 = vmax.f32 %v2127_v49, %v2128_v7 }
 0x20d   : > { %v2142_v20 = vrot.slane %v2141_v40, 4  ;;  %v2149_v60 = vrot.slane %v2148_v9, 4  ;;  %v974_v26 = vpop.f32.mrf.mxu0  ;;  %v2125_v27 = vrot.slane %v2124_v43, 1  ;;  %v1196_v19 = vmax.f32 %v1132_v23, 0.0 }
 0x20e   : > { %v2670_v12 = vsel %vm2593_vm5, %v2112_v15, %v2105_v11  ;;  %v2136_v28 = vmax.f32 %v2134_v8, %v2135_v18  ;;  %v1068_v37 = vmul.f32 %v8593_v36, %v974_v26  ;;  %v2130_v31 = vrot.slane %v2129_v4, 2 }
 0x20f   : > { %v2143_v32 = vmax.f32 %v2141_v40, %v2142_v20  ;;  %v2150_v21 = vmax.f32 %v2148_v9, %v2149_v60  ;;  %v1199_v46 = vmax.f32 %v1135_v25, 0.0  ;;  %v2671_v24 = vsel %vm2595_vm6, %v2119_v16, %v2670_v12 }
 0x210   : > { %v2137_v45 = vrot.slane %v2136_v28, 2  ;;  %v1136_v47 = vadd.f32 %v8604_v42, %v1068_v37  ;;  %v2131_v44 = vmax.f32 %v2129_v4, %v2130_v31  ;;  %v2126_v5 = vmax.f32 %v2124_v43, %v2125_v27 }
 0x211   : > { %v2144_v48 = vrot.slane %v2143_v32, 2  ;;  %v2151_v54 = vrot.slane %v2150_v21, 2  ;;  %v1285_v58 = vsel %vm1217_vm3, %v1199_v46, -inf  ;;  %v1287_v63 = vsel %vm1217_vm3, %v1196_v19, -inf }
 0x212   : > { %v2138_v53 = vmax.f32 %v2136_v28, %v2137_v45  ;;  %v1200_v59 = vmax.f32 %v1136_v47, 0.0  ;;  %v2132_v57 = vrot.slane %v2131_v44, 1  ;;  %v1286_v62 = vmax.f32 %v1284_v29, %v1285_v58 }
 0x213   : > { %v2145_v61 = vmax.f32 %v2143_v32, %v2144_v48  ;;  %v2152_v22 = vmax.f32 %v2150_v21, %v2151_v54  ;;  %v2672_v1 = vsel %vm2597_vm7, %v2126_v5, %v2671_v24 }
 0x214   : > { %v2139_v2 = vrot.slane %v2138_v53, 1  ;;  %v1288_v49 = vsel %vm1217_vm3, %v1200_v59, -inf  ;;  %v2133_v23 = vmax.f32 %v2131_v44, %v2132_v57  ;;  %v1412_v43 = vrot.slane %v1286_v62, 2 }
 0x215   : > { %v2146_v55 = vrot.slane %v2145_v61, 1  ;;  %v2153_v6 = vrot.slane %v2152_v22, 1  ;;  %v8662_v7 = vpop.f32.mrf.mxu0  ;;  %v1413_v40 = vrot.slane %v1286_v62, 4  ;;  %v1414_v9 = vrot.slane %v1286_v62, 6 }
 0x216   : > { %v2140_v8 = vmax.f32 %v2138_v53, %v2139_v2  ;;  %v2155_v11 = vsel %vm1538_vm4, %v1286_v62, -inf  ;;  %v2673_v18 = vsel %vm2599_vm8, %v2133_v23, %v2672_v1  ;;  %v2162_v60 = vsel %vm1538_vm4, %v1412_v43, -inf }
 0x217   : > { %v2147_v15 = vmax.f32 %v2145_v61, %v2146_v55  ;;  %v2154_v16 = vmax.f32 %v2152_v22, %v2153_v6  ;;  %v2156_v4 = vrot.slane %v2155_v11, 4  ;;  %v2169_v25 = vsel %vm1538_vm4, %v1413_v40, -inf }
 0x218   : > { %v2674_v20 = vsel %vm2601_vm9, %v2140_v8, %v2673_v18  ;;  %v2176_v26 = vsel %vm1538_vm4, %v1414_v9, -inf  ;;  %v2163_v28 = vrot.slane %v2162_v60, 4  ;;  %v2170_v37 = vrot.slane %v2169_v25, 4 }
 0x219   : > { %v2675_v27 = vsel %vm2603_vm10, %v2147_v15, %v2674_v20  ;;  %v2157_v12 = vmax.f32 %v2155_v11, %v2156_v4  ;;  %v2177_v31 = vrot.slane %v2176_v26, 4  ;;  %v1289_v32 = vmax.f32 %v1287_v63, %v1288_v49 }
 0x21a   : > { %v2676_v29 = vsel %vm2605_vm11, %v2154_v16, %v2675_v27  ;;  %v2164_v34 = vmax.f32 %v2162_v60, %v2163_v28  ;;  %v2171_v35 = vmax.f32 %v2169_v25, %v2170_v37 }
 0x21b   : > { %2739 = vst.msk [vmem:[#allocation2 + $0x91] sm:$0xff] %vm1217_vm3, %v2676_v29  ;;  %v2158_v21 = vrot.slane %v2157_v12, 2  ;;  %v2178_v38 = vmax.f32 %v2176_v26, %v2177_v31  ;;  %v1415_v19 = vrot.slane %v1289_v32, 2  ;;  %v1416_v45 = vrot.slane %v1289_v32, 4 }
 0x21c   : > { %v1417_v46 = vrot.slane %v1289_v32, 6  ;;  %v2165_v24 = vrot.slane %v2164_v34, 2  ;;  %v2172_v44 = vrot.slane %v2171_v35, 2  ;;  %v2183_v48 = vsel %vm1538_vm4, %v1289_v32, -inf }
 0x21d   : > { %v2159_v47 = vmax.f32 %v2157_v12, %v2158_v21  ;;  %v8674_v54 = vpop.f32.mrf.mxu0  ;;  %v2179_v5 = vrot.slane %v2178_v38, 2  ;;  %v2184_v53 = vrot.slane %v2183_v48, 4  ;;  %v2190_v58 = vsel %vm1538_vm4, %v1415_v19, -inf }
 0x21e   : > { %v2197_v59 = vsel %vm1538_vm4, %v1416_v45, -inf  ;;  %v2166_v61 = vmax.f32 %v2164_v34, %v2165_v24  ;;  %v2173_v22 = vmax.f32 %v2171_v35, %v2172_v44  ;;  %v2191_v62 = vrot.slane %v2190_v58, 4 }
 0x21f   : > { %v2160_v57 = vrot.slane %v2159_v47, 1  ;;  %v2180_v63 = vmax.f32 %v2178_v38, %v2179_v5  ;;  %v2185_v1 = vmax.f32 %v2183_v48, %v2184_v53  ;;  %v2198_v2 = vrot.slane %v2197_v59, 4 }
 0x220   : > { %v2204_v49 = vsel %vm1538_vm4, %v1417_v46, -inf  ;;  %v2167_v23 = vrot.slane %v2166_v61, 1  ;;  %v2174_v55 = vrot.slane %v2173_v22, 1  ;;  %v2192_v6 = vmax.f32 %v2190_v58, %v2191_v62 }
 0x221   : > { %v2161_v43 = vmax.f32 %v2159_v47, %v2160_v57  ;;  %v2186_v8 = vrot.slane %v2185_v1, 2  ;;  %v2199_v40 = vmax.f32 %v2197_v59, %v2198_v2  ;;  %v2205_v9 = vrot.slane %v2204_v49, 4  ;;  %v8689_v59 = vpop.f32.mrf.mxu1  ;;  %v8691_v57 = vpop.f32.mrf.mxu2 }
 0x222   : > { %v2168_v11 = vmax.f32 %v2166_v61, %v2167_v23  ;;  %v2175_v15 = vmax.f32 %v2173_v22, %v2174_v55  ;;  %v2181_v16 = vrot.slane %v2180_v63, 1  ;;  %v2193_v18 = vrot.slane %v2192_v6, 2  ;;  %v2785_v22 = vld [vmem:[#allocation2 + $0x91] sm:$0xff]  ;;  %v8695_v55 = vpop.f32.mrf.mxu3 }
 0x223   : > { %v2187_v4 = vmax.f32 %v2185_v1, %v2186_v8  ;;  %v2200_v20 = vrot.slane %v2199_v40, 2  ;;  %v2206_v60 = vmax.f32 %v2204_v49, %v2205_v9  ;;  %v1069_v58 = vmul.f32 %v8593_v36, %v8662_v7  ;;  %v2757_v62 = vld [vmem:[#allocation2 + $0x90] sm:$0xff] }
 0x224   : > { %v2677_v25 = vsel %vm2593_vm5, %v2168_v11, %v2161_v43  ;;  %v2194_v26 = vmax.f32 %v2192_v6, %v2193_v18  ;;  %v2182_v31 = vmax.f32 %v2180_v63, %v2181_v16  ;;  %v1070_v11 = vmul.f32 %v8593_v36, %v8674_v54 }
 0x225   : > { %v982_v27 = vpop.f32.mrf.mxu0  ;;  %v2678_v12 = vsel %vm2595_vm6, %v2175_v15, %v2677_v25  ;;  %v2188_v28 = vrot.slane %v2187_v4, 1  ;;  %v2201_v37 = vmax.f32 %v2199_v40, %v2200_v20  ;;  %v2207_v29 = vrot.slane %v2206_v60, 2 }
 0x226   : > { %v2195_v32 = vrot.slane %v2194_v26, 1  ;;  %v2679_v38 = vsel %vm2597_vm7, %v2182_v31, %v2678_v12  ;;  %v1137_v61 = vadd.f32 %v8604_v42, %v1069_v58  ;;  %v1071_v12 = vmul.f32 %v8593_v36, %v982_v27 }
 0x227   : > { %v2189_v21 = vmax.f32 %v2187_v4, %v2188_v28  ;;  %v2202_v34 = vrot.slane %v2201_v37, 1  ;;  %v2208_v35 = vmax.f32 %v2206_v60, %v2207_v29  ;;  %v1138_v60 = vadd.f32 %v8604_v42, %v1070_v11 }
 0x228   : > { %v2196_v19 = vmax.f32 %v2194_v26, %v2195_v32  ;;  %v1201_v8 = vmax.f32 %v1137_v61, 0.0 }
 0x229   : > { %v2203_v45 = vmax.f32 %v2201_v37, %v2202_v34  ;;  %v2209_v46 = vrot.slane %v2208_v35, 1  ;;  %v2680_v47 = vsel %vm2599_vm8, %v2189_v21, %v2679_v38 }
 0x22a   : > { %v2681_v24 = vsel %vm2601_vm9, %v2196_v19, %v2680_v47  ;;  %v1290_v16 = vsel %vm1217_vm3, %v1201_v8, -inf  ;;  %v1202_v19 = vmax.f32 %v1138_v60, 0.0 }
 0x22b   : > { %v2210_v44 = vmax.f32 %v2208_v35, %v2209_v46  ;;  %v2682_v48 = vsel %vm2603_vm10, %v2203_v45, %v2681_v24 }
 0x22d   : > { %v984_v5 = vpop.f32.mrf.mxu0  ;;  %v2683_v53 = vsel %vm2605_vm11, %v2210_v44, %v2682_v48 }
 0x22e   : > { %2740 = vst.msk [vmem:[#allocation2 + $0x99] sm:$0xff] %vm1217_vm3, %v2683_v53  ;;  %v1139_v53 = vadd.f32 %v8604_v42, %v1071_v12 }
 0x234   : > { %v2867_v18 = vpop.f32.mrf.mxu1 }
 0x235   : > { %v987_v63 = vpop.f32.mrf.mxu0  ;;  %v2786_v1 = vld [vmem:[#allocation2 + $0x99] sm:$0xff] }
 0x236   : > { %v2758_v2 = vld [vmem:[#allocation2 + $0x98] sm:$0xff]  ;;  %v1073_v23 = vmul.f32 %v8593_v36, %v987_v63  ;;  %v8697_v6 = vpack.c.bf16 %v2786_v1, %v2785_v22  ;;  %v1293_v1 = vsel %vm1217_vm3, %v1202_v19, -inf }
 0x237   : > { %v2984_v49 = vld [vmem:[#allocation2 + $0x92] sm:$0xff]  ;;  %v8699_v43 = vpack.c.bf16 %v2758_v2, %v2757_v62  ;;  %v2985_v7 = vld [vmem:[#allocation2 + $0x9a] sm:$0xff]  ;;  %v1072_v2 = vmul.f32 %v8593_v36, %v984_v5 }
 0x238   : > { %v8701_v40 = vpack.c.bf16 %v2985_v7, %v2984_v49  ;;  %v1141_v9 = vadd.f32 %v8604_v42, %v1073_v23  ;;  %6681 = vmatmul.msk.bf16.gmra.mxu1 %vm1217_vm3, %v8697_v6 }
 0x239   : > { %6697 = vmatmul.msk.bf16.gmra.mxu2 %vm1217_vm3, %v8699_v43  ;;  %v1140_v5 = vadd.f32 %v8604_v42, %v1072_v2 }
 0x23a   : > { %6717 = vmatmul.msk.bf16.gmra.mxu3 %vm1217_vm3, %v8701_v40  ;;  %v1205_v15 = vmax.f32 %v1141_v9, 0.0 }
 0x23b   : > { %v2952_v20 = vpop.f32.mrf.mxu2 }
 0x23c   : > { %v1291_v4 = vsel %vm1217_vm3, %v1205_v15, -inf  ;;  %v2953_v54 = vadd.f32 %v2952_v20, %v2867_v18  ;;  %v3066_v21 = vpop.f32.mrf.mxu3  ;;  %v1203_v15 = vmax.f32 %v1139_v53, 0.0 }
 0x23d   : > { %v1292_v25 = vmax.f32 %v1290_v16, %v1291_v4  ;;  %v989_v26 = vpop.f32.mrf.mxu0 }
 0x23e   : > { %v1074_v28 = vmul.f32 %v8593_v36, %v989_v26  ;;  %v8718_v35 = vadd.f32 %v3066_v21, %v2953_v54 }
 0x23f   : > { %v1418_v37 = vrot.slane %v1292_v25, 2  ;;  %v1419_v29 = vrot.slane %v1292_v25, 4  ;;  %v1420_v31 = vrot.slane %v1292_v25, 6  ;;  %v2211_v32 = vsel %vm1538_vm4, %v1292_v25, -inf }
 0x240   : > { %v2212_v34 = vrot.slane %v2211_v32, 4  ;;  %v1142_v38 = vadd.f32 %v8604_v42, %v1074_v28 }
 0x241   : > { %v2218_v45 = vsel %vm1538_vm4, %v1418_v37, -inf  ;;  %v2225_v46 = vsel %vm1538_vm4, %v1419_v29, -inf  ;;  %v2232_v27 = vsel %vm1538_vm4, %v1420_v31, -inf }
 0x242   : > { %v2213_v47 = vmax.f32 %v2211_v32, %v2212_v34  ;;  %v2219_v24 = vrot.slane %v2218_v45, 4  ;;  %v2226_v44 = vrot.slane %v2225_v46, 4  ;;  %v2233_v48 = vrot.slane %v2232_v27, 4 }
 0x243   : > { %v1206_v58 = vmax.f32 %v1142_v38, 0.0 }
 0x244   : > { %v2214_v61 = vrot.slane %v2213_v47, 2  ;;  %v2220_v22 = vmax.f32 %v2218_v45, %v2219_v24  ;;  %v2227_v62 = vmax.f32 %v2225_v46, %v2226_v44  ;;  %v2234_v63 = vmax.f32 %v2232_v27, %v2233_v48 }
 0x245   : > { %v1294_v49 = vsel %vm1217_vm3, %v1206_v58, -inf  ;;  %v992_v23 = vpop.f32.mrf.mxu0 }
 0x246   : > { %v2215_v7 = vmax.f32 %v2213_v47, %v2214_v61  ;;  %v2221_v8 = vrot.slane %v2220_v22, 2  ;;  %v2228_v9 = vrot.slane %v2227_v62, 2  ;;  %v2235_v11 = vrot.slane %v2234_v63, 2 }
 0x247   : > { %v1295_v16 = vmax.f32 %v1293_v1, %v1294_v49  ;;  %v1075_v60 = vmul.f32 %v8593_v36, %v992_v23  ;;  %v7686_v49 = vld [vmem:[%s9552_s4 + $0x40] sm:$0xff]  ;;  %v7688_v23 = vld [vmem:[%s9552_s4 + $0x50] sm:$0xff] }
 0x248   : > { %v2216_v18 = vrot.slane %v2215_v7, 1  ;;  %v2222_v4 = vmax.f32 %v2220_v22, %v2221_v8  ;;  %v2229_v20 = vmax.f32 %v2227_v62, %v2228_v9  ;;  %v2236_v29 = vmax.f32 %v2234_v63, %v2235_v11  ;;  %3304 = vmatpush.bf16.msrb.mxu2 %v7686_v49  ;;  %3434 = vmatpush.bf16.msrb.mxu3 %v7688_v23 }
 0x249   : > { %v1421_v25 = vrot.slane %v1295_v16, 2  ;;  %v1422_v54 = vrot.slane %v1295_v16, 4  ;;  %v1423_v26 = vrot.slane %v1295_v16, 6  ;;  %v2239_v12 = vsel %vm1538_vm4, %v1295_v16, -inf }
 0x24a   : > { %v2223_v28 = vrot.slane %v2222_v4, 1  ;;  %v2230_v37 = vrot.slane %v2229_v20, 1  ;;  %v2240_v31 = vrot.slane %v2239_v12, 4  ;;  %v2217_v38 = vmax.f32 %v2215_v7, %v2216_v18  ;;  %v7684_v7 = vld [vmem:[%s9552_s4 + $0x30] sm:$0xff] }
 0x24b   : > { %v2246_v32 = vsel %vm1538_vm4, %v1421_v25, -inf  ;;  %v2253_v21 = vsel %vm1538_vm4, %v1422_v54, -inf  ;;  %v2260_v34 = vsel %vm1538_vm4, %v1423_v26, -inf  ;;  %v1143_v44 = vadd.f32 %v8604_v42, %v1075_v60  ;;  %3174 = vmatpush.bf16.msrb.mxu1 %v7684_v7 }
 0x24c   : > { %v2224_v19 = vmax.f32 %v2222_v4, %v2223_v28  ;;  %v2231_v45 = vmax.f32 %v2229_v20, %v2230_v37  ;;  %v2247_v46 = vrot.slane %v2246_v32, 4  ;;  %v2241_v27 = vmax.f32 %v2239_v12, %v2240_v31 }
 0x24d   : > { %v2254_v47 = vrot.slane %v2253_v21, 4  ;;  %v2261_v24 = vrot.slane %v2260_v34, 4  ;;  %v994_v48 = vpop.f32.mrf.mxu0  ;;  %v2237_v53 = vrot.slane %v2236_v29, 1  ;;  %v1296_v62 = vsel %vm1217_vm3, %v1203_v15, -inf }
 0x24e   : > { %v2684_v58 = vsel %vm2593_vm5, %v2224_v19, %v2217_v38  ;;  %v2248_v61 = vmax.f32 %v2246_v32, %v2247_v46  ;;  %v1076_v22 = vmul.f32 %v8593_v36, %v994_v48  ;;  %v2242_v63 = vrot.slane %v2241_v27, 2 }
 0x24f   : > { %v2255_v1 = vmax.f32 %v2253_v21, %v2254_v47  ;;  %v2262_v2 = vmax.f32 %v2260_v34, %v2261_v24  ;;  %v1204_v8 = vmax.f32 %v1140_v5, 0.0  ;;  %v1207_v11 = vmax.f32 %v1143_v44, 0.0 }
 0x250   : > { %v2249_v9 = vrot.slane %v2248_v61, 2  ;;  %v1144_v15 = vadd.f32 %v8604_v42, %v1076_v22  ;;  %v2685_v16 = vsel %vm2595_vm6, %v2231_v45, %v2684_v58  ;;  %v2243_v18 = vmax.f32 %v2241_v27, %v2242_v63 }
 0x251   : > { %v2256_v4 = vrot.slane %v2255_v1, 2  ;;  %v2263_v20 = vrot.slane %v2262_v2, 2  ;;  %v2238_v60 = vmax.f32 %v2236_v29, %v2237_v53  ;;  %v1297_v54 = vsel %vm1217_vm3, %v1207_v11, -inf }
 0x252   : > { %v2250_v25 = vmax.f32 %v2248_v61, %v2249_v9  ;;  %v1208_v26 = vmax.f32 %v1144_v15, 0.0  ;;  %v2244_v12 = vrot.slane %v2243_v18, 1  ;;  %v1298_v37 = vmax.f32 %v1296_v62, %v1297_v54 }
 0x253   : > { %v2257_v28 = vmax.f32 %v2255_v1, %v2256_v4  ;;  %v2264_v5 = vmax.f32 %v2262_v2, %v2263_v20  ;;  %v1299_v31 = vsel %vm1217_vm3, %v1204_v8, -inf  ;;  %v2686_v32 = vsel %vm2597_vm7, %v2238_v60, %v2685_v16 }
 0x254   : > { %v2251_v21 = vrot.slane %v2250_v25, 1  ;;  %v1300_v34 = vsel %vm1217_vm3, %v1208_v26, -inf  ;;  %v2245_v38 = vmax.f32 %v2243_v18, %v2244_v12  ;;  %v1424_v29 = vrot.slane %v1298_v37, 2 }
 0x255   : > { %v2258_v19 = vrot.slane %v2257_v28, 1  ;;  %v2265_v45 = vrot.slane %v2264_v5, 1  ;;  %v8753_v46 = vpop.f32.mrf.mxu0  ;;  %v1425_v47 = vrot.slane %v1298_v37, 4  ;;  %v1426_v24 = vrot.slane %v1298_v37, 6 }
 0x256   : > { %v2252_v27 = vmax.f32 %v2250_v25, %v2251_v21  ;;  %v2267_v44 = vsel %vm1538_vm4, %v1298_v37, -inf  ;;  %v2687_v58 = vsel %vm2599_vm8, %v2245_v38, %v2686_v32  ;;  %v2274_v62 = vsel %vm1538_vm4, %v1424_v29, -inf }
 0x257   : > { %v2259_v48 = vmax.f32 %v2257_v28, %v2258_v19  ;;  %v2266_v53 = vmax.f32 %v2264_v5, %v2265_v45  ;;  %v2268_v61 = vrot.slane %v2267_v44, 4  ;;  %v2281_v63 = vsel %vm1538_vm4, %v1425_v47, -inf }
 0x258   : > { %v2688_v22 = vsel %vm2601_vm9, %v2252_v27, %v2687_v58  ;;  %v2288_v1 = vsel %vm1538_vm4, %v1426_v24, -inf  ;;  %v2275_v23 = vrot.slane %v2274_v62, 4  ;;  %v2282_v7 = vrot.slane %v2281_v63, 4 }
 0x259   : > { %v2689_v2 = vsel %vm2603_vm10, %v2259_v48, %v2688_v22  ;;  %v2269_v49 = vmax.f32 %v2267_v44, %v2268_v61  ;;  %v2289_v9 = vrot.slane %v2288_v1, 4  ;;  %v1301_v11 = vmax.f32 %v1299_v31, %v1300_v34 }
 0x25a   : > { %v2690_v8 = vsel %vm2605_vm11, %v2266_v53, %v2689_v2  ;;  %v2276_v16 = vmax.f32 %v2274_v62, %v2275_v23  ;;  %v2283_v18 = vmax.f32 %v2281_v63, %v2282_v7 }
 0x25b   : > { %2741 = vst.msk [vmem:[#allocation2 + $0xa9] sm:$0xff] %vm1217_vm3, %v2690_v8  ;;  %v2270_v15 = vrot.slane %v2269_v49, 2  ;;  %v2290_v4 = vmax.f32 %v2288_v1, %v2289_v9  ;;  %v1427_v20 = vrot.slane %v1301_v11, 2  ;;  %v1428_v60 = vrot.slane %v1301_v11, 4 }
 0x25c   : > { %v1429_v25 = vrot.slane %v1301_v11, 6  ;;  %v2277_v26 = vrot.slane %v2276_v16, 2  ;;  %v2284_v12 = vrot.slane %v2283_v18, 2  ;;  %v2295_v28 = vsel %vm1538_vm4, %v1301_v11, -inf }
 0x25d   : > { %v2271_v54 = vmax.f32 %v2269_v49, %v2270_v15  ;;  %v999_v5 = vpop.f32.mrf.mxu0  ;;  %v2291_v37 = vrot.slane %v2290_v4, 2  ;;  %v2296_v32 = vrot.slane %v2295_v28, 4  ;;  %v2302_v21 = vsel %vm1538_vm4, %v1427_v20, -inf }
 0x25e   : > { %v2309_v31 = vsel %vm1538_vm4, %v1428_v60, -inf  ;;  %v2278_v38 = vmax.f32 %v2276_v16, %v2277_v26  ;;  %v2285_v19 = vmax.f32 %v2283_v18, %v2284_v12  ;;  %v2303_v45 = vrot.slane %v2302_v21, 4 }
 0x25f   : > { %v2272_v34 = vrot.slane %v2271_v54, 1  ;;  %v2292_v29 = vmax.f32 %v2290_v4, %v2291_v37  ;;  %v2297_v27 = vmax.f32 %v2295_v28, %v2296_v32  ;;  %v2310_v47 = vrot.slane %v2309_v31, 4 }
 0x260   : > { %v2316_v24 = vsel %vm1538_vm4, %v1429_v25, -inf  ;;  %v2279_v44 = vrot.slane %v2278_v38, 1  ;;  %v2286_v48 = vrot.slane %v2285_v19, 1  ;;  %v2304_v53 = vmax.f32 %v2302_v21, %v2303_v45 }
 0x261   : > { %v2273_v58 = vmax.f32 %v2271_v54, %v2272_v34  ;;  %v2298_v61 = vrot.slane %v2297_v27, 2  ;;  %v2311_v22 = vmax.f32 %v2309_v31, %v2310_v47  ;;  %v2317_v62 = vrot.slane %v2316_v24, 4 }
 0x262   : > { %v2280_v63 = vmax.f32 %v2278_v38, %v2279_v44  ;;  %v2287_v1 = vmax.f32 %v2285_v19, %v2286_v48  ;;  %v2293_v2 = vrot.slane %v2292_v29, 1  ;;  %v2305_v49 = vrot.slane %v2304_v53, 2  ;;  %v8783_v44 = vpop.f32.mrf.mxu2  ;;  %v2787_v48 = vld [vmem:[#allocation2 + $0xa9] sm:$0xff] }
 0x263   : > { %v2299_v23 = vmax.f32 %v2297_v27, %v2298_v61  ;;  %v2312_v7 = vrot.slane %v2311_v22, 2  ;;  %v2318_v8 = vmax.f32 %v2316_v24, %v2317_v62  ;;  %v1077_v27 = vmul.f32 %v8593_v36, %v8753_v46  ;;  %v8781_v24 = vpop.f32.mrf.mxu1  ;;  %v8787_v46 = vpop.f32.mrf.mxu3 }
 0x264   : > { %v2691_v9 = vsel %vm2593_vm5, %v2280_v63, %v2273_v58  ;;  %v2306_v11 = vmax.f32 %v2304_v53, %v2305_v49  ;;  %v2294_v60 = vmax.f32 %v2292_v29, %v2293_v2  ;;  %v2759_v53 = vld [vmem:[#allocation2 + $0xa8] sm:$0xff] }
 0x265   : > { %v1002_v15 = vpop.f32.mrf.mxu0  ;;  %v2692_v16 = vsel %vm2595_vm6, %v2287_v1, %v2691_v9  ;;  %v2300_v18 = vrot.slane %v2299_v23, 1  ;;  %v2313_v4 = vmax.f32 %v2311_v22, %v2312_v7  ;;  %v2319_v20 = vrot.slane %v2318_v8, 2 }
 0x266   : > { %v2307_v25 = vrot.slane %v2306_v11, 1  ;;  %v2693_v28 = vsel %vm2597_vm7, %v2294_v60, %v2692_v16  ;;  %v1145_v47 = vadd.f32 %v8604_v42, %v1077_v27  ;;  %v1078_v22 = vmul.f32 %v8593_v36, %v999_v5 }
 0x267   : > { %v2301_v54 = vmax.f32 %v2299_v23, %v2300_v18  ;;  %v2314_v26 = vrot.slane %v2313_v4, 1  ;;  %v2320_v12 = vmax.f32 %v2318_v8, %v2319_v20 }
 0x268   : > { %v2308_v37 = vmax.f32 %v2306_v11, %v2307_v25  ;;  %v1209_v61 = vmax.f32 %v1145_v47, 0.0  ;;  %v1146_v11 = vadd.f32 %v8604_v42, %v1078_v22  ;;  %v3102_v47 = vld [vmem:[#allocation2 + $0x18] sm:$0xff] }
 0x269   : > { %v2315_v32 = vmax.f32 %v2313_v4, %v2314_v26  ;;  %v2321_v21 = vrot.slane %v2320_v12, 1  ;;  %v2694_v31 = vsel %vm2599_vm8, %v2301_v54, %v2693_v28  ;;  %v3232_v22 = vld [vmem:[#allocation2 + $0x19] sm:$0xff] }
 0x26a   : > { %v2695_v34 = vsel %vm2601_vm9, %v2308_v37, %v2694_v31  ;;  %v1302_v5 = vsel %vm1217_vm3, %v1209_v61, -inf  ;;  %v1210_v26 = vmax.f32 %v1146_v11, 0.0  ;;  %v3103_v37 = vld [vmem:[#allocation2 + $0x20] sm:$0xff] }
 0x26b   : > { %v2322_v38 = vmax.f32 %v2320_v12, %v2321_v21  ;;  %v2696_v19 = vsel %vm2603_vm10, %v2315_v32, %v2695_v34  ;;  %v1079_v12 = vmul.f32 %v8593_v36, %v1002_v15  ;;  %v3118_v61 = vpack.c.bf16 %v3103_v37, %v3102_v47  ;;  %v3235_v37 = vld [vmem:[#allocation2 + $0x39] sm:$0xff] }
 0x26c   : > { %v1305_v11 = vsel %vm1217_vm3, %v1210_v26, -inf }
 0x26d   : > { %v8774_v45 = vpop.f32.mrf.mxu0  ;;  %v2697_v29 = vsel %vm2605_vm11, %v2322_v38, %v2696_v19 }
 0x26e   : > { %2742 = vst.msk [vmem:[#allocation2 + $0xb1] sm:$0xff] %vm1217_vm3, %v2697_v29 }
 0x274   : > { %v2872_v18 = vpop.f32.mrf.mxu1 }
 0x275   : > { %v1007_v58 = vpop.f32.mrf.mxu0  ;;  %v2788_v62 = vld [vmem:[#allocation2 + $0xb1] sm:$0xff] }
 0x276   : > { %v2760_v63 = vld [vmem:[#allocation2 + $0xb0] sm:$0xff]  ;;  %v1081_v2 = vmul.f32 %v8593_v36, %v1007_v58  ;;  %v8789_v49 = vpack.c.bf16 %v2788_v62, %v2787_v48  ;;  %v3233_v48 = vld [vmem:[#allocation2 + $0x21] sm:$0xff] }
 0x277   : > { %v2986_v1 = vld [vmem:[#allocation2 + $0xaa] sm:$0xff]  ;;  %v8791_v23 = vpack.c.bf16 %v2760_v63, %v2759_v53  ;;  %v2987_v7 = vld [vmem:[#allocation2 + $0xb2] sm:$0xff] }
 0x278   : > { %v8793_v8 = vpack.c.bf16 %v2987_v7, %v2986_v1  ;;  %v1149_v9 = vadd.f32 %v8604_v42, %v1081_v2  ;;  %6682 = vmatmul.msk.bf16.gmra.mxu1 %vm1217_vm3, %v8789_v49  ;;  %v3362_v7 = vld [vmem:[#allocation2 + $0x1a] sm:$0xff] }
 0x279   : > { %6698 = vmatmul.msk.bf16.gmra.mxu2 %vm1217_vm3, %v8791_v23 }
 0x27a   : > { %6718 = vmatmul.msk.bf16.gmra.mxu3 %vm1217_vm3, %v8793_v8  ;;  %v1213_v16 = vmax.f32 %v1149_v9, 0.0  ;;  %v3363_v9 = vld [vmem:[#allocation2 + $0x22] sm:$0xff] }
 0x27b   : > { %v2957_v20 = vpop.f32.mrf.mxu2 }
 0x27c   : > { %v1303_v4 = vsel %vm1217_vm3, %v1213_v16, -inf  ;;  %v2958_v25 = vadd.f32 %v2957_v20, %v2872_v18  ;;  %v3071_v38 = vpop.f32.mrf.mxu3  ;;  %v1147_v16 = vadd.f32 %v8604_v42, %v1079_v12 }
 0x27d   : > { %v1304_v60 = vmax.f32 %v1302_v5, %v1303_v4  ;;  %v1009_v54 = vpop.f32.mrf.mxu0  ;;  %v3105_v5 = vld [vmem:[#allocation2 + $0x38] sm:$0xff]  ;;  %v3248_v4 = vpack.c.bf16 %v3233_v48, %v3232_v22 }
 0x27e   : > { %v1082_v28 = vmul.f32 %v8593_v36, %v1009_v54  ;;  %v8808_v29 = vadd.f32 %v3071_v38, %v2958_v25  ;;  %v1211_v47 = vmax.f32 %v1147_v16, 0.0 }
 0x27f   : > { %v1430_v32 = vrot.slane %v1304_v60, 2  ;;  %v1431_v21 = vrot.slane %v1304_v60, 4  ;;  %v1432_v31 = vrot.slane %v1304_v60, 6  ;;  %v2323_v34 = vsel %vm1538_vm4, %v1304_v60, -inf }
 0x280   : > { %v2324_v19 = vrot.slane %v2323_v34, 4  ;;  %v1150_v27 = vadd.f32 %v8604_v42, %v1082_v28  ;;  %v3104_v28 = vld [vmem:[#allocation2 + $0x30] sm:$0xff] }
 0x281   : > { %v2330_v53 = vsel %vm1538_vm4, %v1430_v32, -inf  ;;  %v2337_v15 = vsel %vm1538_vm4, %v1431_v21, -inf  ;;  %v2344_v58 = vsel %vm1538_vm4, %v1432_v31, -inf  ;;  %v1080_v32 = vmul.f32 %v8593_v36, %v8774_v45 }
 0x282   : > { %v2325_v62 = vmax.f32 %v2323_v34, %v2324_v19  ;;  %v2331_v63 = vrot.slane %v2330_v53, 4  ;;  %v2338_v1 = vrot.slane %v2337_v15, 4  ;;  %v2345_v2 = vrot.slane %v2344_v58, 4 }
 0x283   : > { %v1214_v18 = vmax.f32 %v1150_v27, 0.0  ;;  %v3378_v31 = vpack.c.bf16 %v3363_v9, %v3362_v7  ;;  %v8819_v38 = vpack.c.bf16 %v3105_v5, %v3104_v28  ;;  %v3234_v27 = vld [vmem:[#allocation2 + $0x31] sm:$0xff] }
 0x284   : > { %v2326_v20 = vrot.slane %v2325_v62, 2  ;;  %v2332_v60 = vmax.f32 %v2330_v53, %v2331_v63  ;;  %v2339_v25 = vmax.f32 %v2337_v15, %v2338_v1  ;;  %v2346_v54 = vmax.f32 %v2344_v58, %v2345_v2 }
 0x285   : > { %v1306_v21 = vsel %vm1217_vm3, %v1214_v18, -inf  ;;  %v1012_v34 = vpop.f32.mrf.mxu0  ;;  %v8822_v15 = vpack.c.bf16 %v3235_v37, %v3234_v27 }
 0x286   : > { %v2327_v26 = vmax.f32 %v2325_v62, %v2326_v20  ;;  %v2333_v19 = vrot.slane %v2332_v60, 2  ;;  %v2340_v42 = vrot.slane %v2339_v25, 2  ;;  %v2347_v12 = vrot.slane %v2346_v54, 2  ;;  %v7920_v62 = vld [vmem:[%s9551_s3] ss:$0 sm:$0xff] }
 0x287   : > { %v1307_v48 = vmax.f32 %v1305_v11, %v1306_v21  ;;  %v1083_v53 = vmul.f32 %v8593_v36, %v1012_v34  ;;  %v1148_v36 = vadd.f32 %v7920_v62, %v1080_v32 }
 0x288   : > { %v2328_v58 = vrot.slane %v2327_v26, 1  ;;  %v2334_v22 = vmax.f32 %v2332_v60, %v2333_v19  ;;  %v2341_v45 = vmax.f32 %v2339_v25, %v2340_v42  ;;  %v2348_v63 = vmax.f32 %v2346_v54, %v2347_v12  ;;  %6731 = vmatmul.msk.bf16.vlgmr.msrb.gmra.mxu1 %vm1217_vm3, %v3118_v61  ;;  %v7921_v12 = vld [vmem:[%s9550_s2] ss:$0 sm:$0xff] }
 0x289   : > { %v1433_v1 = vrot.slane %v1307_v48, 2  ;;  %v1434_v2 = vrot.slane %v1307_v48, 4  ;;  %v1435_v7 = vrot.slane %v1307_v48, 6  ;;  %v2351_v9 = vsel %vm1538_vm4, %v1307_v48, -inf  ;;  %6751 = vmatmul.msk.bf16.vlgmr.msrb.gmra.mxu2 %vm1217_vm3, %v3248_v4  ;;  %v3364_v48 = vld [vmem:[#allocation2 + $0x32] sm:$0xff] }
 0x28a   : > { %v2329_v5 = vmax.f32 %v2327_v26, %v2328_v58  ;;  %v2335_v11 = vrot.slane %v2334_v22, 1  ;;  %v2342_v16 = vrot.slane %v2341_v45, 1  ;;  %6771 = vmatmul.msk.bf16.vlgmr.msrb.gmra.mxu3 %vm1217_vm3, %v3378_v31  ;;  %v2352_v18 = vrot.slane %v2351_v9, 4  ;;  %v3365_v58 = vld [vmem:[#allocation2 + $0x3a] sm:$0xff] }
 0x28b   : > { %v2358_v20 = vsel %vm1538_vm4, %v1433_v1, -inf  ;;  %v2365_v60 = vsel %vm1538_vm4, %v1434_v2, -inf  ;;  %v2372_v25 = vsel %vm1538_vm4, %v1435_v7, -inf  ;;  %v2349_v4 = vrot.slane %v2348_v63, 1  ;;  %v7691_v7 = vld [vmem:[%s9552_s4 + $0x68] sm:$0xff] }
 0x28c   : > { %v2336_v61 = vmax.f32 %v2334_v22, %v2335_v11  ;;  %v2343_v54 = vmax.f32 %v2341_v45, %v2342_v16  ;;  %v2359_v28 = vrot.slane %v2358_v20, 4  ;;  %v2353_v37 = vmax.f32 %v2351_v9, %v2352_v18  ;;  %3564 = vmatpush.bf16.msra.mxu1 %v7691_v7 }
 0x28d   : > { %v2366_v21 = vrot.slane %v2365_v60, 4  ;;  %v2373_v34 = vrot.slane %v2372_v25, 4  ;;  %v1151_v32 = vadd.f32 %v7920_v62, %v1083_v53  ;;  %v1014_v26 = vpop.f32.mrf.mxu0  ;;  %v1308_v19 = vsel %vm1217_vm3, %v1211_v47, -inf  ;;  %v7693_v53 = vld [vmem:[%s9552_s4 + $0x78] sm:$0xff]  ;;  %v7695_v47 = vld [vmem:[%s9552_s4 + $0x88] sm:$0xff] }
 0x28e   : > { %v2698_v31 = vsel %vm2593_vm5, %v2336_v61, %v2329_v5  ;;  %v2360_v42 = vmax.f32 %v2358_v20, %v2359_v28  ;;  %v1084_v27 = vmul.f32 %v7921_v12, %v1014_v26  ;;  %v1212_v22 = vmax.f32 %v1148_v36, 0.0  ;;  %3694 = vmatpush.bf16.msra.mxu2 %v7693_v53  ;;  %3824 = vmatpush.bf16.msra.mxu3 %v7695_v47 }
 0x28f   : > { %v2354_v45 = vrot.slane %v2353_v37, 2  ;;  %v2367_v1 = vmax.f32 %v2365_v60, %v2366_v21  ;;  %v2374_v2 = vmax.f32 %v2372_v25, %v2373_v34  ;;  %v2350_v9 = vmax.f32 %v2348_v63, %v2349_v4 }
 0x290   : > { %v2361_v5 = vrot.slane %v2360_v42, 2  ;;  %v1215_v11 = vmax.f32 %v1151_v32, 0.0  ;;  %v1152_v16 = vadd.f32 %v7920_v62, %v1084_v27  ;;  %v2699_v36 = vsel %vm2595_vm6, %v2343_v54, %v2698_v31 }
 0x291   : > { %v2355_v18 = vmax.f32 %v2353_v37, %v2354_v45  ;;  %v2368_v20 = vrot.slane %v2367_v1, 2  ;;  %v2375_v60 = vrot.slane %v2374_v2, 2  ;;  %v8850_v21 = vpack.c.bf16 %v3365_v58, %v3364_v48 }
 0x292   : > { %v2362_v25 = vmax.f32 %v2360_v42, %v2361_v5  ;;  %v1309_v61 = vsel %vm1217_vm3, %v1215_v11, -inf  ;;  %v1216_v28 = vmax.f32 %v1152_v16, 0.0  ;;  %v1311_v62 = vsel %vm1217_vm3, %v1212_v22, -inf }
 0x293   : > { %v2356_v34 = vrot.slane %v2355_v18, 1  ;;  %v2369_v26 = vmax.f32 %v2367_v1, %v2368_v20  ;;  %v2376_v63 = vmax.f32 %v2374_v2, %v2375_v60  ;;  %v1310_v4 = vmax.f32 %v1308_v19, %v1309_v61 }
 0x294   : > { %v2700_v54 = vsel %vm2597_vm7, %v2350_v9, %v2699_v36  ;;  %v2363_v37 = vrot.slane %v2362_v25, 1  ;;  %v1312_v32 = vsel %vm1217_vm3, %v1216_v28, -inf }
 0x295   : > { %v2357_v31 = vmax.f32 %v2355_v18, %v2356_v34  ;;  %v2370_v12 = vrot.slane %v2369_v26, 1  ;;  %v2377_v42 = vrot.slane %v2376_v63, 1  ;;  %v1436_v27 = vrot.slane %v1310_v4, 2 }
 0x296   : > { %v2364_v45 = vmax.f32 %v2362_v25, %v2363_v37  ;;  %v1437_v53 = vrot.slane %v1310_v4, 4  ;;  %v1438_v48 = vrot.slane %v1310_v4, 6  ;;  %v2379_v58 = vsel %vm1538_vm4, %v1310_v4, -inf }
 0x297   : > { %v2371_v47 = vmax.f32 %v2369_v26, %v2370_v12  ;;  %v2378_v1 = vmax.f32 %v2376_v63, %v2377_v42  ;;  %v2701_v19 = vsel %vm2599_vm8, %v2357_v31, %v2700_v54  ;;  %v2380_v2 = vrot.slane %v2379_v58, 4 }
 0x298   : > { %v2702_v22 = vsel %vm2601_vm9, %v2364_v45, %v2701_v19  ;;  %v2386_v7 = vsel %vm1538_vm4, %v1436_v27, -inf  ;;  %v2393_v9 = vsel %vm1538_vm4, %v1437_v53, -inf  ;;  %v2400_v5 = vsel %vm1538_vm4, %v1438_v48, -inf  ;;  %6732 = vmatmul.msk.bf16.gmra.mxu1 %vm1217_vm3, %v8819_v38 }
 0x299   : > { %v2703_v11 = vsel %vm2603_vm10, %v2371_v47, %v2702_v22  ;;  %v2381_v16 = vmax.f32 %v2379_v58, %v2380_v2  ;;  %v2387_v36 = vrot.slane %v2386_v7, 4  ;;  %v2394_v18 = vrot.slane %v2393_v9, 4  ;;  %6752 = vmatmul.msk.bf16.gmra.mxu2 %vm1217_vm3, %v8822_v15 }
 0x29a   : > { %v2704_v20 = vsel %vm2605_vm11, %v2378_v1, %v2703_v11  ;;  %v2401_v60 = vrot.slane %v2400_v5, 4  ;;  %v1313_v25 = vmax.f32 %v1311_v62, %v1312_v32  ;;  %6772 = vmatmul.msk.bf16.gmra.mxu3 %vm1217_vm3, %v8850_v21 }
 0x29b   : > { %2743 = vst.msk [vmem:[#allocation2 + $0xc1] sm:$0xff] %vm1217_vm3, %v2704_v20  ;;  %v2382_v61 = vrot.slane %v2381_v16, 2  ;;  %v2388_v28 = vmax.f32 %v2386_v7, %v2387_v36  ;;  %v2395_v34 = vmax.f32 %v2393_v9, %v2394_v18 }
 0x29c   : > { %v2402_v26 = vmax.f32 %v2400_v5, %v2401_v60  ;;  %v1439_v63 = vrot.slane %v1313_v25, 2  ;;  %v1440_v4 = vrot.slane %v1313_v25, 4  ;;  %v1441_v54 = vrot.slane %v1313_v25, 6 }
 0x29d   : > { %v2383_v37 = vmax.f32 %v2381_v16, %v2382_v61  ;;  %v2389_v31 = vrot.slane %v2388_v28, 2  ;;  %v2396_v12 = vrot.slane %v2395_v34, 2  ;;  %v2407_v42 = vsel %vm1538_vm4, %v1313_v25, -inf }
 0x29e   : > { %v2403_v27 = vrot.slane %v2402_v26, 2  ;;  %v2408_v45 = vrot.slane %v2407_v42, 4  ;;  %v2414_v62 = vsel %vm1538_vm4, %v1439_v63, -inf  ;;  %v2421_v32 = vsel %vm1538_vm4, %v1440_v4, -inf }
 0x29f   : > { %v2384_v53 = vrot.slane %v2383_v37, 1  ;;  %v2390_v48 = vmax.f32 %v2388_v28, %v2389_v31  ;;  %v2397_v58 = vmax.f32 %v2395_v34, %v2396_v12  ;;  %v2415_v47 = vrot.slane %v2414_v62, 4  ;;  %v3237_v31 = vld [vmem:[#allocation2 + $0x51] sm:$0xff] }
 0x2a0   : > { %v2404_v1 = vmax.f32 %v2402_v26, %v2403_v27  ;;  %v2409_v19 = vmax.f32 %v2407_v42, %v2408_v45  ;;  %v2422_v2 = vrot.slane %v2421_v32, 4  ;;  %v2428_v22 = vsel %vm1538_vm4, %v1441_v54, -inf  ;;  %v3107_v26 = vld [vmem:[#allocation2 + $0x50] sm:$0xff] }
 0x2a1   : > { %v2385_v7 = vmax.f32 %v2383_v37, %v2384_v53  ;;  %v2391_v9 = vrot.slane %v2390_v48, 1  ;;  %v2398_v5 = vrot.slane %v2397_v58, 1  ;;  %v2416_v11 = vmax.f32 %v2414_v62, %v2415_v47  ;;  %v3366_v37 = vld [vmem:[#allocation2 + $0x4a] sm:$0xff]  ;;  %v3367_v42 = vld [vmem:[#allocation2 + $0x52] sm:$0xff] }
 0x2a2   : > { %v2405_v16 = vrot.slane %v2404_v1, 1  ;;  %v2410_v36 = vrot.slane %v2409_v19, 2  ;;  %v2423_v18 = vmax.f32 %v2421_v32, %v2422_v2  ;;  %v2429_v20 = vrot.slane %v2428_v22, 4  ;;  %v3106_v53 = vld [vmem:[#allocation2 + $0x48] sm:$0xff] }
 0x2a3   : > { %v2392_v60 = vmax.f32 %v2390_v48, %v2391_v9  ;;  %v2399_v25 = vmax.f32 %v2397_v58, %v2398_v5  ;;  %v2417_v61 = vrot.slane %v2416_v11, 2  ;;  %v3236_v48 = vld [vmem:[#allocation2 + $0x49] sm:$0xff]  ;;  %v8881_v9 = vpack.c.bf16 %v3367_v42, %v3366_v37 }
 0x2a4   : > { %v2406_v63 = vmax.f32 %v2404_v1, %v2405_v16  ;;  %v2411_v28 = vmax.f32 %v2409_v19, %v2410_v36  ;;  %v2424_v34 = vrot.slane %v2423_v18, 2  ;;  %v2430_v4 = vmax.f32 %v2428_v22, %v2429_v20 }
 0x2a5   : > { %v2705_v12 = vsel %vm2593_vm5, %v2392_v60, %v2385_v7  ;;  %v2418_v54 = vmax.f32 %v2416_v11, %v2417_v61  ;;  %v8877_v1 = vpack.c.bf16 %v3107_v26, %v3106_v53  ;;  %v8879_v19 = vpack.c.bf16 %v3237_v31, %v3236_v48  ;;  %v8894_v61 = vpop.f32.mrf.mxu1  ;;  %v3369_v26 = vld [vmem:[#allocation2 + $0x6a] sm:$0xff]  ;;  %v8898_v31 = vpop.f32.mrf.mxu3 }
 0x2a6   : > { %v2706_v27 = vsel %vm2595_vm6, %v2399_v25, %v2705_v12  ;;  %v2412_v45 = vrot.slane %v2411_v28, 1  ;;  %v2425_v62 = vmax.f32 %v2423_v18, %v2424_v34  ;;  %v2431_v32 = vrot.slane %v2430_v4, 2  ;;  %v3239_v34 = vld [vmem:[#allocation2 + $0x69] sm:$0xff]  ;;  %v3108_v12 = vld [vmem:[#allocation2 + $0x60] sm:$0xff] }
 0x2a7   : > { %v2707_v58 = vsel %vm2597_vm7, %v2406_v63, %v2706_v27  ;;  %v2419_v47 = vrot.slane %v2418_v54, 1  ;;  %v8896_v63 = vpop.f32.mrf.mxu2  ;;  %vm6395_vm4 = vcmask 1040384  }
 0x2a8   : > { %v2413_v2 = vmax.f32 %v2411_v28, %v2412_v45  ;;  %v2426_v22 = vrot.slane %v2425_v62, 1  ;;  %v2432_v7 = vmax.f32 %v2430_v4, %v2431_v32  ;;  %6733 = vmatmul.msk.bf16.gmra.mxu1 %vm1217_vm3, %v8877_v1  ;;  %v3109_v28 = vld [vmem:[#allocation2 + $0x68] sm:$0xff]  ;;  %v7690_v32 = vld [vmem:[%s9552_s4 + $0x60] sm:$0xff] }
 0x2a9   : > { %v2420_v5 = vmax.f32 %v2418_v54, %v2419_v47  ;;  %6753 = vmatmul.msk.bf16.gmra.mxu2 %vm1217_vm3, %v8879_v19  ;;  %v3368_v4 = vld [vmem:[#allocation2 + $0x62] sm:$0xff]  ;;  %v8900_v37 = vpack.c.bf16 %v3109_v28, %v3108_v12  ;;  %3565 = vmatpush.bf16.msra.mxu1 %v7690_v32 }
 0x2aa   : > { %v2427_v11 = vmax.f32 %v2425_v62, %v2426_v22  ;;  %v2433_v16 = vrot.slane %v2432_v7, 1  ;;  %v2708_v36 = vsel %vm2599_vm8, %v2413_v2, %v2707_v58  ;;  %6773 = vmatmul.msk.bf16.gmra.mxu3 %vm1217_vm3, %v8881_v9  ;;  %v3238_v54 = vld [vmem:[#allocation2 + $0x61] sm:$0xff]  ;;  %v8904_v27 = vpack.c.bf16 %v3369_v26, %v3368_v4  ;;  %v7694_v62 = vld [vmem:[%s9552_s4 + $0x80] sm:$0xff] }
 0x2ab   : > { %v2709_v18 = vsel %vm2601_vm9, %v2420_v5, %v2708_v36  ;;  %v8902_v42 = vpack.c.bf16 %v3239_v34, %v3238_v54  ;;  %v7692_v45 = vld [vmem:[%s9552_s4 + $0x70] sm:$0xff]  ;;  %3825 = vmatpush.bf16.msra.mxu3 %v7694_v62  ;;  %v3111_v22 = vld [vmem:[#allocation2 + $0x80] sm:$0xff] }
 0x2ac   : > { %v2434_v20 = vmax.f32 %v2432_v7, %v2433_v16  ;;  %v2710_v60 = vsel %vm2603_vm10, %v2427_v11, %v2709_v18  ;;  %3695 = vmatpush.bf16.msra.mxu2 %v7692_v45  ;;  %v3241_v7 = vld [vmem:[#allocation2 + $0x81] sm:$0xff]  ;;  %v3110_v16 = vld [vmem:[#allocation2 + $0x78] sm:$0xff] }
 0x2ad   : > { %v3370_v5 = vld [vmem:[#allocation2 + $0x7a] sm:$0xff]  ;;  %v3371_v11 = vld [vmem:[#allocation2 + $0x82] sm:$0xff]  ;;  %v8923_v18 = vpack.c.bf16 %v3111_v22, %v3110_v16 }
 0x2ae   : > { %v2711_v25 = vsel %vm2605_vm11, %v2434_v20, %v2710_v60  ;;  %v3240_v36 = vld [vmem:[#allocation2 + $0x79] sm:$0xff]  ;;  %v8927_v60 = vpack.c.bf16 %v3371_v11, %v3370_v5  ;;  %v3246_v4 = vld [vmem:[#allocation2 + $0xc1] sm:$0xff] }
 0x2af   : > { %2744 = vst.msk [vmem:[#allocation2 + $0xc9] sm:$0xff] %vm1217_vm3, %v2711_v25  ;;  %v8925_v20 = vpack.c.bf16 %v3241_v7, %v3240_v36  ;;  %v3116_v28 = vld [vmem:[#allocation2 + $0xc0] sm:$0xff] }
 0x2b5   : > { %v2877_v53 = vpop.f32.mrf.mxu1 }
 0x2b6   : > { %v3377_v12 = vld [vmem:[#allocation2 + $0xca] sm:$0xff] }
 0x2b8   : > { %6734 = vmatmul.msk.bf16.gmra.mxu1 %vm1217_vm3, %v8900_v37 }
 0x2b9   : > { %6754 = vmatmul.msk.bf16.gmra.mxu2 %vm1217_vm3, %v8902_v42 }
 0x2ba   : > { %6774 = vmatmul.msk.bf16.gmra.mxu3 %vm1217_vm3, %v8904_v27 }
 0x2bc   : > { %v2962_v48 = vpop.f32.mrf.mxu2 }
 0x2bd   : > { %v2963_v58 = vadd.f32 %v2962_v48, %v2877_v53  ;;  %v3076_v47 = vpop.f32.mrf.mxu3  ;;  %v8947_v25 = vpop.f32.mrf.mxu1 }
 0x2bf   : > { %v8921_v2 = vadd.f32 %v3076_v47, %v2963_v58 }
 0x2c4   : > { %v8949_v34 = vpop.f32.mrf.mxu2 }
 0x2c5   : > { %v8951_v26 = vpop.f32.mrf.mxu3 }
 0x2c8   : > { %6735 = vmatmul.msk.bf16.gmra.mxu1 %vm1217_vm3, %v8923_v18 }
 0x2c9   : > { %6755 = vmatmul.msk.bf16.gmra.mxu2 %vm1217_vm3, %v8925_v20 }
 0x2ca   : > { %6775 = vmatmul.msk.bf16.gmra.mxu3 %vm1217_vm3, %v8927_v60 }
 0x2d8   : > { %6736 = vmatmul.msk.bf16.gmra.mxu1 %vm1217_vm3, %v8699_v43  ;;  %v3117_v43 = vld [vmem:[#allocation2 + $0xc8] sm:$0xff] }
 0x2d9   : > { %6756 = vmatmul.msk.bf16.gmra.mxu2 %vm1217_vm3, %v8697_v6  ;;  %v3247_v6 = vld [vmem:[#allocation2 + $0xc9] sm:$0xff]  ;;  %v8953_v45 = vpack.c.bf16 %v3117_v43, %v3116_v28 }
 0x2da   : > { %6776 = vmatmul.msk.bf16.gmra.mxu3 %vm1217_vm3, %v8701_v40  ;;  %v3376_v40 = vld [vmem:[#allocation2 + $0xc2] sm:$0xff]  ;;  %v8955_v62 = vpack.c.bf16 %v3247_v6, %v3246_v4  ;;  %v2935_v4 = vadd.f32 %v8430_v10, %v8428_v14  ;;  %v2940_v10 = vadd.f32 %v8511_v52, %v8509_v50  ;;  %v2945_v52 = vadd.f32 %v8599_v41, %v8597_v39 }
 0x2db   : > { %v8957_v32 = vpack.c.bf16 %v3377_v12, %v3376_v40 }
 0x2e8   : > { %6737 = vmatmul.msk.bf16.gmra.mxu1 %vm1217_vm3, %v8791_v23 }
 0x2e9   : > { %6757 = vmatmul.msk.bf16.gmra.mxu2 %vm1217_vm3, %v8789_v49 }
 0x2ea   : > { %6777 = vmatmul.msk.bf16.gmra.mxu3 %vm1217_vm3, %v8793_v8 }
 0x2f5   : > { %v2882_v54 = vpop.f32.mrf.mxu1 }
 0x2f8   : > { %6738 = vmatmul.msk.bf16.gmra.mxu1 %vm1217_vm3, %v8953_v45 }
 0x2f9   : > { %6758 = vmatmul.msk.bf16.gmra.mxu2 %vm1217_vm3, %v8955_v62 }
 0x2fa   : > { %6778 = vmatmul.msk.bf16.gmra.mxu3 %vm1217_vm3, %v8957_v32 }
 0x2fc   : > { %v2967_v53 = vpop.f32.mrf.mxu2 }
 0x2fd   : > { %v2968_v48 = vadd.f32 %v2967_v53, %v2882_v54  ;;  %v3081_v58 = vpop.f32.mrf.mxu3  ;;  %v2884_v47 = vpop.f32.mrf.mxu1 }
 0x2ff   : > { %v8965_v22 = vadd.f32 %v3081_v58, %v2968_v48 }
 0x304   : > { %v2969_v7 = vpop.f32.mrf.mxu2 }
 0x305   : > { %v2970_v5 = vadd.f32 %v2969_v7, %v2884_v47  ;;  %v3083_v11 = vpop.f32.mrf.mxu3  ;;  %v3176_v16 = vpop.f32.mrf.mxu1 }
 0x306   : > { %v3216_v28 = vadd.f32 %v3176_v16, %v8419_v3  ;;  %v3087_v3 = vadd.f32 %v8434_v17, %v2935_v4 }
 0x307   : > { %v8967_v36 = vadd.f32 %v3083_v11, %v2970_v5 }
 0x308   : > { %6791 = vmatmul.msk.bf16.vlgmr.msra.gmra.mxu1 %vm1217_vm3, %v8819_v38 }
 0x309   : > { %6811 = vmatmul.msk.bf16.vlgmr.msra.gmra.mxu2 %vm1217_vm3, %v8822_v15 }
 0x30a   : > { %6831 = vmatmul.msk.bf16.vlgmr.msra.gmra.mxu3 %vm1217_vm3, %v8850_v21 }
 0x30c   : > { %v3306_v43 = vpop.f32.mrf.mxu2 }
 0x30d   : > { %v3346_v6 = vadd.f32 %v3306_v43, %v3216_v28  ;;  %v3436_v40 = vpop.f32.mrf.mxu3  ;;  %v3178_v12 = vpop.f32.mrf.mxu1 }
 0x30e   : > { %v3217_v53 = vadd.f32 %v3178_v12, %v3087_v3  ;;  %v7746_v3 = vld [vmem:[#allocation6 + $0x74] sm:$0xf] }
 0x30f   : > { %v8978_v54 = vadd.f32 %v3436_v40, %v3346_v6 }
 0x314   : > { %v3308_v48 = vpop.f32.mrf.mxu2 }
 0x315   : > { %v3347_v38 = vadd.f32 %v3308_v48, %v3217_v53  ;;  %v3438_v58 = vpop.f32.mrf.mxu3  ;;  %v3181_v47 = vpop.f32.mrf.mxu1 }
 0x316   : > { %v3218_v21 = vadd.f32 %v3181_v47, %v8450_v51  ;;  %v3089_v51 = vadd.f32 %v8516_v0, %v2940_v10 }
 0x317   : > { %v8981_v15 = vadd.f32 %v3438_v58, %v3347_v38 }
 0x318   : > { %6792 = vmatmul.msk.bf16.gmra.mxu1 %vm1217_vm3, %v8877_v1 }
 0x319   : > { %6812 = vmatmul.msk.bf16.gmra.mxu2 %vm1217_vm3, %v8879_v19 }
 0x31a   : > { %6832 = vmatmul.msk.bf16.gmra.mxu3 %vm1217_vm3, %v8881_v9 }
 0x31c   : > { %v3311_v14 = vpop.f32.mrf.mxu2 }
 0x31d   : > { %v3348_v17 = vadd.f32 %v3311_v14, %v3218_v21  ;;  %v3441_v7 = vpop.f32.mrf.mxu3  ;;  %v3183_v5 = vpop.f32.mrf.mxu1 }
 0x31e   : > { %v3219_v16 = vadd.f32 %v3183_v5, %v3089_v51  ;;  %v3632_v51 = vld [vmem:[#allocation2 + $0x99] sm:$0xff] }
 0x31f   : > { %v8992_v11 = vadd.f32 %v3441_v7, %v3348_v17 }
 0x324   : > { %v3313_v28 = vpop.f32.mrf.mxu2 }
 0x325   : > { %v3349_v1 = vadd.f32 %v3313_v28, %v3219_v16  ;;  %v3443_v43 = vpop.f32.mrf.mxu3  ;;  %v3186_v4 = vpop.f32.mrf.mxu1  ;;  %v3761_v28 = vld [vmem:[#allocation2 + $0x92] sm:$0xff] }
 0x326   : > { %v3220_v9 = vadd.f32 %v3186_v4, %v8531_v30  ;;  %v7189_v30 = vld [vmem:[#allocation6 + $0x78] sm:$0xf0]  ;;  %v3631_v4 = vld [vmem:[#allocation2 + $0x91] sm:$0xff] }
 0x327   : > { %v8995_v19 = vadd.f32 %v3443_v43, %v3349_v1  ;;  %v7192_v53 = vor.u32 %v7746_v3, %v7189_v30  ;;  %v3762_v1 = vld [vmem:[#allocation2 + $0x9a] sm:$0xff]  ;;  %v3501_v43 = vld [vmem:[#allocation2 + $0x90] sm:$0xff] }
 0x328   : > { %6793 = vmatmul.msk.bf16.gmra.mxu1 %vm1217_vm3, %v8900_v37  ;;  %v3091_v37 = vadd.f32 %v8609_v56, %v2945_v52  ;;  %v2950_v56 = vadd.f32 %v8691_v57, %v8689_v59  ;;  %v3773_v52 = vpack.c.bf16 %v3762_v1, %v3761_v28  ;;  %v7744_v1 = vld [vmem:[#allocation6 + $0x64] sm:$0xf] }
 0x329   : > { %6813 = vmatmul.msk.bf16.gmra.mxu2 %vm1217_vm3, %v8902_v42  ;;  %5298 = vmatpush.bf16.msrb.mxu0 %v7192_v53 }
 0x32a   : > { %6833 = vmatmul.msk.bf16.gmra.mxu3 %vm1217_vm3, %v8904_v27 }
 0x32c   : > { %v3316_v50 = vpop.f32.mrf.mxu2 }
 0x32d   : > { %v3350_v0 = vadd.f32 %v3316_v50, %v3220_v9  ;;  %v3446_v6 = vpop.f32.mrf.mxu3  ;;  %v3188_v40 = vpop.f32.mrf.mxu1  ;;  %v3643_v50 = vpack.c.bf16 %v3632_v51, %v3631_v4 }
 0x32e   : > { %v3221_v48 = vadd.f32 %v3188_v40, %v3091_v37 }
 0x32f   : > { %v9006_v12 = vadd.f32 %v3446_v6, %v3350_v0 }
 0x334   : > { %v3318_v42 = vpop.f32.mrf.mxu2 }
 0x335   : > { %v3351_v38 = vadd.f32 %v3318_v42, %v3221_v48  ;;  %v3448_v58 = vpop.f32.mrf.mxu3  ;;  %v3191_v27 = vpop.f32.mrf.mxu1 }
 0x336   : > { %v3222_v39 = vadd.f32 %v3191_v27, %v8624_v13  ;;  %v3093_v13 = vadd.f32 %v8695_v55, %v2950_v56 }
 0x337   : > { %v9009_v47 = vadd.f32 %v3448_v58, %v3351_v38 }
 0x338   : > { %6794 = vmatmul.msk.bf16.gmra.mxu1 %vm1217_vm3, %v8923_v18  ;;  %v3502_v18 = vld [vmem:[#allocation2 + $0x98] sm:$0xff] }
 0x339   : > { %6814 = vmatmul.msk.bf16.gmra.mxu2 %vm1217_vm3, %v8925_v20  ;;  %v3513_v57 = vpack.c.bf16 %v3502_v18, %v3501_v43  ;;  %v3768_v18 = vld [vmem:[#allocation2 + $0xe2] sm:$0xff] }
 0x33a   : > { %6834 = vmatmul.msk.bf16.gmra.mxu3 %vm1217_vm3, %v8927_v60 }
 0x33c   : > { %v3321_v41 = vpop.f32.mrf.mxu2 }
 0x33d   : > { %v3352_v21 = vadd.f32 %v3321_v41, %v3222_v39  ;;  %v3451_v14 = vpop.f32.mrf.mxu3  ;;  %v3193_v10 = vpop.f32.mrf.mxu1 }
 0x33e   : > { %v3223_v7 = vadd.f32 %v3193_v10, %v3093_v13  ;;  %v3507_v10 = vld [vmem:[#allocation2 + $0xd8] sm:$0xff]  ;;  %v3508_v13 = vld [vmem:[#allocation2 + $0xe0] sm:$0xff] }
 0x33f   : > { %v9020_v17 = vadd.f32 %v3451_v14, %v3352_v21 }
 0x344   : > { %v3323_v5 = vpop.f32.mrf.mxu2 }
 0x345   : > { %v3353_v16 = vadd.f32 %v3323_v5, %v3223_v7  ;;  %v3453_v20 = vpop.f32.mrf.mxu3  ;;  %v3196_v60 = vpop.f32.mrf.mxu1  ;;  %v3637_v7 = vld [vmem:[#allocation2 + $0xd9] sm:$0xff] }
 0x346   : > { %v3224_v59 = vadd.f32 %v3196_v60, %v8718_v35  ;;  %v3767_v5 = vld [vmem:[#allocation2 + $0xda] sm:$0xff] }
 0x347   : > { %v9023_v9 = vadd.f32 %v3453_v20, %v3353_v16  ;;  %v3776_v20 = vpack.c.bf16 %v3768_v18, %v3767_v5  ;;  %v7181_v60 = vld [vmem:[#allocation6 + $0x68] sm:$0xf0] }
 0x348   : > { %6795 = vmatmul.msk.bf16.gmra.mxu1 %vm1217_vm3, %v3513_v57  ;;  %v7184_v43 = vor.u32 %v7744_v1, %v7181_v60  ;;  %v7699_v60 = vld [vmem:[%s9555_s7 + $0x18] sm:$0xff] }
 0x349   : > { %6815 = vmatmul.msk.bf16.gmra.mxu2 %vm1217_vm3, %v3643_v50 }
 0x34a   : > { %6835 = vmatmul.msk.bf16.gmra.mxu3 %vm1217_vm3, %v3773_v52  ;;  %5299 = vmatpush.bf16.msrb.mxu0 %v7184_v43 }
 0x34b   : > { %4438 = vmatpush.bf16.msrb.mxu2 %v7699_v60 }
 0x34c   : > { %v3326_v55 = vpop.f32.mrf.mxu2 }
 0x34d   : > { %v3354_v0 = vadd.f32 %v3326_v55, %v3224_v59  ;;  %v3456_v6 = vpop.f32.mrf.mxu3  ;;  %v9029_v40 = vpop.f32.mrf.mxu1 }
 0x34f   : > { %v9031_v3 = vadd.f32 %v3456_v6, %v3354_v0 }
 0x354   : > { %v9033_v30 = vpop.f32.mrf.mxu2 }
 0x355   : > { %v9035_v53 = vpop.f32.mrf.mxu3  ;;  %v3201_v35 = vpop.f32.mrf.mxu1 }
 0x356   : > { %v3226_v37 = vadd.f32 %v3201_v35, %v8808_v29 }
 0x358   : > { %6796 = vmatmul.msk.bf16.gmra.mxu1 %vm1217_vm3, %v8791_v23 }
 0x359   : > { %6816 = vmatmul.msk.bf16.gmra.mxu2 %vm1217_vm3, %v8789_v49 }
 0x35a   : > { %6836 = vmatmul.msk.bf16.gmra.mxu3 %vm1217_vm3, %v8793_v8 }
 0x35c   : > { %v3331_v48 = vpop.f32.mrf.mxu2 }
 0x35d   : > { %v3356_v42 = vadd.f32 %v3331_v48, %v3226_v37  ;;  %v3461_v38 = vpop.f32.mrf.mxu3  ;;  %v9044_v58 = vpop.f32.mrf.mxu1 }
 0x35f   : > { %v9046_v27 = vadd.f32 %v3461_v38, %v3356_v42 }
 0x364   : > { %v9048_v39 = vpop.f32.mrf.mxu2 }
 0x365   : > { %v9050_v41 = vpop.f32.mrf.mxu3  ;;  %v3206_v29 = vpop.f32.mrf.mxu1 }
 0x366   : > { %v3228_v23 = vadd.f32 %v3206_v29, %v8921_v2  ;;  %v3638_v2 = vld [vmem:[#allocation2 + $0xe1] sm:$0xff] }
 0x367   : > { %v3646_v16 = vpack.c.bf16 %v3638_v2, %v3637_v7 }
 0x368   : > { %6797 = vmatmul.msk.bf16.gmra.mxu1 %vm1217_vm3, %v8953_v45 }
 0x369   : > { %6817 = vmatmul.msk.bf16.gmra.mxu2 %vm1217_vm3, %v8955_v62  ;;  %v3516_v62 = vpack.c.bf16 %v3508_v13, %v3507_v10 }
 0x36a   : > { %6837 = vmatmul.msk.bf16.gmra.mxu3 %vm1217_vm3, %v8957_v32 }
 0x36c   : > { %v3336_v49 = vpop.f32.mrf.mxu2 }
 0x36d   : > { %v3358_v8 = vadd.f32 %v3336_v49, %v3228_v23  ;;  %v3466_v56 = vpop.f32.mrf.mxu3  ;;  %v9059_v21 = vpop.f32.mrf.mxu1 }
 0x36f   : > { %v9061_v14 = vadd.f32 %v3466_v56, %v3358_v8  ;;  %v9107_v8 = vld [vmem:[%s9553_s5] ss:$0 sm:$0xff] }
 0x374   : > { %v9063_v45 = vpop.f32.mrf.mxu2 }
 0x375   : > { %v9065_v51 = vpop.f32.mrf.mxu3  ;;  %v3211_v32 = vpop.f32.mrf.mxu1 }
 0x376   : > { %v3230_v28 = vadd.f32 %v3211_v32, %v8965_v22 }
 0x378   : > { %6798 = vmatmul.msk.bf16.gmra.mxu1 %vm1217_vm3, %v3516_v62 }
 0x379   : > { %6818 = vmatmul.msk.bf16.gmra.mxu2 %vm1217_vm3, %v3646_v16 }
 0x37a   : > { %6838 = vmatmul.msk.bf16.gmra.mxu3 %vm1217_vm3, %v3776_v20  ;;  %v7703_v20 = vld [vmem:[%s9555_s7 + $0x38] sm:$0xff] }
 0x37b   : > { %7876 = vmatpush.bf16.msrb.mxu3 %v7703_v20  ;;  %4389 = vmatpush.bf16.msrb.mxu1 %v7703_v20 }
 0x37c   : > { %v3341_v22 = vpop.f32.mrf.mxu2 }
 0x37d   : > { %v3360_v4 = vadd.f32 %v3341_v22, %v3230_v28  ;;  %v3471_v59 = vpop.f32.mrf.mxu3  ;;  %v9083_v57 = vpop.f32.mrf.mxu1 }
 0x37f   : > { %v9085_v50 = vadd.f32 %v3471_v59, %v3360_v4 }
 0x384   : > { %v9087_v52 = vpop.f32.mrf.mxu2 }
 0x385   : > { %9564 = vst [vmem:[#allocation9_spill] sm:$0xff] %v9087_v52  ;;  %v9089_v55 = vpop.f32.mrf.mxu3  ;;  %v3567_v0 = vpop.f32.mrf.mxu1 }
 0x386   : > { %9565 = vst [vmem:[#allocation10_spill] sm:$0xff] %v9089_v55  ;;  %v3607_v48 = vadd.f32 %v3567_v0, %v8978_v54 }
 0x38c   : > { %v3697_v6 = vpop.f32.mrf.mxu2 }
 0x38d   : > { %v3827_v35 = vpop.f32.mrf.mxu3  ;;  %v3569_v37 = vpop.f32.mrf.mxu1  ;;  %v3737_v42 = vadd.f32 %v3697_v6, %v3607_v48 }
 0x38e   : > { %v3608_v56 = vadd.f32 %v3569_v37, %v8981_v15 }
 0x38f   : > { %v3867_v49 = vadd.f32 %v3827_v35, %v3737_v42  ;;  %v7698_v42 = vld [vmem:[%s9555_s7 + $0x10] sm:$0xff] }
 0x390   : > { %4439 = vmatpush.bf16.msrb.mxu2 %v7698_v42 }
 0x391   : > { %v3887_v10 = vmul.f32 %v9107_v8, %v3867_v49 }
 0x393   : > { %v3907_v62 = vadd.f32 %v9114_v33, %v3887_v10 }
 0x394   : > { %v3699_v38 = vpop.f32.mrf.mxu2 }
 0x395   : > { %v3829_v29 = vpop.f32.mrf.mxu3  ;;  %v3572_v23 = vpop.f32.mrf.mxu1  ;;  %v3738_v13 = vadd.f32 %v3699_v38, %v3608_v56  ;;  %v3923_v28 = vmax.f32 %v3907_v62, 0.0 }
 0x396   : > { %v3609_v54 = vadd.f32 %v3572_v23, %v8992_v11 }
 0x397   : > { %v3868_v32 = vadd.f32 %v3829_v29, %v3738_v13  ;;  %v3940_v35 = vsel %vm3939_vm12, %v3923_v28, -inf }
 0x399   : > { %v3888_v43 = vmul.f32 %v9107_v8, %v3868_v32 }
 0x39b   : > { %v3908_v38 = vadd.f32 %v9114_v33, %v3888_v43 }
 0x39c   : > { %v3702_v7 = vpop.f32.mrf.mxu2 }
 0x39d   : > { %v3739_v2 = vadd.f32 %v3702_v7, %v3609_v54  ;;  %v3832_v5 = vpop.f32.mrf.mxu3  ;;  %v3574_v18 = vpop.f32.mrf.mxu1 }
 0x39e   : > { %v3610_v11 = vadd.f32 %v3574_v18, %v8995_v19  ;;  %v7702_v19 = vld [vmem:[%s9555_s7 + $0x30] sm:$0xff]  ;;  %v3924_v18 = vmax.f32 %v3908_v38, 0.0 }
 0x39f   : > { %v3869_v16 = vadd.f32 %v3832_v5, %v3739_v2  ;;  %4390 = vmatpush.bf16.msrb.mxu1 %v7702_v19  ;;  %7877 = vmatpush.bf16.msrb.mxu3 %v7702_v19  ;;  %v7701_v2 = vld [vmem:[%s9555_s7 + $0x28] sm:$0xff]  ;;  %v7696_v19 = vld [vmem:[%s9555_s7] sm:$0xff] }
 0x3a0   : > { %v7697_v5 = vld [vmem:[%s9555_s7 + $0x8] sm:$0xff]  ;;  %v3943_v42 = vsel %vm3939_vm12, %v3924_v18, -inf }
 0x3a1   : > { %v3889_v15 = vmul.f32 %v9107_v8, %v3869_v16  ;;  %4440 = vmatpush.bf16.msrb.mxu2 %v7697_v5 }
 0x3a3   : > { %v3909_v1 = vadd.f32 %v9114_v33, %v3889_v15  ;;  %4391 = vmatpush.bf16.msrb.mxu1 %v7701_v2  ;;  %7878 = vmatpush.bf16.msrb.mxu3 %v7701_v2 }
 0x3a4   : > { %v3704_v22 = vpop.f32.mrf.mxu2 }
 0x3a5   : > { %v3925_v4 = vmax.f32 %v3909_v1, 0.0  ;;  %v3740_v59 = vadd.f32 %v3704_v22, %v3610_v11  ;;  %v3834_v0 = vpop.f32.mrf.mxu3  ;;  %v3577_v6 = vpop.f32.mrf.mxu1  ;;  %4441 = vmatpush.bf16.msrb.mxu2 %v7696_v19 }
 0x3a6   : > { %v3611_v22 = vadd.f32 %v3577_v6, %v9006_v12 }
 0x3a7   : > { %v3941_v37 = vsel %vm3939_vm12, %v3925_v4, -inf  ;;  %v3870_v48 = vadd.f32 %v3834_v0, %v3740_v59 }
 0x3a8   : > { %v3942_v29 = vmax.f32 %v3940_v35, %v3941_v37 }
 0x3a9   : > { %v3890_v23 = vmul.f32 %v9107_v8, %v3870_v48  ;;  %v7700_v48 = vld [vmem:[%s9555_s7 + $0x20] sm:$0xff] }
 0x3aa   : > { %v3972_v49 = vrot.slane %v3942_v29, 2  ;;  %v3973_v56 = vrot.slane %v3942_v29, 4  ;;  %v3974_v10 = vrot.slane %v3942_v29, 6  ;;  %v4021_v54 = vsel %vm4020_vm13, %v3942_v29, -inf  ;;  %4392 = vmatpush.bf16.msrb.mxu1 %v7700_v48  ;;  %7879 = vmatpush.bf16.msrb.mxu3 %v7700_v48 }
 0x3ab   : > { %v4022_v13 = vrot.slane %v4021_v54, 4  ;;  %v3910_v7 = vadd.f32 %v9114_v33, %v3890_v23 }
 0x3ac   : > { %v4028_v62 = vsel %vm4020_vm13, %v3972_v49, -inf  ;;  %v4035_v16 = vsel %vm4020_vm13, %v3973_v56, -inf  ;;  %v4042_v32 = vsel %vm4020_vm13, %v3974_v10, -inf  ;;  %v3707_v15 = vpop.f32.mrf.mxu2 }
 0x3ad   : > { %v4023_v20 = vmax.f32 %v4021_v54, %v4022_v13  ;;  %v4029_v28 = vrot.slane %v4028_v62, 4  ;;  %v4036_v1 = vrot.slane %v4035_v16, 4  ;;  %v4043_v11 = vrot.slane %v4042_v32, 4  ;;  %v3837_v60 = vpop.f32.mrf.mxu3  ;;  %v3579_v4 = vpop.f32.mrf.mxu1 }
 0x3ae   : > { %v3926_v43 = vmax.f32 %v3910_v7, 0.0  ;;  %v3741_v23 = vadd.f32 %v3707_v15, %v3611_v22 }
 0x3af   : > { %v4024_v59 = vrot.slane %v4023_v20, 2  ;;  %v4030_v0 = vmax.f32 %v4028_v62, %v4029_v28  ;;  %v4037_v35 = vmax.f32 %v4035_v16, %v4036_v1  ;;  %v4044_v37 = vmax.f32 %v4042_v32, %v4043_v11 }
 0x3b0   : > { %v3944_v38 = vsel %vm3939_vm12, %v3926_v43, -inf }
 0x3b1   : > { %v4025_v29 = vmax.f32 %v4023_v20, %v4024_v59  ;;  %v4031_v12 = vrot.slane %v4030_v0, 2  ;;  %v4038_v6 = vrot.slane %v4037_v35, 2  ;;  %v3945_v49 = vmax.f32 %v3943_v42, %v3944_v38 }
 0x3b2   : > { %v4045_v54 = vrot.slane %v4044_v37, 2  ;;  %v3871_v20 = vadd.f32 %v3837_v60, %v3741_v23  ;;  %v3612_v60 = vadd.f32 %v3579_v4, %v9009_v47 }
 0x3b3   : > { %v4032_v56 = vmax.f32 %v4030_v0, %v4031_v12  ;;  %v4039_v10 = vmax.f32 %v4037_v35, %v4038_v6  ;;  %v3975_v13 = vrot.slane %v3945_v49, 2  ;;  %v3976_v7 = vrot.slane %v3945_v49, 4 }
 0x3b4   : > { %v3977_v2 = vrot.slane %v3945_v49, 6  ;;  %v4049_v5 = vsel %vm4020_vm13, %v3945_v49, -inf  ;;  %v3709_v62 = vpop.f32.mrf.mxu2  ;;  %v4026_v18 = vrot.slane %v4025_v29, 1  ;;  %v4046_v0 = vmax.f32 %v4044_v37, %v4045_v54 }
 0x3b5   : > { %v4033_v16 = vrot.slane %v4032_v56, 1  ;;  %v4040_v32 = vrot.slane %v4039_v10, 1  ;;  %v3839_v28 = vpop.f32.mrf.mxu3  ;;  %v4050_v1 = vrot.slane %v4049_v5, 4  ;;  %v4056_v15 = vsel %vm4020_vm13, %v3975_v13, -inf  ;;  %v3582_v22 = vpop.f32.mrf.mxu1 }
 0x3b6   : > { %v4063_v11 = vsel %vm4020_vm13, %v3976_v7, -inf  ;;  %v4070_v43 = vsel %vm4020_vm13, %v3977_v2, -inf  ;;  %v4057_v35 = vrot.slane %v4056_v15, 4  ;;  %v4027_v38 = vmax.f32 %v4025_v29, %v4026_v18 }
 0x3b7   : > { %v4034_v59 = vmax.f32 %v4032_v56, %v4033_v16  ;;  %v4051_v48 = vmax.f32 %v4049_v5, %v4050_v1  ;;  %v4064_v19 = vrot.slane %v4063_v11, 4  ;;  %v4071_v42 = vrot.slane %v4070_v43, 4 }
 0x3b8   : > { %v4058_v12 = vmax.f32 %v4056_v15, %v4057_v35  ;;  %v3891_v6 = vmul.f32 %v9107_v8, %v3871_v20  ;;  %v4041_v23 = vmax.f32 %v4039_v10, %v4040_v32  ;;  %v4047_v7 = vrot.slane %v4046_v0, 1 }
 0x3b9   : > { %v4052_v49 = vrot.slane %v4051_v48, 2  ;;  %v4065_v13 = vmax.f32 %v4063_v11, %v4064_v19  ;;  %v4072_v55 = vmax.f32 %v4070_v43, %v4071_v42  ;;  %v4289_v2 = vsel %vm2593_vm5, %v4034_v59, %v4027_v38 }
 0x3ba   : > { %v4059_v52 = vrot.slane %v4058_v12, 2  ;;  %v3613_v37 = vadd.f32 %v3582_v22, %v9020_v17  ;;  %v3742_v16 = vadd.f32 %v3709_v62, %v3612_v60  ;;  %v3911_v20 = vadd.f32 %v9114_v33, %v3891_v6 }
 0x3bb   : > { %v4053_v56 = vmax.f32 %v4051_v48, %v4052_v49  ;;  %v4066_v54 = vrot.slane %v4065_v13, 2  ;;  %v4073_v5 = vrot.slane %v4072_v55, 2  ;;  %v4290_v4 = vsel %vm2595_vm6, %v4041_v23, %v4289_v2 }
 0x3bc   : > { %v3712_v29 = vpop.f32.mrf.mxu2  ;;  %v4060_v18 = vmax.f32 %v4058_v12, %v4059_v52  ;;  %v4048_v43 = vmax.f32 %v4046_v0, %v4047_v7  ;;  %v3872_v19 = vadd.f32 %v3839_v28, %v3742_v16  ;;  %v3927_v6 = vmax.f32 %v3911_v20, 0.0  ;;  %v7711_v28 = vld [vmem:[%s9555_s7 + $0x78] sm:$0xff]  ;;  %v7742_v16 = vld [vmem:[#allocation6 + $0x54] sm:$0xf] }
 0x3bd   : > { %v3743_v1 = vadd.f32 %v3712_v29, %v3613_v37  ;;  %v3842_v47 = vpop.f32.mrf.mxu3  ;;  %v4054_v10 = vrot.slane %v4053_v56, 1  ;;  %v4067_v32 = vmax.f32 %v4065_v13, %v4066_v54  ;;  %v4074_v15 = vmax.f32 %v4072_v55, %v4073_v5  ;;  %v3584_v11 = vpop.f32.mrf.mxu1  ;;  %4570 = vmatpush.bf16.msra.mxu1 %v7711_v28  ;;  %v7173_v29 = vld [vmem:[#allocation6 + $0x58] sm:$0xf0] }
 0x3be   : > { %v4061_v59 = vrot.slane %v4060_v18, 1  ;;  %v4291_v62 = vsel %vm2597_vm7, %v4048_v43, %v4290_v4  ;;  %v3614_v23 = vadd.f32 %v3584_v11, %v9023_v9  ;;  %v3892_v13 = vmul.f32 %v9107_v8, %v3872_v19  ;;  %v7710_v4 = vld [vmem:[%s9555_s7 + $0x70] sm:$0xff]  ;;  %v4326_v19 = vld [vmem:[#allocation3] sm:$0xff] }
 0x3bf   : > { %v3873_v35 = vadd.f32 %v3842_v47, %v3743_v1  ;;  %v4055_v17 = vmax.f32 %v4053_v56, %v4054_v10  ;;  %v4068_v22 = vrot.slane %v4067_v32, 1  ;;  %v4075_v48 = vrot.slane %v4074_v15, 1 }
 0x3c0   : > { %v4062_v52 = vmax.f32 %v4060_v18, %v4061_v59  ;;  %v2955_v5 = vadd.f32 %v8783_v44, %v8781_v24  ;;  %v3946_v18 = vsel %vm3939_vm12, %v3927_v6, -inf  ;;  %v7176_v47 = vor.u32 %v7742_v16, %v7173_v29  ;;  %v7708_v16 = vld [vmem:[%s9555_s7 + $0x60] sm:$0xff] }
 0x3c1   : > { %v3893_v42 = vmul.f32 %v9107_v8, %v3873_v35  ;;  %v4069_v38 = vmax.f32 %v4067_v32, %v4068_v22  ;;  %v4292_v12 = vsel %vm2599_vm8, %v4055_v17, %v4291_v62  ;;  %v4076_v60 = vmax.f32 %v4074_v15, %v4075_v48  ;;  %4571 = vmatpush.bf16.msra.mxu1 %v7710_v4  ;;  %v4340_v48 = vld [vmem:[#allocation3 + $0x1] sm:$0xff]  ;;  %v7709_v62 = vld [vmem:[%s9555_s7 + $0x68] sm:$0xff] }
 0x3c2   : > { %v4293_v55 = vsel %vm2601_vm9, %v4062_v52, %v4292_v12  ;;  %v3912_v10 = vadd.f32 %v9114_v33, %v3892_v13  ;;  %5300 = vmatpush.bf16.msrb.mxu0 %v7176_v47  ;;  %v3095_v59 = vadd.f32 %v8787_v46, %v2955_v5  ;;  %v2960_v35 = vadd.f32 %v8896_v63, %v8894_v61 }
 0x3c3   : > { %v3913_v0 = vadd.f32 %v9114_v33, %v3893_v42  ;;  %v4294_v49 = vsel %vm2603_vm10, %v4069_v38, %v4293_v55 }
 0x3c4   : > { %v3714_v7 = vpop.f32.mrf.mxu2  ;;  %v4295_v2 = vsel %vm2605_vm11, %v4076_v60, %v4294_v49  ;;  %v3928_v52 = vmax.f32 %v3912_v10, 0.0  ;;  %v3225_v29 = vadd.f32 %v9029_v40, %v3095_v59  ;;  %v3097_v4 = vadd.f32 %v8898_v31, %v2960_v35 }
 0x3c5   : > { %v3929_v37 = vmax.f32 %v3913_v0, 0.0  ;;  %v3744_v56 = vadd.f32 %v3714_v7, %v3614_v23  ;;  %v3844_v54 = vpop.f32.mrf.mxu3  ;;  %4322 = vst.msk [vmem:[#allocation3 + $0x11] sm:$0xff] %vm3939_vm12, %v4295_v2  ;;  %v3587_v9 = vpop.f32.mrf.mxu1  ;;  %4572 = vmatpush.bf16.msra.mxu1 %v7709_v62 }
 0x3c6   : > { %v3615_v49 = vadd.f32 %v3587_v9, %v9031_v3 }
 0x3c7   : > { %v3947_v20 = vsel %vm3939_vm12, %v3929_v37, -inf  ;;  %v3874_v1 = vadd.f32 %v3844_v54, %v3744_v56 }
 0x3c8   : > { %v3948_v32 = vmax.f32 %v3946_v18, %v3947_v20  ;;  %v3949_v18 = vsel %vm3939_vm12, %v3928_v52, -inf }
 0x3c9   : > { %v3894_v24 = vmul.f32 %v9107_v8, %v3874_v1  ;;  %4573 = vmatpush.bf16.msra.mxu1 %v7708_v16 }
 0x3ca   : > { %v3978_v44 = vrot.slane %v3948_v32, 2  ;;  %v3979_v15 = vrot.slane %v3948_v32, 4  ;;  %v3980_v11 = vrot.slane %v3948_v32, 6  ;;  %v4077_v43 = vsel %vm4020_vm13, %v3948_v32, -inf }
 0x3cb   : > { %v4078_v17 = vrot.slane %v4077_v43, 4  ;;  %v3914_v22 = vadd.f32 %v9114_v33, %v3894_v24  ;;  %v3355_v32 = vadd.f32 %v9033_v30, %v3225_v29 }
 0x3cc   : > { %v4084_v42 = vsel %vm4020_vm13, %v3978_v44, -inf  ;;  %v4091_v38 = vsel %vm4020_vm13, %v3979_v15, -inf  ;;  %v4098_v12 = vsel %vm4020_vm13, %v3980_v11, -inf  ;;  %v3717_v46 = vpop.f32.mrf.mxu2  ;;  %v9201_v0 = vld [vmem:[#allocation3 + $0x11] sm:$0xff] }
 0x3cd   : > { %v4079_v6 = vmax.f32 %v4077_v43, %v4078_v17  ;;  %v4085_v60 = vrot.slane %v4084_v42, 4  ;;  %v4092_v61 = vrot.slane %v4091_v38, 4  ;;  %v4099_v63 = vrot.slane %v4098_v12, 4  ;;  %v3847_v55 = vpop.f32.mrf.mxu3  ;;  %v9203_v23 = vld [vmem:[#allocation3 + $0x10] sm:$0xff]  ;;  %v3589_v13 = vpop.f32.mrf.mxu1 }
 0x3ce   : > { %v3930_v28 = vmax.f32 %v3914_v22, 0.0  ;;  %v4344_v7 = vpack.c.bf16 %v9201_v0, %v4340_v48  ;;  %v4330_v2 = vpack.c.bf16 %v9203_v23, %v4326_v19  ;;  %v3745_v47 = vadd.f32 %v3717_v46, %v3615_v49 }
 0x3cf   : > { %v4080_v37 = vrot.slane %v4079_v6, 2  ;;  %v4086_v56 = vmax.f32 %v4084_v42, %v4085_v60  ;;  %v4093_v54 = vmax.f32 %v4091_v38, %v4092_v61  ;;  %v4100_v5 = vmax.f32 %v4098_v12, %v4099_v63 }
 0x3d0   : > { %v3950_v20 = vsel %vm3939_vm12, %v3930_v28, -inf  ;;  %6863 = vmatmul.msk.bf16.vlgmr.msrb.gmra.mxu1 %vm3939_vm12, %v4344_v7  ;;  %6881 = vmatmul.msk.bf16.vlgmr.msrb.gmra.mxu2 %vm3939_vm12, %v4330_v2  ;;  %v3875_v62 = vadd.f32 %v3847_v55, %v3745_v47  ;;  %v3485_v12 = vadd.f32 %v9035_v53, %v3355_v32  ;;  %v3227_v61 = vadd.f32 %v9044_v58, %v3097_v4 }
 0x3d1   : > { %v4081_v3 = vmax.f32 %v4079_v6, %v4080_v37  ;;  %v4087_v9 = vrot.slane %v4086_v56, 2  ;;  %v4094_v1 = vrot.slane %v4093_v54, 2  ;;  %v3951_v10 = vmax.f32 %v3949_v18, %v3950_v20 }
 0x3d2   : > { %v4101_v44 = vrot.slane %v4100_v5, 2  ;;  %v3895_v2 = vmul.f32 %v9107_v8, %v3875_v62  ;;  %v3616_v37 = vadd.f32 %v3589_v13, %v3485_v12 }
 0x3d3   : > { %v4088_v24 = vmax.f32 %v4086_v56, %v4087_v9  ;;  %v4095_v40 = vmax.f32 %v4093_v54, %v4094_v1  ;;  %v3981_v15 = vrot.slane %v3951_v10, 2  ;;  %v3982_v11 = vrot.slane %v3951_v10, 4 }
 0x3d4   : > { %v3983_v43 = vrot.slane %v3951_v10, 6  ;;  %v4105_v59 = vsel %vm4020_vm13, %v3951_v10, -inf  ;;  %v3719_v17 = vpop.f32.mrf.mxu2  ;;  %v4082_v22 = vrot.slane %v4081_v3, 1  ;;  %v4102_v6 = vmax.f32 %v4100_v5, %v4101_v44 }
 0x3d5   : > { %v4089_v48 = vrot.slane %v4088_v24, 1  ;;  %v4096_v19 = vrot.slane %v4095_v40, 1  ;;  %v3849_v52 = vpop.f32.mrf.mxu3  ;;  %v4106_v42 = vrot.slane %v4105_v59, 4  ;;  %v4112_v31 = vsel %vm4020_vm13, %v3981_v15, -inf  ;;  %v3592_v38 = vpop.f32.mrf.mxu1 }
 0x3d6   : > { %v4119_v35 = vsel %vm4020_vm13, %v3982_v11, -inf  ;;  %v4126_v30 = vsel %vm4020_vm13, %v3983_v43, -inf  ;;  %v4113_v60 = vrot.slane %v4112_v31, 4  ;;  %v4083_v55 = vmax.f32 %v4081_v3, %v4082_v22 }
 0x3d7   : > { %v4090_v46 = vmax.f32 %v4088_v24, %v4089_v48  ;;  %v4107_v63 = vmax.f32 %v4105_v59, %v4106_v42  ;;  %v4120_v28 = vrot.slane %v4119_v35, 4  ;;  %v4127_v49 = vrot.slane %v4126_v30, 4 }
 0x3d8   : > { %v4114_v7 = vmax.f32 %v4112_v31, %v4113_v60  ;;  %v4097_v56 = vmax.f32 %v4095_v40, %v4096_v19  ;;  %v4103_v18 = vrot.slane %v4102_v6, 1  ;;  %v3617_v5 = vadd.f32 %v3592_v38, %v9046_v27 }
 0x3d9   : > { %v4108_v54 = vrot.slane %v4107_v63, 2  ;;  %v4121_v16 = vmax.f32 %v4119_v35, %v4120_v28  ;;  %v4128_v29 = vmax.f32 %v4126_v30, %v4127_v49  ;;  %v4296_v53 = vsel %vm2593_vm5, %v4090_v46, %v4083_v55 }
 0x3da   : > { %v4115_v20 = vrot.slane %v4114_v7, 2  ;;  %v3746_v47 = vadd.f32 %v3719_v17, %v3616_v37  ;;  %v3357_v3 = vadd.f32 %v9048_v39, %v3227_v61  ;;  %v3915_v13 = vadd.f32 %v9114_v33, %v3895_v2 }
 0x3db   : > { %v4109_v9 = vmax.f32 %v4107_v63, %v4108_v54  ;;  %v4122_v58 = vrot.slane %v4121_v16, 2  ;;  %v4129_v1 = vrot.slane %v4128_v29, 2  ;;  %v4297_v40 = vsel %vm2595_vm6, %v4097_v56, %v4296_v53 }
 0x3dc   : > { %v3722_v4 = vpop.f32.mrf.mxu2  ;;  %v4116_v10 = vmax.f32 %v4114_v7, %v4115_v20  ;;  %v4104_v59 = vmax.f32 %v4102_v6, %v4103_v18  ;;  %v3876_v62 = vadd.f32 %v3849_v52, %v3746_v47  ;;  %v3487_v39 = vadd.f32 %v9050_v41, %v3357_v3 }
 0x3dd   : > { %v3747_v32 = vadd.f32 %v3722_v4, %v3617_v5  ;;  %v3852_v24 = vpop.f32.mrf.mxu3  ;;  %v4110_v44 = vrot.slane %v4109_v9, 1  ;;  %v4123_v15 = vmax.f32 %v4121_v16, %v4122_v58  ;;  %v4130_v11 = vmax.f32 %v4128_v29, %v4129_v1  ;;  %v3594_v43 = vpop.f32.mrf.mxu1 }
 0x3de   : > { %v4117_v27 = vrot.slane %v4116_v10, 1  ;;  %v4298_v42 = vsel %vm2597_vm7, %v4104_v59, %v4297_v40  ;;  %v3931_v12 = vmax.f32 %v3915_v13, 0.0  ;;  %v3618_v61 = vadd.f32 %v3594_v43, %v3487_v39 }
 0x3df   : > { %v3877_v22 = vadd.f32 %v3852_v24, %v3747_v32  ;;  %v4111_v48 = vmax.f32 %v4109_v9, %v4110_v44  ;;  %v4124_v19 = vrot.slane %v4123_v15, 1  ;;  %v4131_v17 = vrot.slane %v4130_v11, 1 }
 0x3e0   : > { %v4118_v31 = vmax.f32 %v4116_v10, %v4117_v27  ;;  %v3896_v52 = vmul.f32 %v9107_v8, %v3876_v62  ;;  %v3952_v37 = vsel %vm3939_vm12, %v3931_v12, -inf  ;;  %v2965_v18 = vadd.f32 %v8949_v34, %v8947_v25 }
 0x3e1   : > { %v3897_v35 = vmul.f32 %v9107_v8, %v3877_v22  ;;  %v4125_v30 = vmax.f32 %v4123_v15, %v4124_v19  ;;  %v4299_v38 = vsel %vm2599_vm8, %v4111_v48, %v4298_v42  ;;  %v4132_v46 = vmax.f32 %v4130_v11, %v4131_v17 }
 0x3e2   : > { %v4300_v6 = vsel %vm2601_vm9, %v4118_v31, %v4299_v38  ;;  %v3916_v16 = vadd.f32 %v9114_v33, %v3896_v52  ;;  %v3099_v11 = vadd.f32 %v8951_v26, %v2965_v18 }
 0x3e3   : > { %v3917_v60 = vadd.f32 %v9114_v33, %v3897_v35  ;;  %v4301_v63 = vsel %vm2603_vm10, %v4125_v30, %v4300_v6 }
 0x3e4   : > { %v3724_v41 = vpop.f32.mrf.mxu2  ;;  %v4302_v28 = vsel %vm2605_vm11, %v4132_v46, %v4301_v63  ;;  %v3932_v4 = vmax.f32 %v3916_v16, 0.0  ;;  %v3229_v39 = vadd.f32 %v9059_v21, %v3099_v11  ;;  %v7707_v21 = vld [vmem:[%s9555_s7 + $0x58] sm:$0xff] }
 0x3e5   : > { %v3933_v49 = vmax.f32 %v3917_v60, 0.0  ;;  %v3748_v55 = vadd.f32 %v3724_v41, %v3618_v61  ;;  %v3854_v7 = vpop.f32.mrf.mxu3  ;;  %4323 = vst.msk [vmem:[#allocation3 + $0x21] sm:$0xff] %vm3939_vm12, %v4302_v28  ;;  %v3597_v2 = vpop.f32.mrf.mxu1  ;;  %v7715_v60 = vld [vmem:[%s9555_s7 + $0x98] sm:$0xff]  ;;  %4502 = vmatpush.bf16.msra.mxu3 %v7707_v21  ;;  %v7712_v21 = vld [vmem:[%s9555_s7 + $0x80] sm:$0xff] }
 0x3e6   : > { %v3619_v59 = vadd.f32 %v3597_v2, %v9061_v14  ;;  %v3955_v42 = vsel %vm3939_vm12, %v3932_v4, -inf  ;;  %v3359_v12 = vadd.f32 %v9063_v45, %v3229_v39  ;;  %4638 = vmatpush.bf16.msra.mxu2 %v7715_v60 }
 0x3e7   : > { %v3953_v56 = vsel %vm3939_vm12, %v3933_v49, -inf  ;;  %v3878_v54 = vadd.f32 %v3854_v7, %v3748_v55 }
 0x3e8   : > { %v3954_v29 = vmax.f32 %v3952_v37, %v3953_v56  ;;  %v3489_v18 = vadd.f32 %v9065_v51, %v3359_v12 }
 0x3e9   : > { %v3898_v53 = vmul.f32 %v9107_v8, %v3878_v54 }
 0x3ea   : > { %v3984_v20 = vrot.slane %v3954_v29, 2  ;;  %v3985_v5 = vrot.slane %v3954_v29, 4  ;;  %v3986_v9 = vrot.slane %v3954_v29, 6  ;;  %v4133_v58 = vsel %vm4020_vm13, %v3954_v29, -inf }
 0x3eb   : > { %v4134_v1 = vrot.slane %v4133_v58, 4  ;;  %v3918_v47 = vadd.f32 %v9114_v33, %v3898_v53 }
 0x3ec   : > { %v4140_v3 = vsel %vm4020_vm13, %v3984_v20, -inf  ;;  %v4147_v10 = vsel %vm4020_vm13, %v3985_v5, -inf  ;;  %v4154_v13 = vsel %vm4020_vm13, %v3986_v9, -inf  ;;  %v3727_v32 = vpop.f32.mrf.mxu2  ;;  %v9251_v15 = vld [vmem:[#allocation3 + $0x20] sm:$0xff]  ;;  %v7706_v9 = vld [vmem:[%s9555_s7 + $0x50] sm:$0xff] }
 0x3ed   : > { %v4135_v24 = vmax.f32 %v4133_v58, %v4134_v1  ;;  %v4141_v25 = vrot.slane %v4140_v3, 4  ;;  %v4148_v34 = vrot.slane %v4147_v10, 4  ;;  %v4155_v40 = vrot.slane %v4154_v13, 4  ;;  %v3857_v44 = vpop.f32.mrf.mxu3  ;;  %v3599_v27 = vpop.f32.mrf.mxu1  ;;  %v7714_v58 = vld [vmem:[%s9555_s7 + $0x90] sm:$0xff]  ;;  %4503 = vmatpush.bf16.msra.mxu3 %v7706_v9 }
 0x3ee   : > { %v3934_v43 = vmax.f32 %v3918_v47, 0.0  ;;  %v4525_v22 = vpack.c.bf16 %v9251_v15, %v9203_v23  ;;  %v3749_v14 = vadd.f32 %v3727_v32, %v3619_v59  ;;  %v3231_v1 = vadd.f32 %v9083_v57, %v8967_v36  ;;  %4639 = vmatpush.bf16.msra.mxu2 %v7714_v58  ;;  %v7705_v57 = vld [vmem:[%s9555_s7 + $0x48] sm:$0xff] }
 0x3ef   : > { %v4136_v48 = vrot.slane %v4135_v24, 2  ;;  %v4142_v19 = vmax.f32 %v4140_v3, %v4141_v25  ;;  %v4149_v17 = vmax.f32 %v4147_v10, %v4148_v34  ;;  %v4156_v62 = vmax.f32 %v4154_v13, %v4155_v40  ;;  %v7713_v59 = vld [vmem:[%s9555_s7 + $0x88] sm:$0xff] }
 0x3f0   : > { %v3956_v31 = vsel %vm3939_vm12, %v3934_v43, -inf  ;;  %6933 = vmatmul.msk.bf16.vlgmr.msra.gmra.mxu1 %vm3939_vm12, %v4525_v22  ;;  %v3879_v7 = vadd.f32 %v3857_v44, %v3749_v14  ;;  %v3620_v32 = vadd.f32 %v3599_v27, %v3489_v18 }
 0x3f1   : > { %v4137_v26 = vmax.f32 %v4135_v24, %v4136_v48  ;;  %v4143_v35 = vrot.slane %v4142_v19, 2  ;;  %v4150_v30 = vrot.slane %v4149_v17, 2  ;;  %v3957_v38 = vmax.f32 %v3955_v42, %v3956_v31  ;;  %4504 = vmatpush.bf16.msra.mxu3 %v7705_v57 }
 0x3f2   : > { %v4157_v6 = vrot.slane %v4156_v62, 2  ;;  %v3899_v51 = vmul.f32 %v9107_v8, %v3879_v7  ;;  %4640 = vmatpush.bf16.msra.mxu2 %v7713_v59 }
 0x3f3   : > { %v4144_v23 = vmax.f32 %v4142_v19, %v4143_v35  ;;  %v4151_v46 = vmax.f32 %v4149_v17, %v4150_v30  ;;  %v3987_v61 = vrot.slane %v3957_v38, 2  ;;  %v3988_v63 = vrot.slane %v3957_v38, 4 }
 0x3f4   : > { %v3989_v52 = vrot.slane %v3957_v38, 6  ;;  %v4161_v41 = vsel %vm4020_vm13, %v3957_v38, -inf  ;;  %v3729_v28 = vpop.f32.mrf.mxu2  ;;  %v4138_v49 = vrot.slane %v4137_v26, 1  ;;  %v4158_v20 = vmax.f32 %v4156_v62, %v4157_v6  ;;  %v9566_v62 = vld [vmem:[#allocation9_spill] sm:$0xff] }
 0x3f5   : > { %v4145_v55 = vrot.slane %v4144_v23, 1  ;;  %v4152_v45 = vrot.slane %v4151_v46, 1  ;;  %v3859_v2 = vpop.f32.mrf.mxu3  ;;  %v4162_v37 = vrot.slane %v4161_v41, 4  ;;  %v4168_v56 = vsel %vm4020_vm13, %v3987_v61, -inf  ;;  %v3602_v29 = vpop.f32.mrf.mxu1  ;;  %v7704_v6 = vld [vmem:[%s9555_s7 + $0x40] sm:$0xff] }
 0x3f6   : > { %v4175_v54 = vsel %vm4020_vm13, %v3988_v63, -inf  ;;  %v4182_v16 = vsel %vm4020_vm13, %v3989_v52, -inf  ;;  %v4169_v5 = vrot.slane %v4168_v56, 4  ;;  %v4139_v10 = vmax.f32 %v4137_v26, %v4138_v49  ;;  %4505 = vmatpush.bf16.msra.mxu3 %v7704_v6  ;;  %4641 = vmatpush.bf16.msra.mxu2 %v7712_v21 }
 0x3f7   : > { %v4146_v53 = vmax.f32 %v4144_v23, %v4145_v55  ;;  %v4163_v47 = vmax.f32 %v4161_v41, %v4162_v37  ;;  %v4176_v4 = vrot.slane %v4175_v54, 4  ;;  %v4183_v3 = vrot.slane %v4182_v16, 4 }
 0x3f8   : > { %v4170_v13 = vmax.f32 %v4168_v56, %v4169_v5  ;;  %v4153_v24 = vmax.f32 %v4151_v46, %v4152_v45  ;;  %v4159_v44 = vrot.slane %v4158_v20, 1  ;;  %v3621_v36 = vadd.f32 %v3602_v29, %v9085_v50 }
 0x3f9   : > { %v4164_v25 = vrot.slane %v4163_v47, 2  ;;  %v4177_v34 = vmax.f32 %v4175_v54, %v4176_v4  ;;  %v4184_v40 = vmax.f32 %v4182_v16, %v4183_v3  ;;  %v4303_v11 = vsel %vm2593_vm5, %v4146_v53, %v4139_v10  ;;  %v7740_v4 = vld [vmem:[#allocation6 + $0x44] sm:$0xf]  ;;  %v7165_v3 = vld [vmem:[#allocation6 + $0x48] sm:$0xf0] }
 0x3fa   : > { %v4171_v43 = vrot.slane %v4170_v13, 2  ;;  %v3750_v19 = vadd.f32 %v3729_v28, %v3620_v32  ;;  %v3361_v39 = vadd.f32 %v9566_v62, %v3231_v1  ;;  %v3919_v31 = vadd.f32 %v9114_v33, %v3899_v51  ;;  %v9567_v28 = vld [vmem:[#allocation10_spill] sm:$0xff] }
 0x3fb   : > { %v4165_v27 = vmax.f32 %v4163_v47, %v4164_v25  ;;  %v4178_v22 = vrot.slane %v4177_v34, 2  ;;  %v4185_v48 = vrot.slane %v4184_v40, 2  ;;  %v4304_v35 = vsel %vm2595_vm6, %v4153_v24, %v4303_v11 }
 0x3fc   : > { %v3732_v17 = vpop.f32.mrf.mxu2  ;;  %v4172_v42 = vmax.f32 %v4170_v13, %v4171_v43  ;;  %v4160_v12 = vmax.f32 %v4158_v20, %v4159_v44  ;;  %v3880_v52 = vadd.f32 %v3859_v2, %v3750_v19  ;;  %v3491_v49 = vadd.f32 %v9567_v28, %v3361_v39  ;;  %v9318_v39 = vld [vmem:[#allocation3 + $0x21] sm:$0xff] }
 0x3fd   : > { %v3751_v26 = vadd.f32 %v3732_v17, %v3621_v36  ;;  %v3862_v50 = vpop.f32.mrf.mxu3  ;;  %v4166_v30 = vrot.slane %v4165_v27, 1  ;;  %v4179_v14 = vmax.f32 %v4177_v34, %v4178_v22  ;;  %v4186_v38 = vmax.f32 %v4184_v40, %v4185_v48  ;;  %v3604_v41 = vpop.f32.mrf.mxu1 }
 0x3fe   : > { %v4173_v23 = vrot.slane %v4172_v42, 1  ;;  %v4305_v55 = vsel %vm2597_vm7, %v4160_v12, %v4304_v35  ;;  %v3935_v54 = vmax.f32 %v3919_v31, 0.0  ;;  %v3622_v18 = vadd.f32 %v3604_v41, %v3491_v49  ;;  %v7718_v49 = vld [vmem:[%s9555_s7 + $0xb0] sm:$0xff] }
 0x3ff   : > { %v3881_v46 = vadd.f32 %v3862_v50, %v3751_v26  ;;  %v4167_v60 = vmax.f32 %v4165_v27, %v4166_v30  ;;  %v4180_v61 = vrot.slane %v4179_v14, 1  ;;  %v4187_v63 = vrot.slane %v4186_v38, 1 }
 0x400   : > { %v4174_v45 = vmax.f32 %v4172_v42, %v4173_v23  ;;  %v3900_v20 = vmul.f32 %v9107_v8, %v3880_v52  ;;  %v3958_v10 = vsel %vm3939_vm12, %v3935_v54, -inf  ;;  %v7168_v32 = vor.u32 %v7740_v4, %v7165_v3  ;;  %v7726_v54 = vld [vmem:[%s9555_s7 + $0xf0] sm:$0xff]  ;;  %v7721_v4 = vld [vmem:[%s9555_s7 + $0xc8] sm:$0xff] }
 0x401   : > { %v3901_v7 = vmul.f32 %v9107_v8, %v3881_v46  ;;  %v4181_v37 = vmax.f32 %v4179_v14, %v4180_v61  ;;  %v4306_v56 = vsel %vm2599_vm8, %v4167_v60, %v4305_v55  ;;  %v4188_v16 = vmax.f32 %v4186_v38, %v4187_v63  ;;  %v7723_v60 = vld [vmem:[%s9555_s7 + $0xd8] sm:$0xff]  ;;  %v7722_v55 = vld [vmem:[%s9555_s7 + $0xd0] sm:$0xff] }
 0x402   : > { %v4307_v29 = vsel %vm2601_vm9, %v4174_v45, %v4306_v56  ;;  %v3920_v24 = vadd.f32 %v9114_v33, %v3900_v20  ;;  %5301 = vmatpush.bf16.msrb.mxu0 %v7168_v32  ;;  %v7727_v61 = vld [vmem:[%s9555_s7 + $0xf8] sm:$0xff]  ;;  %4775 = vmatpush.bf16.msrb.mxu1 %v7723_v60 }
 0x403   : > { %v3921_v2 = vadd.f32 %v9114_v33, %v3901_v7  ;;  %v4308_v53 = vsel %vm2603_vm10, %v4181_v37, %v4307_v29  ;;  %4843 = vmatpush.bf16.msrb.mxu2 %v7727_v61 }
 0x404   : > { %v3734_v5 = vpop.f32.mrf.mxu2  ;;  %v4309_v9 = vsel %vm2605_vm11, %v4188_v16, %v4308_v53  ;;  %v3936_v59 = vmax.f32 %v3920_v24, 0.0 }
 0x405   : > { %v3937_v58 = vmax.f32 %v3921_v2, 0.0  ;;  %v3752_v1 = vadd.f32 %v3734_v5, %v3622_v18  ;;  %v3864_v47 = vpop.f32.mrf.mxu3  ;;  %4324 = vst.msk [vmem:[#allocation3 + $0x31] sm:$0xff] %vm3939_vm12, %v4309_v9 }
 0x406   : > { %v3961_v23 = vsel %vm3939_vm12, %v3936_v59, -inf  ;;  %4776 = vmatpush.bf16.msrb.mxu1 %v7722_v55  ;;  %v4455_v55 = vld [vmem:[#allocation3 + $0x22] sm:$0xff] }
 0x407   : > { %v3959_v13 = vsel %vm3939_vm12, %v3937_v58, -inf  ;;  %v3882_v51 = vadd.f32 %v3864_v47, %v3752_v1  ;;  %v7717_v47 = vld [vmem:[%s9555_s7 + $0xa8] sm:$0xff]  ;;  %4844 = vmatpush.bf16.msrb.mxu2 %v7726_v54 }
 0x408   : > { %v3960_v25 = vmax.f32 %v3958_v10, %v3959_v13 }
 0x409   : > { %v3902_v34 = vmul.f32 %v9107_v8, %v3882_v51  ;;  %v7725_v51 = vld [vmem:[%s9555_s7 + $0xe8] sm:$0xff] }
 0x40a   : > { %v3990_v40 = vrot.slane %v3960_v25, 2  ;;  %v3991_v44 = vrot.slane %v3960_v25, 4  ;;  %v3992_v11 = vrot.slane %v3960_v25, 6  ;;  %v4189_v43 = vsel %vm4020_vm13, %v3960_v25, -inf  ;;  %4777 = vmatpush.bf16.msrb.mxu1 %v7721_v4 }
 0x40b   : > { %v4190_v36 = vrot.slane %v4189_v43, 4  ;;  %v3922_v57 = vadd.f32 %v9114_v33, %v3902_v34  ;;  %4845 = vmatpush.bf16.msrb.mxu2 %v7725_v51 }
 0x40c   : > { %v4196_v27 = vsel %vm4020_vm13, %v3990_v40, -inf  ;;  %v4203_v22 = vsel %vm4020_vm13, %v3991_v44, -inf  ;;  %v4210_v48 = vsel %vm4020_vm13, %v3992_v11, -inf  ;;  %v9320_v42 = vld [vmem:[#allocation3 + $0x31] sm:$0xff]  ;;  %v4453_v11 = vld [vmem:[#allocation3 + $0x2] sm:$0xff] }
 0x40d   : > { %v4191_v19 = vmax.f32 %v4189_v43, %v4190_v36  ;;  %v4197_v17 = vrot.slane %v4196_v27, 4  ;;  %v4204_v62 = vrot.slane %v4203_v22, 4  ;;  %v4211_v8 = vrot.slane %v4210_v48, 4  ;;  %v9322_v31 = vld [vmem:[#allocation3 + $0x30] sm:$0xff] }
 0x40e   : > { %v3938_v26 = vmax.f32 %v3922_v57, 0.0  ;;  %v9326_v33 = vpack.c.bf16 %v9320_v42, %v9318_v39  ;;  %v9330_v50 = vpack.c.bf16 %v9322_v31, %v9251_v15  ;;  %v7719_v15 = vld [vmem:[%s9555_s7 + $0xb8] sm:$0xff]  ;;  %v9369_v43 = vld [vmem:[#allocation3 + $0x12] sm:$0xff] }
 0x40f   : > { %v4192_v35 = vrot.slane %v4191_v19, 2  ;;  %v4198_v30 = vmax.f32 %v4196_v27, %v4197_v17  ;;  %v4205_v14 = vmax.f32 %v4203_v22, %v4204_v62  ;;  %v4212_v38 = vmax.f32 %v4210_v48, %v4211_v8  ;;  %v7716_v27 = vld [vmem:[%s9555_s7 + $0xa0] sm:$0xff] }
 0x410   : > { %v3962_v12 = vsel %vm3939_vm12, %v3938_v26, -inf  ;;  %6864 = vmatmul.msk.bf16.vlgmr.msrb.gmra.mxu3 %vm3939_vm12, %v9326_v33  ;;  %6882 = vmatmul.msk.bf16.gmra.mxu2 %vm3939_vm12, %v9330_v50  ;;  %v7720_v22 = vld [vmem:[%s9555_s7 + $0xc0] sm:$0xff]  ;;  %v4457_v8 = vpack.c.bf16 %v9369_v43, %v4453_v11  ;;  %v4593_v26 = vpack.c.bf16 %v9318_v39, %v9201_v0 }
 0x411   : > { %v4193_v46 = vmax.f32 %v4191_v19, %v4192_v35  ;;  %v4199_v6 = vrot.slane %v4198_v30, 2  ;;  %v4206_v21 = vrot.slane %v4205_v14, 2  ;;  %v3963_v63 = vmax.f32 %v3961_v23, %v3962_v12  ;;  %4706 = vmatpush.bf16.msrb.mxu3 %v7719_v15  ;;  %v7724_v35 = vld [vmem:[%s9555_s7 + $0xe0] sm:$0xff]  ;;  %4778 = vmatpush.bf16.msrb.mxu1 %v7720_v22 }
 0x412   : > { %v4213_v28 = vrot.slane %v4212_v38, 2  ;;  %4846 = vmatpush.bf16.msrb.mxu2 %v7724_v35  ;;  %v7747_v35 = vld [vmem:[#allocation6 + $0x74] sm:$0xf0] }
 0x413   : > { %v4200_v52 = vmax.f32 %v4198_v30, %v4199_v6  ;;  %v4207_v41 = vmax.f32 %v4205_v14, %v4206_v21  ;;  %v3993_v45 = vrot.slane %v3963_v63, 2  ;;  %v3994_v7 = vrot.slane %v3963_v63, 4 }
 0x414   : > { %v3995_v37 = vrot.slane %v3963_v63, 6  ;;  %v4217_v56 = vsel %vm4020_vm13, %v3963_v63, -inf  ;;  %v4194_v16 = vrot.slane %v4193_v46, 1  ;;  %v4214_v58 = vmax.f32 %v4212_v38, %v4213_v28 }
 0x415   : > { %v4201_v29 = vrot.slane %v4200_v52, 1  ;;  %v4208_v18 = vrot.slane %v4207_v41, 1  ;;  %v4218_v2 = vrot.slane %v4217_v56, 4  ;;  %v4224_v53 = vsel %vm4020_vm13, %v3993_v45, -inf  ;;  %4707 = vmatpush.bf16.msrb.mxu3 %v7718_v49  ;;  %v4456_v49 = vld [vmem:[#allocation3 + $0x32] sm:$0xff] }
 0x416   : > { %v4231_v20 = vsel %vm4020_vm13, %v3994_v7, -inf  ;;  %v4238_v5 = vsel %vm4020_vm13, %v3995_v37, -inf  ;;  %v4225_v1 = vrot.slane %v4224_v53, 4  ;;  %v4195_v32 = vmax.f32 %v4193_v46, %v4194_v16  ;;  %v7738_v37 = vld [vmem:[#allocation6 + $0x34] sm:$0xf] }
 0x417   : > { %v4202_v9 = vmax.f32 %v4200_v52, %v4201_v29  ;;  %v4219_v3 = vmax.f32 %v4217_v56, %v4218_v2  ;;  %v4232_v10 = vrot.slane %v4231_v20, 4  ;;  %v4239_v13 = vrot.slane %v4238_v5, 4  ;;  %v7157_v29 = vld [vmem:[#allocation6 + $0x38] sm:$0xf0] }
 0x418   : > { %v4226_v24 = vmax.f32 %v4224_v53, %v4225_v1  ;;  %v4209_v25 = vmax.f32 %v4207_v41, %v4208_v18  ;;  %v4215_v36 = vrot.slane %v4214_v58, 1  ;;  %v4458_v56 = vpack.c.bf16 %v4456_v49, %v4455_v55  ;;  %v7731_v2 = vld [vmem:[%s9555_s7 + $0x118] sm:$0xff]  ;;  %v7728_v53 = vld [vmem:[%s9555_s7 + $0x100] sm:$0xff] }
 0x419   : > { %v4220_v34 = vrot.slane %v4219_v3, 2  ;;  %v4233_v40 = vmax.f32 %v4231_v20, %v4232_v10  ;;  %v4240_v44 = vmax.f32 %v4238_v5, %v4239_v13  ;;  %v4310_v57 = vsel %vm2593_vm5, %v4202_v9, %v4195_v32  ;;  %4708 = vmatpush.bf16.msrb.mxu3 %v7717_v47  ;;  %v4729_v9 = vld [vmem:[#allocation3 + $0x50] sm:$0xff] }
 0x41a   : > { %v4227_v59 = vrot.slane %v4226_v24, 2  ;;  %v4311_v30 = vsel %vm2595_vm6, %v4209_v25, %v4310_v57  ;;  %v4216_v23 = vmax.f32 %v4214_v58, %v4215_v36  ;;  %v7160_v18 = vor.u32 %v7738_v37, %v7157_v29  ;;  %v4797_v58 = vld [vmem:[#allocation3 + $0x51] sm:$0xff]  ;;  %v7149_v10 = vld [vmem:[#allocation6 + $0x28] sm:$0xf0] }
 0x41b   : > { %v4221_v48 = vmax.f32 %v4219_v3, %v4220_v34  ;;  %v4234_v19 = vrot.slane %v4233_v40, 2  ;;  %v4241_v17 = vrot.slane %v4240_v44, 2  ;;  %v4661_v20 = vpack.c.bf16 %v4455_v55, %v9369_v43  ;;  %v7736_v3 = vld [vmem:[#allocation6 + $0x24] sm:$0xf]  ;;  %v7115_v55 = vld [vmem:[#allocation6 + $0xe0] sm:$0xf] }
 0x41c   : > { %v4228_v62 = vmax.f32 %v4226_v24, %v4227_v59  ;;  %v4312_v0 = vsel %vm2597_vm7, %v4216_v23, %v4311_v30  ;;  %5302 = vmatpush.bf16.msrb.mxu0 %v7160_v18  ;;  %v7152_v13 = vor.u32 %v7736_v3, %v7149_v10  ;;  %v7734_v59 = vld [vmem:[#allocation6 + $0x14] sm:$0xf]  ;;  %v7745_v23 = vld [vmem:[#allocation6 + $0x64] sm:$0xf0] }
 0x41d   : > { %v4222_v14 = vrot.slane %v4221_v48, 1  ;;  %v4235_v38 = vmax.f32 %v4233_v40, %v4234_v19  ;;  %v4242_v12 = vmax.f32 %v4240_v44, %v4241_v17  ;;  %4709 = vmatpush.bf16.msrb.mxu3 %v7716_v27  ;;  %v7141_v27 = vld [vmem:[#allocation6 + $0x18] sm:$0xf0] }
 0x41e   : > { %v4229_v46 = vrot.slane %v4228_v62, 1  ;;  %v7144_v22 = vor.u32 %v7734_v59, %v7141_v27  ;;  %v7101_v27 = vld [vmem:[#allocation6 + $0xc8] sm:$0xf0] }
 0x41f   : > { %v4223_v6 = vmax.f32 %v4221_v48, %v4222_v14  ;;  %v4236_v21 = vrot.slane %v4235_v38, 1  ;;  %v4243_v15 = vrot.slane %v4242_v12, 1 }
 0x420   : > { %6907 = vmatmul.msk.bf16.vlgmr.msra.gmra.mxu3 %vm3939_vm12, %v4457_v8  ;;  %6959 = vmatmul.msk.bf16.vlgmr.msra.gmra.mxu2 %vm3939_vm12, %v4593_v26  ;;  %v4230_v39 = vmax.f32 %v4228_v62, %v4229_v46  ;;  %v7187_v26 = vld [vmem:[#allocation6 + $0x70] sm:$0xf] }
 0x421   : > { %v4237_v60 = vmax.f32 %v4235_v38, %v4236_v21  ;;  %v4313_v61 = vsel %vm2599_vm8, %v4223_v6, %v4312_v0  ;;  %v4244_v63 = vmax.f32 %v4242_v12, %v4243_v15  ;;  %4911 = vmatpush.bf16.msra.mxu3 %v7731_v2  ;;  %5303 = vmatpush.bf16.msrb.mxu0 %v7152_v13  ;;  %v7179_v12 = vld [vmem:[#allocation6 + $0x60] sm:$0xf]  ;;  %v7123_v21 = vld [vmem:[#allocation6 + $0xf0] sm:$0xf]  ;;  %v7763_v15 = vld [vmem:[#allocation6 + $0xf4] sm:$0xf0] }
 0x422   : > { %v4314_v52 = vsel %vm2601_vm9, %v4230_v39, %v4313_v61  ;;  %v7188_v30 = vor.u32 %v7747_v35, %v7187_v26  ;;  %v7180_v46 = vor.u32 %v7745_v23, %v7179_v12  ;;  %v7762_v0 = vld [vmem:[#allocation6 + $0xf4] sm:$0xf]  ;;  %v7124_v39 = vor.u32 %v7763_v15, %v7123_v21  ;;  %v7171_v61 = vld [vmem:[#allocation6 + $0x50] sm:$0xf]  ;;  %v7099_v13 = vld [vmem:[#allocation6 + $0xc0] sm:$0xf] }
 0x423   : > { %v4315_v41 = vsel %vm2603_vm10, %v4237_v60, %v4314_v52  ;;  %v7125_v60 = vld [vmem:[#allocation6 + $0xf8] sm:$0xf0]  ;;  %v7737_v35 = vld [vmem:[#allocation6 + $0x24] sm:$0xf0]  ;;  %v7091_v23 = vld [vmem:[#allocation6 + $0xb0] sm:$0xf] }
 0x424   : > { %v4316_v28 = vsel %vm2605_vm11, %v4244_v63, %v4315_v41  ;;  %v7743_v63 = vld [vmem:[#allocation6 + $0x54] sm:$0xf0]  ;;  %v7128_v41 = vor.u32 %v7762_v0, %v7125_v60  ;;  %5179 = vmatpush.bf16.msra.mxu1 %v7124_v39  ;;  %v7754_v21 = vld [vmem:[#allocation6 + $0xb4] sm:$0xf] }
 0x425   : > { %4325 = vst.msk [vmem:[#allocation3 + $0x41] sm:$0xff] %vm3939_vm12, %v4316_v28  ;;  %5304 = vmatpush.bf16.msrb.mxu0 %v7144_v22  ;;  %v7172_v28 = vor.u32 %v7743_v63, %v7171_v61  ;;  %v7147_v22 = vld [vmem:[#allocation6 + $0x20] sm:$0xf]  ;;  %v7735_v0 = vld [vmem:[#allocation6 + $0x14] sm:$0xf0] }
 0x426   : > { %5192 = vmatpush.bf16.msra.mxu2 %v7128_v41  ;;  %v7148_v12 = vor.u32 %v7737_v35, %v7147_v22 }
 0x42c   : > { %v4524_v45 = vld [vmem:[#allocation3 + $0x40] sm:$0xff] }
 0x42d   : > { %v4592_v7 = vld [vmem:[#allocation3 + $0x41] sm:$0xff]  ;;  %v4526_v54 = vpack.c.bf16 %v4524_v45, %v9322_v31  ;;  %v7730_v31 = vld [vmem:[%s9555_s7 + $0x110] sm:$0xff]  ;;  %v4731_v47 = vpack.c.bf16 %v4729_v9, %v4524_v45  ;;  %v7761_v45 = vld [vmem:[#allocation6 + $0xe4] sm:$0xf0] }
 0x42e   : > { %v4594_v16 = vpack.c.bf16 %v4592_v7, %v9320_v42  ;;  %4912 = vmatpush.bf16.msra.mxu3 %v7730_v31  ;;  %v7729_v42 = vld [vmem:[%s9555_s7 + $0x108] sm:$0xff]  ;;  %v4660_v5 = vld [vmem:[#allocation3 + $0x42] sm:$0xff]  ;;  %v4799_v4 = vpack.c.bf16 %v4797_v58, %v4592_v7  ;;  %v7116_v37 = vor.u32 %v7761_v45, %v7115_v55  ;;  %v7109_v58 = vld [vmem:[#allocation6 + $0xd8] sm:$0xf0] }
 0x42f   : > { %6934 = vmatmul.msk.bf16.gmra.mxu1 %vm3939_vm12, %v4526_v54  ;;  %v4662_v1 = vpack.c.bf16 %v4660_v5, %v4456_v49  ;;  %v7760_v7 = vld [vmem:[#allocation6 + $0xe4] sm:$0xf]  ;;  %v7163_v54 = vld [vmem:[#allocation6 + $0x40] sm:$0xf]  ;;  %v7753_v55 = vld [vmem:[#allocation6 + $0xa4] sm:$0xf0] }
 0x430   : > { %6908 = vmatmul.msk.bf16.gmra.mxu3 %vm3939_vm12, %v4458_v56  ;;  %6960 = vmatmul.msk.bf16.gmra.mxu2 %vm3939_vm12, %v4594_v16  ;;  %v7741_v16 = vld [vmem:[#allocation6 + $0x44] sm:$0xf0]  ;;  %v7752_v45 = vld [vmem:[#allocation6 + $0xa4] sm:$0xf] }
 0x431   : > { %v7164_v18 = vor.u32 %v7741_v16, %v7163_v54  ;;  %5180 = vmatpush.bf16.msra.mxu1 %v7116_v37  ;;  %v7085_v37 = vld [vmem:[#allocation6 + $0xa8] sm:$0xf0]  ;;  %v7733_v54 = vld [vmem:[#allocation6 + $0x4] sm:$0xf0] }
 0x432   : > { %4913 = vmatpush.bf16.msra.mxu3 %v7729_v42  ;;  %v7107_v42 = vld [vmem:[#allocation6 + $0xd0] sm:$0xf]  ;;  %v7088_v16 = vor.u32 %v7752_v45, %v7085_v37  ;;  %v7791_v45 = vld [vmem:[#allocation6 + $0x1d4] sm:$0xf0]  ;;  %v7301_v37 = vld [vmem:[#allocation6 + $0x1d8] sm:$0xf0] }
 0x436   : > { %4914 = vmatpush.bf16.msra.mxu3 %v7728_v53  ;;  %v7759_v53 = vld [vmem:[#allocation6 + $0xd4] sm:$0xf0] }
 0x437   : > { %v7108_v9 = vor.u32 %v7759_v53, %v7107_v42 }
 0x439   : > { %5181 = vmatpush.bf16.msra.mxu1 %v7108_v9  ;;  %v7795_v9 = vld [vmem:[#allocation6 + $0x1f4] sm:$0xf0] }
 0x43f   : > { %7011 = vmatmul.msk.bf16.vlgmr.msrb.gmra.mxu1 %vm3939_vm12, %v9330_v50  ;;  %v4865_v50 = vld [vmem:[#allocation3 + $0x52] sm:$0xff] }
 0x440   : > { %6985 = vmatmul.msk.bf16.vlgmr.msrb.gmra.mxu3 %vm3939_vm12, %v4661_v20  ;;  %7037 = vmatmul.msk.bf16.vlgmr.msrb.gmra.mxu2 %vm3939_vm12, %v9326_v33  ;;  %v4867_v33 = vpack.c.bf16 %v4865_v50, %v4660_v5  ;;  %v7758_v20 = vld [vmem:[#allocation6 + $0xd4] sm:$0xf]  ;;  %v7757_v50 = vld [vmem:[#allocation6 + $0xc4] sm:$0xf0] }
 0x441   : > { %5285 = vmatpush.bf16.msrb.mxu3 %v7188_v30  ;;  %v7112_v3 = vor.u32 %v7758_v20, %v7109_v58  ;;  %v7100_v59 = vor.u32 %v7757_v50, %v7099_v13  ;;  %v7077_v50 = vld [vmem:[#allocation6 + $0x98] sm:$0xf0] }
 0x443   : > { %5182 = vmatpush.bf16.msra.mxu1 %v7100_v59  ;;  %v7792_v59 = vld [vmem:[#allocation6 + $0x1e4] sm:$0xf] }
 0x445   : > { %5286 = vmatpush.bf16.msrb.mxu3 %v7180_v46  ;;  %v7755_v46 = vld [vmem:[#allocation6 + $0xb4] sm:$0xf0] }
 0x449   : > { %5287 = vmatpush.bf16.msrb.mxu3 %v7172_v28  ;;  %v7083_v28 = vld [vmem:[#allocation6 + $0xa0] sm:$0xf] }
 0x44d   : > { %v4394_v34 = vpop.f32.mrf.mxu1  ;;  %5288 = vmatpush.bf16.msrb.mxu3 %v7164_v18  ;;  %v7732_v18 = vld [vmem:[#allocation6 + $0x4] sm:$0xf] }
 0x44f   : > { %7012 = vmatmul.msk.bf16.gmra.mxu1 %vm3939_vm12, %v4731_v47  ;;  %v7739_v47 = vld [vmem:[#allocation6 + $0x34] sm:$0xf0] }
 0x450   : > { %6986 = vmatmul.msk.bf16.gmra.mxu3 %vm3939_vm12, %v4662_v1  ;;  %7038 = vmatmul.msk.bf16.gmra.mxu2 %vm3939_vm12, %v4799_v4  ;;  %v7155_v1 = vld [vmem:[#allocation6 + $0x30] sm:$0xf] }
 0x451   : > { %v7156_v10 = vor.u32 %v7739_v47, %v7155_v1  ;;  %v7075_v47 = vld [vmem:[#allocation6 + $0x90] sm:$0xf] }
 0x453   : > { %v4443_v51 = vpop.f32.mrf.mxu2  ;;  %5289 = vmatpush.bf16.msrb.mxu3 %v7156_v10  ;;  %v7750_v10 = vld [vmem:[#allocation6 + $0x94] sm:$0xf] }
 0x454   : > { %v4444_v2 = vadd.f32 %v4443_v51, %v4394_v34 }
 0x455   : > { %v9429_v11 = vpop.f32.mrf.mxu1 }
 0x457   : > { %5290 = vmatpush.bf16.msrb.mxu3 %v7148_v12 }
 0x45b   : > { %v9423_v24 = vpop.f32.mrf.mxu2 }
 0x45c   : > { %v4446_v51 = vadd.f32 %v9423_v24, %v9429_v11  ;;  %v7092_v24 = vor.u32 %v7755_v46, %v7091_v23  ;;  %v7093_v11 = vld [vmem:[#allocation6 + $0xb8] sm:$0xf0]  ;;  %v7067_v23 = vld [vmem:[#allocation6 + $0x80] sm:$0xf]  ;;  %v7749_v46 = vld [vmem:[#allocation6 + $0x84] sm:$0xf0] }
 0x45d   : > { %v7096_v61 = vor.u32 %v7754_v21, %v7093_v11  ;;  %v7748_v21 = vld [vmem:[#allocation6 + $0x84] sm:$0xf]  ;;  %v7068_v11 = vor.u32 %v7749_v46, %v7067_v23 }
 0x45e   : > { %5183 = vmatpush.bf16.msra.mxu1 %v7092_v24 }
 0x460   : > { %7063 = vmatmul.msk.bf16.vlgmr.msra.gmra.mxu3 %vm3939_vm12, %v4458_v56  ;;  %v7117_v56 = vld [vmem:[#allocation6 + $0xe8] sm:$0xf0] }
 0x461   : > { %v7120_v29 = vor.u32 %v7760_v7, %v7117_v56  ;;  %v7084_v7 = vor.u32 %v7753_v55, %v7083_v28  ;;  %v7131_v56 = vld [vmem:[#allocation6] sm:$0xf] }
 0x462   : > { %v5046_v28 = vld [vmem:[#allocation4] sm:$0xf] }
 0x463   : > { %5193 = vmatpush.bf16.msra.mxu2 %v7120_v29  ;;  %v7132_v29 = vor.u32 %v7733_v54, %v7131_v56  ;;  %5184 = vmatpush.bf16.msra.mxu1 %v7084_v7  ;;  %5050 = vst [vmem:[#allocation1] ss:$2 sm:$0xff] %v5046_v28 }
 0x467   : > { %5194 = vmatpush.bf16.msra.mxu2 %v7112_v3  ;;  %v7751_v3 = vld [vmem:[#allocation6 + $0x94] sm:$0xf0] }
 0x46d   : > { %v9435_v57 = vpop.f32.mrf.mxu1 }
 0x470   : > { %7064 = vmatmul.msk.bf16.gmra.mxu3 %vm3939_vm12, %v4867_v33  ;;  %v7756_v33 = vld [vmem:[#allocation6 + $0xc4] sm:$0xf] }
 0x471   : > { %v7104_v26 = vor.u32 %v7756_v33, %v7101_v27  ;;  %v7793_v33 = vld [vmem:[#allocation6 + $0x1e4] sm:$0xf0]  ;;  %v7309_v27 = vld [vmem:[#allocation6 + $0x1e8] sm:$0xf0] }
 0x472   : > { %v7312_v35 = vor.u32 %v7792_v59, %v7309_v27  ;;  %v7787_v59 = vld [vmem:[#allocation6 + $0x1b4] sm:$0xf0] }
 0x473   : > { %5195 = vmatpush.bf16.msra.mxu2 %v7104_v26 }
 0x475   : > { %v9441_v17 = vpop.f32.mrf.mxu1 }
 0x477   : > { %5196 = vmatpush.bf16.msra.mxu2 %v7096_v61 }
 0x47b   : > { %5197 = vmatpush.bf16.msra.mxu2 %v7088_v16 }
 0x493   : > { %v9421_v32 = vpop.f32.mrf.mxu3  ;;  %v9427_v40 = vpop.f32.mrf.mxu2 }
 0x49b   : > { %v9425_v25 = vpop.f32.mrf.mxu3  ;;  %v9431_v43 = vpop.f32.mrf.mxu2 }
 0x4a3   : > { %v4507_v44 = vpop.f32.mrf.mxu3  ;;  %v9437_v48 = vpop.f32.mrf.mxu2 }
 0x4a4   : > { %v4517_v5 = vadd.f32 %v4507_v44, %v4444_v2  ;;  %v7133_v2 = vld [vmem:[#allocation6 + $0x8] sm:$0xf0] }
 0x4a6   : > { %v4585_v34 = vadd.f32 %v9435_v57, %v4517_v5  ;;  %v7139_v57 = vld [vmem:[#allocation6 + $0x10] sm:$0xf]  ;;  %v7136_v5 = vor.u32 %v7732_v18, %v7133_v2  ;;  %v7243_v18 = vld [vmem:[#allocation6 + $0x160] sm:$0xf]  ;;  %v7777_v2 = vld [vmem:[#allocation6 + $0x164] sm:$0xf0] }
 0x4a7   : > { %v7140_v63 = vor.u32 %v7735_v0, %v7139_v57  ;;  %v7251_v57 = vld [vmem:[#allocation6 + $0x170] sm:$0xf]  ;;  %v7779_v0 = vld [vmem:[#allocation6 + $0x174] sm:$0xf0] }
 0x4a8   : > { %v4653_v15 = vadd.f32 %v9437_v48, %v4585_v34  ;;  %v4449_v48 = vadd.f32 %v9427_v40, %v9421_v32  ;;  %v7794_v32 = vld [vmem:[#allocation6 + $0x1f4] sm:$0xf]  ;;  %v7317_v40 = vld [vmem:[#allocation6 + $0x1f8] sm:$0xf0]  ;;  %5305 = vmatpush.bf16.msrb.mxu0 %v7136_v5  ;;  %v7080_v34 = vor.u32 %v7750_v10, %v7077_v50  ;;  %v7291_v5 = vld [vmem:[#allocation6 + $0x1c0] sm:$0xf] }
 0x4a9   : > { %5291 = vmatpush.bf16.msrb.mxu3 %v7140_v63  ;;  %v7320_v1 = vor.u32 %v7794_v32, %v7317_v40  ;;  %v7252_v63 = vor.u32 %v7779_v0, %v7251_v57  ;;  %v7789_v32 = vld [vmem:[#allocation6 + $0x1c4] sm:$0xf0]  ;;  %v7788_v40 = vld [vmem:[#allocation6 + $0x1c4] sm:$0xf]  ;;  %v7774_v50 = vld [vmem:[#allocation6 + $0x154] sm:$0xf] }
 0x4aa   : > { %5198 = vmatpush.bf16.msra.mxu2 %v7080_v34  ;;  %v7237_v34 = vld [vmem:[#allocation6 + $0x158] sm:$0xf0]  ;;  %v7772_v57 = vld [vmem:[#allocation6 + $0x144] sm:$0xf]  ;;  %v7229_v0 = vld [vmem:[#allocation6 + $0x148] sm:$0xf0] }
 0x4ab   : > { %v9433_v36 = vpop.f32.mrf.mxu3  ;;  %v9445_v8 = vpop.f32.mrf.mxu2 }
 0x4ac   : > { %v9447_v14 = vpop.f32.mrf.mxu1  ;;  %v4518_v30 = vadd.f32 %v9433_v36, %v4446_v51  ;;  %5566 = vmatpush.bf16.msra.mxu0 %v7320_v1  ;;  %v7292_v1 = vor.u32 %v7789_v32, %v7291_v5  ;;  %v7221_v32 = vld [vmem:[#allocation6 + $0x138] sm:$0xf0] }
 0x4ad   : > { %5292 = vmatpush.bf16.msrb.mxu3 %v7132_v29 }
 0x4ae   : > { %v4586_v36 = vadd.f32 %v9441_v17, %v4518_v30  ;;  %v7315_v17 = vld [vmem:[#allocation6 + $0x1f0] sm:$0xf]  ;;  %v4451_v30 = vadd.f32 %v9431_v43, %v9425_v25 }
 0x4af   : > { %v7316_v58 = vor.u32 %v7795_v9, %v7315_v17  ;;  %v7299_v25 = vld [vmem:[#allocation6 + $0x1d0] sm:$0xf] }
 0x4b0   : > { %5567 = vmatpush.bf16.msra.mxu0 %v7312_v35  ;;  %v7300_v7 = vor.u32 %v7791_v45, %v7299_v25  ;;  %v7786_v35 = vld [vmem:[#allocation6 + $0x1b4] sm:$0xf]  ;;  %v7784_v25 = vld [vmem:[#allocation6 + $0x1a4] sm:$0xf] }
 0x4b1   : > { %5553 = vmatpush.bf16.msra.mxu3 %v7316_v58  ;;  %v7293_v58 = vld [vmem:[#allocation6 + $0x1c8] sm:$0xf0] }
 0x4b3   : > { %v9439_v19 = vpop.f32.mrf.mxu3  ;;  %v9451_v6 = vpop.f32.mrf.mxu2 }
 0x4b4   : > { %v9455_v49 = vpop.f32.mrf.mxu1  ;;  %v4519_v42 = vadd.f32 %v9439_v19, %v4449_v48  ;;  %v7307_v19 = vld [vmem:[#allocation6 + $0x1e0] sm:$0xf]  ;;  %v7790_v48 = vld [vmem:[#allocation6 + $0x1d4] sm:$0xf] }
 0x4b5   : > { %v7304_v29 = vor.u32 %v7790_v48, %v7301_v37 }
 0x4b6   : > { %v4587_v22 = vadd.f32 %v9447_v14, %v4519_v42  ;;  %v7069_v14 = vld [vmem:[#allocation6 + $0x88] sm:$0xf0]  ;;  %v7244_v42 = vor.u32 %v7777_v2, %v7243_v18 }
 0x4b7   : > { %v7072_v61 = vor.u32 %v7748_v21, %v7069_v14  ;;  %5568 = vmatpush.bf16.msra.mxu0 %v7304_v29  ;;  %v7771_v29 = vld [vmem:[#allocation6 + $0x134] sm:$0xf0] }
 0x4b8   : > { %v4655_v43 = vadd.f32 %v9451_v6, %v4587_v22  ;;  %v9490_v6 = vld [vmem:[%s9557_s9] ss:$0 sm:$0xff]  ;;  %v7240_v22 = vor.u32 %v7774_v50, %v7237_v34 }
 0x4b9   : > { %5199 = vmatpush.bf16.msra.mxu2 %v7072_v61 }
 0x4bb   : > { %v9443_v62 = vpop.f32.mrf.mxu3  ;;  %v9457_v31 = vpop.f32.mrf.mxu2 }
 0x4bc   : > { %v4780_v44 = vpop.f32.mrf.mxu1 }
 0x4c3   : > { %v9449_v38 = vpop.f32.mrf.mxu3  ;;  %v4848_v39 = vpop.f32.mrf.mxu2 }
 0x4c4   : > { %v4721_v41 = vadd.f32 %v9449_v38, %v4653_v15  ;;  %v4654_v38 = vadd.f32 %v9445_v8, %v4586_v36  ;;  %v4782_v20 = vpop.f32.mrf.mxu1  ;;  %v7076_v8 = vor.u32 %v7751_v3, %v7075_v47  ;;  %v7778_v36 = vld [vmem:[#allocation6 + $0x174] sm:$0xf]  ;;  %v7296_v47 = vor.u32 %v7788_v40, %v7293_v58 }
 0x4c6   : > { %v4790_v53 = vadd.f32 %v4780_v44, %v4721_v41  ;;  %v7308_v44 = vor.u32 %v7793_v33, %v7307_v19  ;;  %5185 = vmatpush.bf16.msra.mxu1 %v7076_v8  ;;  %v7253_v41 = vld [vmem:[#allocation6 + $0x178] sm:$0xf0]  ;;  %v7775_v8 = vld [vmem:[#allocation6 + $0x154] sm:$0xf0]  ;;  %5569 = vmatpush.bf16.msra.mxu0 %v7296_v47 }
 0x4c7   : > { %v7256_v55 = vor.u32 %v7778_v36, %v7253_v41  ;;  %v7785_v41 = vld [vmem:[#allocation6 + $0x1a4] sm:$0xf0]  ;;  %v7783_v47 = vld [vmem:[#allocation6 + $0x194] sm:$0xf0] }
 0x4c8   : > { %v4858_v26 = vadd.f32 %v4848_v39, %v4790_v53  ;;  %v4520_v39 = vadd.f32 %v9443_v62, %v4451_v30  ;;  %5554 = vmatpush.bf16.msra.mxu3 %v7308_v44  ;;  %v7776_v53 = vld [vmem:[#allocation6 + $0x164] sm:$0xf]  ;;  %v7283_v44 = vld [vmem:[#allocation6 + $0x1b0] sm:$0xf]  ;;  %v7285_v30 = vld [vmem:[#allocation6 + $0x1b8] sm:$0xf0] }
 0x4c9   : > { %5431 = vmatpush.bf16.msrb.mxu2 %v7256_v55  ;;  %v7288_v23 = vor.u32 %v7786_v35, %v7285_v30 }
 0x4ca   : > { %5186 = vmatpush.bf16.msra.mxu1 %v7068_v11  ;;  %v4588_v17 = vadd.f32 %v9455_v49, %v4520_v39  ;;  %v7275_v39 = vld [vmem:[#allocation6 + $0x1a0] sm:$0xf] }
 0x4cb   : > { %v9453_v52 = vpop.f32.mrf.mxu3  ;;  %v4850_v12 = vpop.f32.mrf.mxu2  ;;  %5570 = vmatpush.bf16.msra.mxu0 %v7288_v23  ;;  %v7276_v55 = vor.u32 %v7785_v41, %v7275_v39  ;;  %v7213_v23 = vld [vmem:[#allocation6 + $0x128] sm:$0xf0] }
 0x4cc   : > { %v4722_v13 = vadd.f32 %v9453_v52, %v4654_v38  ;;  %v9479_v52 = vld [vmem:[%s9556_s8] ss:$0 sm:$0xff]  ;;  %v4785_v56 = vpop.f32.mrf.mxu1  ;;  %5555 = vmatpush.bf16.msra.mxu3 %v7300_v7  ;;  %v4656_v19 = vadd.f32 %v9457_v31, %v4588_v17 }
 0x4ce   : > { %v4791_v15 = vadd.f32 %v4782_v20, %v4722_v13  ;;  %5418 = vmatpush.bf16.msrb.mxu1 %v7252_v63  ;;  %v7245_v20 = vld [vmem:[#allocation6 + $0x168] sm:$0xf0]  ;;  %v7235_v13 = vld [vmem:[#allocation6 + $0x150] sm:$0xf] }
 0x4cf   : > { %v7248_v9 = vor.u32 %v7776_v53, %v7245_v20 }
 0x4d0   : > { %v4859_v62 = vadd.f32 %v4850_v12, %v4791_v15  ;;  %5556 = vmatpush.bf16.msra.mxu3 %v7292_v1  ;;  %v7227_v15 = vld [vmem:[#allocation6 + $0x140] sm:$0xf]  ;;  %v7267_v1 = vld [vmem:[#allocation6 + $0x190] sm:$0xf] }
 0x4d1   : > { %5432 = vmatpush.bf16.msrb.mxu2 %v7248_v9 }
 0x4d2   : > { %5419 = vmatpush.bf16.msrb.mxu1 %v7244_v42  ;;  %v7770_v42 = vld [vmem:[#allocation6 + $0x134] sm:$0xf] }
 0x4d3   : > { %v9459_v4 = vpop.f32.mrf.mxu3  ;;  %v4853_v33 = vpop.f32.mrf.mxu2  ;;  %v7224_v58 = vor.u32 %v7770_v42, %v7221_v32  ;;  %v7197_v42 = vld [vmem:[#allocation6 + $0x108] sm:$0xf0] }
 0x4d4   : > { %v4723_v54 = vadd.f32 %v9459_v4, %v4655_v43  ;;  %v4787_v61 = vpop.f32.mrf.mxu1  ;;  %v7277_v43 = vld [vmem:[#allocation6 + $0x1a8] sm:$0xf0] }
 0x4d5   : > { %5433 = vmatpush.bf16.msrb.mxu2 %v7240_v22  ;;  %v7280_v45 = vor.u32 %v7784_v25, %v7277_v43  ;;  %v7768_v22 = vld [vmem:[#allocation6 + $0x124] sm:$0xf]  ;;  %v7203_v43 = vld [vmem:[#allocation6 + $0x110] sm:$0xf] }
 0x4d6   : > { %v4792_v3 = vadd.f32 %v4785_v56, %v4723_v54  ;;  %v7219_v56 = vld [vmem:[#allocation6 + $0x130] sm:$0xf] }
 0x4d7   : > { %5571 = vmatpush.bf16.msra.mxu0 %v7280_v45  ;;  %v7767_v45 = vld [vmem:[#allocation6 + $0x114] sm:$0xf0] }
 0x4d8   : > { %v4860_v46 = vadd.f32 %v4853_v33, %v4792_v3  ;;  %v7782_v3 = vld [vmem:[#allocation6 + $0x194] sm:$0xf]  ;;  %v7211_v33 = vld [vmem:[#allocation6 + $0x120] sm:$0xf] }
 0x4db   : > { %v9466_v60 = vpop.f32.mrf.mxu3  ;;  %v4855_v53 = vpop.f32.mrf.mxu2 }
 0x4dc   : > { %v4724_v12 = vadd.f32 %v9466_v60, %v4656_v19  ;;  %v7232_v60 = vor.u32 %v7772_v57, %v7229_v0  ;;  %v7269_v19 = vld [vmem:[#allocation6 + $0x198] sm:$0xf0] }
 0x4de   : > { %v4793_v28 = vadd.f32 %v4787_v61, %v4724_v12  ;;  %5434 = vmatpush.bf16.msrb.mxu2 %v7232_v60  ;;  %v7261_v61 = vld [vmem:[#allocation6 + $0x188] sm:$0xf0] }
 0x4e0   : > { %v4861_v40 = vadd.f32 %v4855_v53, %v4793_v28 }
 0x4e2   : > { %5435 = vmatpush.bf16.msrb.mxu2 %v7224_v58 }
 0x4e3   : > { %v4916_v51 = vpop.f32.mrf.mxu3 }
 0x4e4   : > { %v4926_v24 = vadd.f32 %v4916_v51, %v4858_v26  ;;  %v7236_v51 = vor.u32 %v7775_v8, %v7235_v13  ;;  %v7284_v26 = vor.u32 %v7787_v59, %v7283_v44  ;;  %v7268_v44 = vor.u32 %v7783_v47, %v7267_v1 }
 0x4e5   : > { %v7272_v59 = vor.u32 %v7782_v3, %v7269_v19 }
 0x4e6   : > { %v4934_v16 = vmul.f32 %v9479_v52, %v4926_v24  ;;  %5420 = vmatpush.bf16.msrb.mxu1 %v7236_v51  ;;  %v7773_v24 = vld [vmem:[#allocation6 + $0x144] sm:$0xf0]  ;;  %5557 = vmatpush.bf16.msra.mxu3 %v7284_v26 }
 0x4e7   : > { %v7228_v14 = vor.u32 %v7773_v24, %v7227_v15  ;;  %5572 = vmatpush.bf16.msra.mxu0 %v7272_v59  ;;  %v7259_v15 = vld [vmem:[#allocation6 + $0x180] sm:$0xf]  ;;  %v7781_v24 = vld [vmem:[#allocation6 + $0x184] sm:$0xf0] }
 0x4e8   : > { %v4942_v10 = vadd.f32 %v9490_v6, %v4934_v16 }
 0x4ea   : > { %v4946_v31 = vmax.f32 %v4942_v10, 0.0  ;;  %5421 = vmatpush.bf16.msrb.mxu1 %v7228_v14  ;;  %5558 = vmatpush.bf16.msra.mxu3 %v7276_v55 }
 0x4eb   : > { %v4918_v38 = vpop.f32.mrf.mxu3 }
 0x4ec   : > { %v4927_v4 = vadd.f32 %v4918_v38, %v4859_v62  ;;  %v7220_v38 = vor.u32 %v7771_v29, %v7219_v56  ;;  %v7204_v56 = vor.u32 %v7767_v45, %v7203_v43  ;;  %v7195_v29 = vld [vmem:[#allocation6 + $0x100] sm:$0xf]  ;;  %v7824_v45 = vld [vmem:[#allocation6 + $0x2e4] sm:$0xf] }
 0x4ee   : > { %v4935_v49 = vmul.f32 %v9479_v52, %v4927_v4  ;;  %5422 = vmatpush.bf16.msrb.mxu1 %v7220_v38  ;;  %5559 = vmatpush.bf16.msra.mxu3 %v7268_v44  ;;  %v7764_v38 = vld [vmem:[#allocation6 + $0x104] sm:$0xf] }
 0x4ef   : > { %v7200_v58 = vor.u32 %v7764_v38, %v7197_v42  ;;  %v7429_v38 = vld [vmem:[#allocation6 + $0x2d8] sm:$0xf0] }
 0x4f0   : > { %v4943_v27 = vadd.f32 %v9490_v6, %v4935_v49 }
 0x4f2   : > { %v4947_v21 = vmax.f32 %v4943_v27, 0.0  ;;  %v7769_v27 = vld [vmem:[#allocation6 + $0x124] sm:$0xf0] }
 0x4f3   : > { %v4921_v11 = vpop.f32.mrf.mxu3 }
 0x4f4   : > { %v4950_v63 = vmax.f32 %v4946_v31, %v4947_v21  ;;  %v4928_v36 = vadd.f32 %v4921_v11, %v4860_v46  ;;  %v7212_v31 = vor.u32 %v7769_v27, %v7211_v33  ;;  %v7216_v21 = vor.u32 %v7768_v22, %v7213_v23  ;;  %v7780_v11 = vld [vmem:[#allocation6 + $0x184] sm:$0xf] }
 0x4f5   : > { %v7264_v60 = vor.u32 %v7780_v11, %v7261_v61  ;;  %v5072_v61 = vld [vmem:[#allocation4 + $0x1] sm:$0xf] }
 0x4f6   : > { %v4954_v48 = vrot.slane %v4950_v63, 2  ;;  %v4955_v7 = vrot.slane %v4950_v63, 4  ;;  %v4956_v37 = vrot.slane %v4950_v63, 6  ;;  %v4967_v62 = vsel %vm4966_vm14, %v4950_v63, -inf  ;;  %5423 = vmatpush.bf16.msrb.mxu1 %v7212_v31  ;;  %5436 = vmatpush.bf16.msrb.mxu2 %v7216_v21 }
 0x4f7   : > { %v4968_v54 = vrot.slane %v4967_v62, 4  ;;  %v4936_v16 = vmul.f32 %v9479_v52, %v4928_v36  ;;  %v7260_v36 = vor.u32 %v7781_v24, %v7259_v15  ;;  %5573 = vmatpush.bf16.msra.mxu0 %v7264_v60 }
 0x4f8   : > { %v4974_v18 = vsel %vm4966_vm14, %v4954_v48, -inf  ;;  %v4981_v2 = vsel %vm4966_vm14, %v4955_v7, -inf  ;;  %v4988_v17 = vsel %vm4966_vm14, %v4956_v37, -inf  ;;  %v7766_v48 = vld [vmem:[#allocation6 + $0x114] sm:$0xf] }
 0x4f9   : > { %v4969_v20 = vmax.f32 %v4967_v62, %v4968_v54  ;;  %v4975_v5 = vrot.slane %v4974_v18, 4  ;;  %v4982_v4 = vrot.slane %v4981_v2, 4  ;;  %v4989_v9 = vrot.slane %v4988_v17, 4  ;;  %5560 = vmatpush.bf16.msra.mxu3 %v7260_v36  ;;  %v7205_v54 = vld [vmem:[#allocation6 + $0x118] sm:$0xf0] }
 0x4fa   : > { %v4944_v51 = vadd.f32 %v9490_v6, %v4936_v16  ;;  %v7208_v16 = vor.u32 %v7766_v48, %v7205_v54  ;;  %5424 = vmatpush.bf16.msrb.mxu1 %v7204_v56  ;;  %v7379_v54 = vld [vmem:[#allocation6 + $0x270] sm:$0xf] }
 0x4fb   : > { %v4970_v10 = vrot.slane %v4969_v20, 2  ;;  %v4976_v49 = vmax.f32 %v4974_v18, %v4975_v5  ;;  %v4983_v13 = vmax.f32 %v4981_v2, %v4982_v4  ;;  %v4990_v8 = vmax.f32 %v4988_v17, %v4989_v9  ;;  %v4923_v50 = vpop.f32.mrf.mxu3  ;;  %v7765_v17 = vld [vmem:[#allocation6 + $0x104] sm:$0xf0] }
 0x4fc   : > { %v4929_v34 = vadd.f32 %v4923_v50, %v4861_v40  ;;  %v4948_v28 = vmax.f32 %v4944_v51, 0.0  ;;  %5437 = vmatpush.bf16.msrb.mxu2 %v7208_v16  ;;  %v7196_v40 = vor.u32 %v7765_v17, %v7195_v29  ;;  %v7810_v16 = vld [vmem:[#allocation6 + $0x274] sm:$0xf]  ;;  %v7381_v29 = vld [vmem:[#allocation6 + $0x278] sm:$0xf0] }
 0x4fd   : > { %v4971_v26 = vmax.f32 %v4969_v20, %v4970_v10  ;;  %v4977_v35 = vrot.slane %v4976_v49, 2  ;;  %v4984_v30 = vrot.slane %v4983_v13, 2  ;;  %v4991_v12 = vrot.slane %v4990_v8, 2  ;;  %v7822_v17 = vld [vmem:[#allocation6 + $0x2d4] sm:$0xf] }
 0x4fe   : > { %v4937_v46 = vmul.f32 %v9479_v52, %v4929_v34  ;;  %5425 = vmatpush.bf16.msrb.mxu1 %v7196_v40  ;;  %v5311_v40 = vld [vmem:[#allocation4 + $0x2] sm:$0xf] }
 0x4ff   : > { %v4972_v14 = vrot.slane %v4971_v26, 1  ;;  %v4978_v57 = vmax.f32 %v4976_v49, %v4977_v35  ;;  %v4985_v0 = vmax.f32 %v4983_v13, %v4984_v30  ;;  %v4992_v39 = vmax.f32 %v4990_v8, %v4991_v12 }
 0x500   : > { %v4945_v63 = vadd.f32 %v9490_v6, %v4937_v46  ;;  %5438 = vmatpush.bf16.msrb.mxu2 %v7200_v58 }
 0x501   : > { %v4979_v41 = vrot.slane %v4978_v57, 1  ;;  %v4986_v52 = vrot.slane %v4985_v0, 1  ;;  %v4993_v25 = vrot.slane %v4992_v39, 1  ;;  %v4973_v7 = vmax.f32 %v4971_v26, %v4972_v14  ;;  %v7443_v14 = vld [vmem:[#allocation6 + $0x2f0] sm:$0xf] }
 0x502   : > { %v4949_v55 = vmax.f32 %v4945_v63, 0.0 }
 0x503   : > { %v4980_v37 = vmax.f32 %v4978_v57, %v4979_v41  ;;  %v4987_v62 = vmax.f32 %v4985_v0, %v4986_v52  ;;  %v4994_v18 = vmax.f32 %v4992_v39, %v4993_v25  ;;  %v7827_v57 = vld [vmem:[#allocation6 + $0x2f4] sm:$0xf0]  ;;  %v7826_v0 = vld [vmem:[#allocation6 + $0x2f4] sm:$0xf]  ;;  %v7445_v39 = vld [vmem:[#allocation6 + $0x2f8] sm:$0xf0] }
 0x504   : > { %v4951_v6 = vmax.f32 %v4948_v28, %v4949_v55  ;;  %v7435_v41 = vld [vmem:[#allocation6 + $0x2e0] sm:$0xf]  ;;  %v7825_v52 = vld [vmem:[#allocation6 + $0x2e4] sm:$0xf0]  ;;  %v7444_v28 = vor.u32 %v7827_v57, %v7443_v14  ;;  %v7448_v55 = vor.u32 %v7826_v0, %v7445_v39  ;;  %v7816_v39 = vld [vmem:[#allocation6 + $0x2a4] sm:$0xf] }
 0x505   : > { %v5035_v2 = vsel %vm2593_vm5, %v4980_v37, %v4973_v7  ;;  %v7437_v37 = vld [vmem:[#allocation6 + $0x2e8] sm:$0xf0]  ;;  %v7403_v57 = vld [vmem:[#allocation6 + $0x2a0] sm:$0xf]  ;;  %v7817_v0 = vld [vmem:[#allocation6 + $0x2a4] sm:$0xf0] }
 0x506   : > { %v5036_v53 = vsel %vm2595_vm6, %v4987_v62, %v5035_v2  ;;  %v4957_v20 = vrot.slane %v4951_v6, 2  ;;  %v4958_v5 = vrot.slane %v4951_v6, 4  ;;  %v4959_v4 = vrot.slane %v4951_v6, 6  ;;  %v7823_v2 = vld [vmem:[#allocation6 + $0x2d4] sm:$0xf0] }
 0x507   : > { %v5037_v9 = vsel %vm2597_vm7, %v4994_v18, %v5036_v53  ;;  %v4995_v32 = vsel %vm4966_vm14, %v4951_v6, -inf  ;;  %v7436_v62 = vor.u32 %v7825_v52, %v7435_v41  ;;  %v7440_v56 = vor.u32 %v7824_v45, %v7437_v37  ;;  %v7811_v6 = vld [vmem:[#allocation6 + $0x274] sm:$0xf0]  ;;  %v7427_v18 = vld [vmem:[#allocation6 + $0x2d0] sm:$0xf] }
 0x508   : > { %5044 = vst [vmem:[#allocation4 + $0x9] sm:$0xf] %v5037_v9  ;;  %v4996_v1 = vrot.slane %v4995_v32, 4  ;;  %v5002_v47 = vsel %vm4966_vm14, %v4957_v20, -inf  ;;  %v5009_v3 = vsel %vm4966_vm14, %v4958_v5, -inf  ;;  %v5016_v10 = vsel %vm4966_vm14, %v4959_v4, -inf }
 0x509   : > { %v5003_v49 = vrot.slane %v5002_v47, 4  ;;  %v5010_v13 = vrot.slane %v5009_v3, 4  ;;  %v5017_v8 = vrot.slane %v5016_v10, 4  ;;  %v7371_v53 = vld [vmem:[#allocation6 + $0x260] sm:$0xf]  ;;  %v7380_v9 = vor.u32 %v7811_v6, %v7379_v54 }
 0x50a   : > { %v4997_v50 = vmax.f32 %v4995_v32, %v4996_v1  ;;  %v7809_v20 = vld [vmem:[#allocation6 + $0x264] sm:$0xf0]  ;;  %v7808_v5 = vld [vmem:[#allocation6 + $0x264] sm:$0xf]  ;;  %v7384_v32 = vor.u32 %v7810_v16, %v7381_v29  ;;  %v7428_v1 = vor.u32 %v7823_v2, %v7427_v18  ;;  %v7347_v52 = vld [vmem:[#allocation6 + $0x230] sm:$0xf] }
 0x50b   : > { %v5004_v19 = vmax.f32 %v5002_v47, %v5003_v49  ;;  %v5011_v33 = vmax.f32 %v5009_v3, %v5010_v13  ;;  %v5018_v51 = vmax.f32 %v5016_v10, %v5017_v8  ;;  %v7432_v47 = vor.u32 %v7822_v17, %v7429_v38  ;;  %v7373_v3 = vld [vmem:[#allocation6 + $0x268] sm:$0xf0]  ;;  %v7419_v10 = vld [vmem:[#allocation6 + $0x2c0] sm:$0xf]  ;;  %v7821_v49 = vld [vmem:[#allocation6 + $0x2c4] sm:$0xf0] }
 0x50c   : > { %v4998_v34 = vrot.slane %v4997_v50, 2  ;;  %v7820_v13 = vld [vmem:[#allocation6 + $0x2c4] sm:$0xf]  ;;  %v7421_v8 = vld [vmem:[#allocation6 + $0x2c8] sm:$0xf0] }
 0x50d   : > { %v5005_v44 = vrot.slane %v5004_v19, 2  ;;  %v5012_v59 = vrot.slane %v5011_v33, 2  ;;  %v5019_v27 = vrot.slane %v5018_v51, 2  ;;  %v7349_v45 = vld [vmem:[#allocation6 + $0x238] sm:$0xf0] }
 0x50e   : > { %v4999_v22 = vmax.f32 %v4997_v50, %v4998_v34  ;;  %v7372_v50 = vor.u32 %v7809_v20, %v7371_v53  ;;  %v7420_v34 = vor.u32 %v7821_v49, %v7419_v10  ;;  %v7814_v37 = vld [vmem:[#allocation6 + $0x294] sm:$0xf]  ;;  %v7801_v54 = vld [vmem:[#allocation6 + $0x224] sm:$0xf0]  ;;  %v7800_v6 = vld [vmem:[#allocation6 + $0x224] sm:$0xf] }
 0x50f   : > { %v5047_v26 = vld [vmem:[#allocation4 + $0x8] sm:$0xf]  ;;  %v5006_v35 = vmax.f32 %v5004_v19, %v5005_v44  ;;  %v5013_v30 = vmax.f32 %v5011_v33, %v5012_v59  ;;  %v5020_v12 = vmax.f32 %v5018_v51, %v5019_v27  ;;  %v7376_v19 = vor.u32 %v7808_v5, %v7373_v3  ;;  %v7363_v33 = vld [vmem:[#allocation6 + $0x250] sm:$0xf]  ;;  %v7807_v51 = vld [vmem:[#allocation6 + $0x254] sm:$0xf0] }
 0x510   : > { %5052 = vst [vmem:[#allocation1 + $0x1] ss:$2 sm:$0xff] %v5047_v26  ;;  %v5000_v23 = vrot.slane %v4999_v22, 1  ;;  %v5073_v48 = vld [vmem:[#allocation4 + $0x9] sm:$0xf]  ;;  %v7424_v44 = vor.u32 %v7820_v13, %v7421_v8 }
 0x511   : > { %v5007_v46 = vrot.slane %v5006_v35, 1  ;;  %v5014_v31 = vrot.slane %v5013_v30, 1  ;;  %v5021_v21 = vrot.slane %v5020_v12, 1  ;;  %v5312_v42 = vld [vmem:[#allocation4 + $0xa] sm:$0xf] }
 0x512   : > { %v5001_v15 = vmax.f32 %v4999_v22, %v5000_v23  ;;  %v7806_v59 = vld [vmem:[#allocation6 + $0x254] sm:$0xf]  ;;  %v7365_v27 = vld [vmem:[#allocation6 + $0x258] sm:$0xf0]  ;;  %v7411_v22 = vld [vmem:[#allocation6 + $0x2b0] sm:$0xf] }
 0x513   : > { %v5008_v24 = vmax.f32 %v5006_v35, %v5007_v46  ;;  %v5015_v11 = vmax.f32 %v5013_v30, %v5014_v31  ;;  %v5022_v63 = vmax.f32 %v5020_v12, %v5021_v21  ;;  %v7819_v26 = vld [vmem:[#allocation6 + $0x2b4] sm:$0xf0]  ;;  %v7818_v35 = vld [vmem:[#allocation6 + $0x2b4] sm:$0xf]  ;;  %v7413_v30 = vld [vmem:[#allocation6 + $0x2b8] sm:$0xf0]  ;;  %v7364_v46 = vor.u32 %v7807_v51, %v7363_v33 }
 0x514   : > { %v7355_v12 = vld [vmem:[#allocation6 + $0x240] sm:$0xf]  ;;  %v5446_v23 = vld [vmem:[#allocation4 + $0x8] sm:$0xf]  ;;  %v7368_v31 = vor.u32 %v7806_v59, %v7365_v27  ;;  %v7416_v14 = vor.u32 %v7818_v35, %v7413_v30  ;;  %v7341_v18 = vld [vmem:[#allocation6 + $0x228] sm:$0xf0] }
 0x515   : > { %v5038_v36 = vsel %vm2593_vm5, %v5008_v24, %v5001_v15  ;;  %v7805_v21 = vld [vmem:[#allocation6 + $0x244] sm:$0xf0]  ;;  %v7804_v15 = vld [vmem:[#allocation6 + $0x244] sm:$0xf]  ;;  %v7357_v24 = vld [vmem:[#allocation6 + $0x248] sm:$0xf0]  ;;  %v7344_v13 = vor.u32 %v7800_v6, %v7341_v18 }
 0x516   : > { %v5039_v60 = vsel %vm2595_vm6, %v5015_v11, %v5038_v36  ;;  %v7412_v11 = vor.u32 %v7819_v26, %v7411_v22  ;;  %v7360_v41 = vor.u32 %v7804_v15, %v7357_v24  ;;  %v7387_v2 = vld [vmem:[#allocation6 + $0x280] sm:$0xf]  ;;  %v7813_v17 = vld [vmem:[#allocation6 + $0x284] sm:$0xf0]  ;;  %v7812_v5 = vld [vmem:[#allocation6 + $0x284] sm:$0xf] }
 0x517   : > { %v5053_v25 = vld.sshfl [vmem:[#allocation1] sm:$0xff pattern:$0x75316420]  ;;  %v5040_v43 = vsel %vm2597_vm7, %v5022_v63, %v5039_v60  ;;  %v7356_v60 = vor.u32 %v7805_v21, %v7355_v12  ;;  %v7799_v8 = vld [vmem:[#allocation6 + $0x214] sm:$0xf0] }
 0x518   : > { %5076 = vst [vmem:[#allocation1] ss:$2 sm:$0xff] %v5072_v61  ;;  %v5055_v7 = vpack.c.bf16 %v5053_v25, %v5053_v25  ;;  %v7405_v61 = vld [vmem:[#allocation6 + $0x2a8] sm:$0xf0]  ;;  %v7803_v25 = vld [vmem:[#allocation6 + $0x234] sm:$0xf0] }
 0x519   : > { %5078 = vst [vmem:[#allocation1 + $0x1] ss:$2 sm:$0xff] %v5073_v48  ;;  %v7395_v48 = vld [vmem:[#allocation6 + $0x290] sm:$0xf]  ;;  %v7348_v16 = vor.u32 %v7803_v25, %v7347_v52  ;;  %v5581_v38 = vld [vmem:[#allocation4 + $0x9] sm:$0xf] }
 0x51a   : > { %5045 = vst [vmem:[#allocation4 + $0x11] sm:$0xf] %v5040_v43  ;;  %5293 = vmatmul.bf16.vlgmr.msrb.gmra.mxu3 %v5055_v7  ;;  %5306 = vmatmul.bf16.vlgmr.msrb.gmra.mxu0 %v5055_v7  ;;  %v7404_v43 = vor.u32 %v7817_v0, %v7403_v57  ;;  %v7815_v7 = vld [vmem:[#allocation6 + $0x294] sm:$0xf0]  ;;  %v7798_v33 = vld [vmem:[#allocation6 + $0x214] sm:$0xf] }
 0x51b   : > { %5823 = vmatpush.bf16.msrb.mxu3 %v7444_v28  ;;  %5836 = vmatpush.bf16.msrb.mxu0 %v7448_v55  ;;  %v7408_v28 = vor.u32 %v7816_v39, %v7405_v61  ;;  %v7802_v55 = vld [vmem:[#allocation6 + $0x234] sm:$0xf]  ;;  %v7396_v53 = vor.u32 %v7815_v7, %v7395_v48  ;;  %v7333_v51 = vld [vmem:[#allocation6 + $0x218] sm:$0xf0]  ;;  %v7563_v59 = vld [vmem:[#allocation6 + $0x3e0] sm:$0xf] }
 0x51c   : > { %v7352_v29 = vor.u32 %v7802_v55, %v7349_v45  ;;  %v7857_v27 = vld [vmem:[#allocation6 + $0x3e4] sm:$0xf0]  ;;  %v7856_v22 = vld [vmem:[#allocation6 + $0x3e4] sm:$0xf]  ;;  %v7565_v26 = vld [vmem:[#allocation6 + $0x3e8] sm:$0xf0]  ;;  %v7336_v30 = vor.u32 %v7798_v33, %v7333_v51 }
 0x51d   : > { %v7323_v12 = vld [vmem:[#allocation6 + $0x200] sm:$0xf]  ;;  %v7507_v21 = vld [vmem:[#allocation6 + $0x370] sm:$0xf]  ;;  %v7843_v15 = vld [vmem:[#allocation6 + $0x374] sm:$0xf0] }
 0x51e   : > { %v5716_v24 = vld [vmem:[#allocation4 + $0xa] sm:$0xf]  ;;  %v7842_v57 = vld [vmem:[#allocation6 + $0x374] sm:$0xf]  ;;  %v7509_v0 = vld [vmem:[#allocation6 + $0x378] sm:$0xf0] }
 0x51f   : > { %5824 = vmatpush.bf16.msrb.mxu3 %v7436_v62  ;;  %5837 = vmatpush.bf16.msrb.mxu0 %v7440_v56  ;;  %v7397_v62 = vld [vmem:[#allocation6 + $0x298] sm:$0xf0]  ;;  %v7339_v56 = vld [vmem:[#allocation6 + $0x220] sm:$0xf]  ;;  %v7555_v39 = vld [vmem:[#allocation6 + $0x3d0] sm:$0xf]  ;;  %v7512_v55 = vor.u32 %v7842_v57, %v7509_v0 }
 0x520   : > { %v5079_v4 = vld.sshfl [vmem:[#allocation1] sm:$0xff pattern:$0x75316420]  ;;  %v7400_v20 = vor.u32 %v7814_v37, %v7397_v62  ;;  %v7340_v49 = vor.u32 %v7801_v54, %v7339_v56  ;;  %v7547_v56 = vld [vmem:[#allocation6 + $0x3c0] sm:$0xf] }
 0x521   : > { %5317 = vst [vmem:[#allocation1 + $0x1] ss:$2 sm:$0xff] %v5312_v42  ;;  %v5081_v58 = vpack.c.bf16 %v5079_v4, %v5079_v4  ;;  %v5447_v36 = vld [vmem:[#allocation4 + $0x10] sm:$0xf]  ;;  %v7841_v45 = vld [vmem:[#allocation6 + $0x364] sm:$0xf0] }
 0x522   : > { %5315 = vst [vmem:[#allocation1] ss:$2 sm:$0xff] %v5311_v40  ;;  %v7389_v4 = vld [vmem:[#allocation6 + $0x288] sm:$0xf0]  ;;  %v7858_v40 = vld [vmem:[#allocation6 + $0x3f4] sm:$0xf] }
 0x523   : > { %5187 = vmatmul.bf16.vlgmr.msra.gmra.mxu1 %v5081_v58  ;;  %5200 = vmatmul.bf16.vlgmr.msra.gmra.mxu2 %v5081_v58  ;;  %v7573_v58 = vld [vmem:[#allocation6 + $0x3f8] sm:$0xf0]  ;;  %v5582_v3 = vld [vmem:[#allocation4 + $0x11] sm:$0xf]  ;;  %v7840_v48 = vld [vmem:[#allocation6 + $0x364] sm:$0xf] }
 0x524   : > { %5688 = vmatpush.bf16.msra.mxu1 %v7380_v9  ;;  %5701 = vmatpush.bf16.msra.mxu2 %v7384_v32  ;;  %v7571_v9 = vld [vmem:[#allocation6 + $0x3f0] sm:$0xf]  ;;  %v7859_v32 = vld [vmem:[#allocation6 + $0x3f4] sm:$0xf0]  ;;  %v7501_v62 = vld [vmem:[#allocation6 + $0x368] sm:$0xf0] }
 0x525   : > { %5825 = vmatpush.bf16.msrb.mxu3 %v7428_v1  ;;  %5838 = vmatpush.bf16.msrb.mxu0 %v7432_v47  ;;  %v7331_v47 = vld [vmem:[#allocation6 + $0x210] sm:$0xf]  ;;  %v7853_v54 = vld [vmem:[#allocation6 + $0x3c4] sm:$0xf0]  ;;  %v7852_v6 = vld [vmem:[#allocation6 + $0x3c4] sm:$0xf] }
 0x526   : > { %v7332_v35 = vor.u32 %v7799_v8, %v7331_v47  ;;  %v5717_v61 = vld [vmem:[#allocation4 + $0x12] sm:$0xf]  ;;  %v7483_v47 = vld [vmem:[#allocation6 + $0x340] sm:$0xf]  ;;  %v7833_v0 = vld [vmem:[#allocation6 + $0x324] sm:$0xf0] }
 0x527   : > { %v7467_v57 = vld [vmem:[#allocation6 + $0x320] sm:$0xf] }
 0x528   : > { %5689 = vmatpush.bf16.msra.mxu1 %v7372_v50  ;;  %5702 = vmatpush.bf16.msra.mxu2 %v7376_v19  ;;  %v7388_v50 = vor.u32 %v7813_v17, %v7387_v2  ;;  %v7392_v19 = vor.u32 %v7812_v5, %v7389_v4  ;;  %v7504_v2 = vor.u32 %v7840_v48, %v7501_v62  ;;  %v7491_v17 = vld [vmem:[#allocation6 + $0x350] sm:$0xf]  ;;  %v7838_v5 = vld [vmem:[#allocation6 + $0x354] sm:$0xf]  ;;  %v7493_v4 = vld [vmem:[#allocation6 + $0x358] sm:$0xf0] }
 0x529   : > { %5826 = vmatpush.bf16.msrb.mxu3 %v7420_v34  ;;  %5839 = vmatpush.bf16.msrb.mxu0 %v7424_v44  ;;  %v5318_v63 = vld.sshfl [vmem:[#allocation1] sm:$0xff pattern:$0x75316420]  ;;  %v7572_v34 = vor.u32 %v7859_v32, %v7571_v9  ;;  %v7576_v44 = vor.u32 %v7858_v40, %v7573_v58  ;;  %v7539_v9 = vld [vmem:[#allocation6 + $0x3b0] sm:$0xf]  ;;  %v7496_v8 = vor.u32 %v7838_v5, %v7493_v4 }
 0x52a   : > { %5450 = vst [vmem:[#allocation1] ss:$2 sm:$0xff] %v5446_v23  ;;  %v5320_v42 = vpack.c.bf16 %v5318_v63, %v5318_v63  ;;  %v7797_v23 = vld [vmem:[#allocation6 + $0x204] sm:$0xf0]  ;;  %v7855_v63 = vld [vmem:[#allocation6 + $0x3d4] sm:$0xf0]  ;;  %v7468_v48 = vor.u32 %v7833_v0, %v7467_v57 }
 0x52b   : > { %5452 = vst [vmem:[#allocation1 + $0x1] ss:$2 sm:$0xff] %v5447_v36  ;;  %v7854_v36 = vld [vmem:[#allocation6 + $0x3d4] sm:$0xf]  ;;  %v7556_v7 = vor.u32 %v7855_v63, %v7555_v39  ;;  %v5852_v32 = vld [vmem:[#allocation4 + $0x10] sm:$0xf] }
 0x52c   : > { %5690 = vmatpush.bf16.msra.mxu1 %v7364_v46  ;;  %5703 = vmatpush.bf16.msra.mxu2 %v7368_v31  ;;  %v7796_v46 = vld [vmem:[#allocation6 + $0x204] sm:$0xf]  ;;  %v7325_v31 = vld [vmem:[#allocation6 + $0x208] sm:$0xf0]  ;;  %v7851_v40 = vld [vmem:[#allocation6 + $0x3b4] sm:$0xf0] }
 0x52d   : > { %5827 = vmatpush.bf16.msrb.mxu3 %v7412_v11  ;;  %5840 = vmatpush.bf16.msrb.mxu0 %v7416_v14  ;;  %v7564_v11 = vor.u32 %v7857_v27, %v7563_v59  ;;  %v7568_v14 = vor.u32 %v7856_v22, %v7565_v26  ;;  %v7328_v52 = vor.u32 %v7796_v46, %v7325_v31  ;;  %v7850_v58 = vld [vmem:[#allocation6 + $0x3b4] sm:$0xf]  ;;  %v7848_v59 = vld [vmem:[#allocation6 + $0x3a4] sm:$0xf]  ;;  %v7533_v27 = vld [vmem:[#allocation6 + $0x3a8] sm:$0xf0] }
 0x52e   : > { %v7540_v33 = vor.u32 %v7851_v40, %v7539_v9  ;;  %v7834_v46 = vld [vmem:[#allocation6 + $0x334] sm:$0xf]  ;;  %v7477_v31 = vld [vmem:[#allocation6 + $0x338] sm:$0xf0]  ;;  %v7832_v39 = vld [vmem:[#allocation6 + $0x324] sm:$0xf] }
 0x52f   : > { %v7480_v63 = vor.u32 %v7834_v46, %v7477_v31  ;;  %v7875_v5 = vld [vmem:[#allocation6 + $0x474] sm:$0xf0]  ;;  %v7874_v4 = vld [vmem:[#allocation6 + $0x474] sm:$0xf]  ;;  %v7637_v40 = vld [vmem:[#allocation6 + $0x478] sm:$0xf0] }
 0x530   : > { %5691 = vmatpush.bf16.msra.mxu1 %v7356_v60  ;;  %5704 = vmatpush.bf16.msra.mxu2 %v7360_v41  ;;  %v7557_v60 = vld [vmem:[#allocation6 + $0x3d8] sm:$0xf0]  ;;  %v7324_v41 = vor.u32 %v7797_v23, %v7323_v12  ;;  %v7536_v23 = vor.u32 %v7848_v59, %v7533_v27  ;;  %v7870_v59 = vld [vmem:[#allocation6 + $0x454] sm:$0xf]  ;;  %v7595_v0 = vld [vmem:[#allocation6 + $0x420] sm:$0xf] }
 0x531   : > { %5828 = vmatpush.bf16.msrb.mxu3 %v7404_v43  ;;  %5841 = vmatpush.bf16.msrb.mxu0 %v7408_v28  ;;  %v7499_v43 = vld [vmem:[#allocation6 + $0x360] sm:$0xf]  ;;  %v7508_v28 = vor.u32 %v7843_v15, %v7507_v21  ;;  %v7560_v37 = vor.u32 %v7854_v36, %v7557_v60  ;;  %v7523_v21 = vld [vmem:[#allocation6 + $0x390] sm:$0xf]  ;;  %v7847_v15 = vld [vmem:[#allocation6 + $0x394] sm:$0xf0] }
 0x532   : > { %v5453_v1 = vld.sshfl [vmem:[#allocation1] sm:$0xff pattern:$0x75316420]  ;;  %v7500_v18 = vor.u32 %v7841_v45, %v7499_v43  ;;  %v7515_v60 = vld [vmem:[#allocation6 + $0x380] sm:$0xf] }
 0x533   : > { %5426 = vmatmul.bf16.vlgmr.msrb.gmra.mxu1 %v5320_v42  ;;  %5439 = vmatmul.bf16.vlgmr.msrb.gmra.mxu2 %v5320_v42  ;;  %v5455_v10 = vpack.c.bf16 %v5453_v1, %v5453_v1  ;;  %5585 = vst [vmem:[#allocation1] ss:$2 sm:$0xff] %v5581_v38  ;;  %v7839_v38 = vld [vmem:[#allocation6 + $0x354] sm:$0xf0]  ;;  %v7541_v1 = vld [vmem:[#allocation6 + $0x3b8] sm:$0xf0] }
 0x534   : > { %5692 = vmatpush.bf16.msra.mxu1 %v7348_v16  ;;  %5705 = vmatpush.bf16.msra.mxu2 %v7352_v29  ;;  %5587 = vst [vmem:[#allocation1 + $0x1] ss:$2 sm:$0xff] %v5582_v3  ;;  %v7549_v16 = vld [vmem:[#allocation6 + $0x3c8] sm:$0xf0]  ;;  %v5853_v42 = vld [vmem:[#allocation4 + $0x18] sm:$0xf]  ;;  %v7544_v51 = vor.u32 %v7850_v58, %v7541_v1 }
 0x535   : > { %5829 = vmatpush.bf16.msrb.mxu3 %v7396_v53  ;;  %5842 = vmatpush.bf16.msrb.mxu0 %v7400_v20  ;;  %v7548_v53 = vor.u32 %v7853_v54, %v7547_v56  ;;  %v7552_v20 = vor.u32 %v7852_v6, %v7549_v16  ;;  %v7837_v3 = vld [vmem:[#allocation6 + $0x344] sm:$0xf0]  ;;  %v7469_v36 = vld [vmem:[#allocation6 + $0x328] sm:$0xf0]  ;;  %v7831_v54 = vld [vmem:[#allocation6 + $0x314] sm:$0xf0] }
 0x536   : > { %5561 = vmatmul.bf16.vlgmr.msra.gmra.mxu3 %v5455_v10  ;;  %5574 = vmatmul.bf16.vlgmr.msra.gmra.mxu0 %v5455_v10  ;;  %v7836_v10 = vld [vmem:[#allocation6 + $0x344] sm:$0xf]  ;;  %v7484_v22 = vor.u32 %v7837_v3, %v7483_v47  ;;  %v7845_v43 = vld [vmem:[#allocation6 + $0x384] sm:$0xf0]  ;;  %v7517_v45 = vld [vmem:[#allocation6 + $0x388] sm:$0xf0] }
 0x537   : > { %v7516_v62 = vor.u32 %v7845_v43, %v7515_v60  ;;  %v7830_v6 = vld [vmem:[#allocation6 + $0x314] sm:$0xf]  ;;  %v7461_v16 = vld [vmem:[#allocation6 + $0x318] sm:$0xf0] }
 0x538   : > { %5693 = vmatpush.bf16.msra.mxu1 %v7340_v49  ;;  %5706 = vmatpush.bf16.msra.mxu2 %v7344_v13  ;;  %v7492_v13 = vor.u32 %v7839_v38, %v7491_v17  ;;  %v7464_v38 = vor.u32 %v7830_v6, %v7461_v16  ;;  %v6123_v9 = vld [vmem:[#allocation4 + $0x1a] sm:$0xf] }
 0x539   : > { %5830 = vmatpush.bf16.msrb.mxu3 %v7388_v50  ;;  %5843 = vmatpush.bf16.msrb.mxu0 %v7392_v19  ;;  %v7485_v50 = vld [vmem:[#allocation6 + $0x348] sm:$0xf0]  ;;  %v7621_v27 = vld [vmem:[#allocation6 + $0x458] sm:$0xf0] }
 0x53a   : > { %v7488_v26 = vor.u32 %v7836_v10, %v7485_v50  ;;  %v7640_v10 = vor.u32 %v7874_v4, %v7637_v40  ;;  %v7629_v50 = vld [vmem:[#allocation6 + $0x468] sm:$0xf0]  ;;  %v7589_v43 = vld [vmem:[#allocation6 + $0x418] sm:$0xf0] }
 0x53b   : > { %v5588_v25 = vld.sshfl [vmem:[#allocation1] sm:$0xff pattern:$0x75316420] }
 0x53c   : > { %5694 = vmatpush.bf16.msra.mxu1 %v7332_v35  ;;  %5707 = vmatpush.bf16.msra.mxu2 %v7336_v30  ;;  %5720 = vst [vmem:[#allocation1] ss:$2 sm:$0xff] %v5716_v24  ;;  %v5590_v29 = vpack.c.bf16 %v5588_v25, %v5588_v25  ;;  %v7475_v35 = vld [vmem:[#allocation6 + $0x330] sm:$0xf]  ;;  %v7835_v30 = vld [vmem:[#allocation6 + $0x334] sm:$0xf0] }
 0x53d   : > { %6094 = vmatpush.bf16.msra.mxu3 %v7572_v34  ;;  %6107 = vmatpush.bf16.msra.mxu0 %v7576_v44  ;;  %5722 = vst [vmem:[#allocation1 + $0x1] ss:$2 sm:$0xff] %v5717_v61  ;;  %v7531_v34 = vld [vmem:[#allocation6 + $0x3a0] sm:$0xf]  ;;  %v7849_v44 = vld [vmem:[#allocation6 + $0x3a4] sm:$0xf0]  ;;  %v7476_v61 = vor.u32 %v7835_v30, %v7475_v35 }
 0x53e   : > { %v7532_v12 = vor.u32 %v7849_v44, %v7531_v34  ;;  %v7846_v24 = vld [vmem:[#allocation6 + $0x394] sm:$0xf]  ;;  %v7619_v34 = vld [vmem:[#allocation6 + $0x450] sm:$0xf]  ;;  %v7871_v44 = vld [vmem:[#allocation6 + $0x454] sm:$0xf0] }
 0x53f   : > { %v7611_v35 = vld [vmem:[#allocation6 + $0x440] sm:$0xf]  ;;  %v7869_v30 = vld [vmem:[#allocation6 + $0x444] sm:$0xf0] }
 0x540   : > { %5695 = vmatpush.bf16.msra.mxu1 %v7324_v41  ;;  %5708 = vmatpush.bf16.msra.mxu2 %v7328_v52  ;;  %v5988_v41 = vld [vmem:[#allocation4 + $0x19] sm:$0xf]  ;;  %v7524_v52 = vor.u32 %v7847_v15, %v7523_v21  ;;  %v7612_v46 = vor.u32 %v7869_v30, %v7611_v35  ;;  %v7603_v21 = vld [vmem:[#allocation6 + $0x430] sm:$0xf] }
 0x541   : > { %6095 = vmatpush.bf16.msra.mxu3 %v7564_v11  ;;  %6108 = vmatpush.bf16.msra.mxu0 %v7568_v14  ;;  %v7525_v11 = vld [vmem:[#allocation6 + $0x398] sm:$0xf0]  ;;  %v5987_v14 = vld [vmem:[#allocation4 + $0x11] sm:$0xf]  ;;  %v7867_v15 = vld [vmem:[#allocation6 + $0x434] sm:$0xf0] }
 0x542   : > { %v7528_v25 = vor.u32 %v7846_v24, %v7525_v11  ;;  %v7866_v24 = vld [vmem:[#allocation6 + $0x434] sm:$0xf]  ;;  %v7605_v11 = vld [vmem:[#allocation6 + $0x438] sm:$0xf0] }
 0x543   : > { %5696 = vmatmul.bf16.vlgmr.msra.gmra.mxu1 %v5590_v29  ;;  %5709 = vmatmul.bf16.vlgmr.msra.gmra.mxu2 %v5590_v29  ;;  %v7451_v29 = vld [vmem:[#allocation6 + $0x300] sm:$0xf]  ;;  %v7608_v57 = vor.u32 %v7866_v24, %v7605_v11 }
 0x544   : > { %5959 = vmatpush.bf16.msrb.mxu1 %v7508_v28  ;;  %5972 = vmatpush.bf16.msrb.mxu2 %v7512_v55  ;;  %v5723_v49 = vld.sshfl [vmem:[#allocation1] sm:$0xff pattern:$0x75316420] }
 0x545   : > { %6096 = vmatpush.bf16.msra.mxu3 %v7556_v7  ;;  %6109 = vmatpush.bf16.msra.mxu0 %v7560_v37  ;;  %v5725_v19 = vpack.c.bf16 %v5723_v49, %v5723_v49  ;;  %5856 = vst [vmem:[#allocation1] ss:$2 sm:$0xff] %v5852_v32  ;;  %v7844_v55 = vld [vmem:[#allocation6 + $0x384] sm:$0xf]  ;;  %v7472_v7 = vor.u32 %v7832_v39, %v7469_v36  ;;  %v7459_v37 = vld [vmem:[#allocation6 + $0x310] sm:$0xf] }
 0x546   : > { %5858 = vst [vmem:[#allocation1 + $0x1] ss:$2 sm:$0xff] %v5853_v42  ;;  %v7520_v56 = vor.u32 %v7844_v55, %v7517_v45  ;;  %v7460_v17 = vor.u32 %v7831_v54, %v7459_v37  ;;  %v7828_v42 = vld [vmem:[#allocation6 + $0x304] sm:$0xf]  ;;  %v7627_v49 = vld [vmem:[#allocation6 + $0x460] sm:$0xf] }
 0x547   : > { %5831 = vmatmul.bf16.vlgmr.msrb.gmra.mxu3 %v5725_v19  ;;  %5844 = vmatmul.bf16.vlgmr.msrb.gmra.mxu0 %v5725_v19  ;;  %v7865_v39 = vld [vmem:[#allocation6 + $0x424] sm:$0xf0]  ;;  %v7579_v45 = vld [vmem:[#allocation6 + $0x400] sm:$0xf]  ;;  %v7581_v37 = vld [vmem:[#allocation6 + $0x408] sm:$0xf0] }
 0x548   : > { %5960 = vmatpush.bf16.msrb.mxu1 %v7500_v18  ;;  %5973 = vmatpush.bf16.msrb.mxu2 %v7504_v2  ;;  %v7829_v18 = vld [vmem:[#allocation6 + $0x304] sm:$0xf0]  ;;  %v6122_v2 = vld [vmem:[#allocation4 + $0x12] sm:$0xf]  ;;  %v7596_v36 = vor.u32 %v7865_v39, %v7595_v0 }
 0x549   : > { %6097 = vmatpush.bf16.msra.mxu3 %v7548_v53  ;;  %6110 = vmatpush.bf16.msra.mxu0 %v7552_v20  ;;  %v7453_v53 = vld [vmem:[#allocation6 + $0x308] sm:$0xf0]  ;;  %v7635_v20 = vld [vmem:[#allocation6 + $0x470] sm:$0xf]  ;;  %v7452_v1 = vor.u32 %v7829_v18, %v7451_v29  ;;  %v6257_v0 = vld [vmem:[%s9559_s11] sm:$0x3] }
 0x54a   : > { %v7456_v47 = vor.u32 %v7828_v42, %v7453_v53  ;;  %v7636_v3 = vor.u32 %v7875_v5, %v7635_v20 }
 0x54c   : > { %5961 = vmatpush.bf16.msrb.mxu1 %v7492_v13  ;;  %5974 = vmatpush.bf16.msrb.mxu2 %v7496_v8  ;;  %v7873_v13 = vld [vmem:[#allocation6 + $0x464] sm:$0xf0]  ;;  %v7872_v8 = vld [vmem:[#allocation6 + $0x464] sm:$0xf] }
 0x54d   : > { %6098 = vmatpush.bf16.msra.mxu3 %v7540_v33  ;;  %6111 = vmatpush.bf16.msra.mxu0 %v7544_v51  ;;  %v5859_v28 = vld.sshfl [vmem:[#allocation1] sm:$0xff pattern:$0x75316420]  ;;  %v7628_v33 = vor.u32 %v7873_v13, %v7627_v49  ;;  %v7632_v51 = vor.u32 %v7872_v8, %v7629_v50 }
 0x54e   : > { %5991 = vst [vmem:[#allocation1] ss:$2 sm:$0xff] %v5987_v14  ;;  %v5861_v19 = vpack.c.bf16 %v5859_v28, %v5859_v28  ;;  %v7604_v14 = vor.u32 %v7867_v15, %v7603_v21 }
 0x54f   : > { %5993 = vst [vmem:[#allocation1 + $0x1] ss:$2 sm:$0xff] %v5988_v41  ;;  %v7587_v41 = vld [vmem:[#allocation6 + $0x410] sm:$0xf] }
 0x550   : > { %5962 = vmatpush.bf16.msrb.mxu1 %v7484_v22  ;;  %5975 = vmatpush.bf16.msrb.mxu2 %v7488_v26  ;;  %v7620_v22 = vor.u32 %v7871_v44, %v7619_v34  ;;  %v7624_v26 = vor.u32 %v7870_v59, %v7621_v27 }
 0x551   : > { %6099 = vmatpush.bf16.msra.mxu3 %v7532_v12  ;;  %6112 = vmatpush.bf16.msra.mxu0 %v7536_v23  ;;  %v7868_v12 = vld [vmem:[#allocation6 + $0x444] sm:$0xf]  ;;  %v7613_v23 = vld [vmem:[#allocation6 + $0x448] sm:$0xf0] }
 0x552   : > { %v7616_v31 = vor.u32 %v7868_v12, %v7613_v23 }
 0x554   : > { %5963 = vmatpush.bf16.msrb.mxu1 %v7476_v61  ;;  %5976 = vmatpush.bf16.msrb.mxu2 %v7480_v63  ;;  %v7864_v61 = vld [vmem:[#allocation6 + $0x424] sm:$0xf]  ;;  %v7597_v63 = vld [vmem:[#allocation6 + $0x428] sm:$0xf0] }
 0x555   : > { %6100 = vmatpush.bf16.msra.mxu3 %v7524_v52  ;;  %6113 = vmatpush.bf16.msra.mxu0 %v7528_v25  ;;  %v7600_v60 = vor.u32 %v7864_v61, %v7597_v63  ;;  %v7863_v52 = vld [vmem:[#allocation6 + $0x414] sm:$0xf0]  ;;  %v7862_v25 = vld [vmem:[#allocation6 + $0x414] sm:$0xf] }
 0x556   : > { %v5994_v32 = vld.sshfl [vmem:[#allocation1] sm:$0xff pattern:$0x75316420]  ;;  %v7588_v28 = vor.u32 %v7863_v52, %v7587_v41  ;;  %v7592_v55 = vor.u32 %v7862_v25, %v7589_v43  ;;  %v6260_v52 = vperm.slane %v6257_v0, 1 }
 0x557   : > { %v5996_v58 = vpack.c.bf16 %v5994_v32, %v5994_v32  ;;  %6126 = vst [vmem:[#allocation1] ss:$2 sm:$0xff] %v6122_v2 }
 0x558   : > { %5964 = vmatpush.bf16.msrb.mxu1 %v7468_v48  ;;  %5977 = vmatpush.bf16.msrb.mxu2 %v7472_v7  ;;  %6128 = vst [vmem:[#allocation1 + $0x1] ss:$2 sm:$0xff] %v6123_v9  ;;  %v7861_v48 = vld [vmem:[#allocation6 + $0x404] sm:$0xf0]  ;;  %v7860_v7 = vld [vmem:[#allocation6 + $0x404] sm:$0xf] }
 0x559   : > { %6101 = vmatpush.bf16.msra.mxu3 %v7516_v62  ;;  %6114 = vmatpush.bf16.msra.mxu0 %v7520_v56  ;;  %v7580_v62 = vor.u32 %v7861_v48, %v7579_v45  ;;  %v7584_v56 = vor.u32 %v7860_v7, %v7581_v37 }
 0x55c   : > { %5965 = vmatpush.bf16.msrb.mxu1 %v7460_v17  ;;  %5978 = vmatpush.bf16.msrb.mxu2 %v7464_v38 }
 0x55d   : > { %6102 = vmatmul.bf16.vlgmr.msra.gmra.mxu3 %v5996_v58  ;;  %6115 = vmatmul.bf16.vlgmr.msra.gmra.mxu0 %v5996_v58 }
 0x55f   : > { %v6129_v54 = vld.sshfl [vmem:[#allocation1] sm:$0xff pattern:$0x75316420] }
 0x560   : > { %5966 = vmatpush.bf16.msrb.mxu1 %v7452_v1  ;;  %5979 = vmatpush.bf16.msrb.mxu2 %v7456_v47  ;;  %v6131_v6 = vpack.c.bf16 %v6129_v54, %v6129_v54 }
 0x563   : > { %5967 = vmatmul.bf16.vlgmr.msrb.gmra.mxu1 %v5861_v19  ;;  %5980 = vmatmul.bf16.vlgmr.msrb.gmra.mxu2 %v5861_v19 }
 0x564   : > { %6229 = vmatpush.bf16.msra.mxu1 %v7636_v3  ;;  %6242 = vmatpush.bf16.msra.mxu2 %v7640_v10 }
 0x568   : > { %6230 = vmatpush.bf16.msra.mxu1 %v7628_v33  ;;  %6243 = vmatpush.bf16.msra.mxu2 %v7632_v51 }
 0x56c   : > { %6231 = vmatpush.bf16.msra.mxu1 %v7620_v22  ;;  %6244 = vmatpush.bf16.msra.mxu2 %v7624_v26 }
 0x570   : > { %6232 = vmatpush.bf16.msra.mxu1 %v7612_v46  ;;  %6245 = vmatpush.bf16.msra.mxu2 %v7616_v31 }
 0x574   : > { %6233 = vmatpush.bf16.msra.mxu1 %v7604_v14  ;;  %6246 = vmatpush.bf16.msra.mxu2 %v7608_v57 }
 0x578   : > { %6234 = vmatpush.bf16.msra.mxu1 %v7596_v36  ;;  %6247 = vmatpush.bf16.msra.mxu2 %v7600_v60  ;;  %v6259_v36 = vperm.slane %v6257_v0, 0  ;;  %v6265_v60 = vld [vmem:[%s9560_s12] sm:$0x3] }
 0x579   : > { %v6268_v45 = vperm.slane %v6265_v60, 1 }
 0x57c   : > { %6235 = vmatpush.bf16.msra.mxu1 %v7588_v28  ;;  %6248 = vmatpush.bf16.msra.mxu2 %v7592_v55  ;;  %v6267_v28 = vperm.slane %v6265_v60, 0 }
 0x580   : > { %6236 = vmatpush.bf16.msra.mxu1 %v7580_v62  ;;  %6249 = vmatpush.bf16.msra.mxu2 %v7584_v56 }
 0x583   : > { %6237 = vmatmul.bf16.vlgmr.msra.gmra.mxu1 %v6131_v6  ;;  %6250 = vmatmul.bf16.vlgmr.msra.gmra.mxu2 %v6131_v6 }
 0x597   : > { %v5307_v16 = vpop.f32.mrf.mxu0 }
 0x59d   : > { %v5294_v29 = vpop.f32.mrf.mxu3 }
 0x59f   : > { %v5309_v18 = vpop.f32.mrf.mxu0 }
 0x5a0   : > { %v5188_v2 = vpop.f32.mrf.mxu1 }
 0x5a1   : > { %v5295_v17 = vadd.f32 %v5294_v29, %v5188_v2 }
 0x5a5   : > { %v5296_v38 = vpop.f32.mrf.mxu3 }
 0x5a6   : > { %v5201_v42 = vpop.f32.mrf.mxu2 }
 0x5a7   : > { %v5308_v53 = vadd.f32 %v5307_v16, %v5201_v42 }
 0x5a8   : > { %v5190_v20 = vpop.f32.mrf.mxu1 }
 0x5ae   : > { %v5203_v5 = vpop.f32.mrf.mxu2 }
 0x5b0   : > { %v5427_v4 = vpop.f32.mrf.mxu1 }
 0x5b1   : > { %v5444_v9 = vadd.f32 %v5427_v4, %v5295_v17 }
 0x5b3   : > { %v5575_v32 = vpop.f32.mrf.mxu0 }
 0x5b6   : > { %v5440_v40 = vpop.f32.mrf.mxu2 }
 0x5b7   : > { %v5445_v58 = vadd.f32 %v5440_v40, %v5308_v53 }
 0x5b8   : > { %v5429_v1 = vpop.f32.mrf.mxu1 }
 0x5b9   : > { %v5562_v47 = vpop.f32.mrf.mxu3  ;;  %v5580_v3 = vadd.f32 %v5575_v32, %v5445_v58 }
 0x5ba   : > { %v5579_v31 = vadd.f32 %v5562_v47, %v5444_v9 }
 0x5bb   : > { %v5577_v10 = vpop.f32.mrf.mxu0 }
 0x5be   : > { %v5442_v49 = vpop.f32.mrf.mxu2 }
 0x5c0   : > { %v5697_v13 = vpop.f32.mrf.mxu1 }
 0x5c1   : > { %v5564_v8 = vpop.f32.mrf.mxu3  ;;  %v5714_v21 = vadd.f32 %v5697_v13, %v5579_v31 }
 0x5c4   : > { %v5845_v50 = vpop.f32.mrf.mxu0 }
 0x5c6   : > { %v5710_v19 = vpop.f32.mrf.mxu2 }
 0x5c7   : > { %v5715_v15 = vadd.f32 %v5710_v19, %v5580_v3 }
 0x5c8   : > { %v5699_v33 = vpop.f32.mrf.mxu1 }
 0x5c9   : > { %v5850_v14 = vadd.f32 %v5845_v50, %v5715_v15 }
 0x5ca   : > { %v5832_v51 = vpop.f32.mrf.mxu3 }
 0x5cb   : > { %v5849_v24 = vadd.f32 %v5832_v51, %v5714_v21 }
 0x5cc   : > { %v5847_v34 = vpop.f32.mrf.mxu0 }
 0x5ce   : > { %v5712_v44 = vpop.f32.mrf.mxu2 }
 0x5d2   : > { %v5834_v59 = vpop.f32.mrf.mxu3 }
 0x5da   : > { %v6116_v27 = vpop.f32.mrf.mxu0 }
 0x5e0   : > { %v6103_v22 = vpop.f32.mrf.mxu3  ;;  %v5968_v26 = vpop.f32.mrf.mxu1 }
 0x5e1   : > { %v5985_v11 = vadd.f32 %v5968_v26, %v5849_v24 }
 0x5e2   : > { %v6118_v35 = vpop.f32.mrf.mxu0 }
 0x5e3   : > { %v6120_v61 = vadd.f32 %v6103_v22, %v5985_v11 }
 0x5e6   : > { %v5981_v30 = vpop.f32.mrf.mxu2 }
 0x5e7   : > { %v5986_v39 = vadd.f32 %v5981_v30, %v5850_v14  ;;  %v6329_v30 = vld [vmem:[%s9561_s13] sm:$0x3] }
 0x5e8   : > { %v6105_v12 = vpop.f32.mrf.mxu3  ;;  %v5970_v23 = vpop.f32.mrf.mxu1  ;;  %v6331_v21 = vperm.slane %v6329_v30, 0  ;;  %v6332_v15 = vperm.slane %v6329_v30, 1 }
 0x5e9   : > { %v6121_v41 = vadd.f32 %v6116_v27, %v5986_v39 }
 0x5ee   : > { %v5983_v46 = vpop.f32.mrf.mxu2 }
 0x600   : > { %v6238_v57 = vpop.f32.mrf.mxu1 }
 0x601   : > { %v6255_v63 = vadd.f32 %v6238_v57, %v6120_v61 }
 0x603   : > { %v6263_v43 = vmul.f32 %v6259_v36, %v6255_v63 }
 0x605   : > { %v6271_v37 = vadd.f32 %v6267_v28, %v6263_v43 }
 0x606   : > { %v6251_v25 = vpop.f32.mrf.mxu2 }
 0x607   : > { %v6256_v55 = vadd.f32 %v6251_v25, %v6121_v41  ;;  %v6273_v6 = vmax.f32 %v6271_v37, 0.0 }
 0x608   : > { %v6240_v48 = vpop.f32.mrf.mxu1 }
 0x609   : > { %v6264_v7 = vmul.f32 %v6260_v52, %v6256_v55  ;;  %v7969_v55 = vmov 0  }
 0x60a   : > { %7904 = vset.pattern.permute.xlu0 %v7969_v55 }
 0x60b   : > { %v6272_v62 = vadd.f32 %v6268_v45, %v6264_v7  ;;  %v7911_v45 = vld [vmem:[#allocation5] ss:$0 sm:$0xff] }
 0x60d   : > { %v6274_v56 = vmax.f32 %v6272_v62, 0.0 }
 0x60e   : > { %v6253_v54 = vpop.f32.mrf.mxu2 }
 0x60f   : > { %v6277_v16 = vrot.slane %v6274_v56, 4 }
 0x611   : > { %v6278_v29 = vsel %vm841_vm0, %v6273_v6, %v6277_v16  ;;  %v6279_v18 = vsel %vm841_vm0, %v6277_v16, %v6273_v6 }
 0x612   : > { %v6280_v2 = vrot.slane %v6279_v18, 4 }
 0x614   : > { %v6283_v17 = vmax.f32 %v6278_v29, %v6280_v2 }
 0x616   : > { %v6285_v38 = vrot.slane %v6283_v17, 2 }
 0x618   : > { %v6286_v42 = vsel %vm4966_vm14, %v6283_v17, %v6285_v38  ;;  %v6288_v53 = vsel %vm6287_vm15, %v6283_v17, %v6285_v38 }
 0x619   : > { %v6289_v20 = vrot.slane %v6288_v53, 2  ;;  %6290 = vst [vmem:[#allocation1] ss:$4 sm:$0xff] %v6286_v42 }
 0x61b   : > { %6294 = vst [vmem:[#allocation1 + $0x20] ss:$4 sm:$0xff] %v6289_v20 }
 0x620   : > { %v6291_v5 = vld.sshfl [vmem:[#allocation1] sm:$0xff pattern:$0x73625140]  ;;  %v6292_v4 = vld.sshfl [vmem:[#allocation1 + $0x8] sm:$0xff pattern:$0x73625140] }
 0x621   : > { %v6301_v9 = vsel %vm4966_vm14, %v6291_v5, -inf  ;;  %v6308_v32 = vsel %vm4966_vm14, %v6292_v4, -inf }
 0x622   : > { %v6295_v40 = vld.sshfl [vmem:[#allocation1 + $0x20] sm:$0xff pattern:$0x73625140]  ;;  %v6296_v58 = vld.sshfl [vmem:[#allocation1 + $0x28] sm:$0xff pattern:$0x73625140] }
 0x623   : > { %v6302_v1 = vrot.slane %v6301_v9, 4  ;;  %v6309_v47 = vrot.slane %v6308_v32, 4  ;;  %v6315_v3 = vsel %vm4966_vm14, %v6295_v40, -inf  ;;  %v6322_v10 = vsel %vm4966_vm14, %v6296_v58, -inf }
 0x624   : > { %v6316_v49 = vrot.slane %v6315_v3, 4  ;;  %v6323_v13 = vrot.slane %v6322_v10, 4 }
 0x625   : > { %v6303_v8 = vmax.f32 %v6301_v9, %v6302_v1  ;;  %v6310_v50 = vmax.f32 %v6308_v32, %v6309_v47 }
 0x626   : > { %v6317_v19 = vmax.f32 %v6315_v3, %v6316_v49  ;;  %v6324_v33 = vmax.f32 %v6322_v10, %v6323_v13 }
 0x627   : > { %v6304_v51 = vrot.slane %v6303_v8, 2  ;;  %v6311_v34 = vrot.slane %v6310_v50, 2 }
 0x628   : > { %v6318_v44 = vrot.slane %v6317_v19, 2  ;;  %v6325_v59 = vrot.slane %v6324_v33, 2 }
 0x629   : > { %v6305_v27 = vmax.f32 %v6303_v8, %v6304_v51  ;;  %v6312_v22 = vmax.f32 %v6310_v50, %v6311_v34 }
 0x62a   : > { %v6319_v26 = vmax.f32 %v6317_v19, %v6318_v44  ;;  %v6326_v35 = vmax.f32 %v6324_v33, %v6325_v59 }
 0x62b   : > { %v6306_v12 = vrot.slane %v6305_v27, 1  ;;  %v6313_v23 = vrot.slane %v6312_v22, 1 }
 0x62c   : > { %v6320_v46 = vrot.slane %v6319_v26, 1  ;;  %v6327_v31 = vrot.slane %v6326_v35, 1 }
 0x62d   : > { %v6307_v24 = vmax.f32 %v6305_v27, %v6306_v12  ;;  %v6314_v11 = vmax.f32 %v6312_v22, %v6313_v23 }
 0x62e   : > { %v6321_v14 = vmax.f32 %v6319_v26, %v6320_v46  ;;  %v6328_v57 = vmax.f32 %v6326_v35, %v6327_v31 }
 0x62f   : > { %v6335_v61 = vmul.f32 %v6331_v21, %v6307_v24  ;;  %v6336_v63 = vmul.f32 %v6332_v15, %v6314_v11 }
 0x630   : > { %v6337_v0 = vmul.f32 %v6331_v21, %v6321_v14  ;;  %v6338_v39 = vmul.f32 %v6332_v15, %v6328_v57 }
 0x632   : > { %v6343_v36 = vrot.slane %v6337_v0, 7  ;;  %v6345_v60 = vrot.slane %v6338_v39, 7 }
 0x634   : > { %v6344_v41 = vsel %vm2593_vm5, %v6343_v36, %v6335_v61  ;;  %v6346_v52 = vsel %vm2593_vm5, %v6345_v60, %v6336_v63 }
 0x635   : > { %v6349_v25 = vsel %vm4966_vm14, %v6344_v41, 0.0  ;;  %v6350_v43 = vsel %vm4966_vm14, %v6346_v52, 0.0 }
 0x636   : > { %v6351_v28 = vadd.f32 %v6350_v43, %v6349_v25 }
 0x638   : > { %6352 = vadd.xlane.f32.xlu0 %v6351_v28 }
 0x6ab   : > { %v6353_v48 = vpop.xlane.xlu0 %6352 }
 0x6ac   : > { %v6358_v7 = vadd.f32 %v7911_v45, %v6353_v48 }
 0x6ae   : > { %v7641_v37 = vmul.f32 -1.442695, %v6358_v7 }
 0x6b0   : > { %7912 = vpow2.f32 %v7641_v37 }
 0x6b6   : > { %v7913_v62 = vpop.eup %7912 }
 0x6b7   : > { %v6362_v56 = vadd.f32 1.0, %v7913_v62 }
 0x6b9   : > { %7914 = vrcp.f32 %v6362_v56  ;;  %v6374_v29 = vand.u32 2147483648, %v6362_v56  ;;  %v6372_v2 = vand.u32 2147483647, %v6362_v56  ;;  %vm6368_vm1 = vweird.f32 %v6362_v56 }
 0x6bb   : > { %v6375_v38 = vor.u32 1.1754944e-38, %v6374_v29  ;;  %vm6373_vm3 = vcmp.eq.f32.partialorder %v6372_v2, 8.507059e+37 }
 0x6bf   : > { %v7915_v54 = vpop.eup %7914 }
 0x6c0   : > { %v6364_v6 = vmul.f32 %v7915_v54, %v6362_v56  ;;  %vm6369_vm0 = vweird.f32 %v7915_v54 }
 0x6c1   : > { %vm6370_vm2 = vmor %vm6368_vm1, %vm6369_vm0 }
 0x6c2   : > { %v6365_v16 = vsub.f32 1.0, %v6364_v6 }
 0x6c4   : > { %v6366_v18 = vmul.f32 %v7915_v54, %v6365_v16 }
 0x6c6   : > { %v6367_v17 = vadd.f32 %v7915_v54, %v6366_v18 }
 0x6c8   : > { %v6371_v42 = vsel %vm6370_vm2, %v7915_v54, %v6367_v17 }
 0x6c9   : > { %v6376_v53 = vsel %vm6373_vm3, %v6375_v38, %v6371_v42 }
 0x6ca   : > { %6380 = vperm.xlu0 %7904, %v6376_v53  }
 0x73c   : > { %v6381_v20 = vpop.permute.xlu0 %6380 }
 0x73d   : > { %v6382_v5 = vrot.slane %v6381_v20, 1  ;;  %v6385_v4 = vmul.f32 %v6381_v20, %v6307_v24  ;;  %v6386_v9 = vmul.f32 %v6381_v20, %v6314_v11 }
 0x73f   : > { %v6387_v32 = vmul.f32 %v6382_v5, %v6321_v14  ;;  %v6388_v40 = vmul.f32 %v6382_v5, %v6328_v57  ;;  %v6389_v58 = vpack.c.bf16 %v6386_v9, %v6385_v4 }
 0x741   : > { %v6390_v1 = vpack.c.bf16 %v6388_v40, %v6387_v32  ;;  %v6393_v47 = vrot.slane %v6389_v58, 3 }
 0x743   : > { %v6394_v3 = vrot.slane %v6390_v1, 3  ;;  %v6398_v10 = vsel %vm6395_vm4, %v6389_v58, %v6393_v47 }
 0x744   : > { %6402 = vst [vmem:[#allocation1] ss:$4 sm:$0xff] %v6398_v10 }
 0x745   : > { %v6401_v49 = vsel %vm6395_vm4, %v6390_v1, %v6394_v3 }
 0x746   : > { %6406 = vst [vmem:[#allocation1 + $0x20] ss:$4 sm:$0xff] %v6401_v49 }
 0x74b   : > { %v6403_v13 = vld [vmem:[#allocation1] sm:$0xff] }
 0x74c   : > { %v6409_v33 = vunpack.c.l.b16 %v6403_v13  ;;  %v6410_v51 = vunpack.c.h.b16 %v6403_v13 }
 0x74d   : > { %v6407_v8 = vld [vmem:[#allocation1 + $0x20] sm:$0xff] }
 0x74e   : > { %v6411_v50 = vunpack.c.l.b16 %v6407_v8  ;;  %v6412_v19 = vunpack.c.h.b16 %v6407_v8 }
 0x750   : > { %v6413_v34 = vrot.slane %v6411_v50, 7  ;;  %v6415_v44 = vrot.slane %v6412_v19, 7 }
 0x752   : > { %v6414_v59 = vsel %vm2593_vm5, %v6413_v34, %v6409_v33  ;;  %v6416_v27 = vsel %vm2593_vm5, %v6415_v44, %v6410_v51 }
 0x753   : > { %v6417_v22 = vpack.c.b16 %v6416_v27, %v6414_v59 }
 0x755   : > { %v6418_v26 = vrot.slane %v6417_v22, 3 }
 0x757   : > { %v6421_v35 = vsel %vm6395_vm4, %v6417_v22, %v6418_v26 }
 0x758   : > { %6423 = vst [vmem:[%s511_s14] sm:$0x3] %v6421_v35 }
 0x759 PF: > { %s28_s20 = sadd.s32 1, %s7962_s20  }
 0x75a   : > { %p25_p7 = scmp.ge.s32.totalorder %s28_s20, 4  }
 0x75c   :  { %27 = sbr.rel (!%p25_p7) target bundleno = 4 (0x4), region = 156 }
 0x761   :  { %6443 = vsyncpa [#allocation7], 1 }
 0x762   :  { %6445 = vsyncpa [#allocation7 + $0x1], 1 }

</bundles_post_ra>
